<compile_context>
chip_gen: v7x
topology: tpu7x:2x2x1
jax: 0.10.0
libtpu: 0.0.40
codegen_flags: <defaults>
</compile_context>

<pallas_src>
import numpy as np
import jax
import jax.numpy as jnp
from jax.experimental import pallas as pl
from jax.experimental.pallas import tpu as pltpu


IN_CH, C1, C2, CB, OUT_CH = 4, 8, 16, 32, 3
H = W = 16                   # spatial size (powers of two, divisible by 4)
PAD = 128                    # lane margin each side of the staging scratch
SCRATCH_ROWS = CB + C2       # 48 rows: enough for the merged dec1 concat


# ----------------------------------------------------------------------------
# Fused U-Net kernel: one grid step == B_TILE lane-batched images, all VMEM.
# ----------------------------------------------------------------------------
def _unet_kernel(x_ref,
                 we1_ref, be1_ref, we2_ref, be2_ref, wbo_ref, bbo_ref,
                 wd1_ref, bd1_ref, wd2_ref, bd2_ref, wh_ref, bh_ref,
                 p1_ref, p2_ref, u1_ref, u2_ref,
                 o_ref, pad_ref):
    f32 = jnp.float32
    b_tile, in_ch, s_img = x_ref.shape
    w0 = W
    n0 = b_tile * s_img            # lanes at full resolution
    n1 = n0 // 4                   # after pool1
    n2 = n0 // 16                  # after pool2

    # Zero the staging scratch ONCE per grid step.  After this every read
    # (seam-masked taps, pool tails, left/right margins) sees either live
    # activations or finite zeros -- the per-stage zero fills are gone.
    pad_ref[...] = jnp.zeros(pad_ref.shape, f32)

    # ---- per-resolution edge masks, hoisted (built once, reused) -----------
    def edge_masks(si, w):
        s = b_tile * si
        lane = jax.lax.broadcasted_iota(jnp.int32, (1, s), 1)
        col = jnp.bitwise_and(lane, w - 1)        # w is a power of two
        q = jnp.bitwise_and(lane, si - 1)         # index within one image
        ml = (col >= 1).astype(f32)               # tap reads column x-1
        mr = (col <= w - 2).astype(f32)           # tap reads column x+1
        mt = (q >= w).astype(f32)                 # tap reads row y-1 (seam!)
        mb = (q < si - w).astype(f32)             # tap reads row y+1 (seam!)
        row_m, col_m = [mt, None, mb], [ml, None, mr]
        out = {}
        for ty in range(3):
            for tx in range(3):
                m = None
                for f in (row_m[ty], col_m[tx]):
                    if f is not None:
                        m = f if m is None else m * f
                out[(ty, tx)] = m                 # (1, s) or None (center)
        return out

    masks0 = edge_masks(s_img, w0)                # 16x16
    masks1 = edge_masks(s_img // 4, w0 // 2)      # 8x8
    masks2 = edge_masks(s_img // 16, w0 // 4)     # 4x4

    # ---- staging helpers ----------------------------------------------------
    def stage(parts):
        # Write parts into consecutive channel rows of the padded scratch.
        # Multi-part staging materializes the decoder channel-concat for free.
        row = 0
        for p in parts:
            ci, sp = p.shape
            pad_ref[row:row + ci, PAD:PAD + sp] = p
            row += ci
        return row

    def window(cin, s, off):
        return pad_ref[0:cin, PAD + off:PAD + off + s]

    # ---- fused ops ----------------------------------------------------------
    def conv3x3(cin, s, w, w_ref, b_ref, masks):
        # 'same' 3x3 conv + bias + ReLU on pre-staged (cin, s) data:
        # 9 accumulated MXU matmuls on shifted windows, seam-masked per tap.
        # Accumulator initialized with the mask-free center tap + bias.
        acc = jnp.dot(w_ref[4], window(cin, s, 0),
                      preferred_element_type=f32) + b_ref[...]
        for ty in range(3):
            for tx in range(3):
                if ty == 1 and tx == 1:
                    continue
                win = window(cin, s, (ty - 1) * w + (tx - 1))
                m = masks[(ty, tx)]
                if m is not None:
                    win = win * m
                acc = acc + jnp.dot(w_ref[ty * 3 + tx], win,
                                    preferred_element_type=f32)
        return jnp.maximum(acc, 0.0)

    def maxpool2x2(cin, s, w, sel_ref):
        # elementwise max of 4 shifted copies, then 0/1 block-diag selection
        # (selected positions never straddle an image seam).
        m = jnp.maximum(jnp.maximum(window(cin, s, 0), window(cin, s, 1)),
                        jnp.maximum(window(cin, s, w), window(cin, s, w + 1)))
        return jnp.dot(m, sel_ref[...], preferred_element_type=f32)

    # ---- encoder (skips stay live as values) --------------------------------
    for i in range(b_tile):                       # lane-batch the images
        pad_ref[0:in_ch, PAD + i * s_img:PAD + (i + 1) * s_img] = x_ref[i]
    s1 = conv3x3(in_ch, n0, w0, we1_ref, be1_ref, masks0)            # (8,  n0)
    stage([s1])
    p1 = maxpool2x2(C1, n0, w0, p1_ref)                              # (8,  n1)
    stage([p1])
    s2 = conv3x3(C1, n1, w0 // 2, we2_ref, be2_ref, masks1)          # (16, n1)
    stage([s2])
    p2 = maxpool2x2(C2, n1, w0 // 2, p2_ref)                         # (16, n2)

    # ---- bottleneck ----------------------------------------------------------
    stage([p2])
    bot = conv3x3(C2, n2, w0 // 4, wbo_ref, bbo_ref, masks2)         # (32, n2)

    # ---- decoder (concat materialized in scratch -> single merged conv) -----
    up1 = jnp.dot(bot, u1_ref[...], preferred_element_type=f32)      # (32, n1)
    cin_d1 = stage([up1, s2])                                        # 48 rows
    d1 = conv3x3(cin_d1, n1, w0 // 2, wd1_ref, bd1_ref, masks1)      # (16, n1)
    up2 = jnp.dot(d1, u2_ref[...], preferred_element_type=f32)       # (16, n0)
    cin_d2 = stage([up2, s1])                                        # 24 rows
    d2 = conv3x3(cin_d2, n0, w0, wd2_ref, bd2_ref, masks0)           # (8,  n0)

    # ---- 1x1 head: lane-dense (C_out, n0), written back per image (NCHW) ----
    head = jnp.dot(wh_ref[...], d2, preferred_element_type=f32) + bh_ref[...]
    for i in range(b_tile):
        o_ref[i] = head[:, i * s_img:(i + 1) * s_img]


def _const_spec(arr):
    zeros = (0,) * arr.ndim
    return pl.BlockSpec(arr.shape, lambda g: zeros)


def unet_pallas(kp, x, b_tile):
    B, c_in, s_img = x.shape
    assert B % b_tile == 0, (B, b_tile)
    assert (W & (W - 1)) == 0 and (H & (H - 1)) == 0 and W % 4 == 0 and H % 4 == 0
    consts = (kp["we1"], kp["be1"], kp["we2"], kp["be2"], kp["wbo"], kp["bbo"],
              kp["wd1"], kp["bd1"], kp["wd2"], kp["bd2"], kp["wh"], kp["bh"],
              kp["P1"], kp["P2"], kp["U1"], kp["U2"])
    in_specs = [pl.BlockSpec((b_tile, c_in, s_img), lambda g: (g, 0, 0))]
    in_specs += [_const_spec(a) for a in consts]
    return pl.pallas_call(
        _unet_kernel,
        out_shape=jax.ShapeDtypeStruct((B, OUT_CH, s_img), jnp.float32),
        grid=(B // b_tile,),
        in_specs=in_specs,
        out_specs=pl.BlockSpec((b_tile, OUT_CH, s_img), lambda g: (g, 0, 0)),
        scratch_shapes=[pltpu.VMEM(
            (SCRATCH_ROWS, 2 * PAD + b_tile * s_img), jnp.float32)],
        compiler_params=pltpu.CompilerParams(
            dimension_semantics=("parallel",)),
    )(x, *consts)


def unet_predictor_forward(kp, img):
    # img: (B, IN_CH, H, W) NCHW.  Free reshape only -- no padding, no
    # transposes: the kernel works on (C, B_TILE*H*W) slabs and emits NCHW.
    B, c, h, w = img.shape
    assert (c, h, w) == (IN_CH, H, W), img.shape
    b_tile = kp["P1"].shape[0] // (H * W)          # static under jit
    x = img.reshape(B, IN_CH, H * W)
    out = unet_pallas(kp, x, b_tile)
    return out.reshape(B, OUT_CH, H, W)


# ----------------------------------------------------------------------------
# Parameters (deterministic init, PyTorch-style layouts) + kernel-side prep
# ----------------------------------------------------------------------------
def init_params(key):
    def conv_w(k, kh, kw, cin, cout):
        scale = 1.0 / np.sqrt(kh * kw * cin)
        return jax.random.normal(k, (kh, kw, cin, cout), jnp.float32) * scale

    keys = jax.random.split(key, 12)
    p = {}
    p["enc1_w"] = conv_w(keys[0], 3, 3, IN_CH, C1)
    p["enc1_b"] = 0.1 * jax.random.normal(keys[6], (C1,), jnp.float32)
    p["enc2_w"] = conv_w(keys[1], 3, 3, C1, C2)
    p["enc2_b"] = 0.1 * jax.random.normal(keys[7], (C2,), jnp.float32)
    p["bot_w"] = conv_w(keys[2], 3, 3, C2, CB)
    p["bot_b"] = 0.1 * jax.random.normal(keys[8], (CB,), jnp.float32)
    p["dec1_w"] = conv_w(keys[3], 3, 3, CB + C2, C2)
    p["dec1_b"] = 0.1 * jax.random.normal(keys[9], (C2,), jnp.float32)
    p["dec2_w"] = conv_w(keys[4], 3, 3, C2 + C1, C1)
    p["dec2_b"] = 0.1 * jax.random.normal(keys[10], (C1,), jnp.float32)
    p["head_w"] = conv_w(keys[5], 1, 1, C1, OUT_CH)[0, 0]     # (C1, OUT_CH)
    p["head_b"] = 0.1 * jax.random.normal(keys[11], (OUT_CH,), jnp.float32)
    return p


def _tap_major_t(w):
    # (3, 3, Cin, Cout) -> (9, Cout, Cin): per-tap transposed weights.
    return jnp.transpose(w, (0, 1, 3, 2)).reshape(9, w.shape[3], w.shape[2])


def _pool_matrix(h, w):
    s_in, wo = h * w, w // 2
    s_out = (h // 2) * wo
    m = np.zeros((s_in, s_out), np.float32)
    for j in range(s_out):
        y, x = divmod(j, wo)
        m[2 * y * w + 2 * x, j] = 1.0
    return m


def _upsample_matrix(h, w):
    s_in, wo = h * w, 2 * w
    s_out = 4 * h * w
    m = np.zeros((s_in, s_out), np.float32)
    for j in range(s_out):
        y, x = divmod(j, wo)
        m[(y // 2) * w + (x // 2), j] = 1.0
    return m


def _block_diag(m, b_tile):
    # Block-diagonal over the lane-batched images.
    return jnp.asarray(np.kron(np.eye(b_tile, dtype=np.float32), m))


def prepare_kernel_params(p, b_tile):
    kp = {}
    kp["we1"] = _tap_major_t(p["enc1_w"])          # (9, 8, 4)  -- no cin pad
    kp["be1"] = p["enc1_b"].reshape(-1, 1)
    kp["we2"] = _tap_major_t(p["enc2_w"])          # (9, 16, 8)
    kp["be2"] = p["enc2_b"].reshape(-1, 1)
    kp["wbo"] = _tap_major_t(p["bot_w"])           # (9, 32, 16)
    kp["bbo"] = p["bot_b"].reshape(-1, 1)
    kp["wd1"] = _tap_major_t(p["dec1_w"])          # (9, 16, 48) -- unsplit
    kp["bd1"] = p["dec1_b"].reshape(-1, 1)
    kp["wd2"] = _tap_major_t(p["dec2_w"])          # (9, 8, 24)  -- unsplit
    kp["bd2"] = p["dec2_b"].reshape(-1, 1)
    kp["wh"] = p["head_w"].T                       # (3, 8)
    kp["bh"] = p["head_b"].reshape(-1, 1)          # (3, 1)
    kp["P1"] = _block_diag(_pool_matrix(H, W), b_tile)
    kp["P2"] = _block_diag(_pool_matrix(H // 2, W // 2), b_tile)
    kp["U1"] = _block_diag(_upsample_matrix(H // 4, W // 4), b_tile)
    kp["U2"] = _block_diag(_upsample_matrix(H // 2, W // 2), b_tile)
    return kp


# ----------------------------------------------------------------------------
# Pure-JAX reference (defines the module semantics; used for verification)
# ----------------------------------------------------------------------------
def reference_forward(p, img):
    x = jnp.transpose(img, (0, 2, 3, 1))                       # NCHW -> NHWC

    def conv3x3(x, w, b, act=True):
        b_, hh, ww, cin = x.shape
        xp = jnp.pad(x, ((0, 0), (1, 1), (1, 1), (0, 0)))
        cols = [xp[:, dy:dy + hh, dx:dx + ww, :]
                for dy in range(3) for dx in range(3)]
        patches = jnp.concatenate(cols, axis=-1).reshape(b_, hh * ww, 9 * cin)
        out = jnp.einsum("bmk,kn->bmn", patches, w.reshape(9 * cin, -1)) + b
        out = out.reshape(b_, hh, ww, -1)
        return jnp.maximum(out, 0.0) if act else out

    def pool(x):
        b_, hh, ww, c = x.shape
        return x.reshape(b_, hh // 2, 2, ww // 2, 2, c).max(axis=(2, 4))

    def up(x):
        return jnp.repeat(jnp.repeat(x, 2, axis=1), 2, axis=2)

    s1 = conv3x3(x, p["enc1_w"], p["enc1_b"])
    s2 = conv3x3(pool(s1), p["enc2_w"], p["enc2_b"])
    bot = conv3x3(pool(s2), p["bot_w"], p["bot_b"])
    d1 = conv3x3(jnp.concatenate([up(bot), s2], axis=-1),
                 p["dec1_w"], p["dec1_b"])
    d2 = conv3x3(jnp.concatenate([up(d1), s1], axis=-1),
                 p["dec2_w"], p["dec2_b"])
    out = jnp.einsum("bhwc,cn->bhwn", d2, p["head_w"]) + p["head_b"]
    return jnp.transpose(out, (0, 3, 1, 2))                    # NHWC -> NCHW


# TODO(synk): the original module builds its sub-modules/hooks from a config
# registry (BUILDER); a representative conv U-Net with identity hooks is
# materialized here instead.

if __name__ == "__main__":
    key = jax.random.PRNGKey(0)
    pkey, xkey = jax.random.split(key)
    params = init_params(pkey)

    B, B_TILE = 8, 4        # 4 images lane-batched per step; grid=(2,) for v7x
    kparams = prepare_kernel_params(params, B_TILE)
    img = jax.random.normal(xkey, (B, IN_CH, H, W), jnp.float32)

    fwd = jax.jit(unet_predictor_forward)
    out = jax.block_until_ready(fwd(kparams, img))
    assert out.shape == (B, OUT_CH, H, W), out.shape

    ref = jax.block_until_ready(jax.jit(reference_forward)(params, img))
    err = float(jnp.max(jnp.abs(out - ref)))
    assert jnp.allclose(out, ref, atol=2e-3, rtol=2e-3), f"max|diff|={err}"

    print("KERNEL_OK")
</pallas_src>

<mosaic_0001>
module attributes {stable_mosaic.version = 11 : i64} {
  func.func @_unet_kernel(%arg0: i32, %arg1: memref<4x4x256xf32, #tpu.memory_space<vmem>>, %arg2: memref<9x8x4xf32, #tpu.memory_space<vmem>>, %arg3: memref<8x1xf32, #tpu.memory_space<vmem>>, %arg4: memref<9x16x8xf32, #tpu.memory_space<vmem>>, %arg5: memref<16x1xf32, #tpu.memory_space<vmem>>, %arg6: memref<9x32x16xf32, #tpu.memory_space<vmem>>, %arg7: memref<32x1xf32, #tpu.memory_space<vmem>>, %arg8: memref<9x16x48xf32, #tpu.memory_space<vmem>>, %arg9: memref<16x1xf32, #tpu.memory_space<vmem>>, %arg10: memref<9x8x24xf32, #tpu.memory_space<vmem>>, %arg11: memref<8x1xf32, #tpu.memory_space<vmem>>, %arg12: memref<3x8xf32, #tpu.memory_space<vmem>>, %arg13: memref<3x1xf32, #tpu.memory_space<vmem>>, %arg14: memref<1024x256xf32, #tpu.memory_space<vmem>>, %arg15: memref<256x64xf32, #tpu.memory_space<vmem>>, %arg16: memref<64x256xf32, #tpu.memory_space<vmem>>, %arg17: memref<256x1024xf32, #tpu.memory_space<vmem>>, %arg18: memref<4x3x256xf32, #tpu.memory_space<vmem>>, %arg19: memref<48x1280xf32, #tpu.memory_space<vmem>>) attributes {dimension_semantics = [#tpu.dimension_semantics<parallel>], iteration_bounds = array<i64: 2>, scalar_prefetch = 0 : i64, scratch_operands = 1 : i64, tpu.core_type = #tpu.core_type<tc>, window_params = [{transform_indices = @transform_0, window_bounds = array<i64: 4, 4, 256>}, {pipeline_mode = #tpu.pipeline_mode<synchronous>, transform_indices = @transform_1, window_bounds = array<i64: 9, 8, 4>}, {pipeline_mode = #tpu.pipeline_mode<synchronous>, transform_indices = @transform_2, window_bounds = array<i64: 8, 1>}, {pipeline_mode = #tpu.pipeline_mode<synchronous>, transform_indices = @transform_3, window_bounds = array<i64: 9, 16, 8>}, {pipeline_mode = #tpu.pipeline_mode<synchronous>, transform_indices = @transform_4, window_bounds = array<i64: 16, 1>}, {pipeline_mode = #tpu.pipeline_mode<synchronous>, transform_indices = @transform_5, window_bounds = array<i64: 9, 32, 16>}, {pipeline_mode = #tpu.pipeline_mode<synchronous>, transform_indices = @transform_6, window_bounds = array<i64: 32, 1>}, {pipeline_mode = #tpu.pipeline_mode<synchronous>, transform_indices = @transform_7, window_bounds = array<i64: 9, 16, 48>}, {pipeline_mode = #tpu.pipeline_mode<synchronous>, transform_indices = @transform_8, window_bounds = array<i64: 16, 1>}, {pipeline_mode = #tpu.pipeline_mode<synchronous>, transform_indices = @transform_9, window_bounds = array<i64: 9, 8, 24>}, {pipeline_mode = #tpu.pipeline_mode<synchronous>, transform_indices = @transform_10, window_bounds = array<i64: 8, 1>}, {pipeline_mode = #tpu.pipeline_mode<synchronous>, transform_indices = @transform_11, window_bounds = array<i64: 3, 8>}, {pipeline_mode = #tpu.pipeline_mode<synchronous>, transform_indices = @transform_12, window_bounds = array<i64: 3, 1>}, {pipeline_mode = #tpu.pipeline_mode<synchronous>, transform_indices = @transform_13, window_bounds = array<i64: 1024, 256>}, {pipeline_mode = #tpu.pipeline_mode<synchronous>, transform_indices = @transform_14, window_bounds = array<i64: 256, 64>}, {pipeline_mode = #tpu.pipeline_mode<synchronous>, transform_indices = @transform_15, window_bounds = array<i64: 64, 256>}, {pipeline_mode = #tpu.pipeline_mode<synchronous>, transform_indices = @transform_16, window_bounds = array<i64: 256, 1024>}, {transform_indices = @transform_17, window_bounds = array<i64: 4, 3, 256>}]} {
    %cst = arith.constant 0.000000e+00 : f32
    %0 = vector.broadcast %cst : f32 to vector<48x1280xf32>
    %c0 = arith.constant 0 : index
    %c0_0 = arith.constant 0 : index
    %1 = vector.load %arg19[%c0, %c0_0] : memref<48x1280xf32, #tpu.memory_space<vmem>>, vector<48x1280xf32>
    tpu.vector_store %arg19[%c0, %c0_0], %0 {strides = array<i32>} : memref<48x1280xf32, #tpu.memory_space<vmem>>, vector<48x1280xf32>,
    %2 = tpu.iota {dimensions = array<i32: 1>} : vector<1x1024xi32>
    %c15_i32 = arith.constant 15 : i32
    %3 = vector.broadcast %c15_i32 : i32 to vector<1x1024xi32>
    %4 = arith.andi %2, %3 : vector<1x1024xi32>
    %c255_i32 = arith.constant 255 : i32
    %5 = vector.broadcast %c255_i32 : i32 to vector<1x1024xi32>
    %6 = arith.andi %2, %5 : vector<1x1024xi32>
    %c1_i32 = arith.constant 1 : i32
    %7 = vector.broadcast %c1_i32 : i32 to vector<1x1024xi32>
    %8 = arith.cmpi sge, %4, %7 : vector<1x1024xi32>
    %9 = arith.extui %8 : vector<1x1024xi1> to vector<1x1024xi32>
    %10 = arith.sitofp %9 : vector<1x1024xi32> to vector<1x1024xf32>
    %c14_i32 = arith.constant 14 : i32
    %11 = vector.broadcast %c14_i32 : i32 to vector<1x1024xi32>
    %12 = arith.cmpi sle, %4, %11 : vector<1x1024xi32>
    %13 = arith.extui %12 : vector<1x1024xi1> to vector<1x1024xi32>
    %14 = arith.sitofp %13 : vector<1x1024xi32> to vector<1x1024xf32>
    %c16_i32 = arith.constant 16 : i32
    %15 = vector.broadcast %c16_i32 : i32 to vector<1x1024xi32>
    %16 = arith.cmpi sge, %6, %15 : vector<1x1024xi32>
    %17 = arith.extui %16 : vector<1x1024xi1> to vector<1x1024xi32>
    %18 = arith.sitofp %17 : vector<1x1024xi32> to vector<1x1024xf32>
    %c240_i32 = arith.constant 240 : i32
    %19 = vector.broadcast %c240_i32 : i32 to vector<1x1024xi32>
    %20 = arith.cmpi slt, %6, %19 : vector<1x1024xi32>
    %21 = arith.extui %20 : vector<1x1024xi1> to vector<1x1024xi32>
    %22 = arith.sitofp %21 : vector<1x1024xi32> to vector<1x1024xf32>
    %23 = arith.mulf %18, %10 : vector<1x1024xf32>
    %24 = arith.mulf %18, %14 : vector<1x1024xf32>
    %25 = arith.mulf %22, %10 : vector<1x1024xf32>
    %26 = arith.mulf %22, %14 : vector<1x1024xf32>
    %27 = tpu.iota {dimensions = array<i32: 1>} : vector<1x256xi32>
    %c7_i32 = arith.constant 7 : i32
    %28 = vector.broadcast %c7_i32 : i32 to vector<1x256xi32>
    %29 = arith.andi %27, %28 : vector<1x256xi32>
    %c63_i32 = arith.constant 63 : i32
    %30 = vector.broadcast %c63_i32 : i32 to vector<1x256xi32>
    %31 = arith.andi %27, %30 : vector<1x256xi32>
    %c1_i32_1 = arith.constant 1 : i32
    %32 = vector.broadcast %c1_i32_1 : i32 to vector<1x256xi32>
    %33 = arith.cmpi sge, %29, %32 : vector<1x256xi32>
    %34 = arith.extui %33 : vector<1x256xi1> to vector<1x256xi32>
    %35 = arith.sitofp %34 : vector<1x256xi32> to vector<1x256xf32>
    %c6_i32 = arith.constant 6 : i32
    %36 = vector.broadcast %c6_i32 : i32 to vector<1x256xi32>
    %37 = arith.cmpi sle, %29, %36 : vector<1x256xi32>
    %38 = arith.extui %37 : vector<1x256xi1> to vector<1x256xi32>
    %39 = arith.sitofp %38 : vector<1x256xi32> to vector<1x256xf32>
    %c8_i32 = arith.constant 8 : i32
    %40 = vector.broadcast %c8_i32 : i32 to vector<1x256xi32>
    %41 = arith.cmpi sge, %31, %40 : vector<1x256xi32>
    %42 = arith.extui %41 : vector<1x256xi1> to vector<1x256xi32>
    %43 = arith.sitofp %42 : vector<1x256xi32> to vector<1x256xf32>
    %c56_i32 = arith.constant 56 : i32
    %44 = vector.broadcast %c56_i32 : i32 to vector<1x256xi32>
    %45 = arith.cmpi slt, %31, %44 : vector<1x256xi32>
    %46 = arith.extui %45 : vector<1x256xi1> to vector<1x256xi32>
    %47 = arith.sitofp %46 : vector<1x256xi32> to vector<1x256xf32>
    %48 = arith.mulf %43, %35 : vector<1x256xf32>
    %49 = arith.mulf %43, %39 : vector<1x256xf32>
    %50 = arith.mulf %47, %35 : vector<1x256xf32>
    %51 = arith.mulf %47, %39 : vector<1x256xf32>
    %52 = tpu.iota {dimensions = array<i32: 1>} : vector<1x64xi32>
    %c3_i32 = arith.constant 3 : i32
    %53 = vector.broadcast %c3_i32 : i32 to vector<1x64xi32>
    %54 = arith.andi %52, %53 : vector<1x64xi32>
    %c15_i32_2 = arith.constant 15 : i32
    %55 = vector.broadcast %c15_i32_2 : i32 to vector<1x64xi32>
    %56 = arith.andi %52, %55 : vector<1x64xi32>
    %c1_i32_3 = arith.constant 1 : i32
    %57 = vector.broadcast %c1_i32_3 : i32 to vector<1x64xi32>
    %58 = arith.cmpi sge, %54, %57 : vector<1x64xi32>
    %59 = arith.extui %58 : vector<1x64xi1> to vector<1x64xi32>
    %60 = arith.sitofp %59 : vector<1x64xi32> to vector<1x64xf32>
    %c2_i32 = arith.constant 2 : i32
    %61 = vector.broadcast %c2_i32 : i32 to vector<1x64xi32>
    %62 = arith.cmpi sle, %54, %61 : vector<1x64xi32>
    %63 = arith.extui %62 : vector<1x64xi1> to vector<1x64xi32>
    %64 = arith.sitofp %63 : vector<1x64xi32> to vector<1x64xf32>
    %c4_i32 = arith.constant 4 : i32
    %65 = vector.broadcast %c4_i32 : i32 to vector<1x64xi32>
    %66 = arith.cmpi sge, %56, %65 : vector<1x64xi32>
    %67 = arith.extui %66 : vector<1x64xi1> to vector<1x64xi32>
    %68 = arith.sitofp %67 : vector<1x64xi32> to vector<1x64xf32>
    %c12_i32 = arith.constant 12 : i32
    %69 = vector.broadcast %c12_i32 : i32 to vector<1x64xi32>
    %70 = arith.cmpi slt, %56, %69 : vector<1x64xi32>
    %71 = arith.extui %70 : vector<1x64xi1> to vector<1x64xi32>
    %72 = arith.sitofp %71 : vector<1x64xi32> to vector<1x64xf32>
    %73 = arith.mulf %68, %60 : vector<1x64xf32>
    %74 = arith.mulf %68, %64 : vector<1x64xf32>
    %75 = arith.mulf %72, %60 : vector<1x64xf32>
    %76 = arith.mulf %72, %64 : vector<1x64xf32>
    %c0_4 = arith.constant 0 : index
    %c0_5 = arith.constant 0 : index
    %c0_6 = arith.constant 0 : index
    %77 = vector.load %arg1[%c0_4, %c0_5, %c0_6] : memref<4x4x256xf32, #tpu.memory_space<vmem>>, vector<1x4x256xf32>
    %78 = vector.shape_cast %77 : vector<1x4x256xf32> to vector<4x256xf32>
    %c0_7 = arith.constant 0 : index
    %c128 = arith.constant 128 : index
    %79 = vector.load %arg19[%c0_7, %c128] : memref<48x1280xf32, #tpu.memory_space<vmem>>, vector<4x256xf32>
    tpu.vector_store %arg19[%c0_7, %c128], %78 {strides = array<i32>} : memref<48x1280xf32, #tpu.memory_space<vmem>>, vector<4x256xf32>,
    %c1 = arith.constant 1 : index
    %c0_8 = arith.constant 0 : index
    %c0_9 = arith.constant 0 : index
    %80 = vector.load %arg1[%c1, %c0_8, %c0_9] : memref<4x4x256xf32, #tpu.memory_space<vmem>>, vector<1x4x256xf32>
    %81 = vector.shape_cast %80 : vector<1x4x256xf32> to vector<4x256xf32>
    %c0_10 = arith.constant 0 : index
    %c384 = arith.constant 384 : index
    %82 = vector.load %arg19[%c0_10, %c384] : memref<48x1280xf32, #tpu.memory_space<vmem>>, vector<4x256xf32>
    tpu.vector_store %arg19[%c0_10, %c384], %81 {strides = array<i32>} : memref<48x1280xf32, #tpu.memory_space<vmem>>, vector<4x256xf32>,
    %c2 = arith.constant 2 : index
    %c0_11 = arith.constant 0 : index
    %c0_12 = arith.constant 0 : index
    %83 = vector.load %arg1[%c2, %c0_11, %c0_12] : memref<4x4x256xf32, #tpu.memory_space<vmem>>, vector<1x4x256xf32>
    %84 = vector.shape_cast %83 : vector<1x4x256xf32> to vector<4x256xf32>
    %c0_13 = arith.constant 0 : index
    %c640 = arith.constant 640 : index
    %85 = vector.load %arg19[%c0_13, %c640] : memref<48x1280xf32, #tpu.memory_space<vmem>>, vector<4x256xf32>
    tpu.vector_store %arg19[%c0_13, %c640], %84 {strides = array<i32>} : memref<48x1280xf32, #tpu.memory_space<vmem>>, vector<4x256xf32>,
    %c3 = arith.constant 3 : index
    %c0_14 = arith.constant 0 : index
    %c0_15 = arith.constant 0 : index
    %86 = vector.load %arg1[%c3, %c0_14, %c0_15] : memref<4x4x256xf32, #tpu.memory_space<vmem>>, vector<1x4x256xf32>
    %87 = vector.shape_cast %86 : vector<1x4x256xf32> to vector<4x256xf32>
    %c0_16 = arith.constant 0 : index
    %c896 = arith.constant 896 : index
    %88 = vector.load %arg19[%c0_16, %c896] : memref<48x1280xf32, #tpu.memory_space<vmem>>, vector<4x256xf32>
    tpu.vector_store %arg19[%c0_16, %c896], %87 {strides = array<i32>} : memref<48x1280xf32, #tpu.memory_space<vmem>>, vector<4x256xf32>,
    %c4 = arith.constant 4 : index
    %c0_17 = arith.constant 0 : index
    %c0_18 = arith.constant 0 : index
    %89 = vector.load %arg2[%c4, %c0_17, %c0_18] : memref<9x8x4xf32, #tpu.memory_space<vmem>>, vector<1x8x4xf32>
    %90 = vector.shape_cast %89 : vector<1x8x4xf32> to vector<8x4xf32>
    %c0_19 = arith.constant 0 : index
    %c128_20 = arith.constant 128 : index
    %91 = vector.load %arg19[%c0_19, %c128_20] : memref<48x1280xf32, #tpu.memory_space<vmem>>, vector<4x1024xf32>
    %cst_21 = arith.constant dense<0.000000e+00> : vector<8x1024xf32>
    %92 = tpu.matmul %90, %91, %cst_21 {dimension_numbers = #tpu.dot_dimension_numbers<[1], [0], [0], [1], [0, 0, 1, 1], [], []>} : vector<8x4xf32>, vector<4x1024xf32>, vector<8x1024xf32> -> vector<8x1024xf32>
    %c0_22 = arith.constant 0 : index
    %c0_23 = arith.constant 0 : index
    %93 = vector.load %arg3[%c0_22, %c0_23] : memref<8x1xf32, #tpu.memory_space<vmem>>, vector<8x1xf32>
    %94 = vector.broadcast %93 : vector<8x1xf32> to vector<8x1024xf32>
    %95 = arith.addf %92, %94 : vector<8x1024xf32>
    %c0_24 = arith.constant 0 : index
    %c111 = arith.constant 111 : index
    %96 = vector.load %arg19[%c0_24, %c111] : memref<48x1280xf32, #tpu.memory_space<vmem>>, vector<4x1024xf32>
    %97 = vector.broadcast %23 : vector<1x1024xf32> to vector<4x1024xf32>
    %98 = arith.mulf %96, %97 : vector<4x1024xf32>
    %c0_25 = arith.constant 0 : index
    %c0_26 = arith.constant 0 : index
    %c0_27 = arith.constant 0 : index
    %99 = vector.load %arg2[%c0_25, %c0_26, %c0_27] : memref<9x8x4xf32, #tpu.memory_space<vmem>>, vector<1x8x4xf32>
    %100 = vector.shape_cast %99 : vector<1x8x4xf32> to vector<8x4xf32>
    %cst_28 = arith.constant dense<0.000000e+00> : vector<8x1024xf32>
    %101 = tpu.matmul %100, %98, %cst_28 {dimension_numbers = #tpu.dot_dimension_numbers<[1], [0], [0], [1], [0, 0, 1, 1], [], []>} : vector<8x4xf32>, vector<4x1024xf32>, vector<8x1024xf32> -> vector<8x1024xf32>
    %102 = arith.addf %95, %101 : vector<8x1024xf32>
    %c0_29 = arith.constant 0 : index
    %c112 = arith.constant 112 : index
    %103 = vector.load %arg19[%c0_29, %c112] : memref<48x1280xf32, #tpu.memory_space<vmem>>, vector<4x1024xf32>
    %104 = vector.broadcast %18 : vector<1x1024xf32> to vector<4x1024xf32>
    %105 = arith.mulf %103, %104 : vector<4x1024xf32>
    %c1_30 = arith.constant 1 : index
    %c0_31 = arith.constant 0 : index
    %c0_32 = arith.constant 0 : index
    %106 = vector.load %arg2[%c1_30, %c0_31, %c0_32] : memref<9x8x4xf32, #tpu.memory_space<vmem>>, vector<1x8x4xf32>
    %107 = vector.shape_cast %106 : vector<1x8x4xf32> to vector<8x4xf32>
    %cst_33 = arith.constant dense<0.000000e+00> : vector<8x1024xf32>
    %108 = tpu.matmul %107, %105, %cst_33 {dimension_numbers = #tpu.dot_dimension_numbers<[1], [0], [0], [1], [0, 0, 1, 1], [], []>} : vector<8x4xf32>, vector<4x1024xf32>, vector<8x1024xf32> -> vector<8x1024xf32>
    %109 = arith.addf %102, %108 : vector<8x1024xf32>
    %c0_34 = arith.constant 0 : index
    %c113 = arith.constant 113 : index
    %110 = vector.load %arg19[%c0_34, %c113] : memref<48x1280xf32, #tpu.memory_space<vmem>>, vector<4x1024xf32>
    %111 = vector.broadcast %24 : vector<1x1024xf32> to vector<4x1024xf32>
    %112 = arith.mulf %110, %111 : vector<4x1024xf32>
    %c2_35 = arith.constant 2 : index
    %c0_36 = arith.constant 0 : index
    %c0_37 = arith.constant 0 : index
    %113 = vector.load %arg2[%c2_35, %c0_36, %c0_37] : memref<9x8x4xf32, #tpu.memory_space<vmem>>, vector<1x8x4xf32>
    %114 = vector.shape_cast %113 : vector<1x8x4xf32> to vector<8x4xf32>
    %cst_38 = arith.constant dense<0.000000e+00> : vector<8x1024xf32>
    %115 = tpu.matmul %114, %112, %cst_38 {dimension_numbers = #tpu.dot_dimension_numbers<[1], [0], [0], [1], [0, 0, 1, 1], [], []>} : vector<8x4xf32>, vector<4x1024xf32>, vector<8x1024xf32> -> vector<8x1024xf32>
    %116 = arith.addf %109, %115 : vector<8x1024xf32>
    %c0_39 = arith.constant 0 : index
    %c127 = arith.constant 127 : index
    %117 = vector.load %arg19[%c0_39, %c127] : memref<48x1280xf32, #tpu.memory_space<vmem>>, vector<4x1024xf32>
    %118 = vector.broadcast %10 : vector<1x1024xf32> to vector<4x1024xf32>
    %119 = arith.mulf %117, %118 : vector<4x1024xf32>
    %c3_40 = arith.constant 3 : index
    %c0_41 = arith.constant 0 : index
    %c0_42 = arith.constant 0 : index
    %120 = vector.load %arg2[%c3_40, %c0_41, %c0_42] : memref<9x8x4xf32, #tpu.memory_space<vmem>>, vector<1x8x4xf32>
    %121 = vector.shape_cast %120 : vector<1x8x4xf32> to vector<8x4xf32>
    %cst_43 = arith.constant dense<0.000000e+00> : vector<8x1024xf32>
    %122 = tpu.matmul %121, %119, %cst_43 {dimension_numbers = #tpu.dot_dimension_numbers<[1], [0], [0], [1], [0, 0, 1, 1], [], []>} : vector<8x4xf32>, vector<4x1024xf32>, vector<8x1024xf32> -> vector<8x1024xf32>
    %123 = arith.addf %116, %122 : vector<8x1024xf32>
    %c0_44 = arith.constant 0 : index
    %c129 = arith.constant 129 : index
    %124 = vector.load %arg19[%c0_44, %c129] : memref<48x1280xf32, #tpu.memory_space<vmem>>, vector<4x1024xf32>
    %125 = vector.broadcast %14 : vector<1x1024xf32> to vector<4x1024xf32>
    %126 = arith.mulf %124, %125 : vector<4x1024xf32>
    %c5 = arith.constant 5 : index
    %c0_45 = arith.constant 0 : index
    %c0_46 = arith.constant 0 : index
    %127 = vector.load %arg2[%c5, %c0_45, %c0_46] : memref<9x8x4xf32, #tpu.memory_space<vmem>>, vector<1x8x4xf32>
    %128 = vector.shape_cast %127 : vector<1x8x4xf32> to vector<8x4xf32>
    %cst_47 = arith.constant dense<0.000000e+00> : vector<8x1024xf32>
    %129 = tpu.matmul %128, %126, %cst_47 {dimension_numbers = #tpu.dot_dimension_numbers<[1], [0], [0], [1], [0, 0, 1, 1], [], []>} : vector<8x4xf32>, vector<4x1024xf32>, vector<8x1024xf32> -> vector<8x1024xf32>
    %130 = arith.addf %123, %129 : vector<8x1024xf32>
    %c0_48 = arith.constant 0 : index
    %c143 = arith.constant 143 : index
    %131 = vector.load %arg19[%c0_48, %c143] : memref<48x1280xf32, #tpu.memory_space<vmem>>, vector<4x1024xf32>
    %132 = vector.broadcast %25 : vector<1x1024xf32> to vector<4x1024xf32>
    %133 = arith.mulf %131, %132 : vector<4x1024xf32>
    %c6 = arith.constant 6 : index
    %c0_49 = arith.constant 0 : index
    %c0_50 = arith.constant 0 : index
    %134 = vector.load %arg2[%c6, %c0_49, %c0_50] : memref<9x8x4xf32, #tpu.memory_space<vmem>>, vector<1x8x4xf32>
    %135 = vector.shape_cast %134 : vector<1x8x4xf32> to vector<8x4xf32>
    %cst_51 = arith.constant dense<0.000000e+00> : vector<8x1024xf32>
    %136 = tpu.matmul %135, %133, %cst_51 {dimension_numbers = #tpu.dot_dimension_numbers<[1], [0], [0], [1], [0, 0, 1, 1], [], []>} : vector<8x4xf32>, vector<4x1024xf32>, vector<8x1024xf32> -> vector<8x1024xf32>
    %137 = arith.addf %130, %136 : vector<8x1024xf32>
    %c0_52 = arith.constant 0 : index
    %c144 = arith.constant 144 : index
    %138 = vector.load %arg19[%c0_52, %c144] : memref<48x1280xf32, #tpu.memory_space<vmem>>, vector<4x1024xf32>
    %139 = vector.broadcast %22 : vector<1x1024xf32> to vector<4x1024xf32>
    %140 = arith.mulf %138, %139 : vector<4x1024xf32>
    %c7 = arith.constant 7 : index
    %c0_53 = arith.constant 0 : index
    %c0_54 = arith.constant 0 : index
    %141 = vector.load %arg2[%c7, %c0_53, %c0_54] : memref<9x8x4xf32, #tpu.memory_space<vmem>>, vector<1x8x4xf32>
    %142 = vector.shape_cast %141 : vector<1x8x4xf32> to vector<8x4xf32>
    %cst_55 = arith.constant dense<0.000000e+00> : vector<8x1024xf32>
    %143 = tpu.matmul %142, %140, %cst_55 {dimension_numbers = #tpu.dot_dimension_numbers<[1], [0], [0], [1], [0, 0, 1, 1], [], []>} : vector<8x4xf32>, vector<4x1024xf32>, vector<8x1024xf32> -> vector<8x1024xf32>
    %144 = arith.addf %137, %143 : vector<8x1024xf32>
    %c0_56 = arith.constant 0 : index
    %c145 = arith.constant 145 : index
    %145 = vector.load %arg19[%c0_56, %c145] : memref<48x1280xf32, #tpu.memory_space<vmem>>, vector<4x1024xf32>
    %146 = vector.broadcast %26 : vector<1x1024xf32> to vector<4x1024xf32>
    %147 = arith.mulf %145, %146 : vector<4x1024xf32>
    %c8 = arith.constant 8 : index
    %c0_57 = arith.constant 0 : index
    %c0_58 = arith.constant 0 : index
    %148 = vector.load %arg2[%c8, %c0_57, %c0_58] : memref<9x8x4xf32, #tpu.memory_space<vmem>>, vector<1x8x4xf32>
    %149 = vector.shape_cast %148 : vector<1x8x4xf32> to vector<8x4xf32>
    %cst_59 = arith.constant dense<0.000000e+00> : vector<8x1024xf32>
    %150 = tpu.matmul %149, %147, %cst_59 {dimension_numbers = #tpu.dot_dimension_numbers<[1], [0], [0], [1], [0, 0, 1, 1], [], []>} : vector<8x4xf32>, vector<4x1024xf32>, vector<8x1024xf32> -> vector<8x1024xf32>
    %151 = arith.addf %144, %150 : vector<8x1024xf32>
    %cst_60 = arith.constant 0.000000e+00 : f32
    %152 = vector.broadcast %cst_60 : f32 to vector<8x1024xf32>
    %153 = arith.maximumf %151, %152 : vector<8x1024xf32>
    %c0_61 = arith.constant 0 : index
    %c128_62 = arith.constant 128 : index
    %154 = vector.load %arg19[%c0_61, %c128_62] : memref<48x1280xf32, #tpu.memory_space<vmem>>, vector<8x1024xf32>
    tpu.vector_store %arg19[%c0_61, %c128_62], %153 {strides = array<i32>} : memref<48x1280xf32, #tpu.memory_space<vmem>>, vector<8x1024xf32>,
    %c0_63 = arith.constant 0 : index
    %c128_64 = arith.constant 128 : index
    %155 = vector.load %arg19[%c0_63, %c128_64] : memref<48x1280xf32, #tpu.memory_space<vmem>>, vector<8x1024xf32>
    %c0_65 = arith.constant 0 : index
    %c129_66 = arith.constant 129 : index
    %156 = vector.load %arg19[%c0_65, %c129_66] : memref<48x1280xf32, #tpu.memory_space<vmem>>, vector<8x1024xf32>
    %157 = arith.maximumf %155, %156 : vector<8x1024xf32>
    %c0_67 = arith.constant 0 : index
    %c144_68 = arith.constant 144 : index
    %158 = vector.load %arg19[%c0_67, %c144_68] : memref<48x1280xf32, #tpu.memory_space<vmem>>, vector<8x1024xf32>
    %c0_69 = arith.constant 0 : index
    %c145_70 = arith.constant 145 : index
    %159 = vector.load %arg19[%c0_69, %c145_70] : memref<48x1280xf32, #tpu.memory_space<vmem>>, vector<8x1024xf32>
    %160 = arith.maximumf %158, %159 : vector<8x1024xf32>
    %161 = arith.maximumf %157, %160 : vector<8x1024xf32>
    %c0_71 = arith.constant 0 : index
    %c0_72 = arith.constant 0 : index
    %162 = vector.load %arg14[%c0_71, %c0_72] : memref<1024x256xf32, #tpu.memory_space<vmem>>, vector<1024x256xf32>
    %cst_73 = arith.constant dense<0.000000e+00> : vector<8x256xf32>
    %163 = tpu.matmul %161, %162, %cst_73 {dimension_numbers = #tpu.dot_dimension_numbers<[1], [0], [0], [1], [0, 0, 1, 1], [], []>} : vector<8x1024xf32>, vector<1024x256xf32>, vector<8x256xf32> -> vector<8x256xf32>
    %c0_74 = arith.constant 0 : index
    %c128_75 = arith.constant 128 : index
    %164 = vector.load %arg19[%c0_74, %c128_75] : memref<48x1280xf32, #tpu.memory_space<vmem>>, vector<8x256xf32>
    tpu.vector_store %arg19[%c0_74, %c128_75], %163 {strides = array<i32>} : memref<48x1280xf32, #tpu.memory_space<vmem>>, vector<8x256xf32>,
    %c4_76 = arith.constant 4 : index
    %c0_77 = arith.constant 0 : index
    %c0_78 = arith.constant 0 : index
    %165 = vector.load %arg4[%c4_76, %c0_77, %c0_78] : memref<9x16x8xf32, #tpu.memory_space<vmem>>, vector<1x16x8xf32>
    %166 = vector.shape_cast %165 : vector<1x16x8xf32> to vector<16x8xf32>
    %c0_79 = arith.constant 0 : index
    %c128_80 = arith.constant 128 : index
    %167 = vector.load %arg19[%c0_79, %c128_80] : memref<48x1280xf32, #tpu.memory_space<vmem>>, vector<8x256xf32>
    %cst_81 = arith.constant dense<0.000000e+00> : vector<16x256xf32>
    %168 = tpu.matmul %166, %167, %cst_81 {dimension_numbers = #tpu.dot_dimension_numbers<[1], [0], [0], [1], [0, 0, 1, 1], [], []>} : vector<16x8xf32>, vector<8x256xf32>, vector<16x256xf32> -> vector<16x256xf32>
    %c0_82 = arith.constant 0 : index
    %c0_83 = arith.constant 0 : index
    %169 = vector.load %arg5[%c0_82, %c0_83] : memref<16x1xf32, #tpu.memory_space<vmem>>, vector<16x1xf32>
    %170 = vector.broadcast %169 : vector<16x1xf32> to vector<16x256xf32>
    %171 = arith.addf %168, %170 : vector<16x256xf32>
    %c0_84 = arith.constant 0 : index
    %c119 = arith.constant 119 : index
    %172 = vector.load %arg19[%c0_84, %c119] : memref<48x1280xf32, #tpu.memory_space<vmem>>, vector<8x256xf32>
    %173 = vector.broadcast %48 : vector<1x256xf32> to vector<8x256xf32>
    %174 = arith.mulf %172, %173 : vector<8x256xf32>
    %c0_85 = arith.constant 0 : index
    %c0_86 = arith.constant 0 : index
    %c0_87 = arith.constant 0 : index
    %175 = vector.load %arg4[%c0_85, %c0_86, %c0_87] : memref<9x16x8xf32, #tpu.memory_space<vmem>>, vector<1x16x8xf32>
    %176 = vector.shape_cast %175 : vector<1x16x8xf32> to vector<16x8xf32>
    %cst_88 = arith.constant dense<0.000000e+00> : vector<16x256xf32>
    %177 = tpu.matmul %176, %174, %cst_88 {dimension_numbers = #tpu.dot_dimension_numbers<[1], [0], [0], [1], [0, 0, 1, 1], [], []>} : vector<16x8xf32>, vector<8x256xf32>, vector<16x256xf32> -> vector<16x256xf32>
    %178 = arith.addf %171, %177 : vector<16x256xf32>
    %c0_89 = arith.constant 0 : index
    %c120 = arith.constant 120 : index
    %179 = vector.load %arg19[%c0_89, %c120] : memref<48x1280xf32, #tpu.memory_space<vmem>>, vector<8x256xf32>
    %180 = vector.broadcast %43 : vector<1x256xf32> to vector<8x256xf32>
    %181 = arith.mulf %179, %180 : vector<8x256xf32>
    %c1_90 = arith.constant 1 : index
    %c0_91 = arith.constant 0 : index
    %c0_92 = arith.constant 0 : index
    %182 = vector.load %arg4[%c1_90, %c0_91, %c0_92] : memref<9x16x8xf32, #tpu.memory_space<vmem>>, vector<1x16x8xf32>
    %183 = vector.shape_cast %182 : vector<1x16x8xf32> to vector<16x8xf32>
    %cst_93 = arith.constant dense<0.000000e+00> : vector<16x256xf32>
    %184 = tpu.matmul %183, %181, %cst_93 {dimension_numbers = #tpu.dot_dimension_numbers<[1], [0], [0], [1], [0, 0, 1, 1], [], []>} : vector<16x8xf32>, vector<8x256xf32>, vector<16x256xf32> -> vector<16x256xf32>
    %185 = arith.addf %178, %184 : vector<16x256xf32>
    %c0_94 = arith.constant 0 : index
    %c121 = arith.constant 121 : index
    %186 = vector.load %arg19[%c0_94, %c121] : memref<48x1280xf32, #tpu.memory_space<vmem>>, vector<8x256xf32>
    %187 = vector.broadcast %49 : vector<1x256xf32> to vector<8x256xf32>
    %188 = arith.mulf %186, %187 : vector<8x256xf32>
    %c2_95 = arith.constant 2 : index
    %c0_96 = arith.constant 0 : index
    %c0_97 = arith.constant 0 : index
    %189 = vector.load %arg4[%c2_95, %c0_96, %c0_97] : memref<9x16x8xf32, #tpu.memory_space<vmem>>, vector<1x16x8xf32>
    %190 = vector.shape_cast %189 : vector<1x16x8xf32> to vector<16x8xf32>
    %cst_98 = arith.constant dense<0.000000e+00> : vector<16x256xf32>
    %191 = tpu.matmul %190, %188, %cst_98 {dimension_numbers = #tpu.dot_dimension_numbers<[1], [0], [0], [1], [0, 0, 1, 1], [], []>} : vector<16x8xf32>, vector<8x256xf32>, vector<16x256xf32> -> vector<16x256xf32>
    %192 = arith.addf %185, %191 : vector<16x256xf32>
    %c0_99 = arith.constant 0 : index
    %c127_100 = arith.constant 127 : index
    %193 = vector.load %arg19[%c0_99, %c127_100] : memref<48x1280xf32, #tpu.memory_space<vmem>>, vector<8x256xf32>
    %194 = vector.broadcast %35 : vector<1x256xf32> to vector<8x256xf32>
    %195 = arith.mulf %193, %194 : vector<8x256xf32>
    %c3_101 = arith.constant 3 : index
    %c0_102 = arith.constant 0 : index
    %c0_103 = arith.constant 0 : index
    %196 = vector.load %arg4[%c3_101, %c0_102, %c0_103] : memref<9x16x8xf32, #tpu.memory_space<vmem>>, vector<1x16x8xf32>
    %197 = vector.shape_cast %196 : vector<1x16x8xf32> to vector<16x8xf32>
    %cst_104 = arith.constant dense<0.000000e+00> : vector<16x256xf32>
    %198 = tpu.matmul %197, %195, %cst_104 {dimension_numbers = #tpu.dot_dimension_numbers<[1], [0], [0], [1], [0, 0, 1, 1], [], []>} : vector<16x8xf32>, vector<8x256xf32>, vector<16x256xf32> -> vector<16x256xf32>
    %199 = arith.addf %192, %198 : vector<16x256xf32>
    %c0_105 = arith.constant 0 : index
    %c129_106 = arith.constant 129 : index
    %200 = vector.load %arg19[%c0_105, %c129_106] : memref<48x1280xf32, #tpu.memory_space<vmem>>, vector<8x256xf32>
    %201 = vector.broadcast %39 : vector<1x256xf32> to vector<8x256xf32>
    %202 = arith.mulf %200, %201 : vector<8x256xf32>
    %c5_107 = arith.constant 5 : index
    %c0_108 = arith.constant 0 : index
    %c0_109 = arith.constant 0 : index
    %203 = vector.load %arg4[%c5_107, %c0_108, %c0_109] : memref<9x16x8xf32, #tpu.memory_space<vmem>>, vector<1x16x8xf32>
    %204 = vector.shape_cast %203 : vector<1x16x8xf32> to vector<16x8xf32>
    %cst_110 = arith.constant dense<0.000000e+00> : vector<16x256xf32>
    %205 = tpu.matmul %204, %202, %cst_110 {dimension_numbers = #tpu.dot_dimension_numbers<[1], [0], [0], [1], [0, 0, 1, 1], [], []>} : vector<16x8xf32>, vector<8x256xf32>, vector<16x256xf32> -> vector<16x256xf32>
    %206 = arith.addf %199, %205 : vector<16x256xf32>
    %c0_111 = arith.constant 0 : index
    %c135 = arith.constant 135 : index
    %207 = vector.load %arg19[%c0_111, %c135] : memref<48x1280xf32, #tpu.memory_space<vmem>>, vector<8x256xf32>
    %208 = vector.broadcast %50 : vector<1x256xf32> to vector<8x256xf32>
    %209 = arith.mulf %207, %208 : vector<8x256xf32>
    %c6_112 = arith.constant 6 : index
    %c0_113 = arith.constant 0 : index
    %c0_114 = arith.constant 0 : index
    %210 = vector.load %arg4[%c6_112, %c0_113, %c0_114] : memref<9x16x8xf32, #tpu.memory_space<vmem>>, vector<1x16x8xf32>
    %211 = vector.shape_cast %210 : vector<1x16x8xf32> to vector<16x8xf32>
    %cst_115 = arith.constant dense<0.000000e+00> : vector<16x256xf32>
    %212 = tpu.matmul %211, %209, %cst_115 {dimension_numbers = #tpu.dot_dimension_numbers<[1], [0], [0], [1], [0, 0, 1, 1], [], []>} : vector<16x8xf32>, vector<8x256xf32>, vector<16x256xf32> -> vector<16x256xf32>
    %213 = arith.addf %206, %212 : vector<16x256xf32>
    %c0_116 = arith.constant 0 : index
    %c136 = arith.constant 136 : index
    %214 = vector.load %arg19[%c0_116, %c136] : memref<48x1280xf32, #tpu.memory_space<vmem>>, vector<8x256xf32>
    %215 = vector.broadcast %47 : vector<1x256xf32> to vector<8x256xf32>
    %216 = arith.mulf %214, %215 : vector<8x256xf32>
    %c7_117 = arith.constant 7 : index
    %c0_118 = arith.constant 0 : index
    %c0_119 = arith.constant 0 : index
    %217 = vector.load %arg4[%c7_117, %c0_118, %c0_119] : memref<9x16x8xf32, #tpu.memory_space<vmem>>, vector<1x16x8xf32>
    %218 = vector.shape_cast %217 : vector<1x16x8xf32> to vector<16x8xf32>
    %cst_120 = arith.constant dense<0.000000e+00> : vector<16x256xf32>
    %219 = tpu.matmul %218, %216, %cst_120 {dimension_numbers = #tpu.dot_dimension_numbers<[1], [0], [0], [1], [0, 0, 1, 1], [], []>} : vector<16x8xf32>, vector<8x256xf32>, vector<16x256xf32> -> vector<16x256xf32>
    %220 = arith.addf %213, %219 : vector<16x256xf32>
    %c0_121 = arith.constant 0 : index
    %c137 = arith.constant 137 : index
    %221 = vector.load %arg19[%c0_121, %c137] : memref<48x1280xf32, #tpu.memory_space<vmem>>, vector<8x256xf32>
    %222 = vector.broadcast %51 : vector<1x256xf32> to vector<8x256xf32>
    %223 = arith.mulf %221, %222 : vector<8x256xf32>
    %c8_122 = arith.constant 8 : index
    %c0_123 = arith.constant 0 : index
    %c0_124 = arith.constant 0 : index
    %224 = vector.load %arg4[%c8_122, %c0_123, %c0_124] : memref<9x16x8xf32, #tpu.memory_space<vmem>>, vector<1x16x8xf32>
    %225 = vector.shape_cast %224 : vector<1x16x8xf32> to vector<16x8xf32>
    %cst_125 = arith.constant dense<0.000000e+00> : vector<16x256xf32>
    %226 = tpu.matmul %225, %223, %cst_125 {dimension_numbers = #tpu.dot_dimension_numbers<[1], [0], [0], [1], [0, 0, 1, 1], [], []>} : vector<16x8xf32>, vector<8x256xf32>, vector<16x256xf32> -> vector<16x256xf32>
    %227 = arith.addf %220, %226 : vector<16x256xf32>
    %cst_126 = arith.constant 0.000000e+00 : f32
    %228 = vector.broadcast %cst_126 : f32 to vector<16x256xf32>
    %229 = arith.maximumf %227, %228 : vector<16x256xf32>
    %c0_127 = arith.constant 0 : index
    %c128_128 = arith.constant 128 : index
    %230 = vector.load %arg19[%c0_127, %c128_128] : memref<48x1280xf32, #tpu.memory_space<vmem>>, vector<16x256xf32>
    tpu.vector_store %arg19[%c0_127, %c128_128], %229 {strides = array<i32>} : memref<48x1280xf32, #tpu.memory_space<vmem>>, vector<16x256xf32>,
    %c0_129 = arith.constant 0 : index
    %c128_130 = arith.constant 128 : index
    %231 = vector.load %arg19[%c0_129, %c128_130] : memref<48x1280xf32, #tpu.memory_space<vmem>>, vector<16x256xf32>
    %c0_131 = arith.constant 0 : index
    %c129_132 = arith.constant 129 : index
    %232 = vector.load %arg19[%c0_131, %c129_132] : memref<48x1280xf32, #tpu.memory_space<vmem>>, vector<16x256xf32>
    %233 = arith.maximumf %231, %232 : vector<16x256xf32>
    %c0_133 = arith.constant 0 : index
    %c136_134 = arith.constant 136 : index
    %234 = vector.load %arg19[%c0_133, %c136_134] : memref<48x1280xf32, #tpu.memory_space<vmem>>, vector<16x256xf32>
    %c0_135 = arith.constant 0 : index
    %c137_136 = arith.constant 137 : index
    %235 = vector.load %arg19[%c0_135, %c137_136] : memref<48x1280xf32, #tpu.memory_space<vmem>>, vector<16x256xf32>
    %236 = arith.maximumf %234, %235 : vector<16x256xf32>
    %237 = arith.maximumf %233, %236 : vector<16x256xf32>
    %c0_137 = arith.constant 0 : index
    %c0_138 = arith.constant 0 : index
    %238 = vector.load %arg15[%c0_137, %c0_138] : memref<256x64xf32, #tpu.memory_space<vmem>>, vector<256x64xf32>
    %cst_139 = arith.constant dense<0.000000e+00> : vector<16x64xf32>
    %239 = tpu.matmul %237, %238, %cst_139 {dimension_numbers = #tpu.dot_dimension_numbers<[1], [0], [0], [1], [0, 0, 1, 1], [], []>} : vector<16x256xf32>, vector<256x64xf32>, vector<16x64xf32> -> vector<16x64xf32>
    %c0_140 = arith.constant 0 : index
    %c128_141 = arith.constant 128 : index
    %240 = vector.load %arg19[%c0_140, %c128_141] : memref<48x1280xf32, #tpu.memory_space<vmem>>, vector<16x64xf32>
    tpu.vector_store %arg19[%c0_140, %c128_141], %239 {strides = array<i32>} : memref<48x1280xf32, #tpu.memory_space<vmem>>, vector<16x64xf32>,
    %c4_142 = arith.constant 4 : index
    %c0_143 = arith.constant 0 : index
    %c0_144 = arith.constant 0 : index
    %241 = vector.load %arg6[%c4_142, %c0_143, %c0_144] : memref<9x32x16xf32, #tpu.memory_space<vmem>>, vector<1x32x16xf32>
    %242 = vector.shape_cast %241 : vector<1x32x16xf32> to vector<32x16xf32>
    %c0_145 = arith.constant 0 : index
    %c128_146 = arith.constant 128 : index
    %243 = vector.load %arg19[%c0_145, %c128_146] : memref<48x1280xf32, #tpu.memory_space<vmem>>, vector<16x64xf32>
    %cst_147 = arith.constant dense<0.000000e+00> : vector<32x64xf32>
    %244 = tpu.matmul %242, %243, %cst_147 {dimension_numbers = #tpu.dot_dimension_numbers<[1], [0], [0], [1], [0, 0, 1, 1], [], []>} : vector<32x16xf32>, vector<16x64xf32>, vector<32x64xf32> -> vector<32x64xf32>
    %c0_148 = arith.constant 0 : index
    %c0_149 = arith.constant 0 : index
    %245 = vector.load %arg7[%c0_148, %c0_149] : memref<32x1xf32, #tpu.memory_space<vmem>>, vector<32x1xf32>
    %246 = vector.broadcast %245 : vector<32x1xf32> to vector<32x64xf32>
    %247 = arith.addf %244, %246 : vector<32x64xf32>
    %c0_150 = arith.constant 0 : index
    %c123 = arith.constant 123 : index
    %248 = vector.load %arg19[%c0_150, %c123] : memref<48x1280xf32, #tpu.memory_space<vmem>>, vector<16x64xf32>
    %249 = vector.broadcast %73 : vector<1x64xf32> to vector<16x64xf32>
    %250 = arith.mulf %248, %249 : vector<16x64xf32>
    %c0_151 = arith.constant 0 : index
    %c0_152 = arith.constant 0 : index
    %c0_153 = arith.constant 0 : index
    %251 = vector.load %arg6[%c0_151, %c0_152, %c0_153] : memref<9x32x16xf32, #tpu.memory_space<vmem>>, vector<1x32x16xf32>
    %252 = vector.shape_cast %251 : vector<1x32x16xf32> to vector<32x16xf32>
    %cst_154 = arith.constant dense<0.000000e+00> : vector<32x64xf32>
    %253 = tpu.matmul %252, %250, %cst_154 {dimension_numbers = #tpu.dot_dimension_numbers<[1], [0], [0], [1], [0, 0, 1, 1], [], []>} : vector<32x16xf32>, vector<16x64xf32>, vector<32x64xf32> -> vector<32x64xf32>
    %254 = arith.addf %247, %253 : vector<32x64xf32>
    %c0_155 = arith.constant 0 : index
    %c124 = arith.constant 124 : index
    %255 = vector.load %arg19[%c0_155, %c124] : memref<48x1280xf32, #tpu.memory_space<vmem>>, vector<16x64xf32>
    %256 = vector.broadcast %68 : vector<1x64xf32> to vector<16x64xf32>
    %257 = arith.mulf %255, %256 : vector<16x64xf32>
    %c1_156 = arith.constant 1 : index
    %c0_157 = arith.constant 0 : index
    %c0_158 = arith.constant 0 : index
    %258 = vector.load %arg6[%c1_156, %c0_157, %c0_158] : memref<9x32x16xf32, #tpu.memory_space<vmem>>, vector<1x32x16xf32>
    %259 = vector.shape_cast %258 : vector<1x32x16xf32> to vector<32x16xf32>
    %cst_159 = arith.constant dense<0.000000e+00> : vector<32x64xf32>
    %260 = tpu.matmul %259, %257, %cst_159 {dimension_numbers = #tpu.dot_dimension_numbers<[1], [0], [0], [1], [0, 0, 1, 1], [], []>} : vector<32x16xf32>, vector<16x64xf32>, vector<32x64xf32> -> vector<32x64xf32>
    %261 = arith.addf %254, %260 : vector<32x64xf32>
    %c0_160 = arith.constant 0 : index
    %c125 = arith.constant 125 : index
    %262 = vector.load %arg19[%c0_160, %c125] : memref<48x1280xf32, #tpu.memory_space<vmem>>, vector<16x64xf32>
    %263 = vector.broadcast %74 : vector<1x64xf32> to vector<16x64xf32>
    %264 = arith.mulf %262, %263 : vector<16x64xf32>
    %c2_161 = arith.constant 2 : index
    %c0_162 = arith.constant 0 : index
    %c0_163 = arith.constant 0 : index
    %265 = vector.load %arg6[%c2_161, %c0_162, %c0_163] : memref<9x32x16xf32, #tpu.memory_space<vmem>>, vector<1x32x16xf32>
    %266 = vector.shape_cast %265 : vector<1x32x16xf32> to vector<32x16xf32>
    %cst_164 = arith.constant dense<0.000000e+00> : vector<32x64xf32>
    %267 = tpu.matmul %266, %264, %cst_164 {dimension_numbers = #tpu.dot_dimension_numbers<[1], [0], [0], [1], [0, 0, 1, 1], [], []>} : vector<32x16xf32>, vector<16x64xf32>, vector<32x64xf32> -> vector<32x64xf32>
    %268 = arith.addf %261, %267 : vector<32x64xf32>
    %c0_165 = arith.constant 0 : index
    %c127_166 = arith.constant 127 : index
    %269 = vector.load %arg19[%c0_165, %c127_166] : memref<48x1280xf32, #tpu.memory_space<vmem>>, vector<16x64xf32>
    %270 = vector.broadcast %60 : vector<1x64xf32> to vector<16x64xf32>
    %271 = arith.mulf %269, %270 : vector<16x64xf32>
    %c3_167 = arith.constant 3 : index
    %c0_168 = arith.constant 0 : index
    %c0_169 = arith.constant 0 : index
    %272 = vector.load %arg6[%c3_167, %c0_168, %c0_169] : memref<9x32x16xf32, #tpu.memory_space<vmem>>, vector<1x32x16xf32>
    %273 = vector.shape_cast %272 : vector<1x32x16xf32> to vector<32x16xf32>
    %cst_170 = arith.constant dense<0.000000e+00> : vector<32x64xf32>
    %274 = tpu.matmul %273, %271, %cst_170 {dimension_numbers = #tpu.dot_dimension_numbers<[1], [0], [0], [1], [0, 0, 1, 1], [], []>} : vector<32x16xf32>, vector<16x64xf32>, vector<32x64xf32> -> vector<32x64xf32>
    %275 = arith.addf %268, %274 : vector<32x64xf32>
    %c0_171 = arith.constant 0 : index
    %c129_172 = arith.constant 129 : index
    %276 = vector.load %arg19[%c0_171, %c129_172] : memref<48x1280xf32, #tpu.memory_space<vmem>>, vector<16x64xf32>
    %277 = vector.broadcast %64 : vector<1x64xf32> to vector<16x64xf32>
    %278 = arith.mulf %276, %277 : vector<16x64xf32>
    %c5_173 = arith.constant 5 : index
    %c0_174 = arith.constant 0 : index
    %c0_175 = arith.constant 0 : index
    %279 = vector.load %arg6[%c5_173, %c0_174, %c0_175] : memref<9x32x16xf32, #tpu.memory_space<vmem>>, vector<1x32x16xf32>
    %280 = vector.shape_cast %279 : vector<1x32x16xf32> to vector<32x16xf32>
    %cst_176 = arith.constant dense<0.000000e+00> : vector<32x64xf32>
    %281 = tpu.matmul %280, %278, %cst_176 {dimension_numbers = #tpu.dot_dimension_numbers<[1], [0], [0], [1], [0, 0, 1, 1], [], []>} : vector<32x16xf32>, vector<16x64xf32>, vector<32x64xf32> -> vector<32x64xf32>
    %282 = arith.addf %275, %281 : vector<32x64xf32>
    %c0_177 = arith.constant 0 : index
    %c131 = arith.constant 131 : index
    %283 = vector.load %arg19[%c0_177, %c131] : memref<48x1280xf32, #tpu.memory_space<vmem>>, vector<16x64xf32>
    %284 = vector.broadcast %75 : vector<1x64xf32> to vector<16x64xf32>
    %285 = arith.mulf %283, %284 : vector<16x64xf32>
    %c6_178 = arith.constant 6 : index
    %c0_179 = arith.constant 0 : index
    %c0_180 = arith.constant 0 : index
    %286 = vector.load %arg6[%c6_178, %c0_179, %c0_180] : memref<9x32x16xf32, #tpu.memory_space<vmem>>, vector<1x32x16xf32>
    %287 = vector.shape_cast %286 : vector<1x32x16xf32> to vector<32x16xf32>
    %cst_181 = arith.constant dense<0.000000e+00> : vector<32x64xf32>
    %288 = tpu.matmul %287, %285, %cst_181 {dimension_numbers = #tpu.dot_dimension_numbers<[1], [0], [0], [1], [0, 0, 1, 1], [], []>} : vector<32x16xf32>, vector<16x64xf32>, vector<32x64xf32> -> vector<32x64xf32>
    %289 = arith.addf %282, %288 : vector<32x64xf32>
    %c0_182 = arith.constant 0 : index
    %c132 = arith.constant 132 : index
    %290 = vector.load %arg19[%c0_182, %c132] : memref<48x1280xf32, #tpu.memory_space<vmem>>, vector<16x64xf32>
    %291 = vector.broadcast %72 : vector<1x64xf32> to vector<16x64xf32>
    %292 = arith.mulf %290, %291 : vector<16x64xf32>
    %c7_183 = arith.constant 7 : index
    %c0_184 = arith.constant 0 : index
    %c0_185 = arith.constant 0 : index
    %293 = vector.load %arg6[%c7_183, %c0_184, %c0_185] : memref<9x32x16xf32, #tpu.memory_space<vmem>>, vector<1x32x16xf32>
    %294 = vector.shape_cast %293 : vector<1x32x16xf32> to vector<32x16xf32>
    %cst_186 = arith.constant dense<0.000000e+00> : vector<32x64xf32>
    %295 = tpu.matmul %294, %292, %cst_186 {dimension_numbers = #tpu.dot_dimension_numbers<[1], [0], [0], [1], [0, 0, 1, 1], [], []>} : vector<32x16xf32>, vector<16x64xf32>, vector<32x64xf32> -> vector<32x64xf32>
    %296 = arith.addf %289, %295 : vector<32x64xf32>
    %c0_187 = arith.constant 0 : index
    %c133 = arith.constant 133 : index
    %297 = vector.load %arg19[%c0_187, %c133] : memref<48x1280xf32, #tpu.memory_space<vmem>>, vector<16x64xf32>
    %298 = vector.broadcast %76 : vector<1x64xf32> to vector<16x64xf32>
    %299 = arith.mulf %297, %298 : vector<16x64xf32>
    %c8_188 = arith.constant 8 : index
    %c0_189 = arith.constant 0 : index
    %c0_190 = arith.constant 0 : index
    %300 = vector.load %arg6[%c8_188, %c0_189, %c0_190] : memref<9x32x16xf32, #tpu.memory_space<vmem>>, vector<1x32x16xf32>
    %301 = vector.shape_cast %300 : vector<1x32x16xf32> to vector<32x16xf32>
    %cst_191 = arith.constant dense<0.000000e+00> : vector<32x64xf32>
    %302 = tpu.matmul %301, %299, %cst_191 {dimension_numbers = #tpu.dot_dimension_numbers<[1], [0], [0], [1], [0, 0, 1, 1], [], []>} : vector<32x16xf32>, vector<16x64xf32>, vector<32x64xf32> -> vector<32x64xf32>
    %303 = arith.addf %296, %302 : vector<32x64xf32>
    %cst_192 = arith.constant 0.000000e+00 : f32
    %304 = vector.broadcast %cst_192 : f32 to vector<32x64xf32>
    %305 = arith.maximumf %303, %304 : vector<32x64xf32>
    %c0_193 = arith.constant 0 : index
    %c0_194 = arith.constant 0 : index
    %306 = vector.load %arg16[%c0_193, %c0_194] : memref<64x256xf32, #tpu.memory_space<vmem>>, vector<64x256xf32>
    %cst_195 = arith.constant dense<0.000000e+00> : vector<32x256xf32>
    %307 = tpu.matmul %305, %306, %cst_195 {dimension_numbers = #tpu.dot_dimension_numbers<[1], [0], [0], [1], [0, 0, 1, 1], [], []>} : vector<32x64xf32>, vector<64x256xf32>, vector<32x256xf32> -> vector<32x256xf32>
    %c0_196 = arith.constant 0 : index
    %c128_197 = arith.constant 128 : index
    %308 = vector.load %arg19[%c0_196, %c128_197] : memref<48x1280xf32, #tpu.memory_space<vmem>>, vector<32x256xf32>
    tpu.vector_store %arg19[%c0_196, %c128_197], %307 {strides = array<i32>} : memref<48x1280xf32, #tpu.memory_space<vmem>>, vector<32x256xf32>,
    %c32 = arith.constant 32 : index
    %c128_198 = arith.constant 128 : index
    %309 = vector.load %arg19[%c32, %c128_198] : memref<48x1280xf32, #tpu.memory_space<vmem>>, vector<16x256xf32>
    tpu.vector_store %arg19[%c32, %c128_198], %229 {strides = array<i32>} : memref<48x1280xf32, #tpu.memory_space<vmem>>, vector<16x256xf32>,
    %c4_199 = arith.constant 4 : index
    %c0_200 = arith.constant 0 : index
    %c0_201 = arith.constant 0 : index
    %310 = vector.load %arg8[%c4_199, %c0_200, %c0_201] : memref<9x16x48xf32, #tpu.memory_space<vmem>>, vector<1x16x48xf32>
    %311 = vector.shape_cast %310 : vector<1x16x48xf32> to vector<16x48xf32>
    %c0_202 = arith.constant 0 : index
    %c128_203 = arith.constant 128 : index
    %312 = vector.load %arg19[%c0_202, %c128_203] : memref<48x1280xf32, #tpu.memory_space<vmem>>, vector<48x256xf32>
    %cst_204 = arith.constant dense<0.000000e+00> : vector<16x256xf32>
    %313 = tpu.matmul %311, %312, %cst_204 {dimension_numbers = #tpu.dot_dimension_numbers<[1], [0], [0], [1], [0, 0, 1, 1], [], []>} : vector<16x48xf32>, vector<48x256xf32>, vector<16x256xf32> -> vector<16x256xf32>
    %c0_205 = arith.constant 0 : index
    %c0_206 = arith.constant 0 : index
    %314 = vector.load %arg9[%c0_205, %c0_206] : memref<16x1xf32, #tpu.memory_space<vmem>>, vector<16x1xf32>
    %315 = vector.broadcast %314 : vector<16x1xf32> to vector<16x256xf32>
    %316 = arith.addf %313, %315 : vector<16x256xf32>
    %c0_207 = arith.constant 0 : index
    %c119_208 = arith.constant 119 : index
    %317 = vector.load %arg19[%c0_207, %c119_208] : memref<48x1280xf32, #tpu.memory_space<vmem>>, vector<48x256xf32>
    %318 = vector.broadcast %48 : vector<1x256xf32> to vector<48x256xf32>
    %319 = arith.mulf %317, %318 : vector<48x256xf32>
    %c0_209 = arith.constant 0 : index
    %c0_210 = arith.constant 0 : index
    %c0_211 = arith.constant 0 : index
    %320 = vector.load %arg8[%c0_209, %c0_210, %c0_211] : memref<9x16x48xf32, #tpu.memory_space<vmem>>, vector<1x16x48xf32>
    %321 = vector.shape_cast %320 : vector<1x16x48xf32> to vector<16x48xf32>
    %cst_212 = arith.constant dense<0.000000e+00> : vector<16x256xf32>
    %322 = tpu.matmul %321, %319, %cst_212 {dimension_numbers = #tpu.dot_dimension_numbers<[1], [0], [0], [1], [0, 0, 1, 1], [], []>} : vector<16x48xf32>, vector<48x256xf32>, vector<16x256xf32> -> vector<16x256xf32>
    %323 = arith.addf %316, %322 : vector<16x256xf32>
    %c0_213 = arith.constant 0 : index
    %c120_214 = arith.constant 120 : index
    %324 = vector.load %arg19[%c0_213, %c120_214] : memref<48x1280xf32, #tpu.memory_space<vmem>>, vector<48x256xf32>
    %325 = vector.broadcast %43 : vector<1x256xf32> to vector<48x256xf32>
    %326 = arith.mulf %324, %325 : vector<48x256xf32>
    %c1_215 = arith.constant 1 : index
    %c0_216 = arith.constant 0 : index
    %c0_217 = arith.constant 0 : index
    %327 = vector.load %arg8[%c1_215, %c0_216, %c0_217] : memref<9x16x48xf32, #tpu.memory_space<vmem>>, vector<1x16x48xf32>
    %328 = vector.shape_cast %327 : vector<1x16x48xf32> to vector<16x48xf32>
    %cst_218 = arith.constant dense<0.000000e+00> : vector<16x256xf32>
    %329 = tpu.matmul %328, %326, %cst_218 {dimension_numbers = #tpu.dot_dimension_numbers<[1], [0], [0], [1], [0, 0, 1, 1], [], []>} : vector<16x48xf32>, vector<48x256xf32>, vector<16x256xf32> -> vector<16x256xf32>
    %330 = arith.addf %323, %329 : vector<16x256xf32>
    %c0_219 = arith.constant 0 : index
    %c121_220 = arith.constant 121 : index
    %331 = vector.load %arg19[%c0_219, %c121_220] : memref<48x1280xf32, #tpu.memory_space<vmem>>, vector<48x256xf32>
    %332 = vector.broadcast %49 : vector<1x256xf32> to vector<48x256xf32>
    %333 = arith.mulf %331, %332 : vector<48x256xf32>
    %c2_221 = arith.constant 2 : index
    %c0_222 = arith.constant 0 : index
    %c0_223 = arith.constant 0 : index
    %334 = vector.load %arg8[%c2_221, %c0_222, %c0_223] : memref<9x16x48xf32, #tpu.memory_space<vmem>>, vector<1x16x48xf32>
    %335 = vector.shape_cast %334 : vector<1x16x48xf32> to vector<16x48xf32>
    %cst_224 = arith.constant dense<0.000000e+00> : vector<16x256xf32>
    %336 = tpu.matmul %335, %333, %cst_224 {dimension_numbers = #tpu.dot_dimension_numbers<[1], [0], [0], [1], [0, 0, 1, 1], [], []>} : vector<16x48xf32>, vector<48x256xf32>, vector<16x256xf32> -> vector<16x256xf32>
    %337 = arith.addf %330, %336 : vector<16x256xf32>
    %c0_225 = arith.constant 0 : index
    %c127_226 = arith.constant 127 : index
    %338 = vector.load %arg19[%c0_225, %c127_226] : memref<48x1280xf32, #tpu.memory_space<vmem>>, vector<48x256xf32>
    %339 = vector.broadcast %35 : vector<1x256xf32> to vector<48x256xf32>
    %340 = arith.mulf %338, %339 : vector<48x256xf32>
    %c3_227 = arith.constant 3 : index
    %c0_228 = arith.constant 0 : index
    %c0_229 = arith.constant 0 : index
    %341 = vector.load %arg8[%c3_227, %c0_228, %c0_229] : memref<9x16x48xf32, #tpu.memory_space<vmem>>, vector<1x16x48xf32>
    %342 = vector.shape_cast %341 : vector<1x16x48xf32> to vector<16x48xf32>
    %cst_230 = arith.constant dense<0.000000e+00> : vector<16x256xf32>
    %343 = tpu.matmul %342, %340, %cst_230 {dimension_numbers = #tpu.dot_dimension_numbers<[1], [0], [0], [1], [0, 0, 1, 1], [], []>} : vector<16x48xf32>, vector<48x256xf32>, vector<16x256xf32> -> vector<16x256xf32>
    %344 = arith.addf %337, %343 : vector<16x256xf32>
    %c0_231 = arith.constant 0 : index
    %c129_232 = arith.constant 129 : index
    %345 = vector.load %arg19[%c0_231, %c129_232] : memref<48x1280xf32, #tpu.memory_space<vmem>>, vector<48x256xf32>
    %346 = vector.broadcast %39 : vector<1x256xf32> to vector<48x256xf32>
    %347 = arith.mulf %345, %346 : vector<48x256xf32>
    %c5_233 = arith.constant 5 : index
    %c0_234 = arith.constant 0 : index
    %c0_235 = arith.constant 0 : index
    %348 = vector.load %arg8[%c5_233, %c0_234, %c0_235] : memref<9x16x48xf32, #tpu.memory_space<vmem>>, vector<1x16x48xf32>
    %349 = vector.shape_cast %348 : vector<1x16x48xf32> to vector<16x48xf32>
    %cst_236 = arith.constant dense<0.000000e+00> : vector<16x256xf32>
    %350 = tpu.matmul %349, %347, %cst_236 {dimension_numbers = #tpu.dot_dimension_numbers<[1], [0], [0], [1], [0, 0, 1, 1], [], []>} : vector<16x48xf32>, vector<48x256xf32>, vector<16x256xf32> -> vector<16x256xf32>
    %351 = arith.addf %344, %350 : vector<16x256xf32>
    %c0_237 = arith.constant 0 : index
    %c135_238 = arith.constant 135 : index
    %352 = vector.load %arg19[%c0_237, %c135_238] : memref<48x1280xf32, #tpu.memory_space<vmem>>, vector<48x256xf32>
    %353 = vector.broadcast %50 : vector<1x256xf32> to vector<48x256xf32>
    %354 = arith.mulf %352, %353 : vector<48x256xf32>
    %c6_239 = arith.constant 6 : index
    %c0_240 = arith.constant 0 : index
    %c0_241 = arith.constant 0 : index
    %355 = vector.load %arg8[%c6_239, %c0_240, %c0_241] : memref<9x16x48xf32, #tpu.memory_space<vmem>>, vector<1x16x48xf32>
    %356 = vector.shape_cast %355 : vector<1x16x48xf32> to vector<16x48xf32>
    %cst_242 = arith.constant dense<0.000000e+00> : vector<16x256xf32>
    %357 = tpu.matmul %356, %354, %cst_242 {dimension_numbers = #tpu.dot_dimension_numbers<[1], [0], [0], [1], [0, 0, 1, 1], [], []>} : vector<16x48xf32>, vector<48x256xf32>, vector<16x256xf32> -> vector<16x256xf32>
    %358 = arith.addf %351, %357 : vector<16x256xf32>
    %c0_243 = arith.constant 0 : index
    %c136_244 = arith.constant 136 : index
    %359 = vector.load %arg19[%c0_243, %c136_244] : memref<48x1280xf32, #tpu.memory_space<vmem>>, vector<48x256xf32>
    %360 = vector.broadcast %47 : vector<1x256xf32> to vector<48x256xf32>
    %361 = arith.mulf %359, %360 : vector<48x256xf32>
    %c7_245 = arith.constant 7 : index
    %c0_246 = arith.constant 0 : index
    %c0_247 = arith.constant 0 : index
    %362 = vector.load %arg8[%c7_245, %c0_246, %c0_247] : memref<9x16x48xf32, #tpu.memory_space<vmem>>, vector<1x16x48xf32>
    %363 = vector.shape_cast %362 : vector<1x16x48xf32> to vector<16x48xf32>
    %cst_248 = arith.constant dense<0.000000e+00> : vector<16x256xf32>
    %364 = tpu.matmul %363, %361, %cst_248 {dimension_numbers = #tpu.dot_dimension_numbers<[1], [0], [0], [1], [0, 0, 1, 1], [], []>} : vector<16x48xf32>, vector<48x256xf32>, vector<16x256xf32> -> vector<16x256xf32>
    %365 = arith.addf %358, %364 : vector<16x256xf32>
    %c0_249 = arith.constant 0 : index
    %c137_250 = arith.constant 137 : index
    %366 = vector.load %arg19[%c0_249, %c137_250] : memref<48x1280xf32, #tpu.memory_space<vmem>>, vector<48x256xf32>
    %367 = vector.broadcast %51 : vector<1x256xf32> to vector<48x256xf32>
    %368 = arith.mulf %366, %367 : vector<48x256xf32>
    %c8_251 = arith.constant 8 : index
    %c0_252 = arith.constant 0 : index
    %c0_253 = arith.constant 0 : index
    %369 = vector.load %arg8[%c8_251, %c0_252, %c0_253] : memref<9x16x48xf32, #tpu.memory_space<vmem>>, vector<1x16x48xf32>
    %370 = vector.shape_cast %369 : vector<1x16x48xf32> to vector<16x48xf32>
    %cst_254 = arith.constant dense<0.000000e+00> : vector<16x256xf32>
    %371 = tpu.matmul %370, %368, %cst_254 {dimension_numbers = #tpu.dot_dimension_numbers<[1], [0], [0], [1], [0, 0, 1, 1], [], []>} : vector<16x48xf32>, vector<48x256xf32>, vector<16x256xf32> -> vector<16x256xf32>
    %372 = arith.addf %365, %371 : vector<16x256xf32>
    %cst_255 = arith.constant 0.000000e+00 : f32
    %373 = vector.broadcast %cst_255 : f32 to vector<16x256xf32>
    %374 = arith.maximumf %372, %373 : vector<16x256xf32>
    %c0_256 = arith.constant 0 : index
    %c0_257 = arith.constant 0 : index
    %375 = vector.load %arg17[%c0_256, %c0_257] : memref<256x1024xf32, #tpu.memory_space<vmem>>, vector<256x1024xf32>
    %cst_258 = arith.constant dense<0.000000e+00> : vector<16x1024xf32>
    %376 = tpu.matmul %374, %375, %cst_258 {dimension_numbers = #tpu.dot_dimension_numbers<[1], [0], [0], [1], [0, 0, 1, 1], [], []>} : vector<16x256xf32>, vector<256x1024xf32>, vector<16x1024xf32> -> vector<16x1024xf32>
    %c0_259 = arith.constant 0 : index
    %c128_260 = arith.constant 128 : index
    %377 = vector.load %arg19[%c0_259, %c128_260] : memref<48x1280xf32, #tpu.memory_space<vmem>>, vector<16x1024xf32>
    tpu.vector_store %arg19[%c0_259, %c128_260], %376 {strides = array<i32>} : memref<48x1280xf32, #tpu.memory_space<vmem>>, vector<16x1024xf32>,
    %c16 = arith.constant 16 : index
    %c128_261 = arith.constant 128 : index
    %378 = vector.load %arg19[%c16, %c128_261] : memref<48x1280xf32, #tpu.memory_space<vmem>>, vector<8x1024xf32>
    tpu.vector_store %arg19[%c16, %c128_261], %153 {strides = array<i32>} : memref<48x1280xf32, #tpu.memory_space<vmem>>, vector<8x1024xf32>,
    %c4_262 = arith.constant 4 : index
    %c0_263 = arith.constant 0 : index
    %c0_264 = arith.constant 0 : index
    %379 = vector.load %arg10[%c4_262, %c0_263, %c0_264] : memref<9x8x24xf32, #tpu.memory_space<vmem>>, vector<1x8x24xf32>
    %380 = vector.shape_cast %379 : vector<1x8x24xf32> to vector<8x24xf32>
    %c0_265 = arith.constant 0 : index
    %c128_266 = arith.constant 128 : index
    %381 = vector.load %arg19[%c0_265, %c128_266] : memref<48x1280xf32, #tpu.memory_space<vmem>>, vector<24x1024xf32>
    %cst_267 = arith.constant dense<0.000000e+00> : vector<8x1024xf32>
    %382 = tpu.matmul %380, %381, %cst_267 {dimension_numbers = #tpu.dot_dimension_numbers<[1], [0], [0], [1], [0, 0, 1, 1], [], []>} : vector<8x24xf32>, vector<24x1024xf32>, vector<8x1024xf32> -> vector<8x1024xf32>
    %c0_268 = arith.constant 0 : index
    %c0_269 = arith.constant 0 : index
    %383 = vector.load %arg11[%c0_268, %c0_269] : memref<8x1xf32, #tpu.memory_space<vmem>>, vector<8x1xf32>
    %384 = vector.broadcast %383 : vector<8x1xf32> to vector<8x1024xf32>
    %385 = arith.addf %382, %384 : vector<8x1024xf32>
    %c0_270 = arith.constant 0 : index
    %c111_271 = arith.constant 111 : index
    %386 = vector.load %arg19[%c0_270, %c111_271] : memref<48x1280xf32, #tpu.memory_space<vmem>>, vector<24x1024xf32>
    %387 = vector.broadcast %23 : vector<1x1024xf32> to vector<24x1024xf32>
    %388 = arith.mulf %386, %387 : vector<24x1024xf32>
    %c0_272 = arith.constant 0 : index
    %c0_273 = arith.constant 0 : index
    %c0_274 = arith.constant 0 : index
    %389 = vector.load %arg10[%c0_272, %c0_273, %c0_274] : memref<9x8x24xf32, #tpu.memory_space<vmem>>, vector<1x8x24xf32>
    %390 = vector.shape_cast %389 : vector<1x8x24xf32> to vector<8x24xf32>
    %cst_275 = arith.constant dense<0.000000e+00> : vector<8x1024xf32>
    %391 = tpu.matmul %390, %388, %cst_275 {dimension_numbers = #tpu.dot_dimension_numbers<[1], [0], [0], [1], [0, 0, 1, 1], [], []>} : vector<8x24xf32>, vector<24x1024xf32>, vector<8x1024xf32> -> vector<8x1024xf32>
    %392 = arith.addf %385, %391 : vector<8x1024xf32>
    %c0_276 = arith.constant 0 : index
    %c112_277 = arith.constant 112 : index
    %393 = vector.load %arg19[%c0_276, %c112_277] : memref<48x1280xf32, #tpu.memory_space<vmem>>, vector<24x1024xf32>
    %394 = vector.broadcast %18 : vector<1x1024xf32> to vector<24x1024xf32>
    %395 = arith.mulf %393, %394 : vector<24x1024xf32>
    %c1_278 = arith.constant 1 : index
    %c0_279 = arith.constant 0 : index
    %c0_280 = arith.constant 0 : index
    %396 = vector.load %arg10[%c1_278, %c0_279, %c0_280] : memref<9x8x24xf32, #tpu.memory_space<vmem>>, vector<1x8x24xf32>
    %397 = vector.shape_cast %396 : vector<1x8x24xf32> to vector<8x24xf32>
    %cst_281 = arith.constant dense<0.000000e+00> : vector<8x1024xf32>
    %398 = tpu.matmul %397, %395, %cst_281 {dimension_numbers = #tpu.dot_dimension_numbers<[1], [0], [0], [1], [0, 0, 1, 1], [], []>} : vector<8x24xf32>, vector<24x1024xf32>, vector<8x1024xf32> -> vector<8x1024xf32>
    %399 = arith.addf %392, %398 : vector<8x1024xf32>
    %c0_282 = arith.constant 0 : index
    %c113_283 = arith.constant 113 : index
    %400 = vector.load %arg19[%c0_282, %c113_283] : memref<48x1280xf32, #tpu.memory_space<vmem>>, vector<24x1024xf32>
    %401 = vector.broadcast %24 : vector<1x1024xf32> to vector<24x1024xf32>
    %402 = arith.mulf %400, %401 : vector<24x1024xf32>
    %c2_284 = arith.constant 2 : index
    %c0_285 = arith.constant 0 : index
    %c0_286 = arith.constant 0 : index
    %403 = vector.load %arg10[%c2_284, %c0_285, %c0_286] : memref<9x8x24xf32, #tpu.memory_space<vmem>>, vector<1x8x24xf32>
    %404 = vector.shape_cast %403 : vector<1x8x24xf32> to vector<8x24xf32>
    %cst_287 = arith.constant dense<0.000000e+00> : vector<8x1024xf32>
    %405 = tpu.matmul %404, %402, %cst_287 {dimension_numbers = #tpu.dot_dimension_numbers<[1], [0], [0], [1], [0, 0, 1, 1], [], []>} : vector<8x24xf32>, vector<24x1024xf32>, vector<8x1024xf32> -> vector<8x1024xf32>
    %406 = arith.addf %399, %405 : vector<8x1024xf32>
    %c0_288 = arith.constant 0 : index
    %c127_289 = arith.constant 127 : index
    %407 = vector.load %arg19[%c0_288, %c127_289] : memref<48x1280xf32, #tpu.memory_space<vmem>>, vector<24x1024xf32>
    %408 = vector.broadcast %10 : vector<1x1024xf32> to vector<24x1024xf32>
    %409 = arith.mulf %407, %408 : vector<24x1024xf32>
    %c3_290 = arith.constant 3 : index
    %c0_291 = arith.constant 0 : index
    %c0_292 = arith.constant 0 : index
    %410 = vector.load %arg10[%c3_290, %c0_291, %c0_292] : memref<9x8x24xf32, #tpu.memory_space<vmem>>, vector<1x8x24xf32>
    %411 = vector.shape_cast %410 : vector<1x8x24xf32> to vector<8x24xf32>
    %cst_293 = arith.constant dense<0.000000e+00> : vector<8x1024xf32>
    %412 = tpu.matmul %411, %409, %cst_293 {dimension_numbers = #tpu.dot_dimension_numbers<[1], [0], [0], [1], [0, 0, 1, 1], [], []>} : vector<8x24xf32>, vector<24x1024xf32>, vector<8x1024xf32> -> vector<8x1024xf32>
    %413 = arith.addf %406, %412 : vector<8x1024xf32>
    %c0_294 = arith.constant 0 : index
    %c129_295 = arith.constant 129 : index
    %414 = vector.load %arg19[%c0_294, %c129_295] : memref<48x1280xf32, #tpu.memory_space<vmem>>, vector<24x1024xf32>
    %415 = vector.broadcast %14 : vector<1x1024xf32> to vector<24x1024xf32>
    %416 = arith.mulf %414, %415 : vector<24x1024xf32>
    %c5_296 = arith.constant 5 : index
    %c0_297 = arith.constant 0 : index
    %c0_298 = arith.constant 0 : index
    %417 = vector.load %arg10[%c5_296, %c0_297, %c0_298] : memref<9x8x24xf32, #tpu.memory_space<vmem>>, vector<1x8x24xf32>
    %418 = vector.shape_cast %417 : vector<1x8x24xf32> to vector<8x24xf32>
    %cst_299 = arith.constant dense<0.000000e+00> : vector<8x1024xf32>
    %419 = tpu.matmul %418, %416, %cst_299 {dimension_numbers = #tpu.dot_dimension_numbers<[1], [0], [0], [1], [0, 0, 1, 1], [], []>} : vector<8x24xf32>, vector<24x1024xf32>, vector<8x1024xf32> -> vector<8x1024xf32>
    %420 = arith.addf %413, %419 : vector<8x1024xf32>
    %c0_300 = arith.constant 0 : index
    %c143_301 = arith.constant 143 : index
    %421 = vector.load %arg19[%c0_300, %c143_301] : memref<48x1280xf32, #tpu.memory_space<vmem>>, vector<24x1024xf32>
    %422 = vector.broadcast %25 : vector<1x1024xf32> to vector<24x1024xf32>
    %423 = arith.mulf %421, %422 : vector<24x1024xf32>
    %c6_302 = arith.constant 6 : index
    %c0_303 = arith.constant 0 : index
    %c0_304 = arith.constant 0 : index
    %424 = vector.load %arg10[%c6_302, %c0_303, %c0_304] : memref<9x8x24xf32, #tpu.memory_space<vmem>>, vector<1x8x24xf32>
    %425 = vector.shape_cast %424 : vector<1x8x24xf32> to vector<8x24xf32>
    %cst_305 = arith.constant dense<0.000000e+00> : vector<8x1024xf32>
    %426 = tpu.matmul %425, %423, %cst_305 {dimension_numbers = #tpu.dot_dimension_numbers<[1], [0], [0], [1], [0, 0, 1, 1], [], []>} : vector<8x24xf32>, vector<24x1024xf32>, vector<8x1024xf32> -> vector<8x1024xf32>
    %427 = arith.addf %420, %426 : vector<8x1024xf32>
    %c0_306 = arith.constant 0 : index
    %c144_307 = arith.constant 144 : index
    %428 = vector.load %arg19[%c0_306, %c144_307] : memref<48x1280xf32, #tpu.memory_space<vmem>>, vector<24x1024xf32>
    %429 = vector.broadcast %22 : vector<1x1024xf32> to vector<24x1024xf32>
    %430 = arith.mulf %428, %429 : vector<24x1024xf32>
    %c7_308 = arith.constant 7 : index
    %c0_309 = arith.constant 0 : index
    %c0_310 = arith.constant 0 : index
    %431 = vector.load %arg10[%c7_308, %c0_309, %c0_310] : memref<9x8x24xf32, #tpu.memory_space<vmem>>, vector<1x8x24xf32>
    %432 = vector.shape_cast %431 : vector<1x8x24xf32> to vector<8x24xf32>
    %cst_311 = arith.constant dense<0.000000e+00> : vector<8x1024xf32>
    %433 = tpu.matmul %432, %430, %cst_311 {dimension_numbers = #tpu.dot_dimension_numbers<[1], [0], [0], [1], [0, 0, 1, 1], [], []>} : vector<8x24xf32>, vector<24x1024xf32>, vector<8x1024xf32> -> vector<8x1024xf32>
    %434 = arith.addf %427, %433 : vector<8x1024xf32>
    %c0_312 = arith.constant 0 : index
    %c145_313 = arith.constant 145 : index
    %435 = vector.load %arg19[%c0_312, %c145_313] : memref<48x1280xf32, #tpu.memory_space<vmem>>, vector<24x1024xf32>
    %436 = vector.broadcast %26 : vector<1x1024xf32> to vector<24x1024xf32>
    %437 = arith.mulf %435, %436 : vector<24x1024xf32>
    %c8_314 = arith.constant 8 : index
    %c0_315 = arith.constant 0 : index
    %c0_316 = arith.constant 0 : index
    %438 = vector.load %arg10[%c8_314, %c0_315, %c0_316] : memref<9x8x24xf32, #tpu.memory_space<vmem>>, vector<1x8x24xf32>
    %439 = vector.shape_cast %438 : vector<1x8x24xf32> to vector<8x24xf32>
    %cst_317 = arith.constant dense<0.000000e+00> : vector<8x1024xf32>
    %440 = tpu.matmul %439, %437, %cst_317 {dimension_numbers = #tpu.dot_dimension_numbers<[1], [0], [0], [1], [0, 0, 1, 1], [], []>} : vector<8x24xf32>, vector<24x1024xf32>, vector<8x1024xf32> -> vector<8x1024xf32>
    %441 = arith.addf %434, %440 : vector<8x1024xf32>
    %cst_318 = arith.constant 0.000000e+00 : f32
    %442 = vector.broadcast %cst_318 : f32 to vector<8x1024xf32>
    %443 = arith.maximumf %441, %442 : vector<8x1024xf32>
    %c0_319 = arith.constant 0 : index
    %c0_320 = arith.constant 0 : index
    %444 = vector.load %arg12[%c0_319, %c0_320] : memref<3x8xf32, #tpu.memory_space<vmem>>, vector<3x8xf32>
    %cst_321 = arith.constant dense<0.000000e+00> : vector<3x1024xf32>
    %445 = tpu.matmul %444, %443, %cst_321 {dimension_numbers = #tpu.dot_dimension_numbers<[1], [0], [0], [1], [0, 0, 1, 1], [], []>} : vector<3x8xf32>, vector<8x1024xf32>, vector<3x1024xf32> -> vector<3x1024xf32>
    %c0_322 = arith.constant 0 : index
    %c0_323 = arith.constant 0 : index
    %446 = vector.load %arg13[%c0_322, %c0_323] : memref<3x1xf32, #tpu.memory_space<vmem>>, vector<3x1xf32>
    %447 = vector.broadcast %446 : vector<3x1xf32> to vector<3x1024xf32>
    %448 = arith.addf %445, %447 : vector<3x1024xf32>
    %449 = vector.extract_strided_slice %448 {offsets = [0, 0], sizes = [3, 256], strides = [1, 1]} : vector<3x1024xf32> to vector<3x256xf32>
    %c0_324 = arith.constant 0 : index
    %c0_325 = arith.constant 0 : index
    %c0_326 = arith.constant 0 : index
    %450 = vector.load %arg18[%c0_324, %c0_325, %c0_326] : memref<4x3x256xf32, #tpu.memory_space<vmem>>, vector<1x3x256xf32>
    %451 = vector.shape_cast %450 : vector<1x3x256xf32> to vector<3x256xf32>
    %452 = vector.shape_cast %449 : vector<3x256xf32> to vector<1x3x256xf32>
    tpu.vector_store %arg18[%c0_324, %c0_325, %c0_326], %452 {strides = array<i32>} : memref<4x3x256xf32, #tpu.memory_space<vmem>>, vector<1x3x256xf32>,
    %453 = vector.extract_strided_slice %448 {offsets = [0, 256], sizes = [3, 256], strides = [1, 1]} : vector<3x1024xf32> to vector<3x256xf32>
    %c1_327 = arith.constant 1 : index
    %c0_328 = arith.constant 0 : index
    %c0_329 = arith.constant 0 : index
    %454 = vector.load %arg18[%c1_327, %c0_328, %c0_329] : memref<4x3x256xf32, #tpu.memory_space<vmem>>, vector<1x3x256xf32>
    %455 = vector.shape_cast %454 : vector<1x3x256xf32> to vector<3x256xf32>
    %456 = vector.shape_cast %453 : vector<3x256xf32> to vector<1x3x256xf32>
    tpu.vector_store %arg18[%c1_327, %c0_328, %c0_329], %456 {strides = array<i32>} : memref<4x3x256xf32, #tpu.memory_space<vmem>>, vector<1x3x256xf32>,
    %457 = vector.extract_strided_slice %448 {offsets = [0, 512], sizes = [3, 256], strides = [1, 1]} : vector<3x1024xf32> to vector<3x256xf32>
    %c2_330 = arith.constant 2 : index
    %c0_331 = arith.constant 0 : index
    %c0_332 = arith.constant 0 : index
    %458 = vector.load %arg18[%c2_330, %c0_331, %c0_332] : memref<4x3x256xf32, #tpu.memory_space<vmem>>, vector<1x3x256xf32>
    %459 = vector.shape_cast %458 : vector<1x3x256xf32> to vector<3x256xf32>
    %460 = vector.shape_cast %457 : vector<3x256xf32> to vector<1x3x256xf32>
    tpu.vector_store %arg18[%c2_330, %c0_331, %c0_332], %460 {strides = array<i32>} : memref<4x3x256xf32, #tpu.memory_space<vmem>>, vector<1x3x256xf32>,
    %461 = vector.extract_strided_slice %448 {offsets = [0, 768], sizes = [3, 256], strides = [1, 1]} : vector<3x1024xf32> to vector<3x256xf32>
    %c3_333 = arith.constant 3 : index
    %c0_334 = arith.constant 0 : index
    %c0_335 = arith.constant 0 : index
    %462 = vector.load %arg18[%c3_333, %c0_334, %c0_335] : memref<4x3x256xf32, #tpu.memory_space<vmem>>, vector<1x3x256xf32>
    %463 = vector.shape_cast %462 : vector<1x3x256xf32> to vector<3x256xf32>
    %464 = vector.shape_cast %461 : vector<3x256xf32> to vector<1x3x256xf32>
    tpu.vector_store %arg18[%c3_333, %c0_334, %c0_335], %464 {strides = array<i32>} : memref<4x3x256xf32, #tpu.memory_space<vmem>>, vector<1x3x256xf32>,
    return
  }
  func.func @transform_0(%arg0: i32) -> (i32, i32, i32) {
    %c0_i32 = arith.constant 0 : i32
    %c0_i32_0 = arith.constant 0 : i32
    %c0_i32_1 = arith.constant 0 : i32
    return %arg0, %c0_i32, %c0_i32_0 : i32, i32, i32
  }
  func.func @transform_1(%arg0: i32) -> (i32, i32, i32) {
    %c0_i32 = arith.constant 0 : i32
    %c0_i32_0 = arith.constant 0 : i32
    %c0_i32_1 = arith.constant 0 : i32
    %c0_i32_2 = arith.constant 0 : i32
    return %c0_i32, %c0_i32_0, %c0_i32_1 : i32, i32, i32
  }
  func.func @transform_2(%arg0: i32) -> (i32, i32) {
    %c0_i32 = arith.constant 0 : i32
    %c0_i32_0 = arith.constant 0 : i32
    %c0_i32_1 = arith.constant 0 : i32
    return %c0_i32, %c0_i32_0 : i32, i32
  }
  func.func @transform_3(%arg0: i32) -> (i32, i32, i32) {
    %c0_i32 = arith.constant 0 : i32
    %c0_i32_0 = arith.constant 0 : i32
    %c0_i32_1 = arith.constant 0 : i32
    %c0_i32_2 = arith.constant 0 : i32
    return %c0_i32, %c0_i32_0, %c0_i32_1 : i32, i32, i32
  }
  func.func @transform_4(%arg0: i32) -> (i32, i32) {
    %c0_i32 = arith.constant 0 : i32
    %c0_i32_0 = arith.constant 0 : i32
    %c0_i32_1 = arith.constant 0 : i32
    return %c0_i32, %c0_i32_0 : i32, i32
  }
  func.func @transform_5(%arg0: i32) -> (i32, i32, i32) {
    %c0_i32 = arith.constant 0 : i32
    %c0_i32_0 = arith.constant 0 : i32
    %c0_i32_1 = arith.constant 0 : i32
    %c0_i32_2 = arith.constant 0 : i32
    return %c0_i32, %c0_i32_0, %c0_i32_1 : i32, i32, i32
  }
  func.func @transform_6(%arg0: i32) -> (i32, i32) {
    %c0_i32 = arith.constant 0 : i32
    %c0_i32_0 = arith.constant 0 : i32
    %c0_i32_1 = arith.constant 0 : i32
    return %c0_i32, %c0_i32_0 : i32, i32
  }
  func.func @transform_7(%arg0: i32) -> (i32, i32, i32) {
    %c0_i32 = arith.constant 0 : i32
    %c0_i32_0 = arith.constant 0 : i32
    %c0_i32_1 = arith.constant 0 : i32
    %c0_i32_2 = arith.constant 0 : i32
    return %c0_i32, %c0_i32_0, %c0_i32_1 : i32, i32, i32
  }
  func.func @transform_8(%arg0: i32) -> (i32, i32) {
    %c0_i32 = arith.constant 0 : i32
    %c0_i32_0 = arith.constant 0 : i32
    %c0_i32_1 = arith.constant 0 : i32
    return %c0_i32, %c0_i32_0 : i32, i32
  }
  func.func @transform_9(%arg0: i32) -> (i32, i32, i32) {
    %c0_i32 = arith.constant 0 : i32
    %c0_i32_0 = arith.constant 0 : i32
    %c0_i32_1 = arith.constant 0 : i32
    %c0_i32_2 = arith.constant 0 : i32
    return %c0_i32, %c0_i32_0, %c0_i32_1 : i32, i32, i32
  }
  func.func @transform_10(%arg0: i32) -> (i32, i32) {
    %c0_i32 = arith.constant 0 : i32
    %c0_i32_0 = arith.constant 0 : i32
    %c0_i32_1 = arith.constant 0 : i32
    return %c0_i32, %c0_i32_0 : i32, i32
  }
  func.func @transform_11(%arg0: i32) -> (i32, i32) {
    %c0_i32 = arith.constant 0 : i32
    %c0_i32_0 = arith.constant 0 : i32
    %c0_i32_1 = arith.constant 0 : i32
    return %c0_i32, %c0_i32_0 : i32, i32
  }
  func.func @transform_12(%arg0: i32) -> (i32, i32) {
    %c0_i32 = arith.constant 0 : i32
    %c0_i32_0 = arith.constant 0 : i32
    %c0_i32_1 = arith.constant 0 : i32
    return %c0_i32, %c0_i32_0 : i32, i32
  }
  func.func @transform_13(%arg0: i32) -> (i32, i32) {
    %c0_i32 = arith.constant 0 : i32
    %c0_i32_0 = arith.constant 0 : i32
    %c0_i32_1 = arith.constant 0 : i32
    return %c0_i32, %c0_i32_0 : i32, i32
  }
  func.func @transform_14(%arg0: i32) -> (i32, i32) {
    %c0_i32 = arith.constant 0 : i32
    %c0_i32_0 = arith.constant 0 : i32
    %c0_i32_1 = arith.constant 0 : i32
    return %c0_i32, %c0_i32_0 : i32, i32
  }
  func.func @transform_15(%arg0: i32) -> (i32, i32) {
    %c0_i32 = arith.constant 0 : i32
    %c0_i32_0 = arith.constant 0 : i32
    %c0_i32_1 = arith.constant 0 : i32
    return %c0_i32, %c0_i32_0 : i32, i32
  }
  func.func @transform_16(%arg0: i32) -> (i32, i32) {
    %c0_i32 = arith.constant 0 : i32
    %c0_i32_0 = arith.constant 0 : i32
    %c0_i32_1 = arith.constant 0 : i32
    return %c0_i32, %c0_i32_0 : i32, i32
  }
  func.func @transform_17(%arg0: i32) -> (i32, i32, i32) {
    %c0_i32 = arith.constant 0 : i32
    %c0_i32_0 = arith.constant 0 : i32
    %c0_i32_1 = arith.constant 0 : i32
    return %arg0, %c0_i32, %c0_i32_0 : i32, i32, i32
  }
}

</mosaic_0001>

<bundles_post_ra>
// kernel: unet_predictor_forward.1
= control target key start
LH: loop header
LB: loop body
LE: loop exit
PB: predicated region body
PF: predicated region fallthrough
CT: control target
= control target key end

     0   :  { %s21908_s0 = inlined_call_operand.vmem [shape: f32[8,4,256], index: 0, kind: input, shape index: {}]   ;;  %s21909_s1 = inlined_call_operand.vmem [shape: f32[9,8,4], index: 1, kind: input, shape index: {}]   ;;  %s21910_s2 = inlined_call_operand.vmem [shape: f32[8,1], index: 2, kind: input, shape index: {}]   ;;  %s21911_s3 = inlined_call_operand.vmem [shape: f32[9,16,8], index: 3, kind: input, shape index: {}]   ;;  %s21912_s4 = inlined_call_operand.vmem [shape: f32[16,1], index: 4, kind: input, shape index: {}]   ;;  %s21913_s5 = inlined_call_operand.vmem [shape: f32[9,32,16], index: 5, kind: input, shape index: {}]   ;;  %s21914_s6 = inlined_call_operand.vmem [shape: f32[32,1], index: 6, kind: input, shape index: {}]   ;;  %s21915_s7 = inlined_call_operand.vmem [shape: f32[9,16,48], index: 7, kind: input, shape index: {}]   ;;  %s21916_s8 = inlined_call_operand.vmem [shape: f32[16,1], index: 8, kind: input, shape index: {}]   ;;  %s21917_s9 = inlined_call_operand.vmem [shape: f32[9,8,24], index: 9, kind: input, shape index: {}]   ;;  %s21918_s10 = inlined_call_operand.vmem [shape: f32[8,1], index: 10, kind: input, shape index: {}]   ;;  %s21919_s11 = inlined_call_operand.vmem [shape: f32[3,8], index: 11, kind: input, shape index: {}]   ;;  %s21920_s12 = inlined_call_operand.vmem [shape: f32[3,1], index: 12, kind: input, shape index: {}]   ;;  %s21921_s13 = inlined_call_operand.hbm [shape: f32[1024,256], index: 13, kind: input, shape index: {}]   ;;  %s21922_s14 = inlined_call_operand.vmem [shape: f32[256,64], index: 14, kind: input, shape index: {}]   ;;  %s21923_s15 = inlined_call_operand.vmem [shape: f32[64,256], index: 15, kind: input, shape index: {}]   ;;  %s21924_s16 = inlined_call_operand.hbm [shape: f32[256,1024], index: 16, kind: input, shape index: {}]   ;;  %s21925_s17 = inlined_call_operand.vmem [shape: f32[8,3,256], index: 17, kind: output, shape index: {}]  }
   0x1   :  { %22177 = sst [smem:[#allocation104_spill]] %s21908_s0 }
   0x2   :  { %22178 = sst [smem:[#allocation105_spill]] %s21909_s1 }
   0x3   :  { %22179 = sst [smem:[#allocation106_spill]] %s21919_s11 }
   0x4   :  { %22180 = sst [smem:[#allocation107_spill]] %s21925_s17 }
   0x5   :  { %22 = vsyncpa [#allocation4], 0 }
   0x6   :  { %23 = vsyncpa [#allocation6], 0  ;;  %s17071_s24 = smov 0  }
   0x7 LB: > { %s16952_s25 = smov [#allocation3]   ;;  %s21930_s27 = sadd.s32 4294967295, %s16950_s24   ;;  %s16950_s24 = sphi %s17071_s24, %s29_s24  }
   0x8   : > { %s470_s26 = sshll.u32 %s16952_s25, 4  ;;  %p14156_p0 = scmp.ge.s32.totalorder %s16950_s24, 1  ;;  %s471_s26 = int_to_ptr.vmem [resolvable:$true] %s470_s26 }
   0x9   : > { %p422_p1 = scmp.lt.s32.totalorder %s16950_s24, 3  ;;  %p17085_p3 = scmp.eq.s32.totalorder %s21930_s27, 0 }
   0xa   : > { %s16953_s0 = smov [#allocation5]   ;;  %s16880_s20 = scalar_lea.hbm %s21921_s13, 32768 }
   0xb   : > { %p17079_p2 = pnand %p14156_p0, %p422_p1  ;;  %s489_s30 = sshll.u32 %s16953_s0, 4  ;;  %s17097_s30 = int_to_ptr.vmem [resolvable:$true] %s489_s30 }
   0xc   : > { %s22182_s29 = scalar_select %p17085_p3, 1, 0 }
   0xd   : > { %s22181_s28 = scalar_select %p17079_p2, 1, 0 }
   0xe   : > { %p15815_p4 = pneg %p17079_p2  ;;  %p16881_p6 = scmp.ne.s32.totalorder %s21921_s13, %s16880_s20 }
   0xf   : > { %p16887_p10 = scmp.lt.u32.totalorder %s16880_s20, %s21921_s13 }
  0x10   : > { %p17093_p5 = pnand %p17085_p3, %p15815_p4 }
  0x12   : > { %p16882_p7 = pneg %p17093_p5 }
  0x14   : > { %p16883_p8 = pnand %p16882_p7, %p16881_p6 }
  0x16   : > { %p16884_p9 = pneg %p16883_p8 }
  0x18   : > { %p16889_p11 = pnand %p16887_p10, %p16884_p9 }
  0x1a   : > { %16892 = shalt.err (!%p16889_p11)
}
  0x1b   : > { %s16893_s0 = scalar_lea.vmem %s471_s26, 32768  ;;  %p16901_p1 = scmp.lt.s32.totalorder %s471_s26, %s471_s26 }
  0x1c   : > { %p16894_p12 = scmp.ne.s32.totalorder %s471_s26, %s16893_s0  ;;  %p16902_p4 = scmp.lt.s32.totalorder %s16893_s0, %s16893_s0 }
  0x1e   : > { %p16896_p13 = pnand %p16894_p12, %p16882_p7  ;;  %p16903_p3 = por %p16902_p4, %p16901_p1 }
  0x20   : > { %p16897_p0 = pneg %p16896_p13 }
  0x22   : > { %p16904_p2 = pnand %p16903_p3, %p16897_p0 }
  0x24   : > { %16907 = shalt.err (!%p16904_p2)
}
  0x25   : > { %s16954_s19 = smov 256   ;;  %s16955_s1 = smov 16  }
  0x26   : > { %15818 = dma.hbm_to_vmem [thread:$0]  (!%p17093_p5), %s21921_s13, 32768, %s471_s26, [#allocation4], %s16954_s19, %s16954_s19, %s16955_s1  }
  0x27   : > { %s16908_s25 = scalar_lea.hbm %s21924_s16, 32768 }
  0x28   : > { %p16909_p6 = scmp.ne.s32.totalorder %s21924_s16, %s16908_s25  ;;  %p16915_p8 = scmp.lt.u32.totalorder %s16908_s25, %s21924_s16 }
  0x2a   : > { %p16911_p2 = pnand %p16909_p6, %p16882_p7 }
  0x2c   : > { %p16912_p3 = pneg %p16911_p2 }
  0x2e   : > { %p16917_p9 = pnand %p16915_p8, %p16912_p3 }
  0x30   : > { %16920 = shalt.err (!%p16917_p9)
}
  0x31   : > { %s16921_s26 = scalar_lea.vmem %s17097_s30, 32768  ;;  %p16929_p13 = scmp.lt.s32.totalorder %s17097_s30, %s17097_s30 }
  0x32   : > { %p16922_p10 = scmp.ne.s32.totalorder %s17097_s30, %s16921_s26  ;;  %p16930_p0 = scmp.lt.s32.totalorder %s16921_s26, %s16921_s26 }
  0x34   : > { %p16924_p11 = pnand %p16922_p10, %p16882_p7  ;;  %p16931_p1 = por %p16930_p0, %p16929_p13 }
  0x36   : > { %p16925_p12 = pneg %p16924_p11 }
  0x38   : > { %p16932_p4 = pnand %p16931_p1, %p16925_p12 }
  0x3a   : > { %16935 = shalt.err (!%p16932_p4)
}
  0x3b   : > { %s16956_s11 = smov 1024   ;;  %s16957_s17 = smov 64  }
  0x3c   : > { %15821 = dma.hbm_to_vmem [thread:$0]  (!%p17093_p5), %s21924_s16, 32768, %s17097_s30, [#allocation6], %s16956_s11, %s16956_s11, %s16957_s17  }
  0x3d   : > { %p22184_p6 = scmp.ne.s32.totalorder %s22181_s28, 0 }
  0x3f   : > { %515 = sbr.rel (%p22184_p6) target bundleno = 4371 (0x1113), region = 88 }
  0x46   : > { %p22185_p7 = scmp.ne.s32.totalorder %s22182_s29, 0 }
  0x48   : > { %16941 = dma.done.wait (%p22185_p7), [#allocation4], 32768  }
  0x49   : > { %16943 = vsyncadd (%p22185_p7), [#allocation4], 4294934528  ;;  %v647_v0 = vlaneseq }
  0x4a   : > { %16945 = dma.done.wait (%p22185_p7), [#allocation6], 32768  }
  0x4b   : > { %16947 = vsyncadd (%p22185_p7), [#allocation6], 4294934528  ;;  %v16958_v1 = vmov 0.0   ;;  %v17169_v2 = vand.u32 127, %v647_v0  ;;  %s22186_s28 = sadd.s32 4294967295, %s16950_s24   ;;  %s22038_s18 = smov 111  }
  0x4c   : > { %621 = vst [vmem:[#allocation2 + $0x110] sm:$0xff] %v16958_v1  ;;  %587 = vst [vmem:[#allocation2] sm:$0xff] %v16958_v1  ;;  %989 = vmatprep.mubr.f32.mxu0 %v16958_v1  ;;  %1060 = vmatprep.mubr.f32.mxu1 %v16958_v1  ;;  %s14163_s29 = sshll.u32 %s22186_s28, 2  ;;  %v16960_v21 = vmov 1.0   ;;  %s22187_s21 = sld [smem:[#allocation104_spill]] }
  0x4d   : > { %588 = vst [vmem:[#allocation2 + $0x8] sm:$0xff] %v16958_v1  ;;  %589 = vst [vmem:[#allocation2 + $0x10] sm:$0xff] %v16958_v1  ;;  %v17172_v3 = vand.u32 15, %v17169_v2  ;;  %v664_v4 = vand.u32 255, %v17169_v2  ;;  %v17176_v5 = vadd.s32 256, %v17169_v2  ;;  %v17179_v6 = vadd.s32 128, %v17169_v2 }
  0x4e   : > { %590 = vst [vmem:[#allocation2 + $0x18] sm:$0xff] %v16958_v1  ;;  %591 = vst [vmem:[#allocation2 + $0x20] sm:$0xff] %v16958_v1  ;;  %v17184_v7 = vadd.s32 384, %v17169_v2  ;;  %v17187_v8 = vadd.s32 640, %v17169_v2  ;;  %v17190_v9 = vadd.s32 896, %v17169_v2  ;;  %v17193_v10 = vadd.s32 512, %v17169_v2 }
  0x4f   : > { %592 = vst [vmem:[#allocation2 + $0x28] sm:$0xff] %v16958_v1  ;;  %593 = vst [vmem:[#allocation2 + $0x30] sm:$0xff] %v16958_v1  ;;  %p574_p5 = scmp.lt.s32.totalorder %s14163_s29, 7  ;;  %vm672_vm0 = vcmp.ge.s32.totalorder %v17172_v3, 1  ;;  %vm720_vm1 = vcmp.ge.s32.totalorder %v664_v4, 16  ;;  %v666_v11 = vand.u32 255, %v17176_v5 }
  0x50   : > { %594 = vst [vmem:[#allocation2 + $0x38] sm:$0xff] %v16958_v1  ;;  %595 = vst [vmem:[#allocation2 + $0x40] sm:$0xff] %v16958_v1  ;;  %v657_v12 = vand.u32 15, %v17179_v6  ;;  %v17199_v13 = vsel %vm672_vm0, 1.0, %v16958_v1  ;;  %v17202_v14 = vsel %vm720_vm1, 1.0, %v16958_v1  ;;  %v659_v15 = vand.u32 15, %v17184_v7 }
  0x51   : > { %596 = vst [vmem:[#allocation2 + $0x48] sm:$0xff] %v16958_v1  ;;  %v658_v16 = vand.u32 15, %v17176_v5  ;;  %s22636_s29 = smov (!%p574_p5, %s14163_s29), 7  ;;  %v768_v17 = vmul.f32 %v17202_v14, %v17199_v13  ;;  %vm722_vm2 = vcmp.ge.s32.totalorder %v666_v11, 16  ;;  %v661_v18 = vand.u32 15, %v17187_v8  ;;  %s22040_s23 = smov 112  }
  0x52   : > { %vm673_vm3 = vcmp.ge.s32.totalorder %v657_v12, 1  ;;  %v17214_v19 = vsel %vm722_vm2, 1.0, %v16958_v1  ;;  %vm675_vm4 = vcmp.ge.s32.totalorder %v659_v15, 1  ;;  %s22037_s30 = sshll.u32 %s22636_s29, 3  ;;  %v663_v25 = vand.u32 15, %v17190_v9  ;;  %s22042_s25 = smov 113  }
  0x53   : > { %v17217_v20 = vsel %vm673_vm3, 1.0, %v16958_v1  ;;  %vm674_vm5 = vcmp.ge.s32.totalorder %v658_v16, 1  ;;  %1218 = vrot.lane.b32.xlu0 %v768_v17, %s22038_s18  ;;  %v15878_v22 = vpack.i.bf16 %v16960_v21, %v17214_v19  ;;  %v17226_v23 = vsel %vm675_vm4, 1.0, %v16958_v1  ;;  %s578_s22 = scalar_lea.vmem %s22187_s21, %s22037_s30  ;;  %s22077_s0 = smov 127  }
  0x54   : > { %v17229_v24 = vsel %vm674_vm5, 1.0, %v16958_v1  ;;  %v15863_v26 = vpack.i.bf16 %v17226_v23, %v17217_v20  ;;  %vm677_vm6 = vcmp.ge.s32.totalorder %v661_v18, 1  ;;  %v660_v27 = vand.u32 15, %v17193_v10  ;;  %v14207_v28 = vld [vmem:[%s578_s22 + $0x18] sm:$0xff]  ;;  %v17242_v29 = vld [vmem:[%s578_s22] sm:$0xff]  ;;  %v17244_v30 = vld [vmem:[%s578_s22 + $0x8] sm:$0xff] }
  0x55   : > { %15879 = vrot.lane.b32.xlu1 %v15878_v22, %s22040_s23  ;;  %v770_v31 = vmul.f32 %v17214_v19, %v17229_v24  ;;  %vm679_vm7 = vcmp.ge.s32.totalorder %v663_v25, 1  ;;  %v17250_v32 = vsel %vm677_vm6, 1.0, %v16958_v1  ;;  %v668_v33 = vand.u32 255, %v17193_v10  ;;  %878 = vst [vmem:[#allocation2 + $0x38] sm:$0xf] %v14207_v28  ;;  %v14206_v34 = vld [vmem:[%s578_s22 + $0x10] sm:$0xff] }
  0x56   : > { %857 = vst [vmem:[#allocation2 + $0x8] sm:$0xf] %v17242_v29  ;;  %864 = vst [vmem:[#allocation2 + $0x18] sm:$0xf] %v17244_v30  ;;  %v17256_v35 = vsel %vm679_vm7, 1.0, %v16958_v1  ;;  %vm676_vm8 = vcmp.ge.s32.totalorder %v660_v27, 1  ;;  %v15873_v43 = vpack.i.bf16 %v16960_v21, %v17202_v14  ;;  %v876_v54 = vcombine.high %v14207_v28, %v14207_v28 }
  0x57   : > { %v654_v36 = vadd.s32 768, %v17169_v2  ;;  %871 = vst [vmem:[#allocation2 + $0x28] sm:$0xf] %v14206_v34  ;;  %15864 = vrot.lane.b32.xlu0 %v15863_v26, %s22038_s18  ;;  %v15868_v37 = vpack.i.bf16 %v17256_v35, %v17250_v32  ;;  %v17263_v38 = vsel %vm676_vm8, 1.0, %v16958_v1  ;;  %vm724_vm9 = vcmp.ge.s32.totalorder %v668_v33, 16  ;;  %s22079_s26 = smov 1  }
  0x58   : > { %v14187_v39 = vsel %vm724_vm9, 1.0, %v16958_v1  ;;  %vm696_vm12 = vcmp.le.s32.totalorder %v17172_v3, 14  ;;  %vm697_vm13 = vcmp.le.s32.totalorder %v657_v12, 14  ;;  %vm699_vm14 = vcmp.le.s32.totalorder %v659_v15, 14  ;;  %879 = vst [vmem:[#allocation2 + $0x40] sm:$0xf] %v876_v54 }
  0x59   : > { %v662_v40 = vand.u32 15, %v654_v36  ;;  %v670_v41 = vand.u32 255, %v654_v36  ;;  %1222 = vrot.lane.b32.xlu1 %v770_v31, %s22038_s18  ;;  %v772_v42 = vmul.f32 %v14187_v39, %v17263_v38  ;;  %v15883_v47 = vpack.i.bf16 %v16960_v21, %v14187_v39  ;;  %s22044_s11 = smov 15   ;;  %s22046_s17 = smov 16  }
  0x5a   : > { %v17283_v48 = vsel %vm696_vm12, 1.0, %v16958_v1  ;;  %vm698_vm15 = vcmp.le.s32.totalorder %v658_v16, 14  ;;  %v17290_v50 = vsel %vm697_vm13, 1.0, %v16958_v1  ;;  %v17293_v51 = vsel %vm699_vm14, 1.0, %v16958_v1  ;;  %s22048_s27 = smov 17   ;;  %s22191_s1 = sld [smem:[#allocation105_spill]] }
  0x5b   : > { %vm678_vm10 = vcmp.ge.s32.totalorder %v662_v40, 1  ;;  %vm726_vm11 = vcmp.ge.s32.totalorder %v670_v41, 16  ;;  %15869 = vrot.lane.b32.xlu0 %v15868_v37, %s22038_s18  ;;  %v776_v52 = vmul.f32 %v17202_v14, %v17283_v48  ;;  %vm700_vm0 = vcmp.le.s32.totalorder %v660_v27, 14  ;;  %s22050_s19 = smov 119   ;;  %s22075_s28 = smov 120  }
  0x5c   : > { %v17272_v44 = vsel %vm678_vm10, 1.0, %v16958_v1  ;;  %v14188_v45 = vsel %vm726_vm11, 1.0, %v16958_v1  ;;  %v17299_v53 = vsel %vm698_vm15, 1.0, %v16958_v1  ;;  %vm701_vm1 = vcmp.le.s32.totalorder %v661_v18, 14  ;;  %s22052_s20 = smov 121   ;;  %s22054_s21 = smov 7  }
  0x5d   : > { %1226 = vrot.lane.b32.xlu1 %v772_v42, %s22038_s18  ;;  %v774_v46 = vmul.f32 %v14188_v45, %v17272_v44  ;;  %v15888_v49 = vpack.i.bf16 %v16960_v21, %v14188_v45  ;;  %v15893_v55 = vpack.i.bf16 %v17293_v51, %v17290_v50  ;;  %vm703_vm2 = vcmp.le.s32.totalorder %v663_v25, 14  ;;  %s16973_s22 = smov 9   ;;  %s22056_s30 = smov 8  }
  0x5e   : > { %v17307_v56 = vsel %vm700_vm0, 1.0, %v16958_v1  ;;  %v778_v57 = vmul.f32 %v17214_v19, %v17299_v53  ;;  %v17313_v58 = vsel %vm701_vm1, 1.0, %v16958_v1  ;;  %vm702_vm3 = vcmp.le.s32.totalorder %v662_v40, 14 }
  0x5f   : > { %15874 = vrot.lane.b32.xlu0 %v15873_v43, %s22040_s23  ;;  %v17316_v59 = vsel %vm703_vm2, 1.0, %v16958_v1  ;;  %v855_v60 = vcombine.high %v17242_v29, %v17242_v29  ;;  %v862_v61 = vcombine.high %v17244_v30, %v17244_v30  ;;  %v869_v62 = vcombine.high %v14206_v34, %v14206_v34 }
  0x60   : > { %v780_v63 = vmul.f32 %v14187_v39, %v17307_v56  ;;  %v17325_v0 = vsel %vm702_vm3, 1.0, %v16958_v1  ;;  %v15898_v4 = vpack.i.bf16 %v17316_v59, %v17313_v58  ;;  %v15903_v10 = vpack.i.bf16 %v17217_v20, %v17199_v13 }
  0x61   : > { %1230 = vrot.lane.b32.xlu1 %v774_v46, %s22038_s18  ;;  %858 = vst [vmem:[#allocation2 + $0x10] sm:$0xf] %v855_v60  ;;  %865 = vst [vmem:[#allocation2 + $0x20] sm:$0xf] %v862_v61  ;;  %v782_v5 = vmul.f32 %v14188_v45, %v17325_v0  ;;  %v15908_v11 = vpack.i.bf16 %v17226_v23, %v17229_v24  ;;  %v15913_v12 = vpack.i.bf16 %v17250_v32, %v17263_v38  ;;  %v17419_v45 = vld [vmem:[#allocation2 + $0x40] sm:$0xf] }
  0x62   : > { %872 = vst [vmem:[#allocation2 + $0x30] sm:$0xf] %v869_v62  ;;  %v15918_v14 = vpack.i.bf16 %v17256_v35, %v17272_v44  ;;  %v15923_v15 = vpack.i.bf16 %v17290_v50, %v17283_v48  ;;  %v665_v16 = vand.u32 255, %v17179_v6  ;;  %v15928_v17 = vpack.i.bf16 %v17293_v51, %v17299_v53 }
  0x63   : > { %15884 = vrot.lane.b32.xlu0 %v15883_v47, %s22040_s23  ;;  %v15933_v18 = vpack.i.bf16 %v17313_v58, %v17307_v56  ;;  %v667_v19 = vand.u32 255, %v17184_v7  ;;  %v15938_v22 = vpack.i.bf16 %v17316_v59, %v17325_v0  ;;  %v669_v25 = vand.u32 255, %v17187_v8 }
  0x64   : > { %vm745_vm4 = vcmp.lt.s32.totalorder %v665_v16, 240  ;;  %v671_v27 = vand.u32 255, %v17190_v9  ;;  %v15943_v28 = vpack.i.bf16 %v17229_v24, %v17199_v13  ;;  %v15948_v9 = vpack.i.bf16 %v17272_v44, %v17263_v38  ;;  %v17404_v38 = vld [vmem:[#allocation2] sm:$0xf]  ;;  %v17479_v16 = vld [vmem:[#allocation2 + $0x28] sm:$0xf] }
  0x65   : > { %15889 = vrot.lane.b32.xlu1 %v15888_v49, %s22040_s23  ;;  %v14189_v26 = vsel %vm745_vm4, 1.0, %v16958_v1  ;;  %vm747_vm5 = vcmp.lt.s32.totalorder %v667_v19, 240  ;;  %vm749_vm6 = vcmp.lt.s32.totalorder %v669_v25, 240  ;;  %v15973_v34 = vpack.i.bf16 %v17299_v53, %v17283_v48  ;;  %v17489_v19 = vld [vmem:[#allocation2 + $0x18] sm:$0xf] }
  0x66   : > { %v785_v7 = vmul.f32 %v14189_v26, %v17217_v20  ;;  %v14190_v29 = vsel %vm747_vm5, 1.0, %v16958_v1  ;;  %vm751_vm7 = vcmp.lt.s32.totalorder %v671_v27, 240  ;;  %v14191_v30 = vsel %vm749_vm6, 1.0, %v16958_v1 }
  0x67   : > { %2015 = vrot.lane.b32.xlu0 %v776_v52, %s22042_s25  ;;  %v787_v8 = vmul.f32 %v14190_v29, %v17226_v23  ;;  %v17374_v13 = vsel %vm751_vm7, 1.0, %v16958_v1  ;;  %v789_v20 = vmul.f32 %v14191_v30, %v17250_v32  ;;  %v15953_v23 = vpack.i.bf16 %v14189_v26, %v16960_v21 }
  0x68   : > { %v791_v24 = vmul.f32 %v17374_v13, %v17256_v35  ;;  %v15958_v31 = vpack.i.bf16 %v14190_v29, %v16960_v21  ;;  %v15963_v33 = vpack.i.bf16 %v14191_v30, %v16960_v21  ;;  %v15968_v32 = vpack.i.bf16 %v17374_v13, %v16960_v21  ;;  %v17452_v62 = vld [vmem:[#allocation2 + $0x20] sm:$0xf] }
  0x69   : > { %15894 = vrot.lane.b32.xlu1 %v15893_v55, %s22042_s25  ;;  %v793_v35 = vmul.f32 %v14189_v26, %v17290_v50  ;;  %v795_v36 = vmul.f32 %v14190_v29, %v17293_v51  ;;  %v15978_v37 = vpack.i.bf16 %v17325_v0, %v17307_v56  ;;  %v797_v21 = vmul.f32 %v14191_v30, %v17313_v58  ;;  %v17517_v30 = vld [vmem:[#allocation2 + $0x38] sm:$0xf] }
  0x6a   : > { %vm22070_vm8 = vcmask 916480   ;;  %vm900_vm9 = vcmask 1043456   ;;  %vm896_vm10 = vcmask 31744   ;;  %vm22069_vm11 = vcmask 908288  }
  0x6b   : > { %2019 = vrot.lane.b32.xlu0 %v778_v57, %s22042_s25  ;;  %14212 = vmatprep.subr.msk.mxu1 %vm900_vm9, %v17452_v62  ;;  %vm22071_vm12 = vcmask 924672   ;;  %vm2430_vm13 = vcmask 1039360   ;;  %vm2485_vm14 = vcmask 7168   ;;  %vm2086_vm15 = vcmask 121856  }
  0x6c   : > { %14213 = vmatpush1.msk.msra.mxu1 %vm900_vm9, %v17489_v19  ;;  %vm1687_vm0 = vcmask 130048   ;;  %vm1288_vm1 = vcmask 138240  }
  0x6d   : > { %2023 = vrot.lane.b32.xlu1 %v780_v63, %s22042_s25  ;;  %v17454_v63 = vld [vmem:[#allocation2 + $0x10] sm:$0xf]  ;;  %14218 = vmatprep.subr.msk.mxu1 %vm900_vm9, %v17419_v45 }
  0x6e   : > { %14209 = vmatprep.subr.msk.mxu0 %vm900_vm9, %v17454_v63 }
  0x6f   : > { %15899 = vrot.lane.b32.xlu0 %v15898_v4, %s22042_s25  ;;  %v17457_v4 = vld [vmem:[#allocation2 + $0x8] sm:$0xf] }
  0x70   : > { %14210 = vmatpush1.msk.msra.mxu0 %vm900_vm9, %v17457_v4 }
  0x71   : > { %2027 = vrot.lane.b32.xlu1 %v782_v5, %s22042_s25 }
  0x73   : > { %15904 = vrot.lane.b32.xlu0 %v15903_v10, %s22077_s0  ;;  %v17468_v10 = vld [vmem:[#allocation2 + $0x30] sm:$0xf] }
  0x74   : > { %14215 = vmatprep.subr.msk.mxu0 %vm900_vm9, %v17468_v10 }
  0x75   : > { %15909 = vrot.lane.b32.xlu1 %v15908_v11, %s22077_s0  ;;  %v14208_v11 = vld [vmem:[%s22191_s1 + $0x20] sm:$0xff] }
  0x76   : > { %14211 = vmatmul.mubr.msk.f32.vlgmr.msra.gmra.mrb[0].mxu0 %vm896_vm10, %v14208_v11  ;;  %14214 = vmatmul.mubr.msk.f32.vlgmr.msra.gmra.mrb[0].mxu1 %vm896_vm10, %v14208_v11 }
  0x77   : > { %15914 = vrot.lane.b32.xlu0 %v15913_v12, %s22077_s0  ;;  %14216 = vmatpush1.msk.msra.mxu0 %vm900_vm9, %v17479_v16 }
  0x78   : > { %1131 = vmatprep.mubr.f32.mxu0 %v16958_v1  ;;  %1202 = vmatprep.mubr.f32.mxu1 %v16958_v1 }
  0x79   : > { %15919 = vrot.lane.b32.xlu1 %v15918_v14, %s22077_s0  ;;  %14219 = vmatpush1.msk.msra.mxu1 %vm900_vm9, %v17517_v30 }
  0x7a   : > { %14217 = vmatmul.mubr.msk.f32.vlgmr.msra.gmra.mrb[2].mxu0 %vm896_vm10, %v14208_v11  ;;  %14220 = vmatmul.mubr.msk.f32.vlgmr.msra.gmra.mrb[2].mxu1 %vm896_vm10, %v14208_v11 }
  0x7b   : > { %15924 = vrot.lane.b32.xlu0 %v15923_v15, %s22079_s26  ;;  %1380 = vmatprep.mubr.f32.mxu0 %v16958_v1 }
  0x7c   : > { %1451 = vmatprep.mubr.f32.mxu1 %v16958_v1 }
  0x7d   : > { %15929 = vrot.lane.b32.xlu1 %v15928_v17, %s22079_s26 }
  0x7f   : > { %15934 = vrot.lane.b32.xlu0 %v15933_v18, %s22079_s26 }
  0x81   : > { %15939 = vrot.lane.b32.xlu1 %v15938_v22, %s22079_s26 }
  0x83   : > { %15944 = vrot.lane.b32.xlu0 %v15943_v28, %s22044_s11 }
  0x85   : > { %3221 = vrot.lane.b32.xlu1 %v785_v7, %s22044_s11 }
  0x87   : > { %3225 = vrot.lane.b32.xlu0 %v787_v8, %s22044_s11 }
  0x89   : > { %15949 = vrot.lane.b32.xlu1 %v15948_v9, %s22044_s11 }
  0x8b   : > { %3229 = vrot.lane.b32.xlu0 %v789_v20, %s22044_s11 }
  0x8d   : > { %3233 = vrot.lane.b32.xlu1 %v791_v24, %s22044_s11 }
  0x8f   : > { %15954 = vrot.lane.b32.xlu0 %v15953_v23, %s22046_s17 }
  0x91   : > { %15959 = vrot.lane.b32.xlu1 %v15958_v31, %s22046_s17 }
  0x93   : > { %15964 = vrot.lane.b32.xlu0 %v15963_v33, %s22046_s17 }
  0x95   : > { %15969 = vrot.lane.b32.xlu1 %v15968_v32, %s22046_s17 }
  0x97   : > { %15974 = vrot.lane.b32.xlu0 %v15973_v34, %s22048_s27 }
  0x99   : > { %4015 = vrot.lane.b32.xlu1 %v793_v35, %s22048_s27 }
  0x9b   : > { %4019 = vrot.lane.b32.xlu0 %v795_v36, %s22048_s27 }
  0x9d   : > { %15979 = vrot.lane.b32.xlu1 %v15978_v37, %s22048_s27 }
  0x9f   : > { %4023 = vrot.lane.b32.xlu0 %v797_v21, %s22048_s27 }
  0xc5   : > { %v17406_v39 = vpop.permute.xlu0 %1218 }
  0xc6   : > { %v1251_v40 = vmul.f32 %v17406_v39, %v17404_v38 }
  0xc7   : > { %v17410_v41 = vpop.permute.xlu1 %15879 }
  0xc8   : > { %1270 = vrot.lane.b32.xlu1 %v1251_v40, %s22048_s27  ;;  %v15882_v12 = vunpack.i.h.bf16 %v17410_v41  ;;  %v15881_v29 = vunpack.i.l.bf16 %v17410_v41 }
  0xc9   : > { %v17413_v42 = vpop.permute.xlu0 %15864 }
  0xca   : > { %v15866_v14 = vunpack.i.l.bf16 %v17413_v42  ;;  %v15867_v23 = vunpack.i.h.bf16 %v17413_v42  ;;  %v17545_v32 = vsel %vm22070_vm8, %v15881_v29, %v15882_v12 }
  0xcb   : > { %v17415_v43 = vpop.permute.xlu1 %1222  ;;  %v1652_v1 = vmul.f32 %v17545_v32, %v17489_v19 }
  0xcc   : > { %v17506_v28 = vsel %vm22069_vm11, %v17406_v39, %v15866_v14  ;;  %v17538_v31 = vsel %vm22069_vm11, %v15866_v14, %v17415_v43  ;;  %v17552_v35 = vsel %vm22069_vm11, %v17415_v43, %v15867_v23 }
  0xcd   : > { %v17417_v44 = vpop.permute.xlu0 %15869  ;;  %22193 = vst [vmem:[#allocation13_spill] sm:$0xff] %v17506_v28  ;;  %v1252_v9 = vmul.f32 %v17506_v28, %v17457_v4  ;;  %22196 = vst [vmem:[#allocation16_spill] sm:$0xff] %v17538_v31  ;;  %v1253_v34 = vmul.f32 %v17538_v31, %v17454_v63  ;;  %v1254_v40 = vmul.f32 %v17552_v35, %v17489_v19  ;;  %v4536_v31 = vld [vmem:[#allocation3 + $0x28] sm:$0xff] }
  0xce   : > { %v17422_v46 = vunpack.i.h.bf16 %v17417_v44  ;;  %v15871_v36 = vunpack.i.l.bf16 %v17417_v44  ;;  %v4700_v28 = vld [vmem:[#allocation3 + $0x548] sm:$0xff] }
  0xcf   : > { %v17424_v47 = vpop.permute.xlu1 %1226 }
  0xd0   : > { %v1259_v48 = vmul.f32 %v17422_v46, %v17419_v45  ;;  %v17566_v41 = vsel %vm22069_vm11, %v17424_v47, %v15871_v36  ;;  %v17602_v11 = vsel %vm22069_vm11, %v15867_v23, %v17424_v47 }
  0xd1   : > { %v15875_v49 = vpop.permute.xlu0 %15874 }
  0xd2   : > { %1286 = vrot.lane.b32.xlu1 %v1259_v48, %s22048_s27  ;;  %v17440_v55 = vunpack.i.l.bf16 %v15875_v49  ;;  %v15877_v58 = vunpack.i.h.bf16 %v15875_v49  ;;  %v1256_v48 = vmul.f32 %v17566_v41, %v17479_v16 }
  0xd3   : > { %v17429_v50 = vpop.permute.xlu1 %1230 }
  0xd4   : > { %v1649_v61 = vmul.f32 %v17440_v55, %v17404_v38  ;;  %v17461_v5 = vsel %vm22070_vm8, %v17440_v55, %v15877_v58  ;;  %v17528_v20 = vsel %vm22070_vm8, %v15877_v58, %v15881_v29  ;;  %v17581_v49 = vsel %vm22069_vm11, %v17429_v50, %v17422_v46 }
  0xd5   : > { %v17431_v51 = vpop.permute.xlu0 %15884  ;;  %22190 = vst [vmem:[#allocation11_spill] sm:$0xff] %v17461_v5  ;;  %v1650_v18 = vmul.f32 %v17461_v5, %v17457_v4  ;;  %22195 = vst [vmem:[#allocation15_spill] sm:$0xff] %v17528_v20  ;;  %v1651_v33 = vmul.f32 %v17528_v20, %v17454_v63  ;;  %v17617_v47 = vsel %vm22069_vm11, %v15871_v36, %v17429_v50  ;;  %v4670_v20 = vld [vmem:[#allocation3 + $0x458] sm:$0xff] }
  0xd6   : > { %v15886_v0 = vunpack.i.l.bf16 %v17431_v51  ;;  %v15887_v22 = vunpack.i.h.bf16 %v17431_v51 }
  0xd7   : > { %v17433_v52 = vpop.permute.xlu1 %15889 }
  0xd8   : > { %v17436_v53 = vunpack.i.h.bf16 %v17433_v52  ;;  %v15891_v25 = vunpack.i.l.bf16 %v17433_v52  ;;  %v17497_v26 = vsel %vm22070_vm8, %v15882_v12, %v15886_v0  ;;  %v17559_v37 = vsel %vm22070_vm8, %v15886_v0, %v15887_v22 }
  0xd9   : > { %v17438_v54 = vpop.permute.xlu0 %2015  ;;  %v1653_v7 = vmul.f32 %v17497_v26, %v17452_v62  ;;  %22197 = vst [vmem:[#allocation17_spill] sm:$0xff] %v17559_v37  ;;  %v1654_v42 = vmul.f32 %v17559_v37, %v17479_v16 }
  0xda   : > { %22188 = vst [vmem:[#allocation9_spill] sm:$0xff] %v17436_v53  ;;  %22189 = vst [vmem:[#allocation10_spill] sm:$0xff] %v17438_v54  ;;  %v1657_v56 = vmul.f32 %v17436_v53, %v17419_v45  ;;  %v2048_v57 = vmul.f32 %v17438_v54, %v17404_v38  ;;  %v17515_v8 = vsel %vm22070_vm8, %v15887_v22, %v15891_v25 }
  0xdb   : > { %22194 = vst [vmem:[#allocation14_spill] sm:$0xff] %v17515_v8  ;;  %v1655_v24 = vmul.f32 %v17515_v8, %v17468_v10  ;;  %v15895_v21 = vpop.permute.xlu1 %15894  ;;  %v17573_v44 = vsel %vm22070_vm8, %v15891_v25, %v17436_v53  ;;  %v1255_v22 = vmul.f32 %v17602_v11, %v17452_v62 }
  0xdc   : > { %1685 = vrot.lane.b32.xlu0 %v1657_v56, %s22046_s17  ;;  %2068 = vrot.lane.b32.xlu1 %v2048_v57, %s22044_s11  ;;  %v15896_v43 = vunpack.i.l.bf16 %v15895_v21  ;;  %22198 = vst [vmem:[#allocation18_spill] sm:$0xff] %v17573_v44  ;;  %v1656_v51 = vmul.f32 %v17573_v44, %v17517_v30  ;;  %v1258_v56 = vmul.f32 %v17581_v49, %v17517_v30  ;;  %v15897_v57 = vunpack.i.h.bf16 %v15895_v21 }
  0xdd   : > { %v17448_v60 = vpop.permute.xlu0 %2019 }
  0xde   : > { %v17588_v52 = vsel %vm22071_vm12, %v17438_v54, %v15896_v43  ;;  %v17595_v58 = vsel %vm22071_vm12, %v15896_v43, %v17448_v60  ;;  %v17609_v14 = vsel %vm22071_vm12, %v17448_v60, %v15897_v57 }
  0xdf   : > { %22199 = vst [vmem:[#allocation19_spill] sm:$0xff] %v17588_v52  ;;  %22200 = vst [vmem:[#allocation20_spill] sm:$0xff] %v17595_v58  ;;  %v2049_v0 = vmul.f32 %v17588_v52, %v17457_v4  ;;  %v2050_v12 = vmul.f32 %v17595_v58, %v17454_v63  ;;  %v22021_v58 = vand.u32 63, %v17169_v2  ;;  %v4668_v52 = vld [vmem:[#allocation3 + $0x448] sm:$0xff] }
  0xe0   : > { %1669 = vrot.lane.b32.xlu0 %v1649_v61, %s22046_s17  ;;  %v2024_v61 = vpop.permute.xlu1 %2023  ;;  %22201 = vst [vmem:[#allocation21_spill] sm:$0xff] %v17609_v14 }
  0xe1   : > { %v17477_v15 = vpop.permute.xlu0 %15899  ;;  %v17629_v29 = vsel %vm22071_vm12, %v15897_v57, %v2024_v61  ;;  %vm816_vm3 = vcmp.ge.s32.totalorder %v22021_v58, 8  ;;  %v4531_v58 = vld [vmem:[#allocation3] sm:$0xff] }
  0xe2   : > { %v17485_v17 = vunpack.i.h.bf16 %v17477_v15  ;;  %22203 = vst [vmem:[#allocation23_spill] sm:$0xff] %v17629_v29 }
  0xe4   : > { %22192 = vst [vmem:[#allocation12_spill] sm:$0xff] %v17485_v17  ;;  %1671 = vrot.lane.b32.xlu0 %v1650_v18, %s22046_s17  ;;  %v2056_v27 = vmul.f32 %v17485_v17, %v17419_v45  ;;  %v15901_v18 = vunpack.i.l.bf16 %v17477_v15  ;;  %v2028_v25 = vpop.permute.xlu1 %2027  ;;  %v1257_v15 = vmul.f32 %v17617_v47, %v17468_v10 }
  0xe6   : > { %2084 = vrot.lane.b32.xlu1 %v2056_v27, %s22044_s11  ;;  %v2051_v27 = vmul.f32 %v17609_v14, %v17489_v19  ;;  %v17623_v60 = vsel %vm22071_vm12, %v2024_v61, %v15901_v18  ;;  %v17644_v36 = vsel %vm22071_vm12, %v15901_v18, %v2028_v25 }
  0xe7   : > { %22202 = vst [vmem:[#allocation22_spill] sm:$0xff] %v17623_v60  ;;  %22206 = vst [vmem:[#allocation26_spill] sm:$0xff] %v17644_v36  ;;  %v2054_v43 = vmul.f32 %v17644_v36, %v17468_v10 }
  0xe8   : > { %1677 = vrot.lane.b32.xlu0 %v1653_v7, %s22046_s17  ;;  %v15905_v7 = vpop.permute.xlu0 %15904  ;;  %v15910_v23 = vpop.permute.xlu1 %15909 }
  0xe9   : > { %v15907_v50 = vunpack.i.h.bf16 %v15905_v7 }
  0xea   : > { %1272 = vrot.lane.b32.xlu1 %v1252_v9, %s22048_s27  ;;  %v17631_v9 = vunpack.i.l.bf16 %v15905_v7 }
  0xec   : > { %1681 = vrot.lane.b32.xlu0 %v1655_v24, %s22046_s17  ;;  %22204 = vst [vmem:[#allocation24_spill] sm:$0xff] %v17631_v9  ;;  %v2053_v24 = vmul.f32 %v17623_v60, %v17479_v16  ;;  %v17648_v21 = vsel %vm2430_vm13, %v17631_v9, %v15907_v50  ;;  %v15920_v61 = vpop.permute.xlu1 %15919  ;;  %v6210_v60 = vld [vmem:[%s21922_s14 + $0xb0] sm:$0xff] }
  0xed   : > { %22207 = vst [vmem:[#allocation27_spill] sm:$0xff] %v17648_v21  ;;  %v17677_v7 = vunpack.i.h.bf16 %v15920_v61 }
  0xee   : > { %1673 = vrot.lane.b32.xlu1 %v1651_v33, %s22046_s17  ;;  %v17638_v33 = vsel %vm22071_vm12, %v2028_v25, %v17485_v17  ;;  %v4702_v17 = vld [vmem:[#allocation3 + $0x558] sm:$0xff] }
  0xef   : > { %22205 = vst [vmem:[#allocation25_spill] sm:$0xff] %v17638_v33  ;;  %22211 = vst [vmem:[#allocation31_spill] sm:$0xff] %v17677_v7 }
  0xf0   : > { %1274 = vrot.lane.b32.xlu0 %v1253_v34, %s22048_s27  ;;  %v2052_v34 = vmul.f32 %v17629_v29, %v17452_v62 }
  0xf2   : > { %1675 = vrot.lane.b32.xlu1 %v1652_v1, %s22046_s17  ;;  %v15911_v1 = vunpack.i.l.bf16 %v15910_v23 }
  0xf4   : > { %1276 = vrot.lane.b32.xlu0 %v1254_v40, %s22048_s27  ;;  %v2055_v40 = vmul.f32 %v17638_v33, %v17517_v30 }
  0xf6   : > { %1679 = vrot.lane.b32.xlu1 %v1654_v42, %s22046_s17  ;;  %v15915_v42 = vpop.permute.xlu0 %15914 }
  0xf7   : > { %v15916_v57 = vunpack.i.l.bf16 %v15915_v42 }
  0xf8   : > { %1280 = vrot.lane.b32.xlu0 %v1256_v48, %s22048_s27  ;;  %v2448_v48 = vmul.f32 %v17648_v21, %v17457_v4  ;;  %v2447_v4 = vmul.f32 %v17631_v9, %v17404_v38 }
  0xfa   : > { %1683 = vrot.lane.b32.xlu1 %v1656_v51, %s22046_s17  ;;  %v15912_v51 = vunpack.i.h.bf16 %v15910_v23 }
  0xfc   : > { %1284 = vrot.lane.b32.xlu0 %v1258_v56, %s22048_s27  ;;  %v17659_v56 = vsel %vm2430_vm13, %v15907_v50, %v15911_v1  ;;  %v17666_v18 = vsel %vm2430_vm13, %v15911_v1, %v15912_v51  ;;  %v17672_v25 = vsel %vm2430_vm13, %v15912_v51, %v15916_v57  ;;  %v15925_v50 = vpop.permute.xlu0 %15924 }
  0xfd   : > { %22208 = vst [vmem:[#allocation28_spill] sm:$0xff] %v17659_v56  ;;  %22209 = vst [vmem:[#allocation29_spill] sm:$0xff] %v17666_v18  ;;  %v2451_v38 = vmul.f32 %v17672_v25, %v17452_v62  ;;  %v17685_v23 = vunpack.i.l.bf16 %v15925_v50 }
  0xfe   : > { %2070 = vrot.lane.b32.xlu1 %v2049_v0, %s22044_s11  ;;  %v2449_v0 = vmul.f32 %v17659_v56, %v17454_v63  ;;  %22210 = vst [vmem:[#allocation30_spill] sm:$0xff] %v17672_v25  ;;  %v4537_v25 = vld [vmem:[#allocation3 + $0x30] sm:$0xff] }
  0xff   : > { %22213 = vst [vmem:[#allocation33_spill] sm:$0xff] %v17685_v23 }
 0x100   : > { %2072 = vrot.lane.b32.xlu0 %v2050_v12, %s22044_s11  ;;  %v15917_v12 = vunpack.i.h.bf16 %v15915_v42  ;;  %v17700_v42 = vld [vmem:[#allocation2 + $0x10] sm:$0xf] }
 0x102   : > { %1278 = vrot.lane.b32.xlu1 %v1255_v22, %s22048_s27  ;;  %v15921_v22 = vunpack.i.l.bf16 %v15920_v61  ;;  %v17680_v63 = vsel %vm2430_vm13, %v15916_v57, %v15917_v12  ;;  %v17709_v57 = vld [vmem:[#allocation2 + $0x18] sm:$0xf] }
 0x103   : > { %22212 = vst [vmem:[#allocation32_spill] sm:$0xff] %v17680_v63 }
 0x104   : > { %2074 = vrot.lane.b32.xlu0 %v2051_v27, %s22044_s11  ;;  %v2450_v27 = vmul.f32 %v17666_v18, %v17489_v19  ;;  %v2452_v19 = vmul.f32 %v17680_v63, %v17479_v16  ;;  %v15935_v16 = vpop.permute.xlu0 %15934  ;;  %v17772_v63 = vld [vmem:[#allocation2 + $0x48] sm:$0xf]  ;;  %v4535_v18 = vld [vmem:[#allocation3 + $0x20] sm:$0xff] }
 0x106   : > { %1282 = vrot.lane.b32.xlu1 %v1257_v15, %s22048_s27  ;;  %v15930_v15 = vpop.permute.xlu1 %15929 }
 0x107   : > { %v15931_v1 = vunpack.i.l.bf16 %v15930_v15 }
 0x108   : > { %2078 = vrot.lane.b32.xlu0 %v2053_v24, %s22044_s11  ;;  %v15927_v24 = vunpack.i.h.bf16 %v15925_v50 }
 0x10a   : > { %2076 = vrot.lane.b32.xlu1 %v2052_v34, %s22044_s11  ;;  %v17688_v34 = vsel %vm2430_vm13, %v15917_v12, %v15921_v22  ;;  %v17712_v61 = vsel %vm2485_vm14, %v15927_v24, %v15931_v1  ;;  %v15932_v12 = vunpack.i.h.bf16 %v15930_v15 }
 0x10b   : > { %22214 = vst [vmem:[#allocation34_spill] sm:$0xff] %v17688_v34  ;;  %v2453_v62 = vmul.f32 %v17688_v34, %v17468_v10  ;;  %22217 = vst [vmem:[#allocation37_spill] sm:$0xff] %v17712_v61  ;;  %v2455_v10 = vmul.f32 %v17677_v7, %v17419_v45  ;;  %v17755_v34 = vld [vmem:[#allocation2 + $0x38] sm:$0xf] }
 0x10c   : > { %2082 = vrot.lane.b32.xlu0 %v2055_v40, %s22044_s11  ;;  %v17695_v40 = vsel %vm2430_vm13, %v15921_v22, %v17677_v7  ;;  %v15937_v22 = vunpack.i.h.bf16 %v15935_v16  ;;  %v17728_v45 = vsel %vm2485_vm14, %v15931_v1, %v15932_v12 }
 0x10d   : > { %22215 = vst [vmem:[#allocation35_spill] sm:$0xff] %v17695_v40  ;;  %v2454_v51 = vmul.f32 %v17695_v40, %v17517_v30  ;;  %v15945_v30 = vpop.permute.xlu0 %15944  ;;  %22218 = vst [vmem:[#allocation38_spill] sm:$0xff] %v17728_v45 }
 0x10e   : > { %2080 = vrot.lane.b32.xlu1 %v2054_v43, %s22044_s11  ;;  %v17704_v43 = vsel %vm2485_vm14, %v17685_v23, %v15927_v24  ;;  %v17725_v24 = vld [vmem:[#allocation2 + $0x20] sm:$0xf]  ;;  %v17753_v7 = vunpack.i.l.bf16 %v15945_v30  ;;  %s22259_s11 = smov 1  }
 0x10f   : > { %22216 = vst [vmem:[#allocation36_spill] sm:$0xff] %v17704_v43  ;;  %v2857_v1 = vmul.f32 %v17728_v45, %v17725_v24 }
 0x110   : > { %2469 = vrot.lane.b32.xlu0 %v2448_v48, %s22079_s26  ;;  %v15940_v48 = vpop.permute.xlu1 %15939  ;;  %22222 = vst [vmem:[#allocation42_spill] sm:$0xff] %v17753_v7 }
 0x112   : > { %2471 = vrot.lane.b32.xlu1 %v2449_v0, %s22079_s26  ;;  %v2855_v0 = vmul.f32 %v17704_v43, %v17700_v42 }
 0x114   : > { %2467 = vrot.lane.b32.xlu0 %v2447_v4, %s22079_s26  ;;  %v2856_v4 = vmul.f32 %v17712_v61, %v17709_v57  ;;  %v3222_v50 = vpop.permute.xlu1 %3221 }
 0x116   : > { %2473 = vrot.lane.b32.xlu1 %v2450_v27, %s22079_s26  ;;  %v15936_v27 = vunpack.i.l.bf16 %v15935_v16 }
 0x118   : > { %2475 = vrot.lane.b32.xlu0 %v2451_v38, %s22079_s26  ;;  %v17722_v38 = vld [vmem:[#allocation2 + $0x8] sm:$0xf]  ;;  %v17738_v16 = vsel %vm2485_vm14, %v15932_v12, %v15936_v27  ;;  %v15950_v40 = vpop.permute.xlu1 %15949 }
 0x119   : > { %v2854_v15 = vmul.f32 %v17685_v23, %v17722_v38  ;;  %22220 = vst [vmem:[#allocation40_spill] sm:$0xff] %v17738_v16  ;;  %v17776_v23 = vsel %vm2086_vm15, %v17753_v7, %v3222_v50 }
 0x11a   : > { %2477 = vrot.lane.b32.xlu1 %v2452_v19, %s22079_s26  ;;  %v17733_v19 = vunpack.i.h.bf16 %v15940_v48  ;;  %22225 = vst [vmem:[#allocation45_spill] sm:$0xff] %v17776_v23 }
 0x11c   : > { %2479 = vrot.lane.b32.xlu0 %v2453_v62, %s22079_s26  ;;  %22219 = vst [vmem:[#allocation39_spill] sm:$0xff] %v17733_v19  ;;  %v15941_v62 = vunpack.i.l.bf16 %v15940_v48 }
 0x11e   : > { %2481 = vrot.lane.b32.xlu1 %v2454_v51, %s22079_s26  ;;  %v17735_v51 = vld [vmem:[#allocation2 + $0x28] sm:$0xf]  ;;  %v17764_v45 = vsel %vm2485_vm14, %v15941_v62, %v17733_v19 }
 0x11f   : > { %v2858_v48 = vmul.f32 %v17738_v16, %v17735_v51  ;;  %22224 = vst [vmem:[#allocation44_spill] sm:$0xff] %v17764_v45 }
 0x120   : > { %2483 = vrot.lane.b32.xlu0 %v2455_v10, %s22079_s26  ;;  %v17740_v10 = vld [vmem:[#allocation2 + $0x30] sm:$0xf] }
 0x122   : > { %2876 = vrot.lane.b32.xlu1 %v2855_v0, %s22077_s0  ;;  %v17743_v0 = vsel %vm2485_vm14, %v15936_v27, %v15937_v22  ;;  %v17758_v27 = vsel %vm2485_vm14, %v15937_v22, %v15941_v62  ;;  %v15947_v22 = vunpack.i.h.bf16 %v15945_v30  ;;  %v17778_v62 = vpop.permute.xlu1 %3233 }
 0x123   : > { %22221 = vst [vmem:[#allocation41_spill] sm:$0xff] %v17743_v0  ;;  %v2859_v12 = vmul.f32 %v17743_v0, %v17740_v10  ;;  %22223 = vst [vmem:[#allocation43_spill] sm:$0xff] %v17758_v27 }
 0x124   : > { %2878 = vrot.lane.b32.xlu0 %v2856_v4, %s22077_s0  ;;  %v3226_v4 = vpop.permute.xlu0 %3225  ;;  %22226 = vst [vmem:[#allocation46_spill] sm:$0xff] %v17778_v62  ;;  %v17787_v30 = vsel %vm2086_vm15, %v3222_v50, %v15947_v22  ;;  %v15952_v50 = vunpack.i.h.bf16 %v15950_v40 }
 0x125   : > { %22227 = vst [vmem:[#allocation47_spill] sm:$0xff] %v17787_v30 }
 0x126   : > { %2874 = vrot.lane.b32.xlu1 %v2854_v15, %s22077_s0  ;;  %v17760_v15 = vld [vmem:[#allocation2 + $0x40] sm:$0xf]  ;;  %v15960_v61 = vpop.permute.xlu1 %15959 }
 0x127   : > { %v2861_v0 = vmul.f32 %v17764_v45, %v17760_v15 }
 0x128   : > { %2880 = vrot.lane.b32.xlu0 %v2857_v1, %s22077_s0  ;;  %v2860_v1 = vmul.f32 %v17758_v27, %v17755_v34  ;;  %v3230_v16 = vpop.permute.xlu0 %3229  ;;  %v15951_v27 = vunpack.i.l.bf16 %v15950_v40 }
 0x129   : > { %v17812_v40 = vsel %vm2086_vm15, %v3230_v16, %v15952_v50 }
 0x12a   : > { %2882 = vrot.lane.b32.xlu1 %v2858_v48, %s22077_s0  ;;  %v2862_v48 = vmul.f32 %v17733_v19, %v17772_v63  ;;  %v3251_v19 = vmul.f32 %v17753_v7, %v17722_v38  ;;  %22231 = vst [vmem:[#allocation51_spill] sm:$0xff] %v17812_v40 }
 0x12c   : > { %2884 = vrot.lane.b32.xlu0 %v2859_v12, %s22077_s0  ;;  %v3252_v12 = vmul.f32 %v17776_v23, %v17700_v42  ;;  %v15955_v45 = vpop.permute.xlu0 %15954  ;;  %v17800_v23 = vsel %vm2086_vm15, %v3226_v4, %v15951_v27 }
 0x12d   : > { %22229 = vst [vmem:[#allocation49_spill] sm:$0xff] %v17800_v23 }
 0x12e   : > { %2886 = vrot.lane.b32.xlu1 %v2860_v1, %s22077_s0  ;;  %v3253_v1 = vmul.f32 %v17787_v30, %v17709_v57  ;;  %v17806_v30 = vsel %vm2086_vm15, %v15951_v27, %v3230_v16  ;;  %v17821_v27 = vsel %vm2086_vm15, %v15952_v50, %v17778_v62  ;;  %v3257_v16 = vmul.f32 %v17812_v40, %v17755_v34 }
 0x12f   : > { %22230 = vst [vmem:[#allocation50_spill] sm:$0xff] %v17806_v30  ;;  %22233 = vst [vmem:[#allocation53_spill] sm:$0xff] %v17821_v27  ;;  %v3259_v50 = vmul.f32 %v17778_v62, %v17772_v63 }
 0x130   : > { %2888 = vrot.lane.b32.xlu0 %v2861_v0, %s22077_s0  ;;  %v17794_v0 = vsel %vm2086_vm15, %v15947_v22, %v3226_v4  ;;  %v15970_v22 = vpop.permute.xlu1 %15969  ;;  %v15957_v4 = vunpack.i.h.bf16 %v15955_v45 }
 0x131   : > { %22228 = vst [vmem:[#allocation48_spill] sm:$0xff] %v17794_v0  ;;  %v15971_v62 = vunpack.i.l.bf16 %v15970_v22 }
 0x132   : > { %2890 = vrot.lane.b32.xlu1 %v2862_v48, %s22077_s0  ;;  %v3254_v48 = vmul.f32 %v17794_v0, %v17725_v24  ;;  %v17817_v0 = vunpack.i.l.bf16 %v15955_v45 }
 0x134   : > { %3273 = vrot.lane.b32.xlu0 %v3252_v12, %s22042_s25  ;;  %v15965_v12 = vpop.permute.xlu0 %15964  ;;  %22232 = vst [vmem:[#allocation52_spill] sm:$0xff] %v17817_v0  ;;  %v4016_v7 = vpop.permute.xlu1 %4015  ;;  %v17831_v45 = vsel %vm1687_vm0, %v17817_v0, %v15957_v4 }
 0x135   : > { %22234 = vst [vmem:[#allocation54_spill] sm:$0xff] %v17831_v45  ;;  %v15967_v56 = vunpack.i.h.bf16 %v15965_v12 }
 0x136   : > { %3275 = vrot.lane.b32.xlu1 %v3253_v1, %s22042_s25  ;;  %v3255_v1 = vmul.f32 %v17800_v23, %v17735_v51  ;;  %v15961_v23 = vunpack.i.l.bf16 %v15960_v61 }
 0x138   : > { %3271 = vrot.lane.b32.xlu0 %v3251_v19, %s22042_s25  ;;  %v3256_v19 = vmul.f32 %v17806_v30, %v17740_v10  ;;  %v17837_v30 = vsel %vm1687_vm0, %v15957_v4, %v15961_v23  ;;  %v17842_v43 = vpop.permute.xlu1 %15979 }
 0x139   : > { %22235 = vst [vmem:[#allocation55_spill] sm:$0xff] %v17837_v30 }
 0x13a   : > { %3277 = vrot.lane.b32.xlu1 %v3254_v48, %s22042_s25  ;;  %v15975_v48 = vpop.permute.xlu0 %15974 }
 0x13c   : > { %3279 = vrot.lane.b32.xlu0 %v3255_v1, %s22042_s25  ;;  %v3258_v1 = vmul.f32 %v17821_v27, %v17760_v15  ;;  %v15966_v27 = vunpack.i.l.bf16 %v15965_v12  ;;  %v1271_v12 = vpop.permute.xlu1 %1270 }
 0x13e   : > { %3281 = vrot.lane.b32.xlu1 %v3256_v19, %s22042_s25  ;;  %v15962_v19 = vunpack.i.h.bf16 %v15960_v61  ;;  %v4020_v40 = vpop.permute.xlu0 %4019 }
 0x140   : > { %3283 = vrot.lane.b32.xlu0 %v3257_v16, %s22042_s25  ;;  %v3649_v16 = vmul.f32 %v17831_v45, %v17700_v42  ;;  %v17848_v61 = vsel %vm1687_vm0, %v15961_v23, %v15962_v19  ;;  %v17854_v45 = vsel %vm1687_vm0, %v15962_v19, %v15966_v27  ;;  %v17862_v23 = vsel %vm1687_vm0, %v15966_v27, %v15967_v56 }
 0x141   : > { %22236 = vst [vmem:[#allocation56_spill] sm:$0xff] %v17848_v61  ;;  %22237 = vst [vmem:[#allocation57_spill] sm:$0xff] %v17854_v45 }
 0x142   : > { %3285 = vrot.lane.b32.xlu1 %v3258_v1, %s22042_s25  ;;  %v3650_v1 = vmul.f32 %v17837_v30, %v17709_v57  ;;  %v4024_v4 = vpop.permute.xlu0 %4023  ;;  %v17859_v30 = vunpack.i.h.bf16 %v15970_v22  ;;  %22239 = vst [vmem:[#allocation59_spill] sm:$0xff] %v17862_v23  ;;  %v3653_v22 = vmul.f32 %v17862_v23, %v17740_v10 }
 0x144   : > { %3287 = vrot.lane.b32.xlu0 %v3259_v50, %s22042_s25  ;;  %v3648_v50 = vmul.f32 %v17817_v0, %v17722_v38  ;;  %22238 = vst [vmem:[#allocation58_spill] sm:$0xff] %v17859_v30  ;;  %v17868_v0 = vsel %vm1687_vm0, %v15967_v56, %v15971_v62  ;;  %v17877_v27 = vsel %vm1687_vm0, %v15971_v62, %v17859_v30  ;;  %s22258_s25 = smov 7  }
 0x145   : > { %22240 = vst [vmem:[#allocation60_spill] sm:$0xff] %v17868_v0  ;;  %22241 = vst [vmem:[#allocation61_spill] sm:$0xff] %v17877_v27  ;;  %v3654_v56 = vmul.f32 %v17868_v0, %v17755_v34 }
 0x146   : > { %3670 = vrot.lane.b32.xlu1 %v3649_v16, %s22040_s23  ;;  %v3651_v16 = vmul.f32 %v17848_v61, %v17725_v24 }
 0x148   : > { %3672 = vrot.lane.b32.xlu0 %v3650_v1, %s22040_s23  ;;  %v3652_v1 = vmul.f32 %v17854_v45, %v17735_v51  ;;  %v15977_v45 = vunpack.i.h.bf16 %v15975_v48 }
 0x14a   : > { %3668 = vrot.lane.b32.xlu1 %v3648_v50, %s22040_s23  ;;  %v17879_v50 = vunpack.i.l.bf16 %v15975_v48  ;;  %v17901_v48 = vsel %vm1288_vm1, %v4016_v7, %v15977_v45 }
 0x14b   : > { %22244 = vst [vmem:[#allocation64_spill] sm:$0xff] %v17901_v48 }
 0x14c   : > { %3674 = vrot.lane.b32.xlu0 %v3651_v16, %s22040_s23  ;;  %22242 = vst [vmem:[#allocation62_spill] sm:$0xff] %v17879_v50  ;;  %v17881_v16 = vpop.permute.xlu1 %1286  ;;  %v17893_v62 = vsel %vm1288_vm1, %v17879_v50, %v4016_v7 }
 0x14d   : > { %22243 = vst [vmem:[#allocation63_spill] sm:$0xff] %v17893_v62 }
 0x14e   : > { %v17870_v19 = vpop.permute.xlu0 %1685  ;;  %3676 = vrot.lane.b32.xlu1 %v3652_v1, %s22040_s23  ;;  %v3655_v1 = vmul.f32 %v17877_v27, %v17760_v15  ;;  %v15981_v27 = vunpack.i.l.bf16 %v17842_v43 }
 0x150   : > { %3678 = vrot.lane.b32.xlu0 %v3653_v22, %s22040_s23  ;;  %v17895_v23 = vpop.permute.xlu1 %2068  ;;  %v3656_v22 = vmul.f32 %v17859_v30, %v17772_v63  ;;  %v17915_v30 = vsel %vm1288_vm1, %v15977_v45, %v4020_v40  ;;  %v17930_v45 = vsel %vm1288_vm1, %v15981_v27, %v4024_v4 }
 0x151   : > { %22245 = vst [vmem:[#allocation65_spill] sm:$0xff] %v17915_v30  ;;  %22247 = vst [vmem:[#allocation67_spill] sm:$0xff] %v17930_v45 }
 0x152   : > { %v17886_v61 = vpop.permute.xlu0 %1669  ;;  %3680 = vrot.lane.b32.xlu1 %v3654_v56, %s22040_s23  ;;  %v4046_v56 = vmul.f32 %v17893_v62, %v17700_v42  ;;  %v21998_v42 = vunpack.i.h.bf16 %v17842_v43  ;;  %v17924_v62 = vsel %vm1288_vm1, %v4020_v40, %v15981_v27  ;;  %v4050_v27 = vmul.f32 %v17930_v45, %v17740_v10 }
 0x153   : > { %22246 = vst [vmem:[#allocation66_spill] sm:$0xff] %v17924_v62 }
 0x154   : > { %3682 = vrot.lane.b32.xlu0 %v3655_v1, %s22040_s23  ;;  %v4047_v1 = vmul.f32 %v17901_v48, %v17709_v57  ;;  %v4048_v57 = vmul.f32 %v17915_v30, %v17725_v24  ;;  %v16968_v48 = vmov 0   ;;  %v17940_v40 = vsel %vm1288_vm1, %v4024_v4, %v21998_v42  ;;  %v1260_v4 = vld [vmem:[%s22191_s1] sm:$0xff] }
 0x155   : > { %15983 = vset.pattern.permute.xlu0 %v16968_v48  ;;  %16044 = vset.pattern.permute.xlu1 %v16968_v48  ;;  %22248 = vst [vmem:[#allocation68_spill] sm:$0xff] %v17940_v40  ;;  %v4051_v48 = vmul.f32 %v17940_v40, %v17755_v34 }
 0x156   : > { %v17903_v0 = vpop.permute.xlu0 %1671  ;;  %3684 = vrot.lane.b32.xlu1 %v3656_v22, %s22040_s23  ;;  %v4045_v22 = vmul.f32 %v17879_v50, %v17722_v38  ;;  %v4049_v38 = vmul.f32 %v17924_v62, %v17735_v51  ;;  %v799_v51 = vmul.f32 %v17374_v13, %v17316_v59  ;;  %v17960_v59 = vld [vmem:[#allocation2 + $0x110] sm:$0xff] }
 0x158   : > { %4067 = vrot.lane.b32.xlu0 %v4046_v56, %s22038_s18  ;;  %v17910_v21 = vpop.permute.xlu1 %2084 }
 0x15a   : > { %v17917_v7 = vpop.permute.xlu0 %1677  ;;  %4069 = vrot.lane.b32.xlu1 %v4047_v1, %s22038_s18 }
 0x15c   : > { %4065 = vrot.lane.b32.xlu0 %v4045_v22, %s22038_s18  ;;  %v1273_v56 = vpop.permute.xlu1 %1272 }
 0x15e   : > { %v17932_v1 = vpop.permute.xlu0 %1681  ;;  %4071 = vrot.lane.b32.xlu1 %v4048_v57, %s22038_s18 }
 0x160   : > { %4073 = vrot.lane.b32.xlu0 %v4049_v38, %s22038_s18  ;;  %v1674_v24 = vpop.permute.xlu1 %1673  ;;  %v1289_v38 = vsel %vm1288_vm1, %v1271_v12, %v1273_v56 }
 0x162   : > { %v1275_v22 = vpop.permute.xlu0 %1274  ;;  %4075 = vrot.lane.b32.xlu1 %v4050_v27, %s22038_s18 }
 0x163   : > { %v1290_v57 = vsel %vm1288_vm1, %v1273_v56, %v1275_v22 }
 0x164   : > { %4077 = vrot.lane.b32.xlu0 %v4051_v48, %s22038_s18  ;;  %14221 = vmatprep.subr.msk.mxu0 %vm900_vm9, %v1290_v57  ;;  %v1676_v10 = vpop.permute.xlu1 %1675 }
 0x165   : > { %14222 = vmatpush1.msk.msra.mxu0 %vm900_vm9, %v1289_v38 }
 0x166   : > { %v1277_v27 = vpop.permute.xlu0 %1276  ;;  %4027 = vrot.lane.b32.xlu1 %v799_v51, %s22048_s27  ;;  %14223 = vmatmul.mubr.msk.f32.vlgmr.msra.gmra.mrb[0].mxu0 %vm896_vm10, %v1260_v4  ;;  %s22279_s27 = smov 15  }
 0x167   : > { %1522 = vmatprep.mubr.f32.mxu0 %v17960_v59  ;;  %v1291_v38 = vsel %vm1288_vm1, %v1275_v22, %v1277_v27 }
 0x168   : > { %v1680_v13 = vpop.permute.xlu1 %1679 }
 0x16a   : > { %v1281_v34 = vpop.permute.xlu0 %1280 }
 0x16c   : > { %v1684_v42 = vpop.permute.xlu1 %1683 }
 0x16e   : > { %v1285_v12 = vpop.permute.xlu0 %1284 }
 0x16f   : > { %v1296_v51 = vsel %vm1288_vm1, %v1285_v12, %v17881_v16  ;;  %v1691_v16 = vsel %vm1687_vm0, %v1676_v10, %v17917_v7 }
 0x170   : > { %v2071_v56 = vpop.permute.xlu1 %2070 }
 0x172   : > { %v2073_v48 = vpop.permute.xlu0 %2072 }
 0x174   : > { %v1279_v40 = vpop.permute.xlu1 %1278 }
 0x175   : > { %v1292_v57 = vsel %vm1288_vm1, %v1277_v27, %v1279_v40  ;;  %v1293_v22 = vsel %vm1288_vm1, %v1279_v40, %v1281_v34 }
 0x176   : > { %v2075_v45 = vpop.permute.xlu0 %2074  ;;  %14224 = vmatprep.subr.msk.mxu1 %vm900_vm9, %v1292_v57 }
 0x177   : > { %14225 = vmatpush1.msk.msra.mxu1 %vm900_vm9, %v1291_v38  ;;  %v2089_v57 = vsel %vm2086_vm15, %v2073_v48, %v2075_v45 }
 0x178   : > { %14226 = vmatmul.mubr.msk.f32.vlgmr.msra.gmra.mrb[0].mxu1 %vm896_vm10, %v1260_v4  ;;  %14230 = vmatprep.subr.msk.mxu1 %vm900_vm9, %v1296_v51  ;;  %v1283_v62 = vpop.permute.xlu1 %1282  ;;  %v14246_v51 = vld [vmem:[%s22191_s1 + $0x10] sm:$0xff] }
 0x179   : > { %v1295_v30 = vsel %vm1288_vm1, %v1283_v62, %v1285_v12  ;;  %v1294_v50 = vsel %vm1288_vm1, %v1281_v34, %v1283_v62  ;;  %1593 = vmatprep.mubr.f32.mxu1 %v17960_v59  ;;  %v1690_v12 = vsel %vm1687_vm0, %v1674_v24, %v1676_v10  ;;  %v1689_v62 = vsel %vm1687_vm0, %v17903_v0, %v1674_v24  ;;  %v14233_v10 = vld [vmem:[%s22191_s1 + $0x8] sm:$0xff] }
 0x17a   : > { %v2079_v27 = vpop.permute.xlu0 %2078  ;;  %14227 = vmatprep.subr.msk.mxu0 %vm900_vm9, %v1294_v50  ;;  %14231 = vmatpush1.msk.msra.mxu1 %vm900_vm9, %v1295_v30  ;;  %v1688_v30 = vsel %vm1687_vm0, %v17886_v61, %v17903_v0  ;;  %v1695_v50 = vsel %vm1687_vm0, %v1684_v42, %v17870_v19  ;;  %v1692_v0 = vsel %vm1687_vm0, %v17917_v7, %v1680_v13 }
 0x17b   : > { %14228 = vmatpush1.msk.msra.mxu0 %vm900_vm9, %v1293_v22  ;;  %14237 = vmatprep.subr.msk.mxu1 %vm900_vm9, %v1691_v16  ;;  %v1694_v19 = vsel %vm1687_vm0, %v17932_v1, %v1684_v42  ;;  %v2088_v34 = vsel %vm2086_vm15, %v2071_v56, %v2073_v48  ;;  %v2087_v42 = vsel %vm2086_vm15, %v17895_v23, %v2071_v56 }
 0x17c   : > { %14229 = vmatmul.mubr.msk.f32.vlgmr.msra.gmra.mrb[2].mxu0 %vm896_vm10, %v1260_v4  ;;  %14232 = vmatmul.mubr.msk.f32.vlgmr.msra.gmra.mrb[2].mxu1 %vm896_vm10, %v1260_v4  ;;  %v2077_v40 = vpop.permute.xlu1 %2076  ;;  %v1693_v4 = vsel %vm1687_vm0, %v1680_v13, %v17932_v1 }
 0x17d   : > { %14234 = vmatprep.subr.msk.mxu0 %vm900_vm9, %v1689_v62  ;;  %14238 = vmatpush1.msk.msra.mxu1 %vm900_vm9, %v1690_v12  ;;  %v2090_v7 = vsel %vm2086_vm15, %v2075_v45, %v2077_v40  ;;  %v2091_v45 = vsel %vm2086_vm15, %v2077_v40, %v2079_v27 }
 0x17e   : > { %14235 = vmatpush1.msk.msra.mxu0 %vm900_vm9, %v1688_v30  ;;  %14243 = vmatprep.subr.msk.mxu1 %vm900_vm9, %v1695_v50  ;;  %v2083_v24 = vpop.permute.xlu0 %2082  ;;  %v14259_v30 = vld [vmem:[%s22191_s1 + $0x18] sm:$0xff] }
 0x17f   : > { %14240 = vmatprep.subr.msk.mxu0 %vm900_vm9, %v1693_v4  ;;  %1779 = vmatprep.mubr.f32.mxu0 %v17960_v59  ;;  %v2094_v23 = vsel %vm2086_vm15, %v2083_v24, %v17910_v21 }
 0x180   : > { %1850 = vmatprep.mubr.f32.mxu1 %v17960_v59  ;;  %14236 = vmatmul.mubr.msk.f32.vlgmr.msra.gmra.mrb[0].mxu0 %vm896_vm10, %v14233_v10  ;;  %v2081_v61 = vpop.permute.xlu1 %2080 }
 0x181   : > { %14239 = vmatmul.mubr.msk.f32.vlgmr.msra.gmra.mrb[0].mxu1 %vm896_vm10, %v14233_v10  ;;  %14241 = vmatpush1.msk.msra.mxu0 %vm900_vm9, %v1692_v0  ;;  %v2092_v38 = vsel %vm2086_vm15, %v2079_v27, %v2081_v61  ;;  %v2093_v22 = vsel %vm2086_vm15, %v2081_v61, %v2083_v24 }
 0x182   : > { %14244 = vmatpush1.msk.msra.mxu1 %vm900_vm9, %v1694_v19  ;;  %14247 = vmatprep.subr.msk.mxu0 %vm900_vm9, %v2088_v34  ;;  %v2470_v13 = vpop.permute.xlu0 %2469 }
 0x183   : > { %14250 = vmatprep.subr.msk.mxu1 %vm900_vm9, %v2090_v7  ;;  %1921 = vmatprep.mubr.f32.mxu0 %v17960_v59 }
 0x184   : > { %1992 = vmatprep.mubr.f32.mxu1 %v17960_v59  ;;  %14242 = vmatmul.mubr.msk.f32.vlgmr.msra.gmra.mrb[2].mxu0 %vm896_vm10, %v14233_v10  ;;  %v2472_v1 = vpop.permute.xlu1 %2471 }
 0x185   : > { %14245 = vmatmul.mubr.msk.f32.vlgmr.msra.gmra.mrb[2].mxu1 %vm896_vm10, %v14233_v10  ;;  %14248 = vmatpush1.msk.msra.mxu0 %vm900_vm9, %v2087_v42  ;;  %v2487_v21 = vsel %vm2485_vm14, %v2470_v13, %v2472_v1 }
 0x186   : > { %14251 = vmatpush1.msk.msra.mxu1 %vm900_vm9, %v2089_v57  ;;  %14253 = vmatprep.subr.msk.mxu0 %vm900_vm9, %v2092_v38  ;;  %v2468_v56 = vpop.permute.xlu0 %2467 }
 0x187   : > { %14256 = vmatprep.subr.msk.mxu1 %vm900_vm9, %v2094_v23  ;;  %2178 = vmatprep.mubr.f32.mxu0 %v17960_v59  ;;  %v2486_v12 = vsel %vm2485_vm14, %v2468_v56, %v2470_v13 }
 0x188   : > { %2249 = vmatprep.mubr.f32.mxu1 %v17960_v59  ;;  %14249 = vmatmul.mubr.msk.f32.vlgmr.msra.gmra.mrb[0].mxu0 %vm896_vm10, %v14246_v51  ;;  %v2474_v48 = vpop.permute.xlu1 %2473 }
 0x189   : > { %14252 = vmatmul.mubr.msk.f32.vlgmr.msra.gmra.mrb[0].mxu1 %vm896_vm10, %v14246_v51  ;;  %14254 = vmatpush1.msk.msra.mxu0 %vm900_vm9, %v2091_v45  ;;  %v2488_v40 = vsel %vm2485_vm14, %v2472_v1, %v2474_v48  ;;  %v14272_v1 = vld [vmem:[%s22191_s1 + $0x28] sm:$0xff] }
 0x18a   : > { %14257 = vmatpush1.msk.msra.mxu1 %vm900_vm9, %v2093_v22  ;;  %14260 = vmatprep.subr.msk.mxu0 %vm900_vm9, %v2487_v21  ;;  %v2476_v16 = vpop.permute.xlu0 %2475 }
 0x18b   : > { %2320 = vmatprep.mubr.f32.mxu0 %v17960_v59  ;;  %2391 = vmatprep.mubr.f32.mxu1 %v17960_v59  ;;  %v2489_v27 = vsel %vm2485_vm14, %v2474_v48, %v2476_v16 }
 0x18c   : > { %14255 = vmatmul.mubr.msk.f32.vlgmr.msra.gmra.mrb[2].mxu0 %vm896_vm10, %v14246_v51  ;;  %14263 = vmatprep.subr.msk.mxu1 %vm900_vm9, %v2489_v27  ;;  %v2478_v62 = vpop.permute.xlu1 %2477 }
 0x18d   : > { %14261 = vmatpush1.msk.msra.mxu0 %vm900_vm9, %v2486_v12  ;;  %14258 = vmatmul.mubr.msk.f32.vlgmr.msra.gmra.mrb[2].mxu1 %vm896_vm10, %v14246_v51  ;;  %v2490_v24 = vsel %vm2485_vm14, %v2476_v16, %v2478_v62 }
 0x18e   : > { %14264 = vmatpush1.msk.msra.mxu1 %vm900_vm9, %v2488_v40  ;;  %v2480_v50 = vpop.permute.xlu0 %2479  ;;  %2577 = vmatprep.mubr.f32.mxu0 %v17960_v59 }
 0x18f   : > { %v2491_v10 = vsel %vm2485_vm14, %v2478_v62, %v2480_v50  ;;  %2648 = vmatprep.mubr.f32.mxu1 %v17960_v59 }
 0x190   : > { %14266 = vmatprep.subr.msk.mxu0 %vm900_vm9, %v2491_v10  ;;  %v2482_v4 = vpop.permute.xlu1 %2481  ;;  %14262 = vmatmul.mubr.msk.f32.vlgmr.msra.gmra.mrb[0].mxu0 %vm896_vm10, %v14259_v30 }
 0x191   : > { %14267 = vmatpush1.msk.msra.mxu0 %vm900_vm9, %v2490_v24  ;;  %14265 = vmatmul.mubr.msk.f32.vlgmr.msra.gmra.mrb[0].mxu1 %vm896_vm10, %v14259_v30  ;;  %v2492_v19 = vsel %vm2485_vm14, %v2480_v50, %v2482_v4  ;;  %v14285_v24 = vld [vmem:[%s22191_s1 + $0x30] sm:$0xff] }
 0x192   : > { %v2484_v0 = vpop.permute.xlu0 %2483  ;;  %2719 = vmatprep.mubr.f32.mxu0 %v17960_v59  ;;  %2790 = vmatprep.mubr.f32.mxu1 %v17960_v59 }
 0x193   : > { %v2493_v61 = vsel %vm2485_vm14, %v2482_v4, %v2484_v0 }
 0x194   : > { %14269 = vmatprep.subr.msk.mxu1 %vm900_vm9, %v2493_v61  ;;  %v2877_v34 = vpop.permute.xlu1 %2876  ;;  %14268 = vmatmul.mubr.msk.f32.vlgmr.msra.gmra.mrb[2].mxu0 %vm896_vm10, %v14259_v30 }
 0x195   : > { %14270 = vmatpush1.msk.msra.mxu1 %vm900_vm9, %v2492_v19  ;;  %2983 = vmatprep.mubr.f32.mxu0 %v17960_v59 }
 0x196   : > { %v2879_v7 = vpop.permute.xlu0 %2878  ;;  %14271 = vmatmul.mubr.msk.f32.vlgmr.msra.gmra.mrb[2].mxu1 %vm896_vm10, %v14259_v30 }
 0x197   : > { %v2893_v13 = vsel %vm2430_vm13, %v2877_v34, %v2879_v7  ;;  %3054 = vmatprep.mubr.f32.mxu1 %v17960_v59 }
 0x198   : > { %14273 = vmatprep.subr.msk.mxu0 %vm900_vm9, %v2893_v13  ;;  %v2875_v42 = vpop.permute.xlu1 %2874 }
 0x199   : > { %v2892_v57 = vsel %vm2430_vm13, %v2875_v42, %v2877_v34 }
 0x19a   : > { %v2881_v38 = vpop.permute.xlu0 %2880  ;;  %14274 = vmatpush1.msk.msra.mxu0 %vm900_vm9, %v2892_v57 }
 0x19b   : > { %14275 = vmatmul.mubr.msk.f32.vlgmr.msra.gmra.mrb[0].mxu0 %vm896_vm10, %v14272_v1  ;;  %v2894_v56 = vsel %vm2430_vm13, %v2879_v7, %v2881_v38 }
 0x19c   : > { %v2883_v51 = vpop.permute.xlu1 %2882  ;;  %3125 = vmatprep.mubr.f32.mxu0 %v17960_v59 }
 0x19d   : > { %v2895_v23 = vsel %vm2430_vm13, %v2881_v38, %v2883_v51 }
 0x19e   : > { %v2885_v45 = vpop.permute.xlu0 %2884  ;;  %14276 = vmatprep.subr.msk.mxu1 %vm900_vm9, %v2895_v23 }
 0x19f   : > { %14277 = vmatpush1.msk.msra.mxu1 %vm900_vm9, %v2894_v56  ;;  %v2896_v21 = vsel %vm2430_vm13, %v2883_v51, %v2885_v45 }
 0x1a0   : > { %v2887_v48 = vpop.permute.xlu1 %2886  ;;  %14278 = vmatmul.mubr.msk.f32.vlgmr.msra.gmra.mrb[0].mxu1 %vm896_vm10, %v14272_v1 }
 0x1a1   : > { %v2897_v22 = vsel %vm2430_vm13, %v2885_v45, %v2887_v48  ;;  %3196 = vmatprep.mubr.f32.mxu1 %v17960_v59 }
 0x1a2   : > { %v2889_v16 = vpop.permute.xlu0 %2888  ;;  %14279 = vmatprep.subr.msk.mxu0 %vm900_vm9, %v2897_v22 }
 0x1a3   : > { %14280 = vmatpush1.msk.msra.mxu0 %vm900_vm9, %v2896_v21  ;;  %v2898_v62 = vsel %vm2430_vm13, %v2887_v48, %v2889_v16  ;;  %v14298_v21 = vld [vmem:[%s22191_s1 + $0x38] sm:$0xff] }
 0x1a4   : > { %v2891_v27 = vpop.permute.xlu1 %2890  ;;  %14281 = vmatmul.mubr.msk.f32.vlgmr.msra.gmra.mrb[2].mxu0 %vm896_vm10, %v14272_v1 }
 0x1a5   : > { %v2899_v12 = vsel %vm2430_vm13, %v2889_v16, %v2891_v27  ;;  %3380 = vmatprep.mubr.f32.mxu0 %v17960_v59 }
 0x1a6   : > { %v3274_v40 = vpop.permute.xlu0 %3273  ;;  %14282 = vmatprep.subr.msk.mxu1 %vm900_vm9, %v2899_v12 }
 0x1a7   : > { %14283 = vmatpush1.msk.msra.mxu1 %vm900_vm9, %v2898_v62 }
 0x1a8   : > { %v3276_v30 = vpop.permute.xlu1 %3275  ;;  %14284 = vmatmul.mubr.msk.f32.vlgmr.msra.gmra.mrb[2].mxu1 %vm896_vm10, %v14272_v1 }
 0x1a9   : > { %v3290_v50 = vsel %vm22071_vm12, %v3274_v40, %v3276_v30  ;;  %3451 = vmatprep.mubr.f32.mxu1 %v17960_v59 }
 0x1aa   : > { %v3272_v10 = vpop.permute.xlu0 %3271  ;;  %14286 = vmatprep.subr.msk.mxu0 %vm900_vm9, %v3290_v50 }
 0x1ab   : > { %v3289_v4 = vsel %vm22071_vm12, %v3272_v10, %v3274_v40 }
 0x1ac   : > { %14287 = vmatpush1.msk.msra.mxu0 %vm900_vm9, %v3289_v4  ;;  %v3278_v0 = vpop.permute.xlu1 %3277 }
 0x1ad   : > { %14288 = vmatmul.mubr.msk.f32.vlgmr.msra.gmra.mrb[0].mxu0 %vm896_vm10, %v14285_v24  ;;  %v3291_v34 = vsel %vm22071_vm12, %v3276_v30, %v3278_v0 }
 0x1ae   : > { %v3280_v61 = vpop.permute.xlu0 %3279  ;;  %3522 = vmatprep.mubr.f32.mxu0 %v17960_v59 }
 0x1af   : > { %v3292_v19 = vsel %vm22071_vm12, %v3278_v0, %v3280_v61 }
 0x1b0   : > { %14289 = vmatprep.subr.msk.mxu1 %vm900_vm9, %v3292_v19  ;;  %v3282_v7 = vpop.permute.xlu1 %3281 }
 0x1b1   : > { %14290 = vmatpush1.msk.msra.mxu1 %vm900_vm9, %v3291_v34  ;;  %v3293_v1 = vsel %vm22071_vm12, %v3280_v61, %v3282_v7 }
 0x1b2   : > { %v3284_v13 = vpop.permute.xlu0 %3283  ;;  %14291 = vmatmul.mubr.msk.f32.vlgmr.msra.gmra.mrb[0].mxu1 %vm896_vm10, %v14285_v24 }
 0x1b3   : > { %v3294_v42 = vsel %vm22071_vm12, %v3282_v7, %v3284_v13  ;;  %3593 = vmatprep.mubr.f32.mxu1 %v17960_v59 }
 0x1b4   : > { %14292 = vmatprep.subr.msk.mxu0 %vm900_vm9, %v3294_v42  ;;  %v3286_v57 = vpop.permute.xlu1 %3285 }
 0x1b5   : > { %14293 = vmatpush1.msk.msra.mxu0 %vm900_vm9, %v3293_v1  ;;  %v3295_v23 = vsel %vm22071_vm12, %v3284_v13, %v3286_v57  ;;  %v14311_v1 = vld [vmem:[%s22191_s1 + $0x40] sm:$0xff] }
 0x1b6   : > { %v3288_v38 = vpop.permute.xlu0 %3287  ;;  %14294 = vmatmul.mubr.msk.f32.vlgmr.msra.gmra.mrb[2].mxu0 %vm896_vm10, %v14285_v24 }
 0x1b7   : > { %v3296_v51 = vsel %vm22071_vm12, %v3286_v57, %v3288_v38  ;;  %3777 = vmatprep.mubr.f32.mxu0 %v17960_v59  ;;  %vm846_vm12 = vcmp.lt.s32.totalorder %v17172_v3, 12 }
 0x1b8   : > { %14295 = vmatprep.subr.msk.mxu1 %vm900_vm9, %v3296_v51  ;;  %v3671_v56 = vpop.permute.xlu1 %3670 }
 0x1b9   : > { %14296 = vmatpush1.msk.msra.mxu1 %vm900_vm9, %v3295_v23 }
 0x1ba   : > { %v3673_v45 = vpop.permute.xlu0 %3672  ;;  %14297 = vmatmul.mubr.msk.f32.vlgmr.msra.gmra.mrb[2].mxu1 %vm896_vm10, %v14285_v24 }
 0x1bb   : > { %v3687_v48 = vsel %vm22070_vm8, %v3671_v56, %v3673_v45  ;;  %3848 = vmatprep.mubr.f32.mxu1 %v17960_v59 }
 0x1bc   : > { %14299 = vmatprep.subr.msk.mxu0 %vm900_vm9, %v3687_v48  ;;  %v3669_v22 = vpop.permute.xlu1 %3668 }
 0x1bd   : > { %v3686_v16 = vsel %vm22070_vm8, %v3669_v22, %v3671_v56 }
 0x1be   : > { %v3675_v27 = vpop.permute.xlu0 %3674  ;;  %14300 = vmatpush1.msk.msra.mxu0 %vm900_vm9, %v3686_v16 }
 0x1bf   : > { %14301 = vmatmul.mubr.msk.f32.vlgmr.msra.gmra.mrb[0].mxu0 %vm896_vm10, %v14298_v21  ;;  %v3688_v40 = vsel %vm22070_vm8, %v3673_v45, %v3675_v27 }
 0x1c0   : > { %v3677_v12 = vpop.permute.xlu1 %3676  ;;  %3919 = vmatprep.mubr.f32.mxu0 %v17960_v59 }
 0x1c1   : > { %v3689_v62 = vsel %vm22070_vm8, %v3675_v27, %v3677_v12 }
 0x1c2   : > { %v3679_v30 = vpop.permute.xlu0 %3678  ;;  %14302 = vmatprep.subr.msk.mxu1 %vm900_vm9, %v3689_v62 }
 0x1c3   : > { %14303 = vmatpush1.msk.msra.mxu1 %vm900_vm9, %v3688_v40  ;;  %v3690_v24 = vsel %vm22070_vm8, %v3677_v12, %v3679_v30  ;;  %v22250_v12 = vunpack.i.h.bf16 %v17842_v43 }
 0x1c4   : > { %v3681_v50 = vpop.permute.xlu1 %3680  ;;  %14304 = vmatmul.mubr.msk.f32.vlgmr.msra.gmra.mrb[0].mxu1 %vm896_vm10, %v14298_v21 }
 0x1c5   : > { %v3691_v10 = vsel %vm22070_vm8, %v3679_v30, %v3681_v50  ;;  %3990 = vmatprep.mubr.f32.mxu1 %v17960_v59  ;;  %v890_v30 = vld [vmem:[%s21910_s2] sm:$0xff] }
 0x1c6   : > { %v3683_v4 = vpop.permute.xlu0 %3682  ;;  %14305 = vmatprep.subr.msk.mxu0 %vm900_vm9, %v3691_v10 }
 0x1c7   : > { %14306 = vmatpush1.msk.msra.mxu0 %vm900_vm9, %v3690_v24  ;;  %v3692_v19 = vsel %vm22070_vm8, %v3681_v50, %v3683_v4 }
 0x1c8   : > { %v3685_v0 = vpop.permute.xlu1 %3684  ;;  %14307 = vmatmul.mubr.msk.f32.vlgmr.msra.gmra.mrb[2].mxu0 %vm896_vm10, %v14298_v21 }
 0x1c9   : > { %v3693_v61 = vsel %vm22070_vm8, %v3683_v4, %v3685_v0  ;;  %4174 = vmatprep.mubr.f32.mxu0 %v17960_v59 }
 0x1ca   : > { %v4068_v34 = vpop.permute.xlu0 %4067  ;;  %14308 = vmatprep.subr.msk.mxu1 %vm900_vm9, %v3693_v61 }
 0x1cb   : > { %14309 = vmatpush1.msk.msra.mxu1 %vm900_vm9, %v3692_v19 }
 0x1cc   : > { %v4070_v7 = vpop.permute.xlu1 %4069  ;;  %14310 = vmatmul.mubr.msk.f32.vlgmr.msra.gmra.mrb[2].mxu1 %vm896_vm10, %v14298_v21 }
 0x1cd   : > { %v4084_v13 = vsel %vm22069_vm11, %v4068_v34, %v4070_v7  ;;  %4245 = vmatprep.mubr.f32.mxu1 %v17960_v59 }
 0x1ce   : > { %v4066_v42 = vpop.permute.xlu0 %4065  ;;  %14312 = vmatprep.subr.msk.mxu0 %vm900_vm9, %v4084_v13 }
 0x1cf   : > { %v4083_v57 = vsel %vm22069_vm11, %v4066_v42, %v4068_v34 }
 0x1d0   : > { %14313 = vmatpush1.msk.msra.mxu0 %vm900_vm9, %v4083_v57  ;;  %v4072_v38 = vpop.permute.xlu1 %4071 }
 0x1d1   : > { %14314 = vmatmul.mubr.msk.f32.vlgmr.msra.gmra.mrb[0].mxu0 %vm896_vm10, %v14311_v1  ;;  %v4085_v56 = vsel %vm22069_vm11, %v4070_v7, %v4072_v38 }
 0x1d2   : > { %v4074_v51 = vpop.permute.xlu0 %4073  ;;  %4316 = vmatprep.mubr.f32.mxu0 %v17960_v59 }
 0x1d3   : > { %v4086_v23 = vsel %vm22069_vm11, %v4072_v38, %v4074_v51 }
 0x1d4   : > { %14315 = vmatprep.subr.msk.mxu1 %vm900_vm9, %v4086_v23  ;;  %v4076_v45 = vpop.permute.xlu1 %4075 }
 0x1d5   : > { %14316 = vmatpush1.msk.msra.mxu1 %vm900_vm9, %v4085_v56  ;;  %v4087_v21 = vsel %vm22069_vm11, %v4074_v51, %v4076_v45 }
 0x1d6   : > { %v4078_v48 = vpop.permute.xlu0 %4077  ;;  %14317 = vmatmul.mubr.msk.f32.vlgmr.msra.gmra.mrb[0].mxu1 %vm896_vm10, %v14311_v1 }
 0x1d7   : > { %v4088_v22 = vsel %vm22069_vm11, %v4076_v45, %v4078_v48  ;;  %4387 = vmatprep.mubr.f32.mxu1 %v17960_v59 }
 0x1d8   : > { %14318 = vmatprep.subr.msk.mxu0 %vm900_vm9, %v4088_v22  ;;  %v18172_v16 = vpop.permute.xlu1 %4027 }
 0x1d9   : > { %22249 = vst [vmem:[#allocation69_spill] sm:$0xff] %v18172_v16  ;;  %14319 = vmatpush1.msk.msra.mxu0 %vm900_vm9, %v4087_v21  ;;  %v4053_v27 = vmul.f32 %v18172_v16, %v17772_v63  ;;  %v18181_v62 = vsel %vm1288_vm1, %v22250_v12, %v18172_v16  ;;  %v4596_v12 = vld [vmem:[#allocation3 + $0x208] sm:$0xff]  ;;  %v4665_v16 = vld [vmem:[#allocation3 + $0x430] sm:$0xff] }
 0x1da   : > { %22251 = vst [vmem:[#allocation70_spill] sm:$0xff] %v18181_v62  ;;  %14320 = vmatmul.mubr.msk.f32.vlgmr.msra.gmra.mrb[2].mxu0 %vm896_vm10, %v14311_v1  ;;  %v4052_v40 = vmul.f32 %v18181_v62, %v17760_v15  ;;  %v800_v62 = vand.u32 7, %v17169_v2 }
 0x1db   : > { %4081 = vrot.lane.b32.xlu1 %v4053_v27, %s22038_s18 }
 0x1dc   : > { %4079 = vrot.lane.b32.xlu0 %v4052_v40, %s22038_s18  ;;  %v4598_v40 = vld [vmem:[#allocation3 + $0x218] sm:$0xff]  ;;  %vm804_vm2 = vcmp.ge.s32.totalorder %v800_v62, 1  ;;  %vm810_vm6 = vcmp.le.s32.totalorder %v800_v62, 6  ;;  %s16979_s18 = smov 5  }
 0x1e0   : > { %893 = vperm.xlu0 %15983, %v890_v30   ;;  %v4595_v30 = vld [vmem:[#allocation3 + $0x200] sm:$0xff] }
 0x24d   : > { %v4082_v63 = vpop.permute.xlu1 %4081 }
 0x24e   : > { %v4080_v50 = vpop.permute.xlu0 %4079 }
 0x24f   : > { %v4089_v43 = vsel %vm22069_vm11, %v4078_v48, %v4080_v50  ;;  %v4090_v10 = vsel %vm22069_vm11, %v4080_v50, %v4082_v63  ;;  %v14765_v63 = vpack.c.bf16 %v4598_v40, %v4596_v12  ;;  %v4597_v50 = vld [vmem:[#allocation3 + $0x210] sm:$0xff]  ;;  %v4607_v40 = vld [vmem:[#allocation3 + $0x260] sm:$0xff] }
 0x250   : > { %14321 = vmatprep.subr.msk.mxu1 %vm900_vm9, %v4090_v10  ;;  %v4602_v10 = vld [vmem:[#allocation3 + $0x238] sm:$0xff] }
 0x251   : > { %14322 = vmatpush1.msk.msra.mxu1 %vm900_vm9, %v4089_v43  ;;  %v4600_v43 = vld [vmem:[#allocation3 + $0x228] sm:$0xff]  ;;  %14766 = vmatprep.subr.bf16.mxu0 %v14765_v63 }
 0x252   : > { %14323 = vmatmul.mubr.msk.f32.vlgmr.msra.gmra.mrb[2].mxu1 %vm896_vm10, %v14311_v1 }
 0x25f   : > { %v18196_v15 = vpop.permute.xlu0 %893 }
 0x2a4   : > { %v4176_v24 = vpop.f32.mrb[0].mxu0 }
 0x2a5   : > { %v18199_v4 = vadd.f32 %v4176_v24, %v18196_v15  ;;  %v4178_v0 = vpop.f32.mrb[1].mxu0  ;;  %v14767_v24 = vpack.c.bf16 %v4597_v50, %v4595_v30  ;;  %v4609_v30 = vld [vmem:[#allocation3 + $0x270] sm:$0xff]  ;;  %v4612_v50 = vld [vmem:[#allocation3 + $0x288] sm:$0xff] }
 0x2a6   : > { %v15550_v61 = vadd.f32 %v4178_v0, %v18196_v15  ;;  %v14769_v0 = vpack.c.bf16 %v4602_v10, %v4600_v43  ;;  %v4614_v43 = vld [vmem:[#allocation3 + $0x298] sm:$0xff]  ;;  %v14779_v10 = vpack.c.bf16 %v4609_v30, %v4607_v40  ;;  %v4621_v40 = vld [vmem:[#allocation3 + $0x2d0] sm:$0xff] }
 0x2a7   : > { %v22009_v19 = vmax.f32 %v18199_v4, 0.0  ;;  %14768 = vmatpush1.bf16.msra.mxu0 %v14767_v24  ;;  %v14781_v63 = vpack.c.bf16 %v4614_v43, %v4612_v50  ;;  %v4611_v24 = vld [vmem:[#allocation3 + $0x280] sm:$0xff]  ;;  %v4626_v30 = vld [vmem:[#allocation3 + $0x2f8] sm:$0xff] }
 0x2a8   : > { %v18203_v34 = vmax.f32 %v15550_v61, 0.0  ;;  %v4599_v61 = vld [vmem:[#allocation3 + $0x220] sm:$0xff]  ;;  %14770 = vmatprep.subr.bf16.mxu0 %v14769_v0  ;;  %v4616_v0 = vld [vmem:[#allocation3 + $0x2a8] sm:$0xff] }
 0x2a9   : > { %v4247_v7 = vpop.f32.mrb[0].mxu1  ;;  %9768 = vst [vmem:[#allocation2 + $0xa8] sm:$0xff] %v22009_v19  ;;  %v4663_v19 = vld [vmem:[#allocation3 + $0x420] sm:$0xff] }
 0x2aa   : > { %v15551_v13 = vadd.f32 %v4247_v7, %v18196_v15  ;;  %v4249_v42 = vpop.f32.mrb[1].mxu1  ;;  %9769 = vst [vmem:[#allocation2 + $0xb0] sm:$0xff] %v18203_v34  ;;  %v4601_v7 = vld [vmem:[#allocation3 + $0x230] sm:$0xff] }
 0x2ab   : > { %v15552_v1 = vadd.f32 %v4249_v42, %v18196_v15  ;;  %v4606_v42 = vld [vmem:[#allocation3 + $0x258] sm:$0xff] }
 0x2ac   : > { %v18210_v57 = vmax.f32 %v15551_v13, 0.0  ;;  %v4604_v13 = vld [vmem:[#allocation3 + $0x248] sm:$0xff] }
 0x2ad   : > { %v18212_v38 = vmax.f32 %v15552_v1, 0.0  ;;  %v4318_v51 = vpop.f32.mrb[2].mxu0  ;;  %v14771_v1 = vpack.c.bf16 %v4601_v7, %v4599_v61  ;;  %v4613_v61 = vld [vmem:[#allocation3 + $0x290] sm:$0xff]  ;;  %v4618_v7 = vld [vmem:[#allocation3 + $0x2b8] sm:$0xff] }
 0x2ae   : > { %4412 = vst [vmem:[#allocation2 + $0x18] sm:$0xff] %v18210_v57  ;;  %9770 = vst [vmem:[#allocation2 + $0xb8] sm:$0xff] %v18210_v57  ;;  %v15553_v23 = vadd.f32 %v4318_v51, %v18196_v15  ;;  %v4320_v56 = vpop.f32.mrb[3].mxu0  ;;  %v14773_v51 = vpack.c.bf16 %v4606_v42, %v4604_v13  ;;  %v14783_v13 = vpack.c.bf16 %v4613_v61, %v4611_v24  ;;  %v4625_v24 = vld [vmem:[#allocation3 + $0x2f0] sm:$0xff]  ;;  %v4630_v61 = vld [vmem:[#allocation3 + $0x318] sm:$0xff] }
 0x2af   : > { %9771 = vst [vmem:[#allocation2 + $0xc0] sm:$0xff] %v18212_v38  ;;  %v15554_v45 = vadd.f32 %v4320_v56, %v18196_v15  ;;  %v4605_v56 = vld [vmem:[#allocation3 + $0x250] sm:$0xff]  ;;  %14772 = vmatpush1.bf16.msra.mxu0 %v14771_v1  ;;  %v14785_v42 = vpack.c.bf16 %v4618_v7, %v4616_v0  ;;  %v4615_v1 = vld [vmem:[#allocation3 + $0x2a0] sm:$0xff] }
 0x2b0   : > { %v18219_v48 = vmax.f32 %v15553_v23, 0.0  ;;  %v4603_v23 = vld [vmem:[#allocation3 + $0x240] sm:$0xff]  ;;  %14774 = vmatprep.subr.bf16.mxu0 %v14773_v51  ;;  %v4620_v51 = vld [vmem:[#allocation3 + $0x2c8] sm:$0xff] }
 0x2b1   : > { %v18221_v22 = vmax.f32 %v15554_v45, 0.0  ;;  %v4608_v45 = vld [vmem:[#allocation3 + $0x268] sm:$0xff] }
 0x2b2   : > { %9772 = vst [vmem:[#allocation2 + $0xc8] sm:$0xff] %v18219_v48  ;;  %v15984_v21 = vpack.i.bf16 %v18219_v48, %v18212_v38 }
 0x2b3   : > { %9773 = vst [vmem:[#allocation2 + $0xd0] sm:$0xff] %v18221_v22  ;;  %v15989_v27 = vpack.i.bf16 %v18210_v57, %v18221_v22 }
 0x2b4   : > { %15985 = vrot.lane.b32.xlu1 %v15984_v21, %s22077_s0  ;;  %v4610_v21 = vld [vmem:[#allocation3 + $0x278] sm:$0xff] }
 0x2b5   : > { %v14777_v12 = vpack.c.bf16 %v4610_v21, %v4608_v45 }
 0x2b8   : > { %15990 = vrot.lane.b32.xlu1 %v15989_v27, %s22077_s0  ;;  %v14775_v27 = vpack.c.bf16 %v4605_v56, %v4603_v23  ;;  %v4617_v23 = vld [vmem:[#allocation3 + $0x2b0] sm:$0xff]  ;;  %v4622_v56 = vld [vmem:[#allocation3 + $0x2d8] sm:$0xff] }
 0x2b9   : > { %v14787_v45 = vpack.c.bf16 %v4617_v23, %v4615_v1  ;;  %v14789_v21 = vpack.c.bf16 %v4622_v56, %v4620_v51  ;;  %v4629_v1 = vld [vmem:[#allocation3 + $0x310] sm:$0xff]  ;;  %v4634_v23 = vld [vmem:[#allocation3 + $0x338] sm:$0xff] }
 0x2ba   : > { %14776 = vmatpush1.bf16.msra.mxu0 %v14775_v27  ;;  %v4619_v27 = vld [vmem:[#allocation3 + $0x2c0] sm:$0xff] }
 0x2bb   : > { %14778 = vmatprep.subr.bf16.mxu0 %v14777_v12  ;;  %v4624_v12 = vld [vmem:[#allocation3 + $0x2e8] sm:$0xff]  ;;  %v14791_v50 = vpack.c.bf16 %v4621_v40, %v4619_v27  ;;  %v4633_v27 = vld [vmem:[#allocation3 + $0x330] sm:$0xff]  ;;  %v4638_v40 = vld [vmem:[#allocation3 + $0x358] sm:$0xff] }
 0x2bc   : > { %v14793_v43 = vpack.c.bf16 %v4626_v30, %v4624_v12 }
 0x2be   : > { %14780 = vmatpush1.bf16.msra.mxu0 %v14779_v10  ;;  %v4623_v10 = vld [vmem:[#allocation3 + $0x2e0] sm:$0xff] }
 0x2bf   : > { %14782 = vmatprep.subr.bf16.mxu0 %v14781_v63  ;;  %v4628_v63 = vld [vmem:[#allocation3 + $0x308] sm:$0xff]  ;;  %v14795_v0 = vpack.c.bf16 %v4625_v24, %v4623_v10  ;;  %v4637_v10 = vld [vmem:[#allocation3 + $0x350] sm:$0xff]  ;;  %v4642_v24 = vld [vmem:[#allocation3 + $0x378] sm:$0xff] }
 0x2c0   : > { %v14797_v7 = vpack.c.bf16 %v4630_v61, %v4628_v63 }
 0x2c2   : > { %14784 = vmatpush1.bf16.msra.mxu0 %v14783_v13  ;;  %v4627_v13 = vld [vmem:[#allocation3 + $0x300] sm:$0xff] }
 0x2c3   : > { %14786 = vmatprep.subr.bf16.mxu0 %v14785_v42  ;;  %v4632_v42 = vld [vmem:[#allocation3 + $0x328] sm:$0xff]  ;;  %v14799_v51 = vpack.c.bf16 %v4629_v1, %v4627_v13  ;;  %v4641_v13 = vld [vmem:[#allocation3 + $0x370] sm:$0xff]  ;;  %v4646_v1 = vld [vmem:[#allocation3 + $0x398] sm:$0xff] }
 0x2c4   : > { %v14801_v56 = vpack.c.bf16 %v4634_v23, %v4632_v42 }
 0x2c6   : > { %14788 = vmatpush1.bf16.msra.mxu0 %v14787_v45  ;;  %v4631_v45 = vld [vmem:[#allocation3 + $0x320] sm:$0xff] }
 0x2c7   : > { %14790 = vmatprep.subr.bf16.mxu0 %v14789_v21  ;;  %v4636_v21 = vld [vmem:[#allocation3 + $0x348] sm:$0xff]  ;;  %v14803_v12 = vpack.c.bf16 %v4633_v27, %v4631_v45  ;;  %v4645_v45 = vld [vmem:[#allocation3 + $0x390] sm:$0xff]  ;;  %v4650_v27 = vld [vmem:[#allocation3 + $0x3b8] sm:$0xff] }
 0x2c8   : > { %v14805_v30 = vpack.c.bf16 %v4638_v40, %v4636_v21 }
 0x2ca   : > { %14792 = vmatpush1.bf16.msra.mxu0 %v14791_v50  ;;  %v4635_v50 = vld [vmem:[#allocation3 + $0x340] sm:$0xff] }
 0x2cb   : > { %14794 = vmatprep.subr.bf16.mxu0 %v14793_v43  ;;  %v4640_v43 = vld [vmem:[#allocation3 + $0x368] sm:$0xff]  ;;  %v14807_v63 = vpack.c.bf16 %v4637_v10, %v4635_v50  ;;  %v4649_v50 = vld [vmem:[#allocation3 + $0x3b0] sm:$0xff] }
 0x2cc   : > { %v14809_v61 = vpack.c.bf16 %v4642_v24, %v4640_v43  ;;  %v4652_v10 = vld [vmem:[#allocation3 + $0x3c8] sm:$0xff]  ;;  %v4654_v43 = vld [vmem:[#allocation3 + $0x3d8] sm:$0xff]  ;;  %v4651_v24 = vld [vmem:[#allocation3 + $0x3c0] sm:$0xff] }
 0x2ce   : > { %14796 = vmatpush1.bf16.msra.mxu0 %v14795_v0  ;;  %v4639_v0 = vld [vmem:[#allocation3 + $0x360] sm:$0xff] }
 0x2cf   : > { %14798 = vmatprep.subr.bf16.mxu0 %v14797_v7  ;;  %v4644_v7 = vld [vmem:[#allocation3 + $0x388] sm:$0xff]  ;;  %v14811_v42 = vpack.c.bf16 %v4641_v13, %v4639_v0 }
 0x2d0   : > { %v14813_v23 = vpack.c.bf16 %v4646_v1, %v4644_v7 }
 0x2d2   : > { %14800 = vmatpush1.bf16.msra.mxu0 %v14799_v51  ;;  %v4643_v51 = vld [vmem:[#allocation3 + $0x380] sm:$0xff] }
 0x2d3   : > { %14802 = vmatprep.subr.bf16.mxu0 %v14801_v56  ;;  %v4648_v56 = vld [vmem:[#allocation3 + $0x3a8] sm:$0xff]  ;;  %v14815_v21 = vpack.c.bf16 %v4645_v45, %v4643_v51  ;;  %v4658_v51 = vld [vmem:[#allocation3 + $0x3f8] sm:$0xff] }
 0x2d4   : > { %v14817_v40 = vpack.c.bf16 %v4650_v27, %v4648_v56 }
 0x2d6   : > { %14804 = vmatpush1.bf16.msra.mxu0 %v14803_v12  ;;  %v4647_v12 = vld [vmem:[#allocation3 + $0x3a0] sm:$0xff] }
 0x2d7   : > { %14806 = vmatprep.subr.bf16.mxu0 %v14805_v30  ;;  %v14819_v30 = vpack.c.bf16 %v4649_v50, %v4647_v12  ;;  %v4657_v12 = vld [vmem:[#allocation3 + $0x3f0] sm:$0xff] }
 0x2da   : > { %14808 = vmatpush1.bf16.msra.mxu0 %v14807_v63  ;;  %v14821_v63 = vpack.c.bf16 %v4654_v43, %v4652_v10 }
 0x2db   : > { %14810 = vmatprep.subr.bf16.mxu0 %v14809_v61  ;;  %v4653_v61 = vld [vmem:[#allocation3 + $0x3d0] sm:$0xff] }
 0x2dc   : > { %v14823_v0 = vpack.c.bf16 %v4653_v61, %v4651_v24 }
 0x2de   : > { %14812 = vmatpush1.bf16.msra.mxu0 %v14811_v42 }
 0x2df   : > { %14814 = vmatprep.subr.bf16.mxu0 %v14813_v23  ;;  %v4656_v23 = vld [vmem:[#allocation3 + $0x3e8] sm:$0xff] }
 0x2e2   : > { %14816 = vmatpush1.bf16.msra.mxu0 %v14815_v21  ;;  %v14825_v21 = vpack.c.bf16 %v4658_v51, %v4656_v23  ;;  %v16004_v51 = vpack.i.bf16 %v17960_v59, %v18203_v34 }
 0x2e3   : > { %14818 = vmatprep.subr.bf16.mxu0 %v14817_v40  ;;  %v4655_v40 = vld [vmem:[#allocation3 + $0x3e0] sm:$0xff] }
 0x2e6   : > { %14820 = vmatpush1.bf16.msra.mxu0 %v14819_v30  ;;  %v14827_v30 = vpack.c.bf16 %v4657_v12, %v4655_v40  ;;  %v4661_v40 = vld [vmem:[#allocation3 + $0x410] sm:$0xff] }
 0x2e7   : > { %14822 = vmatprep.subr.bf16.mxu0 %v14821_v63 }
 0x2ea   : > { %14824 = vmatpush1.bf16.msra.mxu0 %v14823_v0 }
 0x2eb   : > { %14826 = vmatprep.subr.bf16.mxu0 %v14825_v21  ;;  %v4659_v21 = vld [vmem:[#allocation3 + $0x400] sm:$0xff] }
 0x2ee   : > { %14828 = vmatpush1.bf16.msra.mxu0 %v14827_v30  ;;  %v4664_v30 = vld [vmem:[#allocation3 + $0x428] sm:$0xff] }
 0x325   : > { %v4389_v13 = vpop.f32.mrb[2].mxu1 }
 0x326   : > { %v15555_v7 = vadd.f32 %v4389_v13, %v18196_v15  ;;  %v4391_v1 = vpop.f32.mrb[3].mxu1  ;;  %v15986_v42 = vpop.permute.xlu1 %15985 }
 0x327   : > { %v15556_v45 = vadd.f32 %v4391_v1, %v18196_v15  ;;  %v15988_v56 = vunpack.i.h.bf16 %v15986_v42  ;;  %v15987_v27 = vunpack.i.l.bf16 %v15986_v42 }
 0x328   : > { %v4408_v50 = vmax.f32 %v15555_v7, 0.0 }
 0x329   : > { %v18233_v10 = vmax.f32 %v15556_v45, 0.0  ;;  %v4457_v24 = vsel %vm2430_vm13, %v15987_v27, %v15988_v56 }
 0x32a   : > { %9774 = vst [vmem:[#allocation2 + $0xd8] sm:$0xff] %v4408_v50  ;;  %v18235_v43 = vpop.permute.xlu1 %15990  ;;  %v4473_v13 = vmax.f32 %v18212_v38, %v4457_v24  ;;  %v4660_v38 = vld [vmem:[#allocation3 + $0x408] sm:$0xff] }
 0x32b   : > { %9775 = vst [vmem:[#allocation2 + $0xe0] sm:$0xff] %v18233_v10  ;;  %v15993_v15 = vunpack.i.h.bf16 %v18235_v43  ;;  %v15992_v63 = vunpack.i.l.bf16 %v18235_v43  ;;  %v15999_v23 = vpack.i.bf16 %v18233_v10, %v4408_v50  ;;  %v4666_v43 = vld [vmem:[#allocation3 + $0x438] sm:$0xff] }
 0x32d   : > { %v4456_v61 = vsel %vm2430_vm13, %v15993_v15, %v15987_v27  ;;  %v4458_v0 = vsel %vm2430_vm13, %v15988_v56, %v15992_v63 }
 0x32e   : > { %v18245_v7 = vmax.f32 %v18219_v48, %v4458_v0  ;;  %v4472_v1 = vmax.f32 %v18210_v57, %v4456_v61  ;;  %v4662_v48 = vld [vmem:[#allocation3 + $0x418] sm:$0xff] }
 0x32f   : > { %v14829_v45 = vpack.c.bf16 %v4662_v48, %v4660_v38 }
 0x330   : > { %4493 = vrot.lane.b32.xlu1 %v4472_v1, %s22040_s23  ;;  %v15994_v42 = vpack.i.bf16 %v18245_v7, %v4473_v13 }
 0x331   : > { %14830 = vmatprep.subr.bf16.mxu0 %v14829_v45  ;;  %v14833_v45 = vpack.c.bf16 %v4666_v43, %v4664_v30 }
 0x332   : > { %15995 = vrot.lane.b32.xlu0 %v15994_v42, %s22040_s23 }
 0x336   : > { %16000 = vrot.lane.b32.xlu0 %v15999_v23, %s22077_s0 }
 0x33a   : > { %16005 = vrot.lane.b32.xlu0 %v16004_v51, %s22077_s0  ;;  %v14831_v51 = vpack.c.bf16 %v4661_v40, %v4659_v21  ;;  %v14835_v40 = vpack.c.bf16 %v4665_v16, %v4663_v19 }
 0x3a2   : > { %v18260_v12 = vpop.permute.xlu1 %4493 }
 0x3a4   : > { %v18256_v57 = vpop.permute.xlu0 %15995 }
 0x3a5   : > { %v22024_v56 = vunpack.i.h.bf16 %v18256_v57  ;;  %v15997_v27 = vunpack.i.l.bf16 %v18256_v57 }
 0x3a7   : > { %v4509_v24 = vsel %vm22070_vm8, %v18260_v12, %v15997_v27  ;;  %v4510_v61 = vsel %vm22070_vm8, %v15997_v27, %v22024_v56  ;;  %v4693_v56 = vld [vmem:[#allocation3 + $0x510] sm:$0xff] }
 0x3a8   : > { %v16001_v0 = vpop.permute.xlu0 %16000  ;;  %v4526_v42 = vmax.f32 %v4473_v13, %v4510_v61  ;;  %v4525_v23 = vmax.f32 %v4472_v1, %v4509_v24  ;;  %v14837_v24 = vpack.c.bf16 %v4670_v20, %v4668_v52  ;;  %v4672_v20 = vld [vmem:[#allocation3 + $0x468] sm:$0xff]  ;;  %v4674_v52 = vld [vmem:[#allocation3 + $0x478] sm:$0xff] }
 0x3a9   : > { %v16003_v38 = vunpack.i.h.bf16 %v16001_v0  ;;  %v16002_v48 = vunpack.i.l.bf16 %v16001_v0 }
 0x3aa   : > { %4922 = vmatprep.mubr.f32.mxu0 %v4526_v42  ;;  %v18299_v42 = vsel %vm804_vm2, 1.0, %v17960_v59 }
 0x3ab   : > { %v4459_v5 = vsel %vm2430_vm13, %v15992_v63, %v16002_v48  ;;  %v4460_v27 = vsel %vm2430_vm13, %v16002_v48, %v16003_v38  ;;  %4923 = vmatmul.mubr.f32.vlgmr.msra.gmra.mrb[4].mxu0 %v4525_v23  ;;  %v18302_v23 = vsel %vm816_vm3, 1.0, %v17960_v59  ;;  %v4673_v48 = vld [vmem:[#allocation3 + $0x470] sm:$0xff]  ;;  %vm5181_vm3 = vcmask 973824  }
 0x3ac   : > { %v18272_v13 = vmax.f32 %v18221_v22, %v4459_v5  ;;  %v18274_v1 = vmax.f32 %v4408_v50, %v4460_v27  ;;  %v18276_v21 = vpop.permute.xlu0 %16005  ;;  %14832 = vmatpush1.bf16.msra.mxu0 %v14831_v51  ;;  %v803_v5 = vand.u32 63, %v17179_v6  ;;  %v4667_v22 = vld [vmem:[#allocation3 + $0x440] sm:$0xff]  ;;  %v4669_v50 = vld [vmem:[#allocation3 + $0x450] sm:$0xff]  ;;  %v4678_v27 = vld [vmem:[#allocation3 + $0x498] sm:$0xff]  ;;  %v828_v59 = vmul.f32 %v18302_v23, %v18299_v42 }
 0x3ad   : > { %v22022_v30 = vunpack.i.h.bf16 %v18276_v21  ;;  %v22023_v43 = vunpack.i.l.bf16 %v18276_v21  ;;  %14834 = vmatprep.subr.bf16.mxu0 %v14833_v45  ;;  %v14839_v51 = vpack.c.bf16 %v4669_v50, %v4667_v22  ;;  %v4676_v45 = vld [vmem:[#allocation3 + $0x488] sm:$0xff]  ;;  %v4675_v50 = vld [vmem:[#allocation3 + $0x480] sm:$0xff] }
 0x3ae   : > { %v16009_v63 = vpack.i.bf16 %v18274_v1, %v18272_v13  ;;  %vm817_vm4 = vcmp.ge.s32.totalorder %v803_v5, 8  ;;  %v14845_v22 = vpack.c.bf16 %v4678_v27, %v4676_v45  ;;  %v4686_v45 = vld [vmem:[#allocation3 + $0x4d8] sm:$0xff]  ;;  %vm823_vm9 = vcmp.lt.s32.totalorder %v803_v5, 56 }
 0x3af   : > { %v4461_v16 = vsel %vm2430_vm13, %v16003_v38, %v22022_v30  ;;  %v4455_v19 = vsel %vm2430_vm13, %v22023_v43, %v15993_v15  ;;  %v14841_v38 = vpack.c.bf16 %v4674_v52, %v4672_v20  ;;  %v4682_v20 = vld [vmem:[#allocation3 + $0x4b8] sm:$0xff]  ;;  %v4691_v43 = vld [vmem:[#allocation3 + $0x500] sm:$0xff] }
 0x3b0   : > { %v18292_v61 = vmax.f32 %v18233_v10, %v4461_v16  ;;  %v18295_v0 = vmax.f32 %v18203_v34, %v4455_v19  ;;  %16010 = vrot.lane.b32.xlu1 %v16009_v63, %s22040_s23  ;;  %14836 = vmatpush1.bf16.msra.mxu0 %v14835_v40  ;;  %v801_v10 = vand.u32 7, %v17179_v6  ;;  %v4671_v34 = vld [vmem:[#allocation3 + $0x460] sm:$0xff]  ;;  %v22252_v40 = vmax.f32 %v18199_v4, 0.0  ;;  %v4677_v16 = vld [vmem:[#allocation3 + $0x490] sm:$0xff]  ;;  %v4680_v19 = vld [vmem:[#allocation3 + $0x4a8] sm:$0xff] }
 0x3b1   : > { %14838 = vmatprep.subr.bf16.mxu0 %v14837_v24  ;;  %v18313_v24 = vld [vmem:[#allocation2 + $0x110] sm:$0xff]  ;;  %v14843_v6 = vpack.c.bf16 %v4673_v48, %v4671_v34  ;;  %v4684_v48 = vld [vmem:[#allocation3 + $0x4c8] sm:$0xff] }
 0x3b2   : > { %v16014_v15 = vpack.i.bf16 %v18292_v61, %v18295_v0  ;;  %v18316_v63 = vsel %vm817_vm4, 1.0, %v18313_v24  ;;  %vm811_vm5 = vcmp.le.s32.totalorder %v801_v10, 6  ;;  %v4681_v34 = vld [vmem:[#allocation3 + $0x4b0] sm:$0xff]  ;;  %vm805_vm7 = vcmp.ge.s32.totalorder %v801_v10, 1 }
 0x3b3   : > { %v16024_v4 = vpack.i.bf16 %v18316_v63, %v18302_v23  ;;  %v18322_v52 = vsel %vm811_vm5, 1.0, %v18313_v24  ;;  %v14853_v62 = vpack.c.bf16 %v4686_v45, %v4684_v48  ;;  %v4532_v45 = vld [vmem:[#allocation3 + $0x8] sm:$0xff]  ;;  %vm5298_vm4 = vcmask 982016  }
 0x3b4   : > { %16015 = vrot.lane.b32.xlu0 %v16014_v15, %s22040_s23  ;;  %4436 = vrot.lane.b32.xlu1 %v22252_v40, %s22077_s0  ;;  %v14847_v15 = vpack.c.bf16 %v4677_v16, %v4675_v50  ;;  %v831_v27 = vmul.f32 %v18316_v63, %v18322_v52  ;;  %v18328_v40 = vsel %vm810_vm6, 1.0, %v18313_v24  ;;  %v4688_v50 = vld [vmem:[#allocation3 + $0x4e8] sm:$0xff]  ;;  %v4690_v16 = vld [vmem:[#allocation3 + $0x4f8] sm:$0xff]  ;;  %vm5090_vm5 = vcmask 64512  }
 0x3b5   : > { %14840 = vmatpush1.bf16.msra.mxu0 %v14839_v51  ;;  %v14849_v51 = vpack.c.bf16 %v4682_v20, %v4680_v19  ;;  %v16034_v19 = vpack.i.bf16 %v18322_v52, %v18328_v40  ;;  %v18334_v20 = vsel %vm805_vm7, 1.0, %v18313_v24  ;;  %v14857_v10 = vpack.c.bf16 %v4690_v16, %v4688_v50  ;;  %v4698_v50 = vld [vmem:[#allocation3 + $0x538] sm:$0xff] }
 0x3b6   : > { %14842 = vmatprep.subr.bf16.mxu0 %v14841_v38  ;;  %v4679_v38 = vld [vmem:[#allocation3 + $0x4a0] sm:$0xff]  ;;  %vm5415_vm6 = vcmask 990208   ;;  %vm5435_vm7 = vcmask 56320  }
 0x3b8   : > { %5177 = vrot.lane.b32.xlu0 %v828_v59, %s22050_s19  ;;  %v14851_v59 = vpack.c.bf16 %v4681_v34, %v4679_v38  ;;  %v4692_v38 = vld [vmem:[#allocation3 + $0x508] sm:$0xff]  ;;  %v4694_v34 = vld [vmem:[#allocation3 + $0x518] sm:$0xff] }
 0x3b9   : > { %14844 = vmatpush1.bf16.msra.mxu0 %v14843_v6  ;;  %v4683_v6 = vld [vmem:[#allocation3 + $0x4c0] sm:$0xff] }
 0x3ba   : > { %14846 = vmatprep.subr.bf16.mxu0 %v14845_v22  ;;  %v4685_v22 = vld [vmem:[#allocation3 + $0x4d0] sm:$0xff] }
 0x3bb   : > { %v14855_v5 = vpack.c.bf16 %v4685_v22, %v4683_v6  ;;  %v4533_v6 = vld [vmem:[#allocation3 + $0x10] sm:$0xff]  ;;  %v4696_v22 = vld [vmem:[#allocation3 + $0x528] sm:$0xff] }
 0x3bc   : > { %16025 = vrot.lane.b32.xlu0 %v16024_v4, %s22075_s28  ;;  %v18337_v4 = vsel %vm823_vm9, 1.0, %v18313_v24  ;;  %v14703_v16 = vpack.c.bf16 %v4533_v6, %v4531_v58  ;;  %v4541_v6 = vld [vmem:[#allocation3 + $0x50] sm:$0xff]  ;;  %vm5200_vm9 = vcmask 72704  }
 0x3bd   : > { %14848 = vmatpush1.bf16.msra.mxu0 %v14847_v15  ;;  %v4687_v15 = vld [vmem:[#allocation3 + $0x4e0] sm:$0xff]  ;;  %v833_v48 = vmul.f32 %v18337_v4, %v18334_v20 }
 0x3be   : > { %14850 = vmatprep.subr.bf16.mxu0 %v14849_v51  ;;  %v4689_v51 = vld [vmem:[#allocation3 + $0x4f0] sm:$0xff] }
 0x3bf   : > { %v14859_v30 = vpack.c.bf16 %v4689_v51, %v4687_v15  ;;  %v14707_v15 = vpack.c.bf16 %v4537_v25, %v4535_v18  ;;  %v14863_v51 = vpack.c.bf16 %v4693_v56, %v4691_v43  ;;  %v4543_v25 = vld [vmem:[#allocation3 + $0x60] sm:$0xff]  ;;  %v4545_v56 = vld [vmem:[#allocation3 + $0x70] sm:$0xff] }
 0x3c0   : > { %5413 = vrot.lane.b32.xlu0 %v831_v27, %s22052_s20  ;;  %v4534_v27 = vld [vmem:[#allocation3 + $0x18] sm:$0xff]  ;;  %v4699_v43 = vld [vmem:[#allocation3 + $0x540] sm:$0xff] }
 0x3c1   : > { %14852 = vmatpush1.bf16.msra.mxu0 %v14851_v59  ;;  %v14701_v59 = vpack.c.bf16 %v4534_v27, %v4532_v45  ;;  %v4695_v45 = vld [vmem:[#allocation3 + $0x520] sm:$0xff]  ;;  %v4540_v27 = vld [vmem:[#allocation3 + $0x48] sm:$0xff] }
 0x3c2   : > { %14854 = vmatprep.subr.bf16.mxu0 %v14853_v62  ;;  %v14861_v62 = vpack.c.bf16 %v4694_v34, %v4692_v38  ;;  %v14865_v38 = vpack.c.bf16 %v4698_v50, %v4696_v22  ;;  %v4697_v34 = vld [vmem:[#allocation3 + $0x530] sm:$0xff]  ;;  %v4548_v22 = vld [vmem:[#allocation3 + $0x88] sm:$0xff] }
 0x3c3   : > { %14702 = vmatprep.subr.bf16.mxu1 %v14701_v59  ;;  %v4539_v59 = vld [vmem:[#allocation3 + $0x40] sm:$0xff]  ;;  %v4704_v50 = vld [vmem:[#allocation3 + $0x568] sm:$0xff] }
 0x3c4   : > { %16035 = vrot.lane.b32.xlu0 %v16034_v19, %s22079_s26  ;;  %v4538_v19 = vld [vmem:[#allocation3 + $0x38] sm:$0xff]  ;;  %14704 = vmatpush1.bf16.msra.mxu1 %v14703_v16  ;;  %v14711_v33 = vpack.c.bf16 %v4541_v6, %v4539_v59  ;;  %v4705_v59 = vld [vmem:[#allocation3 + $0x570] sm:$0xff] }
 0x3c5   : > { %14856 = vmatpush1.bf16.msra.mxu0 %v14855_v5  ;;  %v14705_v5 = vpack.c.bf16 %v4538_v19, %v4536_v31  ;;  %v4546_v16 = vld [vmem:[#allocation3 + $0x78] sm:$0xff]  ;;  %v14867_v31 = vpack.c.bf16 %v4697_v34, %v4695_v45  ;;  %v4547_v45 = vld [vmem:[#allocation3 + $0x80] sm:$0xff]  ;;  %v4549_v34 = vld [vmem:[#allocation3 + $0x90] sm:$0xff] }
 0x3c6   : > { %14858 = vmatprep.subr.bf16.mxu0 %v14857_v10  ;;  %v4542_v10 = vld [vmem:[#allocation3 + $0x58] sm:$0xff] }
 0x3c7   : > { %14706 = vmatprep.subr.bf16.mxu1 %v14705_v5  ;;  %v14709_v58 = vpack.c.bf16 %v4542_v10, %v4540_v27  ;;  %v4706_v19 = vld [vmem:[#allocation3 + $0x578] sm:$0xff]  ;;  %v14715_v27 = vpack.c.bf16 %v4545_v56, %v4543_v25  ;;  %v4703_v10 = vld [vmem:[#allocation3 + $0x560] sm:$0xff]  ;;  %v4553_v56 = vld [vmem:[#allocation3 + $0xb0] sm:$0xff] }
 0x3c8   : > { %5766 = vrot.lane.b32.xlu0 %v833_v48, %s22054_s21  ;;  %14708 = vmatpush1.bf16.msra.mxu1 %v14707_v15  ;;  %v4544_v48 = vld [vmem:[#allocation3 + $0x68] sm:$0xff]  ;;  %v4550_v5 = vld [vmem:[#allocation3 + $0x98] sm:$0xff]  ;;  %v4551_v25 = vld [vmem:[#allocation3 + $0xa0] sm:$0xff] }
 0x3c9   : > { %14860 = vmatpush1.bf16.msra.mxu0 %v14859_v30  ;;  %14710 = vmatprep.subr.bf16.mxu1 %v14709_v58  ;;  %v14713_v18 = vpack.c.bf16 %v4546_v16, %v4544_v48  ;;  %v14869_v30 = vpack.c.bf16 %v4702_v17, %v4700_v28  ;;  %v14873_v58 = vpack.c.bf16 %v4706_v19, %v4704_v50  ;;  %v4554_v17 = vld [vmem:[#allocation3 + $0xb8] sm:$0xff]  ;;  %v4708_v28 = vld [vmem:[#allocation3 + $0x588] sm:$0xff] }
 0x3ca   : > { %14862 = vmatprep.subr.bf16.mxu0 %v14861_v62  ;;  %v4701_v62 = vld [vmem:[#allocation3 + $0x550] sm:$0xff]  ;;  %v4710_v6 = vld [vmem:[#allocation3 + $0x598] sm:$0xff]  ;;  %v14719_v48 = vpack.c.bf16 %v4549_v34, %v4547_v45  ;;  %v14875_v16 = vpack.c.bf16 %v4705_v59, %v4703_v10  ;;  %v14723_v19 = vpack.c.bf16 %v4553_v56, %v4551_v25  ;;  %v4555_v10 = vld [vmem:[#allocation3 + $0xc0] sm:$0xff] }
 0x3cb   : > { %v14871_v15 = vpack.c.bf16 %v4701_v62, %v4699_v43  ;;  %v4709_v43 = vld [vmem:[#allocation3 + $0x590] sm:$0xff]  ;;  %v4556_v62 = vld [vmem:[#allocation3 + $0xc8] sm:$0xff]  ;;  %v4714_v50 = vld [vmem:[#allocation3 + $0x5b8] sm:$0xff] }
 0x3cc   : > { %14712 = vmatpush1.bf16.msra.mxu1 %v14711_v33  ;;  %v4707_v33 = vld [vmem:[#allocation3 + $0x580] sm:$0xff]  ;;  %v4557_v45 = vld [vmem:[#allocation3 + $0xd0] sm:$0xff]  ;;  %v4560_v59 = vld [vmem:[#allocation3 + $0xe8] sm:$0xff] }
 0x3cd   : > { %14864 = vmatpush1.bf16.msra.mxu0 %v14863_v51  ;;  %14714 = vmatprep.subr.bf16.mxu1 %v14713_v18  ;;  %v14717_v51 = vpack.c.bf16 %v4550_v5, %v4548_v22  ;;  %v14877_v18 = vpack.c.bf16 %v4710_v6, %v4708_v28  ;;  %v4712_v22 = vld [vmem:[#allocation3 + $0x5a8] sm:$0xff]  ;;  %v14879_v5 = vpack.c.bf16 %v4709_v43, %v4707_v33  ;;  %v4713_v34 = vld [vmem:[#allocation3 + $0x5b0] sm:$0xff]  ;;  %v4559_v33 = vld [vmem:[#allocation3 + $0xe0] sm:$0xff] }
 0x3ce   : > { %14866 = vmatprep.subr.bf16.mxu0 %v14865_v38  ;;  %v4552_v38 = vld [vmem:[#allocation3 + $0xa8] sm:$0xff]  ;;  %v14727_v28 = vpack.c.bf16 %v4557_v45, %v4555_v10  ;;  %v4561_v25 = vld [vmem:[#allocation3 + $0xf0] sm:$0xff] }
 0x3cf   : > { %v4717_v56 = vld [vmem:[#allocation3 + $0x5d0] sm:$0xff]  ;;  %v4564_v43 = vld [vmem:[#allocation3 + $0x108] sm:$0xff] }
 0x3d0   : > { %14716 = vmatpush1.bf16.msra.mxu1 %v14715_v27  ;;  %v4711_v27 = vld [vmem:[#allocation3 + $0x5a0] sm:$0xff]  ;;  %v4565_v10 = vld [vmem:[#allocation3 + $0x110] sm:$0xff] }
 0x3d1   : > { %14868 = vmatpush1.bf16.msra.mxu0 %v14867_v31  ;;  %14718 = vmatprep.subr.bf16.mxu1 %v14717_v51  ;;  %v14721_v31 = vpack.c.bf16 %v4554_v17, %v4552_v38  ;;  %v14881_v51 = vpack.c.bf16 %v4714_v50, %v4712_v22  ;;  %v4716_v38 = vld [vmem:[#allocation3 + $0x5c8] sm:$0xff]  ;;  %v4718_v17 = vld [vmem:[#allocation3 + $0x5d8] sm:$0xff]  ;;  %v14883_v6 = vpack.c.bf16 %v4713_v34, %v4711_v27  ;;  %v4563_v27 = vld [vmem:[#allocation3 + $0x100] sm:$0xff] }
 0x3d2   : > { %14870 = vmatprep.subr.bf16.mxu0 %v14869_v30  ;;  %v4558_v30 = vld [vmem:[#allocation3 + $0xd8] sm:$0xff]  ;;  %v14731_v22 = vpack.c.bf16 %v4561_v25, %v4559_v33  ;;  %v4721_v45 = vld [vmem:[#allocation3 + $0x5f0] sm:$0xff]  ;;  %v4568_v34 = vld [vmem:[#allocation3 + $0x128] sm:$0xff] }
 0x3d3   : > { %v4572_v33 = vld [vmem:[#allocation3 + $0x148] sm:$0xff]  ;;  %v4574_v25 = vld [vmem:[#allocation3 + $0x158] sm:$0xff] }
 0x3d4   : > { %14720 = vmatpush1.bf16.msra.mxu1 %v14719_v48  ;;  %v4715_v48 = vld [vmem:[#allocation3 + $0x5c0] sm:$0xff] }
 0x3d5   : > { %14872 = vmatpush1.bf16.msra.mxu0 %v14871_v15  ;;  %14722 = vmatprep.subr.bf16.mxu1 %v14721_v31  ;;  %v14725_v15 = vpack.c.bf16 %v4558_v30, %v4556_v62  ;;  %v14885_v31 = vpack.c.bf16 %v4718_v17, %v4716_v38  ;;  %v4720_v62 = vld [vmem:[#allocation3 + $0x5e8] sm:$0xff]  ;;  %v4722_v30 = vld [vmem:[#allocation3 + $0x5f8] sm:$0xff]  ;;  %v14887_v50 = vpack.c.bf16 %v4717_v56, %v4715_v48  ;;  %v4569_v48 = vld [vmem:[#allocation3 + $0x130] sm:$0xff] }
 0x3d6   : > { %14874 = vmatprep.subr.bf16.mxu0 %v14873_v58  ;;  %v4562_v58 = vld [vmem:[#allocation3 + $0xf8] sm:$0xff]  ;;  %v14735_v38 = vpack.c.bf16 %v4565_v10, %v4563_v27  ;;  %v14741_v56 = vpack.c.bf16 %v4574_v25, %v4572_v33  ;;  %v4580_v27 = vld [vmem:[#allocation3 + $0x188] sm:$0xff] }
 0x3d7   : > { %v4582_v10 = vld [vmem:[#allocation3 + $0x198] sm:$0xff] }
 0x3d8   : > { %14724 = vmatpush1.bf16.msra.mxu1 %v14723_v19  ;;  %v4719_v19 = vld [vmem:[#allocation3 + $0x5e0] sm:$0xff] }
 0x3d9   : > { %14876 = vmatpush1.bf16.msra.mxu0 %v14875_v16  ;;  %14726 = vmatprep.subr.bf16.mxu1 %v14725_v15  ;;  %v14729_v16 = vpack.c.bf16 %v4562_v58, %v4560_v59  ;;  %v14889_v15 = vpack.c.bf16 %v4722_v30, %v4720_v62  ;;  %v4724_v59 = vld [vmem:[#allocation3 + $0x608] sm:$0xff]  ;;  %v4726_v58 = vld [vmem:[#allocation3 + $0x618] sm:$0xff]  ;;  %v14891_v17 = vpack.c.bf16 %v4721_v45, %v4719_v19  ;;  %v4575_v19 = vld [vmem:[#allocation3 + $0x160] sm:$0xff] }
 0x3da   : > { %14878 = vmatprep.subr.bf16.mxu0 %v14877_v18  ;;  %v4566_v18 = vld [vmem:[#allocation3 + $0x118] sm:$0xff]  ;;  %v4576_v62 = vld [vmem:[#allocation3 + $0x168] sm:$0xff]  ;;  %v14749_v45 = vpack.c.bf16 %v4582_v10, %v4580_v27 }
 0x3db   : > { %v4578_v30 = vld [vmem:[#allocation3 + $0x178] sm:$0xff] }
 0x3dc   : > { %14728 = vmatpush1.bf16.msra.mxu1 %v14727_v28 }
 0x3dd   : > { %14880 = vmatpush1.bf16.msra.mxu0 %v14879_v5  ;;  %14730 = vmatprep.subr.bf16.mxu1 %v14729_v16  ;;  %v14733_v5 = vpack.c.bf16 %v4566_v18, %v4564_v43  ;;  %v14893_v16 = vpack.c.bf16 %v4726_v58, %v4724_v59  ;;  %v4571_v43 = vld [vmem:[#allocation3 + $0x140] sm:$0xff]  ;;  %v4573_v18 = vld [vmem:[#allocation3 + $0x150] sm:$0xff]  ;;  %v4584_v59 = vld [vmem:[#allocation3 + $0x1a8] sm:$0xff] }
 0x3de   : > { %14882 = vmatprep.subr.bf16.mxu0 %v14881_v51  ;;  %v4570_v51 = vld [vmem:[#allocation3 + $0x138] sm:$0xff] }
 0x3df   : > { %v14737_v28 = vpack.c.bf16 %v4570_v51, %v4568_v34  ;;  %v4579_v34 = vld [vmem:[#allocation3 + $0x180] sm:$0xff]  ;;  %v4581_v51 = vld [vmem:[#allocation3 + $0x190] sm:$0xff]  ;;  %v4586_v58 = vld [vmem:[#allocation3 + $0x1b8] sm:$0xff] }
 0x3e0   : > { %14732 = vmatpush1.bf16.msra.mxu1 %v14731_v22  ;;  %v14743_v22 = vpack.c.bf16 %v4573_v18, %v4571_v43  ;;  %v4592_v18 = vld [vmem:[#allocation3 + $0x1e8] sm:$0xff] }
 0x3e1   : > { %14884 = vmatpush1.bf16.msra.mxu0 %v14883_v6  ;;  %14734 = vmatprep.subr.bf16.mxu1 %v14733_v5  ;;  %v4567_v6 = vld [vmem:[#allocation3 + $0x120] sm:$0xff]  ;;  %v4577_v5 = vld [vmem:[#allocation3 + $0x170] sm:$0xff] }
 0x3e2   : > { %14886 = vmatprep.subr.bf16.mxu0 %v14885_v31  ;;  %v14739_v31 = vpack.c.bf16 %v4569_v48, %v4567_v6  ;;  %v4585_v6 = vld [vmem:[#allocation3 + $0x1b0] sm:$0xff]  ;;  %v4588_v48 = vld [vmem:[#allocation3 + $0x1c8] sm:$0xff] }
 0x3e4   : > { %14736 = vmatpush1.bf16.msra.mxu1 %v14735_v38  ;;  %v14751_v38 = vpack.c.bf16 %v4581_v51, %v4579_v34  ;;  %v4728_v34 = vld [vmem:[#allocation3 + $0x628] sm:$0xff]  ;;  %v4730_v51 = vld [vmem:[#allocation3 + $0x638] sm:$0xff] }
 0x3e5   : > { %14888 = vmatpush1.bf16.msra.mxu0 %v14887_v50  ;;  %14738 = vmatprep.subr.bf16.mxu1 %v14737_v28  ;;  %v14745_v50 = vpack.c.bf16 %v4578_v30, %v4576_v62  ;;  %v4583_v28 = vld [vmem:[#allocation3 + $0x1a0] sm:$0xff]  ;;  %v4594_v62 = vld [vmem:[#allocation3 + $0x1f8] sm:$0xff] }
 0x3e6   : > { %14890 = vmatprep.subr.bf16.mxu0 %v14889_v15  ;;  %v14747_v15 = vpack.c.bf16 %v4577_v5, %v4575_v19  ;;  %v14755_v33 = vpack.c.bf16 %v4585_v6, %v4583_v28  ;;  %v14761_v30 = vpack.c.bf16 %v4594_v62, %v4592_v18  ;;  %v22255_v18 = vunpack.i.h.bf16 %v18276_v21 }
 0x3e8   : > { %14740 = vmatpush1.bf16.msra.mxu1 %v14739_v31  ;;  %v4587_v31 = vld [vmem:[#allocation3 + $0x1c0] sm:$0xff]  ;;  %v4479_v62 = vmax.f32 %v18313_v24, %v22255_v18  ;;  %v4744_v18 = vld [vmem:[#allocation3 + $0x6a8] sm:$0xff] }
 0x3e9   : > { %14892 = vmatpush1.bf16.msra.mxu0 %v14891_v17  ;;  %14742 = vmatprep.subr.bf16.mxu1 %v14741_v56  ;;  %v14753_v17 = vpack.c.bf16 %v4586_v58, %v4584_v59  ;;  %v4589_v56 = vld [vmem:[#allocation3 + $0x1d0] sm:$0xff]  ;;  %v22253_v59 = vunpack.i.h.bf16 %v18256_v57 }
 0x3ea   : > { %14894 = vmatprep.subr.bf16.mxu0 %v14893_v16  ;;  %v4590_v16 = vld [vmem:[#allocation3 + $0x1d8] sm:$0xff]  ;;  %v14759_v43 = vpack.c.bf16 %v4589_v56, %v4587_v31  ;;  %v14897_v31 = vpack.c.bf16 %v4730_v51, %v4728_v34  ;;  %v4727_v56 = vld [vmem:[#allocation3 + $0x620] sm:$0xff]  ;;  %v4733_v34 = vld [vmem:[#allocation3 + $0x650] sm:$0xff]  ;;  %v829_v51 = vmul.f32 %v18316_v63, %v18334_v20 }
 0x3eb   : > { %v14757_v25 = vpack.c.bf16 %v4590_v16, %v4588_v48 }
 0x3ec   : > { %14744 = vmatpush1.bf16.msra.mxu1 %v14743_v22  ;;  %v4591_v22 = vld [vmem:[#allocation3 + $0x1e0] sm:$0xff] }
 0x3ed   : > { %14746 = vmatprep.subr.bf16.mxu1 %v14745_v50  ;;  %v4593_v50 = vld [vmem:[#allocation3 + $0x1f0] sm:$0xff] }
 0x3ee   : > { %v14763_v19 = vpack.c.bf16 %v4593_v50, %v4591_v22 }
 0x3f0   : > { %14748 = vmatpush1.bf16.msra.mxu1 %v14747_v15  ;;  %v4723_v15 = vld [vmem:[#allocation3 + $0x600] sm:$0xff] }
 0x3f1   : > { %14750 = vmatprep.subr.bf16.mxu1 %v14749_v45  ;;  %v4725_v45 = vld [vmem:[#allocation3 + $0x610] sm:$0xff] }
 0x3f2   : > { %v14895_v16 = vpack.c.bf16 %v4725_v45, %v4723_v15  ;;  %v4731_v45 = vld [vmem:[#allocation3 + $0x640] sm:$0xff] }
 0x3f4   : > { %14752 = vmatpush1.bf16.msra.mxu1 %v14751_v38 }
 0x3f5   : > { %14754 = vmatprep.subr.bf16.mxu1 %v14753_v17 }
 0x3f8   : > { %14756 = vmatpush1.bf16.msra.mxu1 %v14755_v33 }
 0x3f9   : > { %14758 = vmatprep.subr.bf16.mxu1 %v14757_v25  ;;  %v22254_v25 = vunpack.i.l.bf16 %v18276_v21 }
 0x3fc   : > { %14760 = vmatpush1.bf16.msra.mxu1 %v14759_v43  ;;  %v4729_v43 = vld [vmem:[#allocation3 + $0x630] sm:$0xff] }
 0x3fd   : > { %14762 = vmatprep.subr.bf16.mxu1 %v14761_v30  ;;  %v16861_v30 = vld [vmem:[#allocation2 + $0xa8] sm:$0xff]  ;;  %v14899_v21 = vpack.c.bf16 %v4729_v43, %v4727_v56  ;;  %v4741_v56 = vld [vmem:[#allocation3 + $0x690] sm:$0xff]  ;;  %v16029_v43 = vpack.i.bf16 %v18334_v20, %v18299_v42 }
 0x400   : > { %14764 = vmatpush1.bf16.msra.mxu1 %v14763_v19 }
 0x422   : > { %v18343_v5 = vpop.permute.xlu1 %16010 }
 0x423   : > { %v16013_v27 = vunpack.i.h.bf16 %v18343_v5  ;;  %v16012_v10 = vunpack.i.l.bf16 %v18343_v5 }
 0x425   : > { %v4511_v58 = vsel %vm22070_vm8, %v22253_v59, %v16012_v10  ;;  %v4512_v38 = vsel %vm22070_vm8, %v16012_v10, %v16013_v27  ;;  %v4736_v59 = vld [vmem:[#allocation3 + $0x668] sm:$0xff] }
 0x426   : > { %v18353_v17 = vpop.permute.xlu0 %16015  ;;  %v4437_v28 = vpop.permute.xlu1 %4436  ;;  %v4528_v6 = vmax.f32 %v18272_v13, %v4512_v38  ;;  %v4527_v48 = vmax.f32 %v18245_v7, %v4511_v58  ;;  %v4732_v13 = vld [vmem:[#allocation3 + $0x648] sm:$0xff]  ;;  %v4734_v7 = vld [vmem:[#allocation3 + $0x658] sm:$0xff] }
 0x427   : > { %v16017_v33 = vunpack.i.l.bf16 %v18353_v17  ;;  %v4454_v57 = vsel %vm2430_vm13, %v4437_v28, %v22254_v25  ;;  %v14901_v15 = vpack.c.bf16 %v4734_v7, %v4732_v13  ;;  %v4738_v58 = vld [vmem:[#allocation3 + $0x678] sm:$0xff]  ;;  %v4735_v28 = vld [vmem:[#allocation3 + $0x660] sm:$0xff]  ;;  %v22256_v25 = vand.u32 63, %v17169_v2 }
 0x428   : > { %v18364_v22 = vmax.f32 %v16861_v30, %v4454_v57  ;;  %4993 = vmatprep.mubr.f32.mxu0 %v4528_v6  ;;  %v14905_v38 = vpack.c.bf16 %v4738_v58, %v4736_v59  ;;  %v830_v6 = vmul.f32 %v18302_v23, %v18328_v40  ;;  %v4752_v59 = vld [vmem:[#allocation3 + $0x6e8] sm:$0xff]  ;;  %v4754_v58 = vld [vmem:[#allocation3 + $0x6f8] sm:$0xff] }
 0x429   : > { %4994 = vmatmul.mubr.f32.vlgmr.msra.gmra.mrb[4].mxu0 %v4527_v48  ;;  %v4508_v50 = vsel %vm22070_vm8, %v16017_v33, %v18260_v12  ;;  %v14903_v12 = vpack.c.bf16 %v4733_v34, %v4731_v45  ;;  %v4740_v48 = vld [vmem:[#allocation3 + $0x688] sm:$0xff]  ;;  %vm822_vm2 = vcmp.lt.s32.totalorder %v22256_v25, 56  ;;  %v4747_v34 = vld [vmem:[#allocation3 + $0x6c0] sm:$0xff] }
 0x42a   : > { %v16019_v19 = vpack.i.bf16 %v18364_v22, %v4479_v62  ;;  %v4524_v10 = vmax.f32 %v18295_v0, %v4508_v50  ;;  %14896 = vmatpush1.bf16.msra.mxu0 %v14895_v16  ;;  %v4737_v0 = vld [vmem:[#allocation3 + $0x670] sm:$0xff]  ;;  %v4742_v16 = vld [vmem:[#allocation3 + $0x698] sm:$0xff]  ;;  %v14199_v23 = vsel %vm822_vm2, 1.0, %v18313_v24  ;;  %v4743_v50 = vld [vmem:[#allocation3 + $0x6a0] sm:$0xff]  ;;  %v18406_v5 = vpop.permute.xlu0 %5177  ;;  %vm843_vm2 = vcmp.ge.s32.totalorder %v17172_v3, 4 }
 0x42b   : > { %14898 = vmatprep.subr.bf16.mxu0 %v14897_v31  ;;  %v14907_v63 = vpack.c.bf16 %v4737_v0, %v4735_v28  ;;  %v14909_v57 = vpack.c.bf16 %v4742_v16, %v4740_v48  ;;  %v4739_v31 = vld [vmem:[#allocation3 + $0x680] sm:$0xff]  ;;  %v4746_v62 = vld [vmem:[#allocation3 + $0x6b8] sm:$0xff]  ;;  %v834_v13 = vmul.f32 %v14199_v23, %v18328_v40  ;;  %v16039_v40 = vpack.i.bf16 %v18337_v4, %v14199_v23  ;;  %v4753_v28 = vld [vmem:[#allocation3 + $0x6f0] sm:$0xff] }
 0x42c   : > { %4851 = vmatprep.mubr.f32.mxu1 %v4524_v10  ;;  %16020 = vrot.lane.b32.xlu1 %v16019_v19, %s22040_s23  ;;  %v14911_v30 = vpack.c.bf16 %v4741_v56, %v4739_v31  ;;  %v14913_v7 = vpack.c.bf16 %v4746_v62, %v4744_v18  ;;  %v4745_v19 = vld [vmem:[#allocation3 + $0x6b0] sm:$0xff]  ;;  %v832_v10 = vmul.f32 %v14199_v23, %v18299_v42  ;;  %v4758_v48 = vld [vmem:[#allocation3 + $0x718] sm:$0xff]  ;;  %v4760_v31 = vld [vmem:[#allocation3 + $0x728] sm:$0xff]  ;;  %s16980_s23 = smov 4  }
 0x42d   : > { %5996 = vrot.lane.b32.xlu0 %v834_v13, %s16973_s22  ;;  %v14915_v20 = vpack.c.bf16 %v4745_v19, %v4743_v50  ;;  %v14921_v42 = vpack.c.bf16 %v4754_v58, %v4752_v59  ;;  %v835_v0 = vmul.f32 %v18337_v4, %v18322_v52  ;;  %v4762_v56 = vld [vmem:[#allocation3 + $0x738] sm:$0xff]  ;;  %v4759_v62 = vld [vmem:[#allocation3 + $0x720] sm:$0xff]  ;;  %v4761_v23 = vld [vmem:[#allocation3 + $0x730] sm:$0xff] }
 0x42e   : > { %14900 = vmatpush1.bf16.msra.mxu0 %v14899_v21  ;;  %v4748_v21 = vld [vmem:[#allocation3 + $0x6c8] sm:$0xff]  ;;  %v14929_v18 = vpack.c.bf16 %v4762_v56, %v4760_v31  ;;  %v4766_v52 = vld [vmem:[#allocation3 + $0x758] sm:$0xff]  ;;  %v14931_v4 = vpack.c.bf16 %v4761_v23, %v4759_v62  ;;  %v4765_v50 = vld [vmem:[#allocation3 + $0x750] sm:$0xff] }
 0x42f   : > { %14902 = vmatprep.subr.bf16.mxu0 %v14901_v15  ;;  %v4750_v15 = vld [vmem:[#allocation3 + $0x6d8] sm:$0xff]  ;;  %v4768_v19 = vld [vmem:[#allocation3 + $0x768] sm:$0xff]  ;;  %v4771_v58 = vld [vmem:[#allocation3 + $0x780] sm:$0xff] }
 0x430   : > { %5179 = vrot.lane.b32.xlu1 %v829_v51, %s22050_s19  ;;  %v14917_v45 = vpack.c.bf16 %v4750_v15, %v4748_v21  ;;  %v4749_v51 = vld [vmem:[#allocation3 + $0x6d0] sm:$0xff]  ;;  %v4779_v31 = vld [vmem:[#allocation3 + $0x7c0] sm:$0xff] }
 0x431   : > { %v4781_v56 = vld [vmem:[#allocation3 + $0x7d0] sm:$0xff] }
 0x432   : > { %14904 = vmatpush1.bf16.msra.mxu0 %v14903_v12  ;;  %v14919_v12 = vpack.c.bf16 %v4749_v51, %v4747_v34  ;;  %v4772_v34 = vld [vmem:[#allocation3 + $0x788] sm:$0xff]  ;;  %v4774_v51 = vld [vmem:[#allocation3 + $0x798] sm:$0xff]  ;;  %v14951_v62 = vpack.c.bf16 %v4781_v56, %v4779_v31 }
 0x433   : > { %14906 = vmatprep.subr.bf16.mxu0 %v14905_v38  ;;  %v4751_v38 = vld [vmem:[#allocation3 + $0x6e0] sm:$0xff]  ;;  %v14941_v59 = vpack.c.bf16 %v4774_v51, %v4772_v34 }
 0x434   : > { %5411 = vrot.lane.b32.xlu1 %v830_v6, %s22052_s20  ;;  %v4756_v6 = vld [vmem:[#allocation3 + $0x708] sm:$0xff]  ;;  %v14923_v16 = vpack.c.bf16 %v4753_v28, %v4751_v38  ;;  %v4778_v38 = vld [vmem:[#allocation3 + $0x7b8] sm:$0xff] }
 0x435   : > { %v14925_v25 = vpack.c.bf16 %v4758_v48, %v4756_v6  ;;  %v4775_v6 = vld [vmem:[#allocation3 + $0x7a0] sm:$0xff]  ;;  %v4777_v48 = vld [vmem:[#allocation3 + $0x7b0] sm:$0xff] }
 0x436   : > { %14908 = vmatpush1.bf16.msra.mxu0 %v14907_v63  ;;  %v4755_v63 = vld [vmem:[#allocation3 + $0x700] sm:$0xff] }
 0x437   : > { %14910 = vmatprep.subr.bf16.mxu0 %v14909_v57  ;;  %v4757_v57 = vld [vmem:[#allocation3 + $0x710] sm:$0xff] }
 0x438   : > { %16030 = vrot.lane.b32.xlu1 %v16029_v43, %s22077_s0  ;;  %v14927_v43 = vpack.c.bf16 %v4757_v57, %v4755_v63  ;;  %v14947_v63 = vpack.c.bf16 %v4777_v48, %v4775_v6  ;;  %v5186_v48 = vmul.f32 %v18313_v24, %v18406_v5 }
 0x43a   : > { %14912 = vmatpush1.bf16.msra.mxu0 %v14911_v30  ;;  %v4764_v30 = vld [vmem:[#allocation3 + $0x748] sm:$0xff] }
 0x43b   : > { %14914 = vmatprep.subr.bf16.mxu0 %v14913_v7  ;;  %v14933_v13 = vpack.c.bf16 %v4766_v52, %v4764_v30  ;;  %v4763_v7 = vld [vmem:[#allocation3 + $0x740] sm:$0xff]  ;;  %v4785_v52 = vld [vmem:[#allocation3 + $0x7f0] sm:$0xff] }
 0x43c   : > { %5764 = vrot.lane.b32.xlu1 %v832_v10, %s22054_s21  ;;  %v4770_v10 = vld [vmem:[#allocation3 + $0x778] sm:$0xff]  ;;  %v14935_v21 = vpack.c.bf16 %v4765_v50, %v4763_v7  ;;  %v4783_v30 = vld [vmem:[#allocation3 + $0x7e0] sm:$0xff] }
 0x43d   : > { %v14937_v15 = vpack.c.bf16 %v4770_v10, %v4768_v19 }
 0x43e   : > { %14916 = vmatpush1.bf16.msra.mxu0 %v14915_v20  ;;  %v4767_v20 = vld [vmem:[#allocation3 + $0x760] sm:$0xff] }
 0x43f   : > { %14918 = vmatprep.subr.bf16.mxu0 %v14917_v45  ;;  %v4769_v45 = vld [vmem:[#allocation3 + $0x770] sm:$0xff] }
 0x440   : > { %16040 = vrot.lane.b32.xlu1 %v16039_v40, %s22056_s30  ;;  %v14939_v40 = vpack.c.bf16 %v4769_v45, %v4767_v20 }
 0x442   : > { %14920 = vmatpush1.bf16.msra.mxu0 %v14919_v12  ;;  %v4773_v12 = vld [vmem:[#allocation3 + $0x790] sm:$0xff] }
 0x443   : > { %14922 = vmatprep.subr.bf16.mxu0 %v14921_v42  ;;  %v4776_v42 = vld [vmem:[#allocation3 + $0x7a8] sm:$0xff]  ;;  %v14943_v28 = vpack.c.bf16 %v4773_v12, %v4771_v58 }
 0x444   : > { %5998 = vrot.lane.b32.xlu1 %v835_v0, %s16973_s22  ;;  %v14945_v0 = vpack.c.bf16 %v4778_v38, %v4776_v42 }
 0x446   : > { %14924 = vmatpush1.bf16.msra.mxu0 %v14923_v16  ;;  %v4780_v16 = vld [vmem:[#allocation3 + $0x7c8] sm:$0xff] }
 0x447   : > { %14926 = vmatprep.subr.bf16.mxu0 %v14925_v25  ;;  %v4782_v25 = vld [vmem:[#allocation3 + $0x7d8] sm:$0xff] }
 0x448   : > { %v14949_v57 = vpack.c.bf16 %v4782_v25, %v4780_v16  ;;  %v14325_v25 = vld [vmem:[%s21911_s3 + $0x48] sm:$0xff] }
 0x44a   : > { %14928 = vmatpush1.bf16.msra.mxu0 %v14927_v43  ;;  %v4784_v43 = vld [vmem:[#allocation3 + $0x7e8] sm:$0xff] }
 0x44b   : > { %14930 = vmatprep.subr.bf16.mxu0 %v14929_v18  ;;  %v4786_v18 = vld [vmem:[#allocation3 + $0x7f8] sm:$0xff] }
 0x44c   : > { %v14953_v23 = vpack.c.bf16 %v4786_v18, %v4784_v43 }
 0x44e   : > { %14932 = vmatpush1.bf16.msra.mxu0 %v14931_v4  ;;  %v14955_v4 = vpack.c.bf16 %v4785_v52, %v4783_v30 }
 0x44f   : > { %14934 = vmatprep.subr.bf16.mxu0 %v14933_v13  ;;  %v16018_v13 = vunpack.i.h.bf16 %v18353_v17 }
 0x451   : > { %v4513_v10 = vsel %vm22070_vm8, %v16013_v27, %v16018_v13  ;;  %v16026_v27 = vpop.permute.xlu0 %16025 }
 0x452   : > { %14936 = vmatpush1.bf16.msra.mxu0 %v14935_v21  ;;  %v4529_v34 = vmax.f32 %v18274_v1, %v4513_v10  ;;  %v18415_v1 = vunpack.i.h.bf16 %v16026_v27 }
 0x453   : > { %14938 = vmatprep.subr.bf16.mxu0 %v14937_v15 }
 0x456   : > { %14940 = vmatpush1.bf16.msra.mxu0 %v14939_v40 }
 0x457   : > { %14942 = vmatprep.subr.bf16.mxu0 %v14941_v59 }
 0x45a   : > { %14944 = vmatpush1.bf16.msra.mxu0 %v14943_v28  ;;  %v14324_v28 = vld [vmem:[%s21911_s3 + $0x40] sm:$0xff] }
 0x45b   : > { %14946 = vmatprep.subr.bf16.mxu0 %v14945_v0 }
 0x45e   : > { %14948 = vmatpush1.bf16.msra.mxu0 %v14947_v63  ;;  %v18452_v63 = vpop.permute.xlu0 %5413 }
 0x45f   : > { %14950 = vmatprep.subr.bf16.mxu0 %v14949_v57 }
 0x462   : > { %14952 = vmatpush1.bf16.msra.mxu0 %v14951_v62 }
 0x463   : > { %14954 = vmatprep.subr.bf16.mxu0 %v14953_v23 }
 0x466   : > { %14956 = vmatpush1.bf16.msra.mxu0 %v14955_v4 }
 0x49e   : > { %v16021_v7 = vpop.permute.xlu1 %16020 }
 0x49f   : > { %v16023_v50 = vunpack.i.h.bf16 %v16021_v7  ;;  %v16022_v19 = vunpack.i.l.bf16 %v16021_v7 }
 0x4a1   : > { %v4507_v21 = vsel %vm22070_vm8, %v16023_v50, %v16017_v33  ;;  %v4514_v15 = vsel %vm22070_vm8, %v16018_v13, %v16022_v19  ;;  %v16036_v13 = vpop.permute.xlu0 %16035 }
 0x4a2   : > { %v4523_v20 = vmax.f32 %v18364_v22, %v4507_v21  ;;  %v4530_v45 = vmax.f32 %v18292_v61, %v4514_v15  ;;  %v18408_v17 = vpop.permute.xlu1 %5179  ;;  %v18417_v22 = vunpack.i.l.bf16 %v16026_v27  ;;  %v18484_v7 = vunpack.i.l.bf16 %v16036_v13 }
 0x4a3   : > { %v18413_v61 = vsel %vm5181_vm3, %v18406_v5, %v18408_v17  ;;  %v18489_v19 = vunpack.i.h.bf16 %v16036_v13 }
 0x4a4   : > { %4852 = vmatmul.mubr.f32.vlgmr.msra.gmra.mrb[4].mxu1 %v4523_v20  ;;  %5064 = vmatprep.mubr.f32.mxu0 %v4530_v45  ;;  %v18436_v0 = vsel %vm5298_vm4, %v18417_v22, %v18415_v1  ;;  %v5303_v56 = vmul.f32 %v18313_v24, %v18417_v22 }
 0x4a5   : > { %5065 = vmatmul.mubr.f32.vlgmr.msra.gmra.mrb[4].mxu0 %v4529_v34  ;;  %5161 = vmatprep.mubr.f32.mxu1 %v18313_v24  ;;  %v18499_v15 = vsel %vm2485_vm14, %v18484_v7, %v18489_v19  ;;  %v18507_v34 = vld [vmem:[#allocation2 + $0x18] sm:$0xff] }
 0x4a6   : > { %v18438_v6 = vpop.permute.xlu1 %5411  ;;  %v5658_v27 = vmul.f32 %v18489_v19, %v18507_v34 }
 0x4a7   : > { %v18462_v43 = vsel %vm5415_vm6, %v18438_v6, %v18452_v63  ;;  %v5420_v52 = vmul.f32 %v18313_v24, %v18438_v6 }
 0x4aa   : > { %v16031_v31 = vpop.permute.xlu1 %16030 }
 0x4ab   : > { %v18465_v18 = vunpack.i.h.bf16 %v16031_v31  ;;  %v18467_v62 = vunpack.i.l.bf16 %v16031_v31 }
 0x4ad   : > { %v18481_v4 = vsel %vm2430_vm13, %v18467_v62, %v18465_v18  ;;  %v5537_v10 = vmul.f32 %v18313_v24, %v18467_v62 }
 0x4ae   : > { %v18501_v20 = vpop.permute.xlu1 %5764 }
 0x577   : > { %v4853_v33 = vpop.f32.mrb[4].mxu1 }
 0x578   : > { %v4855_v51 = vpop.f32.mrb[5].mxu1  ;;  %v5066_v40 = vpop.f32.mrb[4].mxu0 }
 0x579   : > { %v18419_v59 = vadd.f32 %v5066_v40, %v4853_v33  ;;  %v5068_v58 = vpop.f32.mrb[5].mxu0 }
 0x57a   : > { %v18421_v12 = vadd.f32 %v5068_v58, %v4855_v51  ;;  %v16041_v51 = vpop.permute.xlu1 %16040 }
 0x57b   : > { %v5187_v42 = vmul.f32 %v18419_v59, %v18413_v61  ;;  %v5304_v16 = vmul.f32 %v18419_v59, %v18436_v0  ;;  %v5421_v23 = vmul.f32 %v18419_v59, %v18462_v43  ;;  %v5538_v50 = vmul.f32 %v18419_v59, %v18481_v4 }
 0x57c   : > { %5097 = vmatprep.subr.mxu1 %v18421_v12  ;;  %v5188_v38 = vmul.f32 %v18421_v12, %v18408_v17  ;;  %v5305_v57 = vmul.f32 %v18415_v1, %v18421_v12  ;;  %v5422_v30 = vmul.f32 %v18421_v12, %v18452_v63  ;;  %v5539_v21 = vmul.f32 %v18465_v18, %v18421_v12 }
 0x57d   : > { %5196 = vrot.lane.b32.xlu0 %v5187_v42, %s16973_s22  ;;  %5098 = vmatpush1.msra.mxu1 %v18419_v59  ;;  %v5657_v45 = vmul.f32 %v18421_v12, %v18499_v15  ;;  %v5656_v40 = vmul.f32 %v18484_v7, %v18419_v59  ;;  %v18522_v58 = vunpack.i.l.bf16 %v16041_v51 }
 0x57e   : > { %5198 = vrot.lane.b32.xlu1 %v5188_v38, %s16973_s22  ;;  %14326 = vmatmul.mubr.msk.f32.vlgmr.msra.gmra.mrb[6].mxu1 %vm5090_vm5, %v14324_v28  ;;  %v18527_v38 = vunpack.i.h.bf16 %v16041_v51  ;;  %v18545_v31 = vpop.permute.xlu1 %5998  ;;  %v5189_v51 = vld [vmem:[%s21911_s3] sm:$0xff] }
 0x57f   : > { %5167 = vmatprep.mubr.f32.mxu1 %v18313_v24  ;;  %v6006_v13 = vmul.f32 %v18545_v31, %v18507_v34 }
 0x581   : > { %5194 = vrot.lane.b32.xlu0 %v5186_v48, %s16973_s22  ;;  %v5772_v48 = vmul.f32 %v18419_v59, %v18501_v20 }
 0x582   : > { %5314 = vrot.lane.b32.xlu1 %v5304_v16, %s22056_s30  ;;  %14327 = vmatmul.mubr.msk.f32.gmra.mrb[8].mxu1 %vm5090_vm5, %v14325_v25  ;;  %v18537_v16 = vsel %vm5090_vm5, %v18522_v58, %v18527_v38 }
 0x583   : > { %5275 = vmatprep.mubr.f32.mxu1 %v18313_v24  ;;  %v18509_v24 = vpop.permute.xlu0 %5766 }
 0x584   : > { %v18517_v33 = vsel %vm5435_vm7, %v18501_v20, %v18509_v24  ;;  %v5774_v28 = vmul.f32 %v18509_v24, %v18507_v34 }
 0x585   : > { %5316 = vrot.lane.b32.xlu0 %v5305_v57, %s22056_s30  ;;  %v5773_v42 = vmul.f32 %v18421_v12, %v18517_v33  ;;  %v5889_v57 = vmul.f32 %v18421_v12, %v18537_v16 }
 0x586   : > { %5312 = vrot.lane.b32.xlu1 %v5303_v56, %s22056_s30  ;;  %v5890_v56 = vmul.f32 %v18527_v38, %v18507_v34  ;;  %s16977_s30 = smov 125  }
 0x587   : > { %v18540_v25 = vpop.permute.xlu0 %5996 }
 0x589   : > { %5431 = vrot.lane.b32.xlu0 %v5421_v23, %s22054_s21  ;;  %v18553_v23 = vsel %vm5200_vm9, %v18540_v25, %v18545_v31 }
 0x58a   : > { %5433 = vrot.lane.b32.xlu1 %v5422_v30, %s22054_s21  ;;  %v5888_v30 = vmul.f32 %v18522_v58, %v18419_v59 }
 0x58d   : > { %5429 = vrot.lane.b32.xlu0 %v5420_v52, %s22054_s21  ;;  %v6005_v52 = vmul.f32 %v18421_v12, %v18553_v23  ;;  %v5079_v12 = vld [vmem:[%s21912_s4 + $0x8] sm:$0xff]  ;;  %s16978_s21 = smov 3  }
 0x58e   : > { %5548 = vrot.lane.b32.xlu1 %v5538_v50, %s22079_s26  ;;  %v6004_v50 = vmul.f32 %v18419_v59, %v18540_v25 }
 0x591   : > { %5550 = vrot.lane.b32.xlu0 %v5539_v21, %s22079_s26 }
 0x592   : > { %5546 = vrot.lane.b32.xlu1 %v5537_v10, %s22079_s26  ;;  %v5078_v10 = vld [vmem:[%s21912_s4] sm:$0xff] }
 0x595   : > { %5667 = vrot.lane.b32.xlu0 %v5657_v45, %s22077_s0 }
 0x596   : > { %5669 = vrot.lane.b32.xlu1 %v5658_v27, %s22077_s0 }
 0x599   : > { %5665 = vrot.lane.b32.xlu0 %v5656_v40, %s22077_s0 }
 0x59a   : > { %5783 = vrot.lane.b32.xlu1 %v5773_v42, %s22052_s20 }
 0x59d   : > { %5785 = vrot.lane.b32.xlu0 %v5774_v28, %s22052_s20 }
 0x59e   : > { %5781 = vrot.lane.b32.xlu1 %v5772_v48, %s22052_s20  ;;  %v18580_v48 = vld [vmem:[#allocation2 + $0x110] sm:$0xff]  ;;  %s16976_s20 = smov 123  }
 0x5a1   : > { %5899 = vrot.lane.b32.xlu0 %v5889_v57, %s22075_s28  ;;  %v5190_v57 = vld [vmem:[%s21911_s3 + $0x8] sm:$0xff] }
 0x5a2   : > { %5901 = vrot.lane.b32.xlu1 %v5890_v56, %s22075_s28 }
 0x5a5   : > { %5897 = vrot.lane.b32.xlu0 %v5888_v30, %s22075_s28 }
 0x5a6   : > { %6015 = vrot.lane.b32.xlu1 %v6005_v52, %s22050_s19 }
 0x5a9   : > { %6017 = vrot.lane.b32.xlu0 %v6006_v13, %s22050_s19 }
 0x5aa   : > { %6013 = vrot.lane.b32.xlu1 %v6004_v50, %s22050_s19  ;;  %v14330_v50 = vld [vmem:[%s21911_s3 + $0x10] sm:$0xff]  ;;  %s16975_s19 = smov 124  }
 0x5ad   : > { %5082 = vperm.xlu0 %15983, %v5078_v10  }
 0x5ae   : > { %5087 = vperm.xlu1 %16044, %v5079_v12  }
 0x5ef   : > { %v5197_v21 = vpop.permute.xlu0 %5196 }
 0x5f0   : > { %v5199_v45 = vpop.permute.xlu1 %5198 }
 0x5f1   : > { %v5202_v27 = vsel %vm5200_vm9, %v5197_v21, %v5199_v45  ;;  %v14331_v45 = vld [vmem:[%s21911_s3 + $0x18] sm:$0xff] }
 0x5f2   : > { %5211 = vmatprep.subr.mxu1 %v5202_v27 }
 0x5f3   : > { %v5195_v59 = vpop.permute.xlu0 %5194 }
 0x5f4   : > { %v5201_v40 = vsel %vm5200_vm9, %v5195_v59, %v5197_v21  ;;  %v5315_v42 = vpop.permute.xlu1 %5314 }
 0x5f5   : > { %5212 = vmatpush1.msra.mxu1 %v5201_v40  ;;  %v14334_v40 = vld [vmem:[%s21911_s3 + $0x20] sm:$0xff] }
 0x5f6   : > { %14328 = vmatmul.mubr.msk.f32.vlgmr.msra.gmra.mrb[6].mxu1 %vm5090_vm5, %v5189_v51 }
 0x5f7   : > { %v5317_v28 = vpop.permute.xlu0 %5316  ;;  %5281 = vmatprep.mubr.f32.mxu1 %v18580_v48 }
 0x5f8   : > { %v5313_v56 = vpop.permute.xlu1 %5312  ;;  %v5319_v30 = vsel %vm5090_vm5, %v5315_v42, %v5317_v28 }
 0x5f9   : > { %v5318_v52 = vsel %vm5090_vm5, %v5313_v56, %v5315_v42  ;;  %5328 = vmatprep.subr.mxu1 %v5319_v30  ;;  %v14335_v30 = vld [vmem:[%s21911_s3 + $0x28] sm:$0xff] }
 0x5fa   : > { %14329 = vmatmul.mubr.msk.f32.gmra.mrb[8].mxu1 %vm5090_vm5, %v5190_v57 }
 0x5fb   : > { %5329 = vmatpush1.msra.mxu1 %v5318_v52  ;;  %v5432_v13 = vpop.permute.xlu0 %5431  ;;  %5392 = vmatprep.mubr.f32.mxu1 %v18580_v48 }
 0x5fc   : > { %v5434_v10 = vpop.permute.xlu1 %5433 }
 0x5fd   : > { %v5437_v12 = vsel %vm5435_vm7, %v5432_v13, %v5434_v10  ;;  %v14338_v10 = vld [vmem:[%s21911_s3 + $0x30] sm:$0xff] }
 0x5fe   : > { %14332 = vmatmul.mubr.msk.f32.vlgmr.msra.gmra.mrb[6].mxu1 %vm5090_vm5, %v14330_v50  ;;  %5446 = vmatprep.subr.mxu1 %v5437_v12 }
 0x5ff   : > { %v5430_v21 = vpop.permute.xlu0 %5429  ;;  %5398 = vmatprep.mubr.f32.mxu1 %v18580_v48 }
 0x600   : > { %v5436_v27 = vsel %vm5435_vm7, %v5430_v21, %v5432_v13  ;;  %v5549_v59 = vpop.permute.xlu1 %5548 }
 0x601   : > { %5447 = vmatpush1.msra.mxu1 %v5436_v27  ;;  %v14339_v27 = vld [vmem:[%s21911_s3 + $0x38] sm:$0xff] }
 0x602   : > { %14333 = vmatmul.mubr.msk.f32.gmra.mrb[8].mxu1 %vm5090_vm5, %v14331_v45 }
 0x603   : > { %v5551_v51 = vpop.permute.xlu0 %5550  ;;  %5510 = vmatprep.mubr.f32.mxu1 %v18580_v48 }
 0x604   : > { %v5547_v42 = vpop.permute.xlu1 %5546  ;;  %v5553_v28 = vsel %vm2485_vm14, %v5549_v59, %v5551_v51 }
 0x605   : > { %v5552_v57 = vsel %vm2485_vm14, %v5547_v42, %v5549_v59  ;;  %5562 = vmatprep.subr.mxu1 %v5553_v28  ;;  %v14342_v42 = vld [vmem:[%s21911_s3 + $0x50] sm:$0xff] }
 0x606   : > { %14336 = vmatmul.mubr.msk.f32.vlgmr.msra.gmra.mrb[6].mxu1 %vm5090_vm5, %v14334_v40 }
 0x607   : > { %5563 = vmatpush1.msra.mxu1 %v5552_v57  ;;  %v5668_v56 = vpop.permute.xlu0 %5667  ;;  %5516 = vmatprep.mubr.f32.mxu1 %v18580_v48 }
 0x608   : > { %v5670_v52 = vpop.permute.xlu1 %5669 }
 0x609   : > { %v5672_v13 = vsel %vm2430_vm13, %v5668_v56, %v5670_v52  ;;  %v14343_v52 = vld [vmem:[%s21911_s3 + $0x58] sm:$0xff] }
 0x60a   : > { %14337 = vmatmul.mubr.msk.f32.gmra.mrb[8].mxu1 %vm5090_vm5, %v14335_v30  ;;  %5681 = vmatprep.subr.mxu1 %v5672_v13  ;;  %v14346_v13 = vld [vmem:[%s21911_s3 + $0x60] sm:$0xff] }
 0x60b   : > { %v5666_v50 = vpop.permute.xlu0 %5665  ;;  %5626 = vmatprep.mubr.f32.mxu1 %v18580_v48 }
 0x60c   : > { %v5671_v12 = vsel %vm2430_vm13, %v5666_v50, %v5668_v56  ;;  %v5784_v21 = vpop.permute.xlu1 %5783 }
 0x60e   : > { %14340 = vmatmul.mubr.msk.f32.vlgmr.msra.gmra.mrb[6].mxu1 %vm5090_vm5, %v14338_v10 }
 0x60f   : > { %5682 = vmatpush1.msra.mxu1 %v5671_v12  ;;  %v5786_v45 = vpop.permute.xlu0 %5785  ;;  %5632 = vmatprep.mubr.f32.mxu1 %v18580_v48 }
 0x610   : > { %v5782_v59 = vpop.permute.xlu1 %5781  ;;  %v5788_v51 = vsel %vm5415_vm6, %v5784_v21, %v5786_v45  ;;  %v14347_v45 = vld [vmem:[%s21911_s3 + $0x68] sm:$0xff] }
 0x611   : > { %5797 = vmatprep.subr.mxu1 %v5788_v51  ;;  %v5787_v56 = vsel %vm5415_vm6, %v5782_v59, %v5784_v21  ;;  %v14350_v59 = vld [vmem:[%s21911_s3 + $0x70] sm:$0xff] }
 0x612   : > { %14341 = vmatmul.mubr.msk.f32.gmra.mrb[8].mxu1 %vm5090_vm5, %v14339_v27 }
 0x613   : > { %v5900_v40 = vpop.permute.xlu0 %5899  ;;  %5745 = vmatprep.mubr.f32.mxu1 %v18580_v48 }
 0x614   : > { %v5902_v28 = vpop.permute.xlu1 %5901 }
 0x615   : > { %v5904_v57 = vsel %vm5298_vm4, %v5900_v40, %v5902_v28  ;;  %v14355_v28 = vld [vmem:[%s21911_s3 + $0x88] sm:$0xff] }
 0x616   : > { %14344 = vmatmul.mubr.msk.f32.vlgmr.msra.gmra.mrb[6].mxu1 %vm5090_vm5, %v14342_v42  ;;  %v14354_v42 = vld [vmem:[%s21911_s3 + $0x80] sm:$0xff] }
 0x617   : > { %5798 = vmatpush1.msra.mxu1 %v5787_v56  ;;  %v5898_v30 = vpop.permute.xlu0 %5897  ;;  %5751 = vmatprep.mubr.f32.mxu1 %v18580_v48 }
 0x618   : > { %5913 = vmatprep.subr.mxu1 %v5904_v57  ;;  %v6016_v10 = vpop.permute.xlu1 %6015  ;;  %v5903_v12 = vsel %vm5298_vm4, %v5898_v30, %v5900_v40  ;;  %v14351_v40 = vld [vmem:[%s21911_s3 + $0x78] sm:$0xff] }
 0x61a   : > { %14345 = vmatmul.mubr.msk.f32.gmra.mrb[8].mxu1 %vm5090_vm5, %v14343_v52 }
 0x61b   : > { %5861 = vmatprep.mubr.f32.mxu1 %v18580_v48  ;;  %v6018_v50 = vpop.permute.xlu0 %6017 }
 0x61c   : > { %v6020_v21 = vsel %vm5181_vm3, %v6016_v10, %v6018_v50  ;;  %v6014_v27 = vpop.permute.xlu1 %6013 }
 0x61d   : > { %v6019_v51 = vsel %vm5181_vm3, %v6014_v27, %v6016_v10 }
 0x61e   : > { %14348 = vmatmul.mubr.msk.f32.vlgmr.msra.gmra.mrb[6].mxu1 %vm5090_vm5, %v14346_v13 }
 0x61f   : > { %5914 = vmatpush1.msra.mxu1 %v5903_v12  ;;  %5867 = vmatprep.mubr.f32.mxu1 %v18580_v48 }
 0x620   : > { %6029 = vmatprep.subr.mxu1 %v6020_v21 }
 0x622   : > { %14349 = vmatmul.mubr.msk.f32.gmra.mrb[8].mxu1 %vm5090_vm5, %v14347_v45 }
 0x623   : > { %5977 = vmatprep.mubr.f32.mxu1 %v18580_v48 }
 0x626   : > { %14352 = vmatmul.mubr.msk.f32.vlgmr.msra.gmra.mrb[6].mxu1 %vm5090_vm5, %v14350_v59 }
 0x627   : > { %6030 = vmatpush1.msra.mxu1 %v6019_v51  ;;  %5983 = vmatprep.mubr.f32.mxu1 %v18580_v48 }
 0x62a   : > { %14353 = vmatmul.mubr.msk.f32.gmra.mrb[8].mxu1 %vm5090_vm5, %v14351_v40  ;;  %v6204_v40 = vld [vmem:[%s21922_s14 + $0x80] sm:$0xff] }
 0x62b   : > { %6093 = vmatprep.mubr.f32.mxu1 %v18580_v48 }
 0x62c   : > { %v5083_v57 = vpop.permute.xlu0 %5082 }
 0x62d   : > { %v5088_v50 = vpop.permute.xlu1 %5087 }
 0x62e   : > { %14356 = vmatmul.mubr.msk.f32.vlgmr.msra.gmra.mrb[6].mxu1 %vm5090_vm5, %v14354_v42  ;;  %v6205_v42 = vld [vmem:[%s21922_s14 + $0x88] sm:$0xff] }
 0x62f   : > { %6099 = vmatprep.mubr.f32.mxu1 %v18580_v48 }
 0x632   : > { %14357 = vmatmul.mubr.msk.f32.gmra.mrb[8].mxu1 %vm5090_vm5, %v14355_v28  ;;  %v6188_v28 = vld [vmem:[%s21922_s14] sm:$0xff] }
 0x701   : > { %v6095_v56 = vpop.f32.mrb[6].mxu1 }
 0x702   : > { %v15559_v30 = vadd.f32 %v6095_v56, %v5083_v57  ;;  %v6097_v52 = vpop.f32.mrb[7].mxu1  ;;  %v14957_v56 = vpack.c.bf16 %v6205_v42, %v6204_v40  ;;  %v6191_v40 = vld [vmem:[%s21922_s14 + $0x18] sm:$0xff]  ;;  %v6208_v42 = vld [vmem:[%s21922_s14 + $0xa0] sm:$0xff] }
 0x703   : > { %v15560_v13 = vadd.f32 %v6097_v52, %v5083_v57  ;;  %v6206_v52 = vld [vmem:[%s21922_s14 + $0x90] sm:$0xff] }
 0x704   : > { %v18671_v10 = vmax.f32 %v15559_v30, 0.0  ;;  %v6189_v30 = vld [vmem:[%s21922_s14 + $0x8] sm:$0xff]  ;;  %14958 = vmatprep.subr.bf16.mxu1 %v14957_v56 }
 0x705   : > { %v18673_v12 = vmax.f32 %v15560_v13, 0.0  ;;  %v6101_v21 = vpop.f32.mrb[8].mxu1  ;;  %v6207_v13 = vld [vmem:[%s21922_s14 + $0x98] sm:$0xff]  ;;  %v6193_v56 = vld [vmem:[%s21922_s14 + $0x28] sm:$0xff] }
 0x706   : > { %6114 = vst [vmem:[#allocation2 + $0x8] sm:$0xff] %v18671_v10  ;;  %7558 = vst [vmem:[#allocation2 + $0x148] sm:$0xff] %v18671_v10  ;;  %v15561_v45 = vadd.f32 %v6101_v21, %v5088_v50  ;;  %v6103_v27 = vpop.f32.mrb[9].mxu1  ;;  %v14959_v21 = vpack.c.bf16 %v6189_v30, %v6188_v28 }
 0x707   : > { %7559 = vst [vmem:[#allocation2 + $0x150] sm:$0xff] %v18673_v12  ;;  %v15562_v59 = vadd.f32 %v6103_v27, %v5088_v50  ;;  %v16045_v51 = vpack.i.bf16 %v18507_v34, %v18673_v12  ;;  %v6190_v27 = vld [vmem:[%s21922_s14 + $0x10] sm:$0xff] }
 0x708   : > { %v18689_v57 = vmax.f32 %v15561_v45, 0.0  ;;  %v14961_v45 = vpack.c.bf16 %v6207_v13, %v6206_v52  ;;  %14960 = vmatpush3.bf16.msra.mxu1 %v14959_v21  ;;  %v14963_v30 = vpack.c.bf16 %v6191_v40, %v6190_v27  ;;  %v6192_v13 = vld [vmem:[%s21922_s14 + $0x20] sm:$0xff]  ;;  %v6211_v21 = vld [vmem:[%s21922_s14 + $0xb8] sm:$0xff]  ;;  %v6194_v40 = vld [vmem:[%s21922_s14 + $0x30] sm:$0xff] }
 0x709   : > { %v18700_v50 = vmax.f32 %v15562_v59, 0.0  ;;  %16046 = vrot.lane.b32.xlu0 %v16045_v51, %s22077_s0  ;;  %v6209_v51 = vld [vmem:[%s21922_s14 + $0xa8] sm:$0xff]  ;;  %v14969_v27 = vpack.c.bf16 %v6211_v21, %v6210_v60 }
 0x70a   : > { %6116 = vst [vmem:[#allocation2 + $0x58] sm:$0xff] %v18689_v57  ;;  %7560 = vst [vmem:[#allocation2 + $0x198] sm:$0xff] %v18689_v57  ;;  %v16055_v59 = vpack.i.bf16 %v18689_v57, %v18580_v48  ;;  %14962 = vmatprep.subr.bf16.mxu1 %v14961_v45  ;;  %v14965_v52 = vpack.c.bf16 %v6209_v51, %v6208_v42  ;;  %v14967_v45 = vpack.c.bf16 %v6193_v56, %v6192_v13  ;;  %v6195_v42 = vld [vmem:[%s21922_s14 + $0x38] sm:$0xff]  ;;  %v6213_v51 = vld [vmem:[%s21922_s14 + $0xc8] sm:$0xff] }
 0x70b   : > { %7561 = vst [vmem:[#allocation2 + $0x1a0] sm:$0xff] %v18700_v50  ;;  %v16050_v28 = vpack.i.bf16 %v18700_v50, %v18671_v10  ;;  %v6214_v13 = vld [vmem:[%s21922_s14 + $0xd0] sm:$0xff]  ;;  %v6215_v56 = vld [vmem:[%s21922_s14 + $0xd8] sm:$0xff] }
 0x70c   : > { %14964 = vmatpush3.bf16.msra.mxu1 %v14963_v30  ;;  %v6196_v30 = vld [vmem:[%s21922_s14 + $0x40] sm:$0xff] }
 0x70d   : > { %16056 = vrot.lane.b32.xlu0 %v16055_v59, %s22077_s0  ;;  %16051 = vrot.lane.b32.xlu1 %v16050_v28, %s22077_s0  ;;  %v6212_v59 = vld [vmem:[%s21922_s14 + $0xc0] sm:$0xff]  ;;  %v14971_v28 = vpack.c.bf16 %v6195_v42, %v6194_v40  ;;  %v6199_v40 = vld [vmem:[%s21922_s14 + $0x58] sm:$0xff] }
 0x70e   : > { %14966 = vmatprep.subr.bf16.mxu1 %v14965_v52  ;;  %v14973_v60 = vpack.c.bf16 %v6213_v51, %v6212_v59  ;;  %v6197_v52 = vld [vmem:[%s21922_s14 + $0x48] sm:$0xff]  ;;  %v6216_v59 = vld [vmem:[%s21922_s14 + $0xe0] sm:$0xff] }
 0x70f   : > { %v14975_v21 = vpack.c.bf16 %v6197_v52, %v6196_v30  ;;  %v6217_v51 = vld [vmem:[%s21922_s14 + $0xe8] sm:$0xff] }
 0x710   : > { %14968 = vmatpush3.bf16.msra.mxu1 %v14967_v45  ;;  %v14977_v45 = vpack.c.bf16 %v6215_v56, %v6214_v13  ;;  %v6201_v30 = vld [vmem:[%s21922_s14 + $0x68] sm:$0xff] }
 0x711   : > { %14970 = vmatprep.subr.bf16.mxu1 %v14969_v27  ;;  %v6198_v27 = vld [vmem:[%s21922_s14 + $0x50] sm:$0xff] }
 0x712   : > { %v14979_v42 = vpack.c.bf16 %v6199_v40, %v6198_v27  ;;  %v6219_v27 = vld [vmem:[%s21922_s14 + $0xf8] sm:$0xff] }
 0x714   : > { %14972 = vmatpush3.bf16.msra.mxu1 %v14971_v28  ;;  %v6200_v28 = vld [vmem:[%s21922_s14 + $0x60] sm:$0xff] }
 0x715   : > { %14974 = vmatprep.subr.bf16.mxu1 %v14973_v60  ;;  %v14981_v60 = vpack.c.bf16 %v6217_v51, %v6216_v59  ;;  %v14983_v52 = vpack.c.bf16 %v6201_v30, %v6200_v28  ;;  %v6203_v59 = vld [vmem:[%s21922_s14 + $0x78] sm:$0xff] }
 0x718   : > { %14976 = vmatpush3.bf16.msra.mxu1 %v14975_v21 }
 0x719   : > { %14978 = vmatprep.subr.bf16.mxu1 %v14977_v45  ;;  %v6218_v45 = vld [vmem:[%s21922_s14 + $0xf0] sm:$0xff] }
 0x71a   : > { %v14985_v40 = vpack.c.bf16 %v6219_v27, %v6218_v45 }
 0x71c   : > { %14980 = vmatpush3.bf16.msra.mxu1 %v14979_v42  ;;  %v6202_v42 = vld [vmem:[%s21922_s14 + $0x70] sm:$0xff] }
 0x71d   : > { %14982 = vmatprep.subr.bf16.mxu1 %v14981_v60  ;;  %v14987_v60 = vpack.c.bf16 %v6203_v59, %v6202_v42 }
 0x720   : > { %14984 = vmatpush3.bf16.msra.mxu1 %v14983_v52 }
 0x721   : > { %14986 = vmatprep.subr.bf16.mxu1 %v14985_v40 }
 0x724   : > { %14988 = vmatpush3.bf16.msra.mxu1 %v14987_v60 }
 0x77b   : > { %v16047_v13 = vpop.permute.xlu0 %16046 }
 0x77c   : > { %v16049_v56 = vunpack.i.h.bf16 %v16047_v13  ;;  %v16048_v21 = vunpack.i.l.bf16 %v16047_v13 }
 0x77e   : > { %v6156_v51 = vmax.f32 %v18507_v34, %v16049_v56  ;;  %v6143_v28 = vsel %vm2430_vm13, %v16048_v21, %v16049_v56 }
 0x77f   : > { %v6151_v30 = vmax.f32 %v18673_v12, %v6143_v28  ;;  %v16057_v52 = vpop.permute.xlu0 %16056  ;;  %v16052_v13 = vpop.permute.xlu1 %16051  ;;  %v836_v28 = vand.u32 3, %v17169_v2 }
 0x780   : > { %v16059_v36 = vunpack.i.h.bf16 %v16057_v52  ;;  %v16058_v45 = vunpack.i.l.bf16 %v16057_v52  ;;  %v16054_v27 = vunpack.i.h.bf16 %v16052_v13  ;;  %v16053_v9 = vunpack.i.l.bf16 %v16052_v13 }
 0x781   : > { %v16060_v29 = vpack.i.bf16 %v6156_v51, %v6151_v30  ;;  %vm837_vm11 = vcmp.ge.s32.totalorder %v836_v28, 1  ;;  %vm840_vm8 = vcmp.le.s32.totalorder %v836_v28, 2 }
 0x782   : > { %v6157_v14 = vmax.f32 %v18580_v48, %v16058_v45  ;;  %v6144_v44 = vsel %vm2430_vm13, %v16059_v36, %v16054_v27  ;;  %v6145_v34 = vsel %vm2430_vm13, %v16054_v27, %v16058_v45  ;;  %v6142_v56 = vsel %vm2430_vm13, %v16053_v9, %v16048_v21 }
 0x783   : > { %v6152_v42 = vmax.f32 %v18689_v57, %v6144_v44  ;;  %v6153_v59 = vmax.f32 %v18700_v50, %v6145_v34  ;;  %v6150_v40 = vmax.f32 %v18671_v10, %v6142_v56  ;;  %16061 = vrot.lane.b32.xlu1 %v16060_v29, %s22075_s28  ;;  %v14201_v36 = vsel %vm837_vm11, 1.0, %v18580_v48 }
 0x784   : > { %v14203_v9 = vsel %vm843_vm2, 1.0, %v18580_v48  ;;  %v14202_v21 = vsel %vm840_vm8, 1.0, %v18580_v48  ;;  %vm6295_vm8 = vcmask 523264   ;;  %vm6452_vm11 = vcmask 39936  }
 0x785   : > { %v16070_v51 = vpack.i.bf16 %v6152_v42, %v6157_v14  ;;  %v16065_v60 = vpack.i.bf16 %v6153_v59, %v6150_v40  ;;  %v849_v44 = vmul.f32 %v14203_v9, %v14201_v36  ;;  %v850_v2 = vmul.f32 %v14203_v9, %v14202_v21 }
 0x786   : > { %v14204_v14 = vsel %vm846_vm12, 1.0, %v18580_v48  ;;  %vm6713_vm12 = vcmask 23552  }
 0x787   : > { %16071 = vrot.lane.b32.xlu1 %v16070_v51, %s22075_s28  ;;  %16066 = vrot.lane.b32.xlu0 %v16065_v60, %s22075_s28  ;;  %v851_v29 = vmul.f32 %v14204_v14, %v14201_v36  ;;  %v852_v3 = vmul.f32 %v14204_v14, %v14202_v21  ;;  %s22271_s28 = smov 17  }
 0x78b   : > { %6559 = vrot.lane.b32.xlu1 %v14203_v9, %s16975_s19  ;;  %6429 = vrot.lane.b32.xlu0 %v849_v44, %s16976_s20 }
 0x78f   : > { %6820 = vrot.lane.b32.xlu1 %v14201_v36, %s22077_s0  ;;  %6689 = vrot.lane.b32.xlu0 %v850_v2, %s16977_s30 }
 0x793   : > { %7070 = vrot.lane.b32.xlu1 %v851_v29, %s16978_s21  ;;  %6950 = vrot.lane.b32.xlu0 %v14202_v21, %s22079_s26 }
 0x797   : > { %7310 = vrot.lane.b32.xlu1 %v852_v3, %s16979_s18  ;;  %7190 = vrot.lane.b32.xlu0 %v14204_v14, %s16980_s23 }
 0x7f5   : > { %v16062_v52 = vpop.permute.xlu1 %16061 }
 0x7f6   : > { %v16064_v13 = vunpack.i.h.bf16 %v16062_v52  ;;  %v16063_v45 = vunpack.i.l.bf16 %v16062_v52 }
 0x7f8   : > { %v6177_v27 = vsel %vm5298_vm4, %v16063_v45, %v16064_v13 }
 0x7f9   : > { %v16072_v34 = vpop.permute.xlu1 %16071  ;;  %v16067_v56 = vpop.permute.xlu0 %16066  ;;  %v6185_v28 = vmax.f32 %v6151_v30, %v6177_v27 }
 0x7fa   : > { %v16074_v51 = vunpack.i.h.bf16 %v16072_v34  ;;  %v16073_v60 = vunpack.i.l.bf16 %v16072_v34  ;;  %v16069_v36 = vunpack.i.h.bf16 %v16067_v56  ;;  %v16068_v9 = vunpack.i.l.bf16 %v16067_v56 }
 0x7fb   : > { %6284 = vmatprep.mubr.f32.mxu1 %v6185_v28 }
 0x7fc   : > { %v6176_v44 = vsel %vm5298_vm4, %v16068_v9, %v16063_v45  ;;  %v6179_v21 = vsel %vm5298_vm4, %v16069_v36, %v16073_v60  ;;  %v6178_v14 = vsel %vm5298_vm4, %v16074_v51, %v16069_v36 }
 0x7fd   : > { %v6184_v2 = vmax.f32 %v6150_v40, %v6176_v44  ;;  %v6187_v29 = vmax.f32 %v6153_v59, %v6179_v21  ;;  %v6186_v3 = vmax.f32 %v6152_v42, %v6178_v14  ;;  %v14358_v59 = vld [vmem:[%s21913_s5 + $0x80] sm:$0xff]  ;;  %v6430_v40 = vpop.permute.xlu0 %6429  ;;  %v6560_v51 = vpop.permute.xlu1 %6559 }
 0x7fe   : > { %v6432_v42 = vmul.f32 %v18580_v48, %v6430_v40  ;;  %v6562_v60 = vmul.f32 %v18580_v48, %v6560_v51 }
 0x7ff   : > { %6285 = vmatmul.mubr.f32.vlgmr.msra.gmra.mrb[10].mxu1 %v6184_v2 }
 0x800   : > { %6289 = vmatprep.mubr.f32.mxu1 %v6187_v29 }
 0x801   : > { %v6690_v21 = vpop.permute.xlu0 %6689 }
 0x802   : > { %v6692_v14 = vmul.f32 %v18580_v48, %v6690_v21 }
 0x803   : > { %6290 = vmatmul.mubr.f32.gmra.mrb[12].mxu1 %v6186_v3 }
 0x804   : > { %14615 = vmatprep.mubr.msk.f32.mxu1 %vm1687_vm0, %v14358_v59 }
 0x8d2   : > { %v14551_v52 = vpop.f32.mrb[10].mxu1 }
 0x8d3   : > { %v14552_v13 = vpop.f32.mrb[11].mxu1 }
 0x8d4   : > { %v14553_v30 = vadd.f32 %v14552_v13, %v14551_v52 }
 0x8d6   : > { %6296 = vst.msk [vmem:[#allocation2 + $0x8] sm:$0xff] %vm6295_vm8, %v14553_v30  ;;  %v14554_v27 = vpop.f32.mrb[12].mxu1 }
 0x8d7   : > { %v14555_v34 = vpop.f32.mrb[13].mxu1 }
 0x8d8   : > { %v14556_v56 = vadd.f32 %v14555_v34, %v14554_v27  ;;  %v14359_v27 = vld [vmem:[%s21913_s5 + $0x88] sm:$0xff]  ;;  %v6821_v34 = vpop.permute.xlu1 %6820 }
 0x8d9   : > { %v6823_v59 = vmul.f32 %v18580_v48, %v6821_v34 }
 0x8da   : > { %6297 = vst.msk [vmem:[#allocation2 + $0x58] sm:$0xff] %vm6295_vm8, %v14556_v56  ;;  %v14360_v56 = vld [vmem:[%s21913_s5 + $0x90] sm:$0xff] }
 0x8dd   : > { %v6303_v45 = vld [vmem:[#allocation2 + $0x8] sm:$0xff] }
 0x8de   : > { %v6433_v28 = vmul.f32 %v6430_v40, %v6303_v45  ;;  %v6563_v44 = vmul.f32 %v6560_v51, %v6303_v45  ;;  %v6693_v3 = vmul.f32 %v6690_v21, %v6303_v45 }
 0x8e0   : > { %v16075_v9 = vpack.i.bf16 %v6433_v28, %v6432_v42  ;;  %v16085_v13 = vpack.i.bf16 %v6563_v44, %v6562_v60  ;;  %v16095_v28 = vpack.i.bf16 %v6693_v3, %v6692_v14  ;;  %v14361_v44 = vld [vmem:[%s21913_s5 + $0x98] sm:$0xff] }
 0x8e1   : > { %v6304_v36 = vld [vmem:[#allocation2 + $0x58] sm:$0xff] }
 0x8e2   : > { %16076 = vrot.lane.b32.xlu0 %v16075_v9, %s16979_s18  ;;  %v14989_v2 = vpack.c.bf16 %v6304_v36, %v6303_v45  ;;  %v6435_v29 = vmul.f32 %v6430_v40, %v6304_v36  ;;  %v6565_v30 = vmul.f32 %v6560_v51, %v6304_v36  ;;  %v6824_v40 = vmul.f32 %v6821_v34, %v6303_v45  ;;  %v6951_v9 = vpop.permute.xlu0 %6950 }
 0x8e3   : > { %v6695_v51 = vmul.f32 %v6690_v21, %v6304_v36  ;;  %v6826_v3 = vmul.f32 %v6821_v34, %v6304_v36 }
 0x8e4   : > { %14990 = vmatprep.subr.bf16.mxu1 %v14989_v2  ;;  %v16080_v52 = vpack.i.bf16 %v6435_v29, %v6432_v42  ;;  %v16090_v42 = vpack.i.bf16 %v6565_v30, %v6562_v60  ;;  %v6954_v60 = vmul.f32 %v6951_v9, %v6304_v36  ;;  %v16105_v21 = vpack.i.bf16 %v6824_v40, %v6823_v59 }
 0x8e5   : > { %14992 = vmatpush3.bf16.msra.mxu1 %v14989_v2  ;;  %v6436_v2 = vld [vmem:[%s21913_s5] sm:$0xff]  ;;  %v16100_v29 = vpack.i.bf16 %v6695_v51, %v6692_v14 }
 0x8e6   : > { %16081 = vrot.lane.b32.xlu1 %v16080_v52, %s16979_s18  ;;  %16086 = vrot.lane.b32.xlu0 %v16085_v13, %s16980_s23  ;;  %v7071_v52 = vpop.permute.xlu1 %7070  ;;  %v6953_v13 = vmul.f32 %v6951_v9, %v6303_v45  ;;  %v7191_v30 = vpop.permute.xlu0 %7190  ;;  %s22270_s18 = smov 119  }
 0x8e7   : > { %v7073_v53 = vmul.f32 %v7071_v52, %v6303_v45  ;;  %v7193_v54 = vmul.f32 %v7191_v30, %v6303_v45 }
 0x8e8   : > { %14616 = vmatmul.mubr.msk.f32.vlgmr.msra.gmra.mrb[14].mxu1 %vm1687_vm0, %v14359_v27  ;;  %v7074_v27 = vmul.f32 %v7071_v52, %v6304_v36  ;;  %v7864_v52 = vmul.f32 %v18580_v48, %v18417_v22 }
 0x8e9   : > { %14618 = vmatprep.mubr.msk.f32.mxu1 %vm1687_vm0, %v14360_v56  ;;  %v16115_v56 = vpack.i.bf16 %v6954_v60, %v6953_v13  ;;  %v7692_v60 = vmul.f32 %v18671_v10, %v18413_v61 }
 0x8ea   : > { %16091 = vrot.lane.b32.xlu1 %v16090_v42, %s16980_s23  ;;  %16096 = vrot.lane.b32.xlu0 %v16095_v28, %s16978_s21  ;;  %v7194_v42 = vmul.f32 %v7191_v30, %v6304_v36  ;;  %v16110_v28 = vpack.i.bf16 %v6826_v3, %v6823_v59  ;;  %v7311_v14 = vpop.permute.xlu1 %7310  ;;  %v16120_v34 = vpack.i.bf16 %v7074_v27, %v7073_v53  ;;  %v6307_v53 = vld [vmem:[%s21914_s6 + $0x10] sm:$0xff]  ;;  %s22508_s23 = smov 111  }
 0x8eb   : > { %v7314_v40 = vmul.f32 %v7311_v14, %v6304_v36  ;;  %v7313_v9 = vmul.f32 %v7311_v14, %v6303_v45  ;;  %v6308_v45 = vld [vmem:[%s21914_s6 + $0x18] sm:$0xff]  ;;  %v7696_v3 = vmul.f32 %v18700_v50, %v18408_v17  ;;  %v16160_v30 = vpack.i.bf16 %v7864_v52, %v7864_v52 }
 0x8ec   : > { %14619 = vmatmul.mubr.msk.f32.gmra.mrb[16].mxu1 %vm1687_vm0, %v14361_v44  ;;  %v16125_v51 = vpack.i.bf16 %v7194_v42, %v7193_v54  ;;  %v6305_v44 = vld [vmem:[%s21914_s6] sm:$0xff]  ;;  %v7679_v54 = vmul.f32 %v18580_v48, %v18406_v5  ;;  %v7695_v5 = vmul.f32 %v18689_v57, %v18413_v61  ;;  %v7877_v27 = vmul.f32 %v18671_v10, %v18436_v0 }
 0x8ed   : > { %14625 = vmatprep.mubr.msk.f32.mxu1 %vm1687_vm0, %v6436_v2  ;;  %v16130_v59 = vpack.i.bf16 %v7314_v40, %v7313_v9  ;;  %v6306_v2 = vld [vmem:[%s21914_s6 + $0x8] sm:$0xff]  ;;  %v7880_v42 = vmul.f32 %v18689_v57, %v18436_v0  ;;  %v8064_v9 = vmul.f32 %v18673_v12, %v18452_v63 }
 0x8ee   : > { %16101 = vrot.lane.b32.xlu1 %v16100_v29, %s16978_s21  ;;  %16106 = vrot.lane.b32.xlu0 %v16105_v21, %s22079_s26  ;;  %v16135_v36 = vpack.i.bf16 %v7679_v54, %v7679_v54  ;;  %v7693_v29 = vmul.f32 %v18673_v12, %v18408_v17  ;;  %v16150_v13 = vpack.i.bf16 %v7696_v3, %v7695_v5 }
 0x8f0   : > { %v16145_v21 = vpack.i.bf16 %v7693_v29, %v7692_v60 }
 0x8f2   : > { %16111 = vrot.lane.b32.xlu1 %v16110_v28, %s22079_s26  ;;  %16116 = vrot.lane.b32.xlu0 %v16115_v56, %s22077_s0  ;;  %v7878_v56 = vmul.f32 %v18415_v1, %v18673_v12  ;;  %v7881_v28 = vmul.f32 %v18415_v1, %v18700_v50  ;;  %s22272_s0 = smov 16  }
 0x8f4   : > { %v16170_v22 = vpack.i.bf16 %v7878_v56, %v7877_v27  ;;  %v16175_v14 = vpack.i.bf16 %v7881_v28, %v7880_v42  ;;  %v6437_v42 = vld [vmem:[%s21913_s5 + $0x8] sm:$0xff] }
 0x8f6   : > { %16121 = vrot.lane.b32.xlu1 %v16120_v34, %s16977_s30  ;;  %16126 = vrot.lane.b32.xlu0 %v16125_v51, %s16975_s19  ;;  %v8050_v34 = vmul.f32 %v18580_v48, %v18438_v6  ;;  %v8063_v51 = vmul.f32 %v18671_v10, %v18462_v43  ;;  %v8067_v6 = vmul.f32 %v18700_v50, %v18452_v63  ;;  %s22633_s19 = sshll.u32 %s22636_s29, 3 }
 0x8f7   : > { %v8236_v10 = vmul.f32 %v18580_v48, %v18467_v62 }
 0x8f8   : > { %v16185_v40 = vpack.i.bf16 %v8050_v34, %v8050_v34 }
 0x8f9   : > { %v18919_v12 = vpack.i.bf16 %v8236_v10, %v8236_v10 }
 0x8fa   : > { %16131 = vrot.lane.b32.xlu1 %v16130_v59, %s16976_s20  ;;  %6311 = vperm.xlu0 %15983, %v6305_v44   ;;  %s22257_s20 = smov 8   ;;  %v16195_v44 = vpack.i.bf16 %v8064_v9, %v8063_v51  ;;  %v8066_v59 = vmul.f32 %v18689_v57, %v18462_v43  ;;  %v6438_v51 = vld [vmem:[%s21913_s5 + $0x10] sm:$0xff] }
 0x8fe   : > { %6316 = vperm.xlu1 %16044, %v6306_v2   ;;  %6321 = vperm.xlu0 %15983, %v6307_v53   ;;  %v16200_v2 = vpack.i.bf16 %v8067_v6, %v8066_v59 }
 0x902   : > { %6326 = vperm.xlu1 %16044, %v6308_v45   ;;  %16136 = vrot.lane.b32.xlu0 %v16135_v36, %s16973_s22 }
 0x906   : > { %16141 = vrot.lane.b32.xlu1 %v16135_v36, %s16973_s22  ;;  %16146 = vrot.lane.b32.xlu0 %v16145_v21, %s16973_s22 }
 0x90a   : > { %16151 = vrot.lane.b32.xlu1 %v16150_v13, %s16973_s22  ;;  %16156 = vrot.lane.b32.xlu0 %v16135_v36, %s16973_s22 }
 0x90e   : > { %16161 = vrot.lane.b32.xlu1 %v16160_v30, %s22257_s20  ;;  %16166 = vrot.lane.b32.xlu0 %v16160_v30, %s22257_s20 }
 0x912   : > { %16171 = vrot.lane.b32.xlu1 %v16170_v22, %s22257_s20  ;;  %16176 = vrot.lane.b32.xlu0 %v16175_v14, %s22257_s20 }
 0x916   : > { %16181 = vrot.lane.b32.xlu1 %v16160_v30, %s22257_s20  ;;  %16186 = vrot.lane.b32.xlu0 %v16185_v40, %s22258_s25 }
 0x91a   : > { %16191 = vrot.lane.b32.xlu1 %v16185_v40, %s22258_s25  ;;  %16196 = vrot.lane.b32.xlu0 %v16195_v44, %s22258_s25 }
 0x91e   : > { %16201 = vrot.lane.b32.xlu1 %v16200_v2, %s22258_s25  ;;  %16206 = vrot.lane.b32.xlu0 %v16185_v40, %s22258_s25  ;;  %v6439_v2 = vld [vmem:[%s21913_s5 + $0x18] sm:$0xff] }
 0x922   : > { %16211 = vrot.lane.b32.xlu1 %v18919_v12, %s22079_s26 }
 0x954   : > { %v16077_v57 = vpop.permute.xlu0 %16076 }
 0x955   : > { %v16079_v53 = vunpack.i.h.bf16 %v16077_v57  ;;  %v16078_v50 = vunpack.i.l.bf16 %v16077_v57 }
 0x957   : > { %v6453_v62 = vsel %vm6452_vm11, %v16078_v50, %v16079_v53 }
 0x958   : > { %v16082_v54 = vpop.permute.xlu1 %16081  ;;  %v16087_v45 = vpop.permute.xlu0 %16086 }
 0x959   : > { %v16084_v36 = vunpack.i.h.bf16 %v16082_v54  ;;  %v16083_v60 = vunpack.i.l.bf16 %v16082_v54  ;;  %v16089_v29 = vunpack.i.h.bf16 %v16087_v45  ;;  %v16088_v21 = vunpack.i.l.bf16 %v16087_v45  ;;  %v14370_v54 = vld [vmem:[%s21913_s5 + $0x20] sm:$0xff] }
 0x95b   : > { %v6454_v48 = vsel %vm6452_vm11, %v16083_v60, %v16084_v36  ;;  %v6583_v28 = vsel %vm896_vm10, %v16088_v21, %v16089_v29  ;;  %v14371_v60 = vld [vmem:[%s21913_s5 + $0x28] sm:$0xff] }
 0x95c   : > { %v16092_v5 = vpop.permute.xlu1 %16091  ;;  %v16097_v3 = vpop.permute.xlu0 %16096  ;;  %v14993_v52 = vpack.c.bf16 %v6454_v48, %v6453_v62  ;;  %v14372_v48 = vld [vmem:[%s21913_s5 + $0x30] sm:$0xff] }
 0x95d   : > { %v16094_v13 = vunpack.i.h.bf16 %v16092_v5  ;;  %v16093_v30 = vunpack.i.l.bf16 %v16092_v5  ;;  %v16099_v27 = vunpack.i.h.bf16 %v16097_v3  ;;  %v16098_v56 = vunpack.i.l.bf16 %v16097_v3  ;;  %v14373_v3 = vld [vmem:[%s21913_s5 + $0x38] sm:$0xff] }
 0x95e   : > { %14994 = vmatprep.subr.bf16.mxu1 %v14993_v52 }
 0x95f   : > { %14996 = vmatpush3.bf16.msra.mxu1 %v14993_v52  ;;  %v6584_v22 = vsel %vm896_vm10, %v16093_v30, %v16094_v13  ;;  %v6714_v10 = vsel %vm6713_vm12, %v16098_v56, %v16099_v27  ;;  %v14378_v52 = vld [vmem:[%s21913_s5 + $0x40] sm:$0xff]  ;;  %v14379_v27 = vld [vmem:[%s21913_s5 + $0x48] sm:$0xff]  ;;  %v14380_v56 = vld [vmem:[%s21913_s5 + $0x50] sm:$0xff]  ;;  %vm7589_vm10 = vcmask 392192  }
 0x960   : > { %v16102_v14 = vpop.permute.xlu1 %16101  ;;  %v16107_v34 = vpop.permute.xlu0 %16106  ;;  %v14997_v40 = vpack.c.bf16 %v6584_v22, %v6583_v28  ;;  %v14381_v22 = vld [vmem:[%s21913_s5 + $0x58] sm:$0xff] }
 0x961   : > { %v16104_v9 = vunpack.i.h.bf16 %v16102_v14  ;;  %v16103_v44 = vunpack.i.l.bf16 %v16102_v14  ;;  %v16109_v59 = vunpack.i.h.bf16 %v16107_v34  ;;  %v16108_v6 = vunpack.i.l.bf16 %v16107_v34  ;;  %v14386_v14 = vld [vmem:[%s21913_s5 + $0x60] sm:$0xff] }
 0x962   : > { %14626 = vmatmul.mubr.msk.f32.vlgmr.msra.gmra.mrb[14].mxu1 %vm1687_vm0, %v6437_v42  ;;  %14998 = vmatprep.subr.bf16.mxu1 %v14997_v40 }
 0x963   : > { %15000 = vmatpush3.bf16.msra.mxu1 %v14997_v40  ;;  %14628 = vmatprep.mubr.msk.f32.mxu1 %vm1687_vm0, %v6438_v51  ;;  %v6715_v57 = vsel %vm6713_vm12, %v16103_v44, %v16104_v9  ;;  %v6844_v29 = vsel %vm2485_vm14, %v16108_v6, %v16109_v59  ;;  %v14387_v51 = vld [vmem:[%s21913_s5 + $0x68] sm:$0xff]  ;;  %v14388_v9 = vld [vmem:[%s21913_s5 + $0x70] sm:$0xff]  ;;  %v14389_v6 = vld [vmem:[%s21913_s5 + $0x78] sm:$0xff] }
 0x964   : > { %v16112_v53 = vpop.permute.xlu1 %16111  ;;  %v15001_v50 = vpack.c.bf16 %v6715_v57, %v6714_v10  ;;  %v16117_v5 = vpop.permute.xlu0 %16116 }
 0x965   : > { %v16114_v45 = vunpack.i.h.bf16 %v16112_v53  ;;  %v16113_v36 = vunpack.i.l.bf16 %v16112_v53  ;;  %v16119_v13 = vunpack.i.h.bf16 %v16117_v5  ;;  %v16118_v30 = vunpack.i.l.bf16 %v16117_v5  ;;  %v14395_v53 = vld [vmem:[%s21913_s5 + $0xa8] sm:$0xff] }
 0x966   : > { %14629 = vmatmul.mubr.msk.f32.gmra.mrb[16].mxu1 %vm1687_vm0, %v6439_v2  ;;  %15002 = vmatprep.subr.bf16.mxu1 %v15001_v50  ;;  %v14394_v2 = vld [vmem:[%s21913_s5 + $0xa0] sm:$0xff] }
 0x967   : > { %14635 = vmatprep.mubr.msk.f32.mxu1 %vm1687_vm0, %v14370_v54  ;;  %v6845_v21 = vsel %vm2485_vm14, %v16113_v36, %v16114_v45  ;;  %v15009_v42 = vpack.c.bf16 %v16119_v13, %v16118_v30  ;;  %v14397_v36 = vld [vmem:[%s21913_s5 + $0xb8] sm:$0xff]  ;;  %v7434_v13 = vld [vmem:[%s21923_s15 + $0x8] sm:$0xff] }
 0x968   : > { %v15005_v62 = vpack.c.bf16 %v6845_v21, %v6844_v29  ;;  %v16122_v28 = vpop.permute.xlu1 %16121  ;;  %v16127_v59 = vpop.permute.xlu0 %16126  ;;  %v7436_v30 = vld [vmem:[%s21923_s15 + $0x18] sm:$0xff] }
 0x969   : > { %v16124_v34 = vunpack.i.h.bf16 %v16122_v28  ;;  %v16123_v40 = vunpack.i.l.bf16 %v16122_v28  ;;  %v16129_v10 = vunpack.i.h.bf16 %v16127_v59  ;;  %v16128_v57 = vunpack.i.l.bf16 %v16127_v59  ;;  %v14413_v28 = vld [vmem:[%s21913_s5 + $0xf8] sm:$0xff]  ;;  %v14420_v59 = vld [vmem:[%s21913_s5 + $0x110] sm:$0xff] }
 0x96a   : > { %14636 = vmatmul.mubr.msk.f32.vlgmr.msra.gmra.mrb[14].mxu1 %vm1687_vm0, %v14371_v60  ;;  %v14402_v60 = vld [vmem:[%s21913_s5 + $0xc0] sm:$0xff] }
 0x96b   : > { %15004 = vmatpush3.bf16.msra.mxu1 %v15001_v50  ;;  %14638 = vmatprep.mubr.msk.f32.mxu1 %vm1687_vm0, %v14372_v48  ;;  %v15013_v44 = vpack.c.bf16 %v16124_v34, %v16123_v40  ;;  %v14396_v50 = vld [vmem:[%s21913_s5 + $0xb0] sm:$0xff]  ;;  %v15017_v54 = vpack.c.bf16 %v16129_v10, %v16128_v57  ;;  %v7438_v40 = vld [vmem:[%s21923_s15 + $0x28] sm:$0xff] }
 0x96c   : > { %15006 = vmatprep.subr.bf16.mxu1 %v15005_v62  ;;  %v16132_v45 = vpop.permute.xlu1 %16131  ;;  %v14404_v48 = vld [vmem:[%s21913_s5 + $0xd0] sm:$0xff]  ;;  %v7442_v57 = vld [vmem:[%s21923_s15 + $0x48] sm:$0xff] }
 0x96d   : > { %v16134_v29 = vunpack.i.h.bf16 %v16132_v45  ;;  %v16133_v21 = vunpack.i.l.bf16 %v16132_v45  ;;  %v7435_v34 = vld [vmem:[%s21923_s15 + $0x10] sm:$0xff] }
 0x96e   : > { %14639 = vmatmul.mubr.msk.f32.gmra.mrb[16].mxu1 %vm1687_vm0, %v14373_v3  ;;  %v14405_v3 = vld [vmem:[%s21913_s5 + $0xd8] sm:$0xff]  ;;  %v7439_v10 = vld [vmem:[%s21923_s15 + $0x30] sm:$0xff] }
 0x96f   : > { %14645 = vmatprep.mubr.msk.f32.mxu1 %vm1687_vm0, %v14378_v52  ;;  %v15021_v5 = vpack.c.bf16 %v16134_v29, %v16133_v21  ;;  %v14410_v52 = vld [vmem:[%s21913_s5 + $0xe0] sm:$0xff]  ;;  %v19087_v21 = vld [vmem:[#allocation2 + $0x110] sm:$0xff] }
 0x972   : > { %14646 = vmatmul.mubr.msk.f32.vlgmr.msra.gmra.mrb[14].mxu1 %vm1687_vm0, %v14379_v27  ;;  %v14411_v27 = vld [vmem:[%s21913_s5 + $0xe8] sm:$0xff] }
 0x973   : > { %15008 = vmatpush3.bf16.msra.mxu1 %v15005_v62  ;;  %14648 = vmatprep.mubr.msk.f32.mxu1 %vm1687_vm0, %v14380_v56  ;;  %v14403_v62 = vld [vmem:[%s21913_s5 + $0xc8] sm:$0xff]  ;;  %v14412_v56 = vld [vmem:[%s21913_s5 + $0xf0] sm:$0xff] }
 0x974   : > { %15010 = vmatprep.subr.bf16.mxu1 %v15009_v42 }
 0x976   : > { %14649 = vmatmul.mubr.msk.f32.gmra.mrb[16].mxu1 %vm1687_vm0, %v14381_v22  ;;  %v14418_v22 = vld [vmem:[%s21913_s5 + $0x100] sm:$0xff] }
 0x977   : > { %14655 = vmatprep.mubr.msk.f32.mxu1 %vm1687_vm0, %v14386_v14  ;;  %v7433_v14 = vld [vmem:[%s21923_s15] sm:$0xff] }
 0x97a   : > { %14656 = vmatmul.mubr.msk.f32.vlgmr.msra.gmra.mrb[14].mxu1 %vm1687_vm0, %v14387_v51  ;;  %v7440_v51 = vld [vmem:[%s21923_s15 + $0x38] sm:$0xff] }
 0x97b   : > { %15012 = vmatpush3.bf16.msra.mxu1 %v15009_v42  ;;  %14658 = vmatprep.mubr.msk.f32.mxu1 %vm1687_vm0, %v14388_v9  ;;  %v15025_v42 = vpack.c.bf16 %v7436_v30, %v7434_v13  ;;  %v14419_v9 = vld [vmem:[%s21913_s5 + $0x108] sm:$0xff] }
 0x97c   : > { %15014 = vmatprep.subr.bf16.mxu1 %v15013_v44 }
 0x97e   : > { %14659 = vmatmul.mubr.msk.f32.gmra.mrb[16].mxu1 %vm1687_vm0, %v14389_v6  ;;  %v15029_v6 = vpack.c.bf16 %v7440_v51, %v7438_v40 }
 0x97f   : > { %14665 = vmatprep.mubr.msk.f32.mxu1 %vm1687_vm0, %v14394_v2  ;;  %v7437_v2 = vld [vmem:[%s21923_s15 + $0x20] sm:$0xff] }
 0x982   : > { %14666 = vmatmul.mubr.msk.f32.vlgmr.msra.gmra.mrb[14].mxu1 %vm1687_vm0, %v14395_v53  ;;  %v7444_v53 = vld [vmem:[%s21923_s15 + $0x58] sm:$0xff] }
 0x983   : > { %15016 = vmatpush3.bf16.msra.mxu1 %v15013_v44  ;;  %14668 = vmatprep.mubr.msk.f32.mxu1 %vm1687_vm0, %v14396_v50  ;;  %v15027_v44 = vpack.c.bf16 %v7435_v34, %v7433_v14  ;;  %v14421_v50 = vld [vmem:[%s21913_s5 + $0x118] sm:$0xff]  ;;  %v15033_v45 = vpack.c.bf16 %v7444_v53, %v7442_v57 }
 0x984   : > { %15018 = vmatprep.subr.bf16.mxu1 %v15017_v54 }
 0x986   : > { %14669 = vmatmul.mubr.msk.f32.gmra.mrb[16].mxu1 %vm1687_vm0, %v14397_v36  ;;  %v7441_v36 = vld [vmem:[%s21923_s15 + $0x40] sm:$0xff] }
 0x987   : > { %14675 = vmatprep.mubr.msk.f32.mxu1 %vm1687_vm0, %v14402_v60  ;;  %v7443_v60 = vld [vmem:[%s21923_s15 + $0x50] sm:$0xff] }
 0x988   : > { %v15035_v29 = vpack.c.bf16 %v7443_v60, %v7441_v36 }
 0x98a   : > { %14676 = vmatmul.mubr.msk.f32.vlgmr.msra.gmra.mrb[14].mxu1 %vm1687_vm0, %v14403_v62  ;;  %v7446_v62 = vld [vmem:[%s21923_s15 + $0x68] sm:$0xff] }
 0x98b   : > { %15020 = vmatpush3.bf16.msra.mxu1 %v15017_v54  ;;  %14678 = vmatprep.mubr.msk.f32.mxu1 %vm1687_vm0, %v14404_v48  ;;  %v15031_v54 = vpack.c.bf16 %v7439_v10, %v7437_v2  ;;  %v7448_v48 = vld [vmem:[%s21923_s15 + $0x78] sm:$0xff] }
 0x98c   : > { %15022 = vmatprep.subr.bf16.mxu1 %v15021_v5 }
 0x98e   : > { %14679 = vmatmul.mubr.msk.f32.gmra.mrb[16].mxu1 %vm1687_vm0, %v14405_v3  ;;  %v7445_v3 = vld [vmem:[%s21923_s15 + $0x60] sm:$0xff] }
 0x98f   : > { %14685 = vmatprep.mubr.msk.f32.mxu1 %vm1687_vm0, %v14410_v52  ;;  %v7447_v52 = vld [vmem:[%s21923_s15 + $0x70] sm:$0xff] }
 0x990   : > { %v15039_v13 = vpack.c.bf16 %v7447_v52, %v7445_v3 }
 0x992   : > { %14686 = vmatmul.mubr.msk.f32.vlgmr.msra.gmra.mrb[14].mxu1 %vm1687_vm0, %v14411_v27  ;;  %v6312_v27 = vpop.permute.xlu0 %6311 }
 0x993   : > { %15024 = vmatpush3.bf16.msra.mxu1 %v15021_v5  ;;  %14688 = vmatprep.mubr.msk.f32.mxu1 %vm1687_vm0, %v14412_v56  ;;  %v15037_v5 = vpack.c.bf16 %v7448_v48, %v7446_v62 }
 0x994   : > { %15026 = vmatprep.subr.bf16.mxu1 %v15025_v42 }
 0x996   : > { %14689 = vmatmul.mubr.msk.f32.gmra.mrb[16].mxu1 %vm1687_vm0, %v14413_v28  ;;  %v6317_v28 = vpop.permute.xlu1 %6316  ;;  %v6322_v51 = vpop.permute.xlu0 %6321 }
 0x997   : > { %14695 = vmatprep.mubr.msk.f32.mxu1 %vm1687_vm0, %v14418_v22 }
 0x99a   : > { %14696 = vmatmul.mubr.msk.f32.vlgmr.msra.gmra.mrb[14].mxu1 %vm1687_vm0, %v14419_v9 }
 0x99b   : > { %14698 = vmatprep.mubr.msk.f32.mxu1 %vm1687_vm0, %v14420_v59  ;;  %15028 = vmatpush1.bf16.msra.mxu1 %v15027_v44  ;;  %v6327_v59 = vpop.permute.xlu1 %6326 }
 0x99c   : > { %15030 = vmatprep.subr.bf16.mxu1 %v15029_v6 }
 0x99e   : > { %14699 = vmatmul.mubr.msk.f32.gmra.mrb[16].mxu1 %vm1687_vm0, %v14421_v50 }
 0x99f   : > { %15032 = vmatpush1.bf16.msra.mxu1 %v15031_v54  ;;  %7525 = vmatprep.mubr.f32.mxu1 %v19087_v21 }
 0x9a0   : > { %15034 = vmatprep.subr.bf16.mxu1 %v15033_v45 }
 0x9a3   : > { %15036 = vmatpush1.bf16.msra.mxu1 %v15035_v29 }
 0x9a4   : > { %15038 = vmatprep.subr.bf16.mxu1 %v15037_v5 }
 0x9a7   : > { %15040 = vmatpush1.bf16.msra.mxu1 %v15039_v13 }
 0xa6d   : > { %v14697_v30 = vpop.f32.mrb[14].mxu1 }
 0xa6e   : > { %v7406_v56 = vpop.f32.mrb[15].mxu1  ;;  %v15563_v22 = vadd.f32 %v14697_v30, %v6317_v28 }
 0xa6f   : > { %v15564_v42 = vadd.f32 %v7406_v56, %v6312_v27 }
 0xa70   : > { %v7430_v9 = vmax.f32 %v15563_v22, 0.0 }
 0xa71   : > { %v7429_v14 = vmax.f32 %v15564_v42, 0.0  ;;  %v14700_v34 = vpop.f32.mrb[16].mxu1 }
 0xa72   : > { %v7416_v40 = vpop.f32.mrb[17].mxu1  ;;  %v15565_v6 = vadd.f32 %v14700_v34, %v6327_v59 }
 0xa73   : > { %14426 = vmatmul.mubr.msk.f32.vlgmr.msra.gmra.mrb[18].mxu1 %vm6295_vm8, %v7429_v14  ;;  %v15566_v44 = vadd.f32 %v7416_v40, %v6322_v51 }
 0xa74   : > { %7531 = vmatprep.mubr.f32.mxu1 %v19087_v21  ;;  %v7432_v10 = vmax.f32 %v15565_v6, 0.0 }
 0xa75   : > { %v7431_v2 = vmax.f32 %v15566_v44, 0.0 }
 0xa77   : > { %14427 = vmatmul.mubr.msk.f32.gmra.mrb[20].mxu1 %vm6295_vm8, %v7430_v9 }
 0xa78   : > { %7537 = vmatprep.mubr.f32.mxu1 %v19087_v21 }
 0xa7b   : > { %14428 = vmatmul.mubr.msk.f32.gmra.mrb[22].mxu1 %vm6295_vm8, %v7431_v2 }
 0xa7c   : > { %7543 = vmatprep.mubr.f32.mxu1 %v19087_v21 }
 0xa7f   : > { %14429 = vmatmul.mubr.msk.f32.gmra.mrb[24].mxu1 %vm6295_vm8, %v7432_v10 }
 0xa80   : > { %7660 = vmatprep.mubr.f32.mxu1 %v19087_v21 }
 0xb46   : > { %v19110_v57 = vpop.f32.mrb[18].mxu1 }
 0xb47   : > { %v19112_v53 = vpop.f32.mrb[19].mxu1  ;;  %v7865_v50 = vmul.f32 %v19110_v57, %v18436_v0  ;;  %v7680_v54 = vmul.f32 %v19110_v57, %v18413_v61  ;;  %v8237_v45 = vmul.f32 %v19110_v57, %v18481_v4  ;;  %v8051_v36 = vmul.f32 %v19110_v57, %v18462_v43 }
 0xb48   : > { %v7866_v60 = vmul.f32 %v18415_v1, %v19112_v53  ;;  %v7681_v29 = vmul.f32 %v19112_v53, %v18408_v17  ;;  %v8238_v62 = vmul.f32 %v18465_v18, %v19112_v53  ;;  %v8052_v48 = vmul.f32 %v19112_v53, %v18452_v63 }
 0xb49   : > { %v19160_v10 = vmul.f32 %v18484_v7, %v19110_v57  ;;  %v19298_v37 = vmul.f32 %v19110_v57, %v18540_v25 }
 0xb4a   : > { %v19130_v5 = vpop.f32.mrb[20].mxu1  ;;  %v16220_v3 = vpack.i.bf16 %v7866_v60, %v7865_v50  ;;  %v16215_v52 = vpack.i.bf16 %v7681_v29, %v7680_v54  ;;  %v16230_v13 = vpack.i.bf16 %v8238_v62, %v8237_v45  ;;  %v16225_v30 = vpack.i.bf16 %v8052_v48, %v8051_v36 }
 0xb4b   : > { %v19132_v27 = vpop.f32.mrb[21].mxu1  ;;  %v15043_v56 = vpack.c.bf16 %v19130_v5, %v19110_v57  ;;  %v7868_v42 = vmul.f32 %v19130_v5, %v18436_v0  ;;  %v7683_v28 = vmul.f32 %v19130_v5, %v18413_v61  ;;  %v8240_v22 = vmul.f32 %v19130_v5, %v18481_v4 }
 0xb4c   : > { %16221 = vrot.lane.b32.xlu1 %v16220_v3, %s22257_s20  ;;  %16216 = vrot.lane.b32.xlu0 %v16215_v52, %s16973_s22  ;;  %v15041_v14 = vpack.c.bf16 %v19132_v27, %v19112_v53  ;;  %v7869_v34 = vmul.f32 %v18415_v1, %v19132_v27  ;;  %v7684_v40 = vmul.f32 %v19132_v27, %v18408_v17 }
 0xb4d   : > { %v8241_v51 = vmul.f32 %v18465_v18, %v19132_v27  ;;  %v8054_v9 = vmul.f32 %v19130_v5, %v18462_v43  ;;  %v8055_v44 = vmul.f32 %v19132_v27, %v18452_v63  ;;  %v19164_v50 = vmul.f32 %v18484_v7, %v19130_v5 }
 0xb4e   : > { %v19156_v59 = vpop.f32.mrb[22].mxu1  ;;  %15042 = vmatprep.subr.bf16.mxu1 %v15041_v14  ;;  %v16240_v6 = vpack.i.bf16 %v7869_v34, %v7868_v42  ;;  %v16235_v2 = vpack.i.bf16 %v7684_v40, %v7683_v28 }
 0xb4f   : > { %v19166_v54 = vpop.f32.mrb[23].mxu1  ;;  %15044 = vmatpush1.bf16.msra.mxu1 %v15043_v56  ;;  %v16250_v45 = vpack.i.bf16 %v8241_v51, %v8240_v22  ;;  %v16245_v36 = vpack.i.bf16 %v8055_v44, %v8054_v9  ;;  %v7871_v60 = vmul.f32 %v19156_v59, %v18436_v0  ;;  %v7686_v29 = vmul.f32 %v19156_v59, %v18413_v61 }
 0xb50   : > { %16231 = vrot.lane.b32.xlu1 %v16230_v13, %s22259_s11  ;;  %16226 = vrot.lane.b32.xlu0 %v16225_v30, %s22258_s25  ;;  %v7872_v62 = vmul.f32 %v18415_v1, %v19166_v54  ;;  %v7687_v48 = vmul.f32 %v19166_v54, %v18408_v17  ;;  %v19180_v3 = vmul.f32 %v19156_v59, %v18462_v43 }
 0xb51   : > { %v19184_v52 = vmul.f32 %v19166_v54, %v18452_v63  ;;  %v19188_v56 = vmul.f32 %v19156_v59, %v18481_v4  ;;  %v19192_v13 = vmul.f32 %v18465_v18, %v19166_v54  ;;  %v19287_v22 = vmul.f32 %v18522_v58, %v19156_v59 }
 0xb52   : > { %v19194_v30 = vpop.f32.mrb[24].mxu1  ;;  %v16260_v42 = vpack.i.bf16 %v7872_v62, %v7871_v60  ;;  %v16255_v28 = vpack.i.bf16 %v7687_v48, %v7686_v29 }
 0xb53   : > { %v19198_v14 = vpop.f32.mrb[25].mxu1  ;;  %v15047_v34 = vpack.c.bf16 %v19194_v30, %v19156_v59  ;;  %v16265_v40 = vpack.i.bf16 %v19184_v52, %v19180_v3  ;;  %v7689_v51 = vmul.f32 %v19194_v30, %v18413_v61  ;;  %v16275_v9 = vpack.i.bf16 %v19192_v13, %v19188_v56  ;;  %v16865_v3 = vld [vmem:[#allocation2 + $0x1a0] sm:$0xff] }
 0xb54   : > { %16241 = vrot.lane.b32.xlu0 %v16240_v6, %s22257_s20  ;;  %16236 = vrot.lane.b32.xlu1 %v16235_v2, %s16973_s22  ;;  %v15045_v44 = vpack.c.bf16 %v19198_v14, %v19166_v54  ;;  %v7690_v60 = vmul.f32 %v19198_v14, %v18408_v17  ;;  %v7874_v29 = vmul.f32 %v19194_v30, %v18436_v0  ;;  %v16864_v0 = vld [vmem:[#allocation2 + $0x150] sm:$0xff]  ;;  %v14430_v13 = vld [vmem:[%s21915_s7 + $0x40] sm:$0xff] }
 0xb55   : > { %v7875_v62 = vmul.f32 %v18415_v1, %v19198_v14  ;;  %v19220_v61 = vmul.f32 %v18484_v7, %v19156_v59  ;;  %v19224_v6 = vmul.f32 %v18484_v7, %v19194_v30  ;;  %v19228_v48 = vmul.f32 %v19194_v30, %v18462_v43 }
 0xb56   : > { %15046 = vmatprep.subr.bf16.mxu1 %v15045_v44  ;;  %v16270_v2 = vpack.i.bf16 %v7690_v60, %v7689_v51  ;;  %v19232_v17 = vmul.f32 %v19198_v14, %v18452_v63  ;;  %v19236_v1 = vmul.f32 %v19194_v30, %v18481_v4  ;;  %v15049_v52 = vpack.c.bf16 %v16865_v3, %v16864_v0  ;;  %v16866_v44 = vld [vmem:[#allocation2 + $0x148] sm:$0xff]  ;;  %v16867_v60 = vld [vmem:[#allocation2 + $0x198] sm:$0xff] }
 0xb57   : > { %15048 = vmatpush1.bf16.msra.mxu1 %v15047_v34  ;;  %v16295_v56 = vpack.i.bf16 %v7875_v62, %v7874_v29  ;;  %v19242_v43 = vmul.f32 %v18465_v18, %v19198_v14  ;;  %v19250_v34 = vmul.f32 %v19110_v57, %v18501_v20  ;;  %v19254_v51 = vmul.f32 %v19130_v5, %v18501_v20 }
 0xb58   : > { %16251 = vrot.lane.b32.xlu0 %v16250_v45, %s22259_s11  ;;  %16246 = vrot.lane.b32.xlu1 %v16245_v36, %s22258_s25  ;;  %v15051_v29 = vpack.c.bf16 %v16867_v60, %v16866_v44  ;;  %v19260_v36 = vmul.f32 %v19156_v59, %v18501_v20  ;;  %v19264_v62 = vmul.f32 %v19194_v30, %v18501_v20 }
 0xb59   : > { %15050 = vmatprep.subr.bf16.mxu1 %v15049_v52  ;;  %v19277_v45 = vmul.f32 %v18522_v58, %v19110_v57  ;;  %v19281_v63 = vmul.f32 %v18522_v58, %v19130_v5  ;;  %v8250_v52 = vmul.f32 %v16864_v0, %v18465_v18  ;;  %v19302_v0 = vmul.f32 %v19130_v5, %v18540_v25 }
 0xb5a   : > { %v19316_v5 = vmul.f32 %v19156_v59, %v18540_v25  ;;  %v19320_v8 = vmul.f32 %v19194_v30, %v18540_v25  ;;  %v8253_v59 = vmul.f32 %v16865_v3, %v18465_v18  ;;  %v8445_v18 = vmul.f32 %v19087_v21, %v18489_v19 }
 0xb5b   : > { %15052 = vmatpush1.bf16.msra.mxu1 %v15051_v29  ;;  %v8249_v29 = vmul.f32 %v16866_v44, %v18481_v4  ;;  %v14431_v44 = vld [vmem:[%s21915_s7 + $0x48] sm:$0xff]  ;;  %v16460_v57 = vpack.i.bf16 %v19302_v0, %v19298_v37 }
 0xb5c   : > { %16261 = vrot.lane.b32.xlu0 %v16260_v42, %s22257_s20  ;;  %16256 = vrot.lane.b32.xlu1 %v16255_v28, %s16973_s22  ;;  %v19291_v42 = vmul.f32 %v18522_v58, %v19194_v30 }
 0xb5d   : > { %v16285_v28 = vpack.i.bf16 %v8250_v52, %v8249_v29  ;;  %v8444_v52 = vmul.f32 %v19132_v27, %v18499_v15  ;;  %v8441_v29 = vmul.f32 %v19112_v53, %v18499_v15 }
 0xb5e   : > { %14432 = vmatmul.mubr.msk.f32.vlgmr.msra.gmra.mrb[26].mxu1 %vm7589_vm10, %v14430_v13  ;;  %v16425_v13 = vpack.i.bf16 %v19291_v42, %v19287_v22 }
 0xb5f   : > { %7666 = vmatprep.mubr.f32.mxu1 %v19087_v21  ;;  %v16310_v3 = vpack.i.bf16 %v8445_v18, %v8444_v52  ;;  %v22262_v52 = vpack.i.bf16 %v19224_v6, %v19220_v61 }
 0xb60   : > { %16266 = vrot.lane.b32.xlu1 %v16265_v40, %s22258_s25  ;;  %16271 = vrot.lane.b32.xlu0 %v16270_v2, %s16973_s22  ;;  %v16470_v40 = vpack.i.bf16 %v19320_v8, %v19316_v5  ;;  %v8252_v2 = vmul.f32 %v16867_v60, %v18481_v4  ;;  %v8447_v60 = vmul.f32 %v19166_v54, %v18499_v15  ;;  %s22260_s22 = smov 127  }
 0xb62   : > { %14433 = vmatmul.mubr.msk.f32.gmra.mrb[28].mxu1 %vm7589_vm10, %v14431_v44  ;;  %v16290_v30 = vpack.i.bf16 %v8253_v59, %v8252_v2  ;;  %v19350_v44 = vld [vmem:[#allocation2 + $0x1a0] sm:$0xff] }
 0xb63   : > { %7847 = vmatprep.mubr.f32.mxu1 %v19087_v21  ;;  %v8456_v2 = vmul.f32 %v19350_v44, %v18499_v15 }
 0xb64   : > { %16286 = vrot.lane.b32.xlu1 %v16285_v28, %s22259_s11  ;;  %16276 = vrot.lane.b32.xlu0 %v16275_v9, %s22259_s11  ;;  %v19337_v9 = vld [vmem:[#allocation2 + $0x18] sm:$0xff]  ;;  %v16320_v28 = vpack.i.bf16 %v8445_v18, %v8447_v60 }
 0xb65   : > { %v8442_v4 = vmul.f32 %v18489_v19, %v19337_v9  ;;  %v22261_v19 = vpack.i.bf16 %v19164_v50, %v19160_v10  ;;  %v19373_v10 = vld [vmem:[#allocation2 + $0x148] sm:$0xff]  ;;  %v16340_v50 = vpack.i.bf16 %v8445_v18, %v8456_v2  ;;  %v8628_v60 = vmul.f32 %v19337_v9, %v18509_v24 }
 0xb66   : > { %v8452_v61 = vmul.f32 %v18484_v7, %v19373_v10  ;;  %v8633_v2 = vmul.f32 %v19166_v54, %v18517_v33  ;;  %v9000_v22 = vmul.f32 %v19337_v9, %v18545_v31 }
 0xb68   : > { %16296 = vrot.lane.b32.xlu1 %v16295_v56, %s22257_s20  ;;  %16281 = vrot.lane.b32.xlu0 %v18919_v12, %s22259_s11  ;;  %v16305_v56 = vpack.i.bf16 %v8442_v4, %v8441_v29  ;;  %v22263_v29 = vpack.i.bf16 %v19232_v17, %v19228_v48  ;;  %v8630_v48 = vmul.f32 %v19132_v27, %v18517_v33  ;;  %s22265_s20 = smov 121  }
 0xb69   : > { %v22264_v17 = vpack.i.bf16 %v19242_v43, %v19236_v1  ;;  %v22266_v43 = vpack.i.bf16 %v19254_v51, %v19250_v34  ;;  %v8638_v34 = vmul.f32 %v19373_v10, %v18501_v20 }
 0xb6c   : > { %16301 = vrot.lane.b32.xlu1 %v18919_v12, %s22259_s11  ;;  %16291 = vrot.lane.b32.xlu0 %v16290_v30, %s22259_s11  ;;  %v19352_v12 = vld [vmem:[#allocation2 + $0x150] sm:$0xff]  ;;  %v19363_v30 = vld [vmem:[#allocation2 + $0x198] sm:$0xff] }
 0xb6d   : > { %v8453_v59 = vmul.f32 %v19352_v12, %v18499_v15  ;;  %v8639_v1 = vmul.f32 %v19352_v12, %v18517_v33  ;;  %v9013_v37 = vmul.f32 %v19363_v30, %v18540_v25 }
 0xb6f   : > { %v16335_v4 = vpack.i.bf16 %v8445_v18, %v8453_v59 }
 0xb70   : > { %16311 = vrot.lane.b32.xlu1 %v16310_v3, %s22260_s22  ;;  %16306 = vrot.lane.b32.xlu0 %v16305_v56, %s22260_s22  ;;  %v8455_v3 = vmul.f32 %v18484_v7, %v19363_v30  ;;  %v8627_v56 = vmul.f32 %v19112_v53, %v18517_v33  ;;  %v8631_v7 = vmul.f32 %v19087_v21, %v18509_v24 }
 0xb72   : > { %v16345_v6 = vpack.i.bf16 %v8455_v3, %v8452_v61  ;;  %v16370_v59 = vpack.i.bf16 %v8631_v7, %v8633_v2  ;;  %v16380_v24 = vpack.i.bf16 %v8631_v7, %v8639_v1  ;;  %v8816_v3 = vmul.f32 %v19132_v27, %v18537_v16 }
 0xb73   : > { %v8642_v61 = vmul.f32 %v19350_v44, %v18517_v33  ;;  %v8819_v2 = vmul.f32 %v19166_v54, %v18537_v16 }
 0xb74   : > { %16321 = vrot.lane.b32.xlu1 %v16320_v28, %s22260_s22  ;;  %16316 = vrot.lane.b32.xlu0 %v22261_v19, %s22260_s22  ;;  %v16355_v28 = vpack.i.bf16 %v8628_v60, %v8627_v56  ;;  %v16360_v19 = vpack.i.bf16 %v8631_v7, %v8630_v48  ;;  %v8813_v56 = vmul.f32 %v19112_v53, %v18537_v16 }
 0xb75   : > { %v8814_v48 = vmul.f32 %v18527_v38, %v19337_v9  ;;  %v9008_v9 = vmul.f32 %v19198_v14, %v18553_v23 }
 0xb78   : > { %16326 = vrot.lane.b32.xlu1 %v22262_v52, %s22260_s22  ;;  %16331 = vrot.lane.b32.xlu0 %v22263_v29, %s22258_s25  ;;  %v8641_v52 = vmul.f32 %v19363_v30, %v18501_v20  ;;  %v8450_v29 = vmul.f32 %v19198_v14, %v18499_v15  ;;  %v19422_v15 = vpop.permute.xlu1 %16141  ;;  %s22268_s25 = smov 120  }
 0xb7a   : > { %v16395_v51 = vpack.i.bf16 %v8641_v52, %v8638_v34  ;;  %v8827_v52 = vmul.f32 %v18522_v58, %v19363_v30 }
 0xb7c   : > { %16341 = vrot.lane.b32.xlu1 %v16340_v50, %s22260_s22  ;;  %16336 = vrot.lane.b32.xlu0 %v16335_v4, %s22260_s22  ;;  %v22267_v50 = vpack.i.bf16 %v19264_v62, %v19260_v36  ;;  %v16385_v4 = vpack.i.bf16 %v8445_v18, %v8450_v29  ;;  %v8817_v36 = vmul.f32 %v19087_v21, %v18527_v38  ;;  %v19438_v60 = vpop.permute.xlu1 %16151 }
 0xb7d   : > { %v16390_v62 = vpack.i.bf16 %v8631_v7, %v8642_v61  ;;  %v8636_v18 = vmul.f32 %v19198_v14, %v18517_v33  ;;  %v8824_v29 = vmul.f32 %v18522_v58, %v19373_v10 }
 0xb7e   : > { %v16405_v20 = vpack.i.bf16 %v8817_v36, %v8816_v3  ;;  %v16420_v33 = vpack.i.bf16 %v8817_v36, %v8819_v2 }
 0xb7f   : > { %v16440_v34 = vpack.i.bf16 %v8827_v52, %v8824_v29 }
 0xb80   : > { %16351 = vrot.lane.b32.xlu1 %v22264_v17, %s22259_s11  ;;  %16346 = vrot.lane.b32.xlu0 %v16345_v6, %s22260_s22  ;;  %v19420_v6 = vpop.permute.xlu0 %16136  ;;  %v19448_v38 = vpop.permute.xlu1 %16161 }
 0xb84   : > { %16356 = vrot.lane.b32.xlu1 %v16355_v28, %s22265_s20  ;;  %16361 = vrot.lane.b32.xlu0 %v16360_v19, %s22265_s20  ;;  %v19436_v17 = vpop.permute.xlu0 %16146  ;;  %v16415_v28 = vpack.i.bf16 %v8631_v7, %v8636_v18  ;;  %v16400_v19 = vpack.i.bf16 %v8814_v48, %v8813_v56  ;;  %v22269_v7 = vpack.i.bf16 %v19281_v63, %v19277_v45  ;;  %v19468_v63 = vpop.permute.xlu1 %16171 }
 0xb85   : > { %v9011_v18 = vmul.f32 %v19352_v12, %v18553_v23 }
 0xb88   : > { %16366 = vrot.lane.b32.xlu1 %v22266_v43, %s22265_s20  ;;  %16371 = vrot.lane.b32.xlu0 %v16370_v59, %s22265_s20  ;;  %v8825_v59 = vmul.f32 %v19352_v12, %v18537_v16  ;;  %v19446_v1 = vpop.permute.xlu0 %16156  ;;  %v19482_v61 = vpop.permute.xlu1 %16181  ;;  %v9010_v12 = vmul.f32 %v19373_v10, %v18540_v25  ;;  %v10117_v25 = vmul.f32 %v19087_v21, %v17406_v39 }
 0xb8a   : > { %v16430_v43 = vpack.i.bf16 %v8817_v36, %v8825_v59  ;;  %v16490_v56 = vpack.i.bf16 %v9013_v37, %v9010_v12  ;;  %v16495_v10 = vpack.i.bf16 %v10117_v25, %v10117_v25 }
 0xb8c   : > { %16381 = vrot.lane.b32.xlu1 %v16380_v24, %s22265_s20  ;;  %16376 = vrot.lane.b32.xlu0 %v22267_v50, %s22265_s20  ;;  %v8828_v24 = vmul.f32 %v19350_v44, %v18537_v16  ;;  %v19466_v50 = vpop.permute.xlu0 %16166 }
 0xb8e   : > { %v16435_v45 = vpack.i.bf16 %v8817_v36, %v8828_v24 }
 0xb90   : > { %16396 = vrot.lane.b32.xlu1 %v16395_v51, %s22265_s20  ;;  %16386 = vrot.lane.b32.xlu0 %v16385_v4, %s22260_s22  ;;  %v8999_v51 = vmul.f32 %v19112_v53, %v18553_v23  ;;  %v8822_v4 = vmul.f32 %v19198_v14, %v18537_v16  ;;  %v19480_v3 = vpop.permute.xlu0 %16176  ;;  %v9003_v16 = vmul.f32 %v19087_v21, %v18545_v31 }
 0xb91   : > { %v9014_v14 = vmul.f32 %v19350_v44, %v18553_v23  ;;  %v7577_v44 = vld [vmem:[%s21916_s8] sm:$0xff] }
 0xb92   : > { %v16445_v58 = vpack.i.bf16 %v9000_v22, %v8999_v51  ;;  %v16450_v42 = vpack.i.bf16 %v8817_v36, %v8822_v4  ;;  %v9005_v36 = vmul.f32 %v19166_v54, %v18553_v23  ;;  %v16480_v54 = vpack.i.bf16 %v9003_v16, %v9011_v18 }
 0xb93   : > { %v16485_v48 = vpack.i.bf16 %v9003_v16, %v9014_v14  ;;  %v16139_v4 = vunpack.i.h.bf16 %v19420_v6  ;;  %v16138_v22 = vunpack.i.l.bf16 %v19420_v6 }
 0xb94   : > { %16406 = vrot.lane.b32.xlu1 %v16405_v20, %s22268_s25  ;;  %16391 = vrot.lane.b32.xlu0 %v16390_v62, %s22265_s20  ;;  %v19499_v20 = vpop.permute.xlu1 %16191  ;;  %v16475_v62 = vpack.i.bf16 %v9003_v16, %v9008_v9  ;;  %v16465_v31 = vpack.i.bf16 %v9003_v16, %v9005_v36 }
 0xb98   : > { %16416 = vrot.lane.b32.xlu1 %v16415_v28, %s22265_s20  ;;  %16401 = vrot.lane.b32.xlu0 %v16400_v19, %s22268_s25  ;;  %v19536_v28 = vld [vmem:[#allocation2 + $0xc0] sm:$0xff]  ;;  %v19538_v19 = vld [vmem:[#allocation2 + $0xb8] sm:$0xff] }
 0xb99   : > { %v10121_v39 = vmul.f32 %v19536_v28, %v17602_v11  ;;  %v10120_v59 = vmul.f32 %v19538_v19, %v17552_v35 }
 0xb9c   : > { %16421 = vrot.lane.b32.xlu1 %v16420_v33, %s22268_s25  ;;  %16411 = vrot.lane.b32.xlu0 %v22269_v7, %s22268_s25  ;;  %v19550_v7 = vld [vmem:[#allocation2 + $0xd0] sm:$0xff] }
 0xba0   : > { %16426 = vrot.lane.b32.xlu1 %v16425_v13, %s22268_s25  ;;  %16431 = vrot.lane.b32.xlu0 %v16430_v43, %s22268_s25  ;;  %v9002_v13 = vmul.f32 %v19132_v27, %v18553_v23  ;;  %v19497_v27 = vpop.permute.xlu0 %16186  ;;  %v7578_v23 = vld [vmem:[%s21916_s8 + $0x8] sm:$0xff] }
 0xba1   : > { %v19552_v43 = vld [vmem:[#allocation2 + $0xc8] sm:$0xff] }
 0xba2   : > { %v16455_v53 = vpack.i.bf16 %v9003_v16, %v9002_v13  ;;  %v10122_v51 = vmul.f32 %v19552_v43, %v17566_v41  ;;  %v19564_v13 = vld [vmem:[#allocation2 + $0xe0] sm:$0xff]  ;;  %v19566_v16 = vld [vmem:[#allocation2 + $0xd8] sm:$0xff] }
 0xba3   : > { %v10124_v37 = vmul.f32 %v19566_v16, %v17581_v49 }
 0xba4   : > { %16436 = vrot.lane.b32.xlu1 %v16435_v45, %s22268_s25  ;;  %16441 = vrot.lane.b32.xlu0 %v16440_v34, %s22268_s25  ;;  %v19509_v0 = vpop.permute.xlu0 %16196  ;;  %v10123_v34 = vmul.f32 %v19550_v7, %v17617_v47 }
 0xba8   : > { %16446 = vrot.lane.b32.xlu1 %v16445_v58, %s22270_s18  ;;  %16451 = vrot.lane.b32.xlu0 %v16450_v42, %s22268_s25  ;;  %v19528_v30 = vpop.permute.xlu0 %16206 }
 0xbac   : > { %16461 = vrot.lane.b32.xlu1 %v16460_v57, %s22270_s18  ;;  %16456 = vrot.lane.b32.xlu0 %v16455_v53, %s22270_s18  ;;  %v19511_v57 = vpop.permute.xlu1 %16201  ;;  %v10569_v53 = vmul.f32 %v19087_v21, %v17440_v55 }
 0xbb0   : > { %16476 = vrot.lane.b32.xlu1 %v16475_v62, %s22270_s18  ;;  %16466 = vrot.lane.b32.xlu0 %v16465_v31, %s22270_s18  ;;  %v19530_v8 = vpop.permute.xlu1 %16211 }
 0xbb4   : > { %16481 = vrot.lane.b32.xlu1 %v16480_v54, %s22270_s18  ;;  %16471 = vrot.lane.b32.xlu0 %v16470_v40, %s22270_s18  ;;  %v10125_v54 = vmul.f32 %v17422_v46, %v19564_v13 }
 0xbb8   : > { %16491 = vrot.lane.b32.xlu1 %v16490_v56, %s22270_s18  ;;  %16486 = vrot.lane.b32.xlu0 %v16485_v48, %s22270_s18  ;;  %v16500_v48 = vpack.i.bf16 %v10569_v53, %v10569_v53  ;;  %s22632_s18 = sld [smem:[#allocation106_spill]] }
 0xbbc   : > { %7586 = vperm.xlu1 %16044, %v7578_v23   ;;  %7581 = vperm.xlu0 %15983, %v7577_v44   ;;  %v16154_v23 = vunpack.i.h.bf16 %v19438_v60  ;;  %v16153_v44 = vunpack.i.l.bf16 %v19438_v60 }
 0xbbe   : > { %v19534_v5 = vpop.permute.xlu1 %16221  ;;  %v16217_v40 = vpop.permute.xlu0 %16216 }
 0xbbf   : > { %v16219_v24 = vunpack.i.h.bf16 %v16217_v40  ;;  %v16218_v52 = vunpack.i.l.bf16 %v16217_v40 }
 0xbc0   : > { %10190 = vrot.lane.b32.xlu1 %v10117_v25, %s22271_s28  ;;  %16496 = vrot.lane.b32.xlu0 %v16495_v10, %s22271_s28  ;;  %v10572_v10 = vmul.f32 %v19538_v19, %v17545_v32 }
 0xbc1   : > { %v7753_v9 = vsel %vm5200_vm9, %v16138_v22, %v16218_v52  ;;  %v7754_v62 = vsel %vm5200_vm9, %v16218_v52, %v16219_v24  ;;  %v10573_v52 = vmul.f32 %v19536_v28, %v17497_v26  ;;  %v16149_v22 = vunpack.i.h.bf16 %v19436_v17 }
 0xbc2   : > { %v19542_v2 = vpop.permute.xlu1 %16231  ;;  %v19544_v33 = vpop.permute.xlu0 %16226 }
 0xbc4   : > { %10198 = vrot.lane.b32.xlu1 %v10121_v39, %s22271_s28  ;;  %10196 = vrot.lane.b32.xlu0 %v10120_v59, %s22271_s28  ;;  %v16144_v39 = vunpack.i.h.bf16 %v19422_v15 }
 0xbc6   : > { %v19556_v29 = vpop.permute.xlu0 %16241  ;;  %v16237_v45 = vpop.permute.xlu1 %16236 }
 0xbc7   : > { %v16239_v58 = vunpack.i.h.bf16 %v16237_v45  ;;  %v16238_v42 = vunpack.i.l.bf16 %v16237_v45  ;;  %v22273_v45 = vld [vmem:[#allocation14_spill] sm:$0xff] }
 0xbc8   : > { %10202 = vrot.lane.b32.xlu1 %v10123_v34, %s22271_s28  ;;  %10200 = vrot.lane.b32.xlu0 %v10122_v51, %s22271_s28  ;;  %v10575_v60 = vmul.f32 %v19550_v7, %v22273_v45  ;;  %v22274_v34 = vld [vmem:[#allocation17_spill] sm:$0xff] }
 0xbc9   : > { %v7755_v36 = vsel %vm5200_vm9, %v16139_v4, %v16238_v42  ;;  %v7756_v6 = vsel %vm5200_vm9, %v16238_v42, %v16239_v58  ;;  %v10574_v51 = vmul.f32 %v19552_v43, %v22274_v34  ;;  %v16143_v4 = vunpack.i.l.bf16 %v19422_v15 }
 0xbca   : > { %v19576_v31 = vpop.permute.xlu0 %16251  ;;  %v19578_v18 = vpop.permute.xlu1 %16246  ;;  %v15053_v14 = vpack.c.bf16 %v7756_v6, %v7754_v62  ;;  %v15055_v55 = vpack.c.bf16 %v7755_v36, %v7753_v9  ;;  %v16159_v9 = vunpack.i.h.bf16 %v19446_v1  ;;  %v16158_v36 = vunpack.i.l.bf16 %v19446_v1 }
 0xbcb   : > { %v7764_v62 = vsel %vm5200_vm9, %v16153_v44, %v16154_v23 }
 0xbcc   : > { %10206 = vrot.lane.b32.xlu1 %v10125_v54, %s22271_s28  ;;  %10204 = vrot.lane.b32.xlu0 %v10124_v37, %s22271_s28 }
 0xbcd   : > { %15054 = vmatprep.subr.bf16.mxu1 %v15053_v14  ;;  %v16243_v14 = vunpack.i.l.bf16 %v19556_v29 }
 0xbce   : > { %15056 = vmatpush1.bf16.msra.mxu1 %v15055_v55  ;;  %v19586_v12 = vpop.permute.xlu0 %16261  ;;  %v16257_v56 = vpop.permute.xlu1 %16256 }
 0xbcf   : > { %v16259_v25 = vunpack.i.h.bf16 %v16257_v56  ;;  %v16258_v40 = vunpack.i.l.bf16 %v16257_v56 }
 0xbd0   : > { %10643 = vrot.lane.b32.xlu1 %v10569_v53, %s22272_s0  ;;  %16501 = vrot.lane.b32.xlu0 %v16500_v48, %s22272_s0  ;;  %v16148_v53 = vunpack.i.l.bf16 %v19436_v17  ;;  %v16244_v17 = vunpack.i.h.bf16 %v19556_v29  ;;  %v7763_v29 = vsel %vm5200_vm9, %v16159_v9, %v16153_v44  ;;  %v16264_v9 = vunpack.i.h.bf16 %v19586_v12 }
 0xbd1   : > { %v7757_v6 = vsel %vm5200_vm9, %v16143_v4, %v16258_v40  ;;  %v7758_v54 = vsel %vm5200_vm9, %v16258_v40, %v16259_v25 }
 0xbd2   : > { %v19595_v59 = vpop.permute.xlu1 %16266  ;;  %v16272_v24 = vpop.permute.xlu0 %16271  ;;  %v7762_v25 = vsel %vm5200_vm9, %v16148_v53, %v16149_v22  ;;  %v7761_v40 = vsel %vm5200_vm9, %v16158_v36, %v16148_v53  ;;  %v16164_v22 = vunpack.i.h.bf16 %v19448_v38  ;;  %v16263_v36 = vunpack.i.l.bf16 %v19586_v12 }
 0xbd3   : > { %v16274_v58 = vunpack.i.h.bf16 %v16272_v24  ;;  %v16273_v42 = vunpack.i.l.bf16 %v16272_v24  ;;  %v16224_v24 = vunpack.i.h.bf16 %v19534_v5  ;;  %v16178_v12 = vunpack.i.l.bf16 %v19480_v3 }
 0xbd4   : > { %10651 = vrot.lane.b32.xlu1 %v10573_v52, %s22272_s0  ;;  %10649 = vrot.lane.b32.xlu0 %v10572_v10, %s22272_s0  ;;  %v22275_v10 = vld [vmem:[#allocation10_spill] sm:$0xff]  ;;  %v15061_v52 = vpack.c.bf16 %v7764_v62, %v7762_v25  ;;  %v15063_v62 = vpack.c.bf16 %v7763_v29, %v7761_v40  ;;  %v16179_v25 = vunpack.i.h.bf16 %v19480_v3  ;;  %v16168_v3 = vunpack.i.l.bf16 %v19466_v50 }
 0xbd5   : > { %v7759_v15 = vsel %vm5200_vm9, %v16144_v39, %v16273_v42  ;;  %v7760_v37 = vsel %vm5200_vm9, %v16273_v42, %v16274_v58  ;;  %v11022_v23 = vmul.f32 %v19087_v21, %v22275_v10  ;;  %v16223_v39 = vunpack.i.l.bf16 %v19534_v5  ;;  %v22276_v42 = vld [vmem:[#allocation9_spill] sm:$0xff]  ;;  %v22277_v5 = vld [vmem:[#allocation18_spill] sm:$0xff] }
 0xbd6   : > { %v19617_v55 = vpop.permute.xlu1 %16286  ;;  %v19619_v1 = vpop.permute.xlu0 %16276  ;;  %v15057_v56 = vpack.c.bf16 %v7760_v37, %v7758_v54  ;;  %v15059_v48 = vpack.c.bf16 %v7759_v15, %v7757_v6  ;;  %v10577_v6 = vmul.f32 %v22276_v42, %v19564_v13  ;;  %v16163_v37 = vunpack.i.l.bf16 %v19448_v38  ;;  %v7697_v38 = vld [vmem:[%s21915_s7] sm:$0xff] }
 0xbd7   : > { %v16505_v53 = vpack.i.bf16 %v11022_v23, %v11022_v23  ;;  %v7940_v54 = vsel %vm5090_vm5, %v16223_v39, %v16224_v24  ;;  %v16173_v10 = vunpack.i.l.bf16 %v19468_v63 }
 0xbd8   : > { %10655 = vrot.lane.b32.xlu1 %v10575_v60, %s22272_s0  ;;  %10653 = vrot.lane.b32.xlu0 %v10574_v51, %s22272_s0  ;;  %v10576_v60 = vmul.f32 %v19566_v16, %v22277_v5  ;;  %v7942_v51 = vsel %vm5090_vm5, %v16243_v14, %v16244_v17  ;;  %v16174_v17 = vunpack.i.h.bf16 %v19468_v63  ;;  %v7939_v29 = vsel %vm5090_vm5, %v16163_v37, %v16223_v39  ;;  %v22278_v63 = vld [vmem:[#allocation21_spill] sm:$0xff] }
 0xbd9   : > { %15058 = vmatprep.subr.bf16.mxu1 %v15057_v56  ;;  %v7941_v56 = vsel %vm5090_vm5, %v16164_v22, %v16243_v14  ;;  %v16169_v14 = vunpack.i.h.bf16 %v19466_v50  ;;  %v11025_v40 = vmul.f32 %v19538_v19, %v22278_v63  ;;  %v16183_v39 = vunpack.i.l.bf16 %v19482_v61 }
 0xbda   : > { %15060 = vmatpush1.bf16.msra.mxu1 %v15059_v48  ;;  %v16297_v4 = vpop.permute.xlu1 %16296  ;;  %v19630_v58 = vpop.permute.xlu0 %16281  ;;  %v15065_v48 = vpack.c.bf16 %v7942_v51, %v7940_v54  ;;  %v22280_v51 = vld [vmem:[#allocation23_spill] sm:$0xff]  ;;  %v16249_v50 = vunpack.i.h.bf16 %v19578_v18  ;;  %v7948_v37 = vsel %vm5090_vm5, %v16173_v10, %v16174_v17 }
 0xbdb   : > { %v16299_v15 = vunpack.i.h.bf16 %v16297_v4  ;;  %v16298_v44 = vunpack.i.l.bf16 %v16297_v4  ;;  %15062 = vmatprep.subr.bf16.mxu1 %v15061_v52  ;;  %v11026_v22 = vmul.f32 %v19536_v28, %v22280_v51 }
 0xbdc   : > { %10659 = vrot.lane.b32.xlu1 %v10577_v6, %s22272_s0  ;;  %10657 = vrot.lane.b32.xlu0 %v10576_v60, %s22272_s0  ;;  %v15067_v6 = vpack.c.bf16 %v7941_v56, %v7939_v29  ;;  %v7944_v60 = vsel %vm5090_vm5, %v16263_v36, %v16264_v9  ;;  %v7950_v56 = vsel %vm5090_vm5, %v16178_v12, %v16179_v25 }
 0xbdd   : > { %v7946_v24 = vsel %vm5090_vm5, %v16298_v44, %v16299_v15  ;;  %v16184_v15 = vunpack.i.h.bf16 %v19482_v61  ;;  %v7698_v61 = vld [vmem:[%s21915_s7 + $0x8] sm:$0xff]  ;;  %v7947_v25 = vsel %vm5090_vm5, %v16183_v39, %v16173_v10  ;;  %v15073_v29 = vpack.c.bf16 %v7950_v56, %v7948_v37 }
 0xbde   : > { %15064 = vmatpush1.bf16.msra.mxu1 %v15063_v62  ;;  %v19649_v52 = vpop.permute.xlu1 %16301  ;;  %v19651_v4 = vpop.permute.xlu0 %16291  ;;  %v7945_v62 = vsel %vm5090_vm5, %v16169_v14, %v16298_v44  ;;  %v15069_v54 = vpack.c.bf16 %v7946_v24, %v7944_v60  ;;  %v7943_v44 = vsel %vm5090_vm5, %v16168_v3, %v16263_v36  ;;  %v16228_v24 = vunpack.i.l.bf16 %v19544_v33  ;;  %v22283_v60 = vld [vmem:[#allocation22_spill] sm:$0xff] }
 0xbdf   : > { %15066 = vmatprep.subr.bf16.mxu1 %v15065_v48  ;;  %v22281_v48 = vld [vmem:[#allocation24_spill] sm:$0xff]  ;;  %v15071_v17 = vpack.c.bf16 %v7945_v62, %v7943_v44  ;;  %v7949_v14 = vsel %vm5090_vm5, %v16184_v15, %v16178_v12  ;;  %v16189_v10 = vunpack.i.h.bf16 %v19497_v27  ;;  %v16188_v12 = vunpack.i.l.bf16 %v19497_v27  ;;  %v22284_v15 = vld [vmem:[#allocation25_spill] sm:$0xff] }
 0xbe0   : > { %11096 = vrot.lane.b32.xlu1 %v11022_v23, %s22279_s27  ;;  %16506 = vrot.lane.b32.xlu0 %v16505_v53, %s22279_s27  ;;  %v16248_v23 = vunpack.i.l.bf16 %v19578_v18  ;;  %v19686_v18 = vmul.f32 %v19087_v21, %v22281_v48  ;;  %v11029_v39 = vmul.f32 %v19566_v16, %v22284_v15  ;;  %v16269_v37 = vunpack.i.h.bf16 %v19595_v59  ;;  %v9236_v15 = vld [vmem:[#allocation5 + $0x180] sm:$0xff] }
 0xbe1   : > { %14434 = vmatmul.mubr.msk.f32.vlgmr.msra.gmra.mrb[26].mxu1 %vm7589_vm10, %v7697_v38  ;;  %v16229_v38 = vunpack.i.h.bf16 %v19544_v33  ;;  %v16268_v16 = vunpack.i.l.bf16 %v19595_v59  ;;  %v16193_v44 = vunpack.i.l.bf16 %v19499_v20  ;;  %v16198_v59 = vunpack.i.l.bf16 %v19509_v0 }
 0xbe2   : > { %15068 = vmatpush1.bf16.msra.mxu1 %v15067_v6  ;;  %v19673_v53 = vpop.permute.xlu1 %16311  ;;  %v19675_v9 = vpop.permute.xlu0 %16306  ;;  %7853 = vmatprep.mubr.f32.mxu1 %v19087_v21  ;;  %v22282_v6 = vld [vmem:[#allocation26_spill] sm:$0xff]  ;;  %v16510_v62 = vpack.i.bf16 %v19686_v18, %v19686_v18  ;;  %v8127_v27 = vsel %vm5435_vm7, %v16189_v10, %v16248_v23 }
 0xbe3   : > { %15070 = vmatprep.subr.bf16.mxu1 %v15069_v54  ;;  %v11028_v33 = vmul.f32 %v19550_v7, %v22282_v6  ;;  %v16204_v7 = vunpack.i.h.bf16 %v19511_v57  ;;  %v16203_v54 = vunpack.i.l.bf16 %v19511_v57  ;;  %v16199_v57 = vunpack.i.h.bf16 %v19509_v0  ;;  %v9244_v6 = vld [vmem:[#allocation5 + $0x1c0] sm:$0xff] }
 0xbe4   : > { %11104 = vrot.lane.b32.xlu1 %v11026_v22, %s22279_s27  ;;  %11102 = vrot.lane.b32.xlu0 %v11025_v40, %s22279_s27  ;;  %v11027_v22 = vmul.f32 %v19552_v43, %v22283_v60  ;;  %v8128_v40 = vsel %vm5435_vm7, %v16248_v23, %v16249_v50  ;;  %v15075_v43 = vpack.c.bf16 %v7949_v14, %v7947_v25  ;;  %v22285_v25 = vld [vmem:[#allocation12_spill] sm:$0xff]  ;;  %v14436_v23 = vld [vmem:[%s21915_s7 + $0x10] sm:$0xff] }
 0xbe5   : > { %14435 = vmatmul.mubr.msk.f32.gmra.mrb[28].mxu1 %vm7589_vm10, %v7698_v61  ;;  %v8126_v50 = vsel %vm5435_vm7, %v16228_v24, %v16229_v38  ;;  %v16194_v61 = vunpack.i.h.bf16 %v19499_v20  ;;  %v11030_v38 = vmul.f32 %v22285_v25, %v19564_v13  ;;  %v8125_v14 = vsel %vm5435_vm7, %v16188_v12, %v16228_v24  ;;  %v9220_v25 = vld [vmem:[#allocation5 + $0x100] sm:$0xff] }
 0xbe6   : > { %15072 = vmatpush1.bf16.msra.mxu1 %v15071_v17  ;;  %v19695_v36 = vpop.permute.xlu1 %16321  ;;  %v19697_v3 = vpop.permute.xlu0 %16316  ;;  %8033 = vmatprep.mubr.f32.mxu1 %v19087_v21  ;;  %v15077_v56 = vpack.c.bf16 %v8128_v40, %v8126_v50  ;;  %v16209_v20 = vunpack.i.h.bf16 %v19528_v30  ;;  %v15079_v13 = vpack.c.bf16 %v8127_v27, %v8125_v14  ;;  %v8136_v40 = vsel %vm5435_vm7, %v16203_v54, %v16204_v7 }
 0xbe7   : > { %15074 = vmatprep.subr.bf16.mxu1 %v15073_v29  ;;  %v8129_v10 = vsel %vm5435_vm7, %v16193_v44, %v16268_v16  ;;  %v8130_v24 = vsel %vm5435_vm7, %v16268_v16, %v16269_v37  ;;  %v19751_v37 = vld [vmem:[#allocation2 + $0xa8] sm:$0xff]  ;;  %v8134_v16 = vsel %vm5435_vm7, %v16198_v59, %v16199_v57  ;;  %v16234_v44 = vunpack.i.h.bf16 %v19542_v2 }
 0xbe8   : > { %11108 = vrot.lane.b32.xlu1 %v11028_v33, %s22279_s27  ;;  %11106 = vrot.lane.b32.xlu0 %v11027_v22, %s22279_s27  ;;  %v16208_v22 = vunpack.i.l.bf16 %v19528_v30  ;;  %v16253_v30 = vunpack.i.l.bf16 %v19576_v31 }
 0xbea   : > { %15076 = vmatpush1.bf16.msra.mxu1 %v15075_v43  ;;  %v19722_v48 = vpop.permute.xlu1 %16326  ;;  %v16332_v17 = vpop.permute.xlu0 %16331  ;;  %v16254_v43 = vunpack.i.h.bf16 %v19576_v31  ;;  %v8133_v31 = vsel %vm5435_vm7, %v16208_v22, %v16198_v59  ;;  %v22287_v59 = vld [vmem:[#allocation30_spill] sm:$0xff] }
 0xbeb   : > { %v16334_v29 = vunpack.i.h.bf16 %v16332_v17  ;;  %v16333_v33 = vunpack.i.l.bf16 %v16332_v17  ;;  %15078 = vmatprep.subr.bf16.mxu1 %v15077_v56  ;;  %v14437_v56 = vld [vmem:[%s21915_s7 + $0x18] sm:$0xff]  ;;  %v16233_v17 = vunpack.i.l.bf16 %v19542_v2  ;;  %v11479_v14 = vmul.f32 %v19536_v28, %v22287_v59  ;;  %v22288_v2 = vld [vmem:[#allocation29_spill] sm:$0xff] }
 0xbec   : > { %11112 = vrot.lane.b32.xlu1 %v11030_v38, %s22279_s27  ;;  %11110 = vrot.lane.b32.xlu0 %v11029_v39, %s22279_s27  ;;  %v22286_v38 = vld [vmem:[#allocation13_spill] sm:$0xff]  ;;  %v16279_v28 = vunpack.i.h.bf16 %v19619_v1 }
 0xbed   : > { %v8131_v0 = vsel %vm5435_vm7, %v16194_v61, %v16333_v33  ;;  %14438 = vmatmul.mubr.msk.f32.vlgmr.msra.gmra.mrb[26].mxu1 %vm7589_vm10, %v14436_v23  ;;  %v8132_v12 = vsel %vm5435_vm7, %v16333_v33, %v16334_v29  ;;  %v8135_v61 = vsel %vm5435_vm7, %v16209_v20, %v16203_v54  ;;  %v10118_v57 = vmul.f32 %v19751_v37, %v22286_v38  ;;  %v19773_v33 = vld [vmem:[#allocation2 + $0x110] sm:$0xff] }
 0xbee   : > { %15080 = vmatpush1.bf16.msra.mxu1 %v15079_v13  ;;  %v19743_v50 = vpop.permute.xlu1 %16341  ;;  %v19745_v39 = vpop.permute.xlu0 %16336  ;;  %v15081_v7 = vpack.c.bf16 %v8132_v12, %v8130_v24  ;;  %v15083_v27 = vpack.c.bf16 %v8131_v0, %v8129_v10  ;;  %8039 = vmatprep.mubr.f32.mxu1 %v19087_v21  ;;  %v15085_v21 = vpack.c.bf16 %v8136_v40, %v8134_v16  ;;  %v16214_v20 = vunpack.i.h.bf16 %v19530_v8 }
 0xbef   : > { %v11478_v29 = vmul.f32 %v19538_v19, %v22288_v2  ;;  %v15087_v40 = vpack.c.bf16 %v8135_v61, %v8133_v31  ;;  %v16213_v10 = vunpack.i.l.bf16 %v19530_v8  ;;  %v16278_v19 = vunpack.i.l.bf16 %v19619_v1 }
 0xbf0   : > { %11549 = vrot.lane.b32.xlu1 %v19686_v18, %s22259_s11  ;;  %16511 = vrot.lane.b32.xlu0 %v16510_v62, %s22259_s11  ;;  %v8314_v18 = vsel %vm2485_vm14, %v16253_v30, %v16254_v43  ;;  %v19771_v62 = vld [vmem:[#allocation2 + $0xb0] sm:$0xff]  ;;  %v8312_v0 = vsel %vm2485_vm14, %v16233_v17, %v16234_v44  ;;  %v8313_v24 = vsel %vm2485_vm14, %v16214_v20, %v16253_v30  ;;  %v22289_v43 = vld [vmem:[#allocation16_spill] sm:$0xff]  ;;  %v16294_v16 = vunpack.i.h.bf16 %v19651_v4  ;;  %v14440_v30 = vld [vmem:[%s21915_s7 + $0x20] sm:$0xff] }
 0xbf1   : > { %15082 = vmatprep.subr.bf16.mxu1 %v15081_v7  ;;  %14439 = vmatmul.mubr.msk.f32.gmra.mrb[28].mxu1 %vm7589_vm10, %v14437_v56  ;;  %v15089_v12 = vpack.c.bf16 %v8314_v18, %v8312_v0  ;;  %v10119_v7 = vmul.f32 %v19771_v62, %v22289_v43  ;;  %v8311_v8 = vsel %vm2485_vm14, %v16213_v10, %v16233_v17  ;;  %v16293_v1 = vunpack.i.l.bf16 %v19651_v4 }
 0xbf2   : > { %15084 = vmatpush1.bf16.msra.mxu1 %v15083_v27  ;;  %v16352_v54 = vpop.permute.xlu1 %16351  ;;  %v19764_v23 = vpop.permute.xlu0 %16346  ;;  %8219 = vmatprep.mubr.f32.mxu1 %v19773_v33  ;;  %v22290_v27 = vld [vmem:[#allocation11_spill] sm:$0xff]  ;;  %v16284_v17 = vunpack.i.h.bf16 %v19630_v58  ;;  %v16304_v4 = vunpack.i.h.bf16 %v19649_v52  ;;  %v15091_v18 = vpack.c.bf16 %v8313_v24, %v8311_v8  ;;  %v8316_v20 = vsel %vm2485_vm14, %v16278_v19, %v16279_v28 }
 0xbf3   : > { %v16354_v22 = vunpack.i.h.bf16 %v16352_v54  ;;  %v16353_v13 = vunpack.i.l.bf16 %v16352_v54  ;;  %15086 = vmatprep.subr.bf16.mxu1 %v15085_v21  ;;  %v10570_v56 = vmul.f32 %v19751_v37, %v22290_v27  ;;  %v16289_v21 = vunpack.i.h.bf16 %v19617_v55  ;;  %v22291_v24 = vld [vmem:[#allocation15_spill] sm:$0xff] }
 0xbf4   : > { %11557 = vrot.lane.b32.xlu1 %v11479_v14, %s22259_s11  ;;  %11555 = vrot.lane.b32.xlu0 %v11478_v29, %s22259_s11  ;;  %v16288_v54 = vunpack.i.l.bf16 %v19617_v55  ;;  %v16283_v14 = vunpack.i.l.bf16 %v19630_v58  ;;  %v16303_v29 = vunpack.i.l.bf16 %v19649_v52  ;;  %v16308_v55 = vunpack.i.l.bf16 %v19675_v9 }
 0xbf5   : > { %v8318_v44 = vsel %vm2485_vm14, %v16353_v13, %v16354_v22  ;;  %v16309_v22 = vunpack.i.h.bf16 %v19675_v9  ;;  %v16314_v10 = vunpack.i.h.bf16 %v19673_v53  ;;  %v16313_v52 = vunpack.i.l.bf16 %v19673_v53  ;;  %v14441_v9 = vld [vmem:[%s21915_s7 + $0x28] sm:$0xff] }
 0xbf6   : > { %15088 = vmatpush1.bf16.msra.mxu1 %v15087_v40  ;;  %v19791_v61 = vpop.permute.xlu1 %16356  ;;  %v19793_v31 = vpop.permute.xlu0 %16361  ;;  %v8317_v40 = vsel %vm2485_vm14, %v16284_v17, %v16353_v13  ;;  %v15093_v58 = vpack.c.bf16 %v8318_v44, %v8316_v20  ;;  %v10571_v28 = vmul.f32 %v19771_v62, %v22291_v24  ;;  %v8315_v13 = vsel %vm2485_vm14, %v16283_v14, %v16278_v19  ;;  %v22293_v14 = vld [vmem:[#allocation20_spill] sm:$0xff] }
 0xbf7   : > { %15090 = vmatprep.subr.bf16.mxu1 %v15089_v12  ;;  %v8322_v12 = vsel %vm2485_vm14, %v16293_v1, %v16294_v16  ;;  %v16319_v53 = vunpack.i.h.bf16 %v19697_v3  ;;  %v8320_v8 = vsel %vm2485_vm14, %v16288_v54, %v16289_v21  ;;  %v8321_v44 = vsel %vm2485_vm14, %v16304_v4, %v16293_v1 }
 0xbf8   : > { %10192 = vrot.lane.b32.xlu1 %v10118_v57, %s22271_s28  ;;  %10194 = vrot.lane.b32.xlu0 %v10119_v7, %s22271_s28  ;;  %v16318_v7 = vunpack.i.l.bf16 %v19697_v3  ;;  %v15095_v16 = vpack.c.bf16 %v8317_v40, %v8315_v13  ;;  %v15097_v17 = vpack.c.bf16 %v8322_v12, %v8320_v8  ;;  %v11024_v20 = vmul.f32 %v19771_v62, %v22293_v14  ;;  %v22294_v13 = vld [vmem:[#allocation27_spill] sm:$0xff] }
 0xbf9   : > { %14442 = vmatmul.mubr.msk.f32.vlgmr.msra.gmra.mrb[26].mxu1 %vm7589_vm10, %v14440_v30  ;;  %v8319_v30 = vsel %vm2485_vm14, %v16303_v29, %v16288_v54  ;;  %v8516_v3 = vsel %vm2430_vm13, %v16308_v55, %v16309_v22  ;;  %v16324_v21 = vunpack.i.h.bf16 %v19695_v36  ;;  %v16323_v1 = vunpack.i.l.bf16 %v19695_v36 }
 0xbfa   : > { %15092 = vmatpush1.bf16.msra.mxu1 %v15091_v18  ;;  %v19814_v57 = vpop.permute.xlu1 %16366  ;;  %v19816_v0 = vpop.permute.xlu0 %16371  ;;  %8225 = vmatprep.mubr.f32.mxu1 %v19773_v33  ;;  %v22292_v18 = vld [vmem:[#allocation19_spill] sm:$0xff]  ;;  %v8518_v29 = vsel %vm2430_vm13, %v16313_v52, %v16314_v10  ;;  %v8517_v40 = vsel %vm2430_vm13, %v16319_v53, %v16313_v52  ;;  %v15099_v22 = vpack.c.bf16 %v8321_v44, %v8319_v30  ;;  %v16343_v36 = vunpack.i.l.bf16 %v19743_v50  ;;  %v22295_v53 = vld [vmem:[#allocation28_spill] sm:$0xff] }
 0xbfb   : > { %15094 = vmatprep.subr.bf16.mxu1 %v15093_v58  ;;  %v11023_v19 = vmul.f32 %v19751_v37, %v22292_v18  ;;  %v8515_v58 = vsel %vm2430_vm13, %v16318_v7, %v16308_v55  ;;  %v16339_v12 = vunpack.i.h.bf16 %v19745_v39  ;;  %v15101_v10 = vpack.c.bf16 %v8518_v29, %v8516_v3 }
 0xbfc   : > { %10645 = vrot.lane.b32.xlu1 %v10570_v56, %s22272_s0  ;;  %10647 = vrot.lane.b32.xlu0 %v10571_v28, %s22272_s0  ;;  %v16328_v56 = vunpack.i.l.bf16 %v19722_v48  ;;  %v16344_v28 = vunpack.i.h.bf16 %v19743_v50  ;;  %v11476_v52 = vmul.f32 %v19751_v37, %v22294_v13  ;;  %v11477_v55 = vmul.f32 %v19771_v62, %v22295_v53 }
 0xbfd   : > { %14443 = vmatmul.mubr.msk.f32.gmra.mrb[28].mxu1 %vm7589_vm10, %v14441_v9  ;;  %v16338_v9 = vunpack.i.l.bf16 %v19745_v39  ;;  %v16329_v7 = vunpack.i.h.bf16 %v19722_v48  ;;  %v14444_v39 = vld [vmem:[%s21915_s7 + $0x30] sm:$0xff]  ;;  %v15103_v44 = vpack.c.bf16 %v8517_v40, %v8515_v58  ;;  %v16349_v37 = vunpack.i.h.bf16 %v19764_v23  ;;  %v9189_v48 = vld [vmem:[#allocation5 + $0x8] sm:$0xff]  ;;  %v9196_v40 = vld [vmem:[#allocation5 + $0x40] sm:$0xff] }
 0xbfe   : > { %15096 = vmatpush1.bf16.msra.mxu1 %v15095_v16  ;;  %v19842_v54 = vpop.permute.xlu1 %16381  ;;  %v19844_v4 = vpop.permute.xlu0 %16376  ;;  %8405 = vmatprep.mubr.f32.mxu1 %v19773_v33  ;;  %v8519_v8 = vsel %vm2430_vm13, %v16328_v56, %v16323_v1  ;;  %v8520_v16 = vsel %vm2430_vm13, %v16323_v1, %v16324_v21  ;;  %v16359_v3 = vunpack.i.h.bf16 %v19791_v61  ;;  %v8526_v29 = vsel %vm2430_vm13, %v16343_v36, %v16344_v28  ;;  %v9188_v1 = vld [vmem:[#allocation5] sm:$0xff] }
 0xbff   : > { %15098 = vmatprep.subr.bf16.mxu1 %v15097_v17  ;;  %v16348_v17 = vunpack.i.l.bf16 %v19764_v23  ;;  %v8524_v56 = vsel %vm2430_vm13, %v16338_v9, %v16339_v12  ;;  %v16358_v23 = vunpack.i.l.bf16 %v19791_v61  ;;  %v16364_v58 = vunpack.i.h.bf16 %v19793_v31  ;;  %v14445_v61 = vld [vmem:[%s21915_s7 + $0x38] sm:$0xff] }
 0xc00   : > { %11098 = vrot.lane.b32.xlu1 %v11023_v19, %s22279_s27  ;;  %11100 = vrot.lane.b32.xlu0 %v11024_v20, %s22279_s27  ;;  %v9197_v20 = vld [vmem:[#allocation5 + $0x48] sm:$0xff] }
 0xc01   : > { %v15149_v21 = vpack.c.bf16 %v9197_v20, %v9189_v48 }
 0xc02   : > { %15100 = vmatpush1.bf16.msra.mxu1 %v15099_v22  ;;  %v19862_v50 = vpop.permute.xlu1 %16396  ;;  %v16387_v30 = vpop.permute.xlu0 %16386 }
 0xc03   : > { %v16389_v62 = vunpack.i.h.bf16 %v16387_v30  ;;  %v16388_v19 = vunpack.i.l.bf16 %v16387_v30  ;;  %15102 = vmatprep.subr.bf16.mxu1 %v15101_v10  ;;  %15150 = vmatprep.subr.bf16.mxu0 %v15149_v21  ;;  %v8702_v21 = vsel %vm5415_vm6, %v16358_v23, %v16359_v3 }
 0xc04   : > { %11551 = vrot.lane.b32.xlu1 %v11476_v52, %s22259_s11  ;;  %11553 = vrot.lane.b32.xlu0 %v11477_v55, %s22259_s11  ;;  %v9205_v52 = vld [vmem:[#allocation5 + $0x88] sm:$0xff]  ;;  %v16363_v55 = vunpack.i.l.bf16 %v19793_v31  ;;  %v9204_v31 = vld [vmem:[#allocation5 + $0x80] sm:$0xff] }
 0xc05   : > { %v8521_v22 = vsel %vm2430_vm13, %v16329_v7, %v16388_v19  ;;  %14446 = vmatmul.mubr.msk.f32.vlgmr.msra.gmra.mrb[26].mxu1 %vm7589_vm10, %v14444_v39  ;;  %v8522_v10 = vsel %vm2430_vm13, %v16388_v19, %v16389_v62  ;;  %v15151_v7 = vpack.c.bf16 %v9196_v40, %v9188_v1  ;;  %v9213_v39 = vld [vmem:[#allocation5 + $0xc8] sm:$0xff]  ;;  %v8525_v62 = vsel %vm2430_vm13, %v16349_v37, %v16343_v36 }
 0xc06   : > { %15104 = vmatpush1.bf16.msra.mxu1 %v15103_v44  ;;  %v19881_v12 = vpop.permute.xlu1 %16406  ;;  %v19883_v28 = vpop.permute.xlu0 %16391  ;;  %v15105_v30 = vpack.c.bf16 %v8522_v10, %v8520_v16  ;;  %v15107_v48 = vpack.c.bf16 %v8521_v22, %v8519_v8  ;;  %8411 = vmatprep.mubr.f32.mxu1 %v19773_v33  ;;  %v8523_v19 = vsel %vm2430_vm13, %v16348_v17, %v16338_v9  ;;  %v9212_v44 = vld [vmem:[#allocation5 + $0xc0] sm:$0xff]  ;;  %v16369_v8 = vunpack.i.h.bf16 %v19814_v57  ;;  %v9221_v1 = vld [vmem:[#allocation5 + $0x108] sm:$0xff] }
 0xc07   : > { %15152 = vmatpush1.bf16.msra.mxu0 %v15151_v7  ;;  %v15153_v20 = vpack.c.bf16 %v9213_v39, %v9205_v52  ;;  %v16368_v16 = vunpack.i.l.bf16 %v19814_v57  ;;  %v15109_v22 = vpack.c.bf16 %v8526_v29, %v8524_v56  ;;  %v15155_v10 = vpack.c.bf16 %v9212_v44, %v9204_v31  ;;  %v9229_v40 = vld [vmem:[#allocation5 + $0x148] sm:$0xff]  ;;  %v9228_v57 = vld [vmem:[#allocation5 + $0x140] sm:$0xff] }
 0xc08   : > { %15106 = vmatprep.subr.bf16.mxu1 %v15105_v30  ;;  %v16374_v36 = vunpack.i.h.bf16 %v19816_v0  ;;  %v15111_v17 = vpack.c.bf16 %v8525_v62, %v8523_v19  ;;  %v8704_v52 = vsel %vm5415_vm6, %v16363_v55, %v16364_v58  ;;  %v16373_v56 = vunpack.i.l.bf16 %v19816_v0  ;;  %v9245_v7 = vld [vmem:[#allocation5 + $0x1c8] sm:$0xff] }
 0xc09   : > { %14447 = vmatmul.mubr.msk.f32.gmra.mrb[28].mxu1 %vm7589_vm10, %v14445_v61  ;;  %v16384_v29 = vunpack.i.h.bf16 %v19842_v54  ;;  %15154 = vmatprep.subr.bf16.mxu0 %v15153_v20  ;;  %v16378_v62 = vunpack.i.l.bf16 %v19844_v4  ;;  %v15157_v3 = vpack.c.bf16 %v9229_v40, %v9221_v1  ;;  %v15159_v58 = vpack.c.bf16 %v9228_v57, %v9220_v25  ;;  %v14448_v25 = vld [vmem:[%s21915_s7 + $0x50] sm:$0xff] }
 0xc0a   : > { %15108 = vmatpush1.bf16.msra.mxu1 %v15107_v48  ;;  %v16417_v9 = vpop.permute.xlu1 %16416  ;;  %v19895_v37 = vpop.permute.xlu0 %16401  ;;  %8609 = vmatprep.mubr.f32.mxu1 %v19773_v33  ;;  %v9237_v48 = vld [vmem:[#allocation5 + $0x188] sm:$0xff]  ;;  %v8701_v19 = vsel %vm5415_vm6, %v16368_v16, %v16358_v23  ;;  %v8703_v31 = vsel %vm5415_vm6, %v16369_v8, %v16363_v55  ;;  %v15113_v0 = vpack.c.bf16 %v8704_v52, %v8702_v21  ;;  %v16393_v20 = vunpack.i.l.bf16 %v19883_v28 }
 0xc0b   : > { %v16419_v30 = vunpack.i.h.bf16 %v16417_v9  ;;  %v16418_v61 = vunpack.i.l.bf16 %v16417_v9  ;;  %15110 = vmatprep.subr.bf16.mxu1 %v15109_v22  ;;  %15156 = vmatpush1.bf16.msra.mxu0 %v15155_v10  ;;  %v15161_v44 = vpack.c.bf16 %v9245_v7, %v9237_v48  ;;  %v16394_v22 = vunpack.i.h.bf16 %v19883_v28  ;;  %v9253_v55 = vld [vmem:[#allocation5 + $0x208] sm:$0xff]  ;;  %v9260_v48 = vld [vmem:[#allocation5 + $0x240] sm:$0xff] }
 0xc0c   : > { %15158 = vmatprep.subr.bf16.mxu0 %v15157_v3  ;;  %v9261_v8 = vld [vmem:[#allocation5 + $0x248] sm:$0xff]  ;;  %v16379_v16 = vunpack.i.h.bf16 %v19844_v4  ;;  %v8706_v10 = vsel %vm5415_vm6, %v16373_v56, %v16374_v36  ;;  %v8705_v28 = vsel %vm5415_vm6, %v16378_v62, %v16373_v56  ;;  %v15115_v1 = vpack.c.bf16 %v8703_v31, %v8701_v19  ;;  %v9252_v4 = vld [vmem:[#allocation5 + $0x200] sm:$0xff] }
 0xc0d   : > { %v8708_v23 = vsel %vm5415_vm6, %v16418_v61, %v16419_v30  ;;  %v22296_v40 = vunpack.i.l.bf16 %v19842_v54  ;;  %v15163_v21 = vpack.c.bf16 %v9244_v6, %v9236_v15  ;;  %v15165_v30 = vpack.c.bf16 %v9261_v8, %v9253_v55  ;;  %v14449_v15 = vld [vmem:[%s21915_s7 + $0x58] sm:$0xff]  ;;  %v9277_v3 = vld [vmem:[#allocation5 + $0x2c8] sm:$0xff]  ;;  %v9284_v54 = vld [vmem:[#allocation5 + $0x300] sm:$0xff] }
 0xc0e   : > { %15112 = vmatpush1.bf16.msra.mxu1 %v15111_v17  ;;  %v19908_v9 = vpop.permute.xlu1 %16421  ;;  %v16412_v39 = vpop.permute.xlu0 %16411  ;;  %v8707_v52 = vsel %vm5415_vm6, %v16379_v16, %v16418_v61  ;;  %v15117_v57 = vpack.c.bf16 %v8708_v23, %v8706_v10  ;;  %v16399_v36 = vunpack.i.h.bf16 %v19862_v50  ;;  %v16404_v56 = vunpack.i.h.bf16 %v19895_v37  ;;  %v9269_v61 = vld [vmem:[#allocation5 + $0x288] sm:$0xff]  ;;  %v9268_v16 = vld [vmem:[#allocation5 + $0x280] sm:$0xff] }
 0xc0f   : > { %15114 = vmatprep.subr.bf16.mxu1 %v15113_v0  ;;  %v8710_v17 = vsel %vm5415_vm6, %v22296_v40, %v16384_v29  ;;  %15160 = vmatpush1.bf16.msra.mxu0 %v15159_v58  ;;  %v16403_v7 = vunpack.i.l.bf16 %v19895_v37  ;;  %v8712_v6 = vsel %vm5415_vm6, %v16393_v20, %v16394_v22  ;;  %v16398_v58 = vunpack.i.l.bf16 %v19862_v50  ;;  %v9276_v10 = vld [vmem:[#allocation5 + $0x2c0] sm:$0xff] }
 0xc10   : > { %15162 = vmatprep.subr.bf16.mxu0 %v15161_v44  ;;  %v16409_v19 = vunpack.i.h.bf16 %v19881_v12  ;;  %v16414_v37 = vunpack.i.h.bf16 %v16412_v39  ;;  %v16413_v31 = vunpack.i.l.bf16 %v16412_v39  ;;  %v16408_v0 = vunpack.i.l.bf16 %v19881_v12 }
 0xc11   : > { %14450 = vmatmul.mubr.msk.f32.vlgmr.msra.gmra.mrb[26].mxu1 %vm7589_vm10, %v14448_v25  ;;  %v8711_v44 = vsel %vm5415_vm6, %v16399_v36, %v16393_v20  ;;  %v15119_v22 = vpack.c.bf16 %v8707_v52, %v8705_v28  ;;  %v15167_v25 = vpack.c.bf16 %v9260_v48, %v9252_v4  ;;  %v16424_v23 = vunpack.i.h.bf16 %v19908_v9  ;;  %v9285_v28 = vld [vmem:[#allocation5 + $0x308] sm:$0xff] }
 0xc12   : > { %15116 = vmatpush1.bf16.msra.mxu1 %v15115_v1  ;;  %v19925_v62 = vpop.permute.xlu1 %16426  ;;  %v19927_v29 = vpop.permute.xlu0 %16431  ;;  %8615 = vmatprep.mubr.f32.mxu1 %v19773_v33  ;;  %v16423_v55 = vunpack.i.l.bf16 %v19908_v9  ;;  %v15121_v8 = vpack.c.bf16 %v8712_v6, %v8710_v17  ;;  %v15169_v50 = vpack.c.bf16 %v9277_v3, %v9269_v61  ;;  %v8888_v20 = vsel %vm5298_vm4, %v16403_v7, %v16404_v56  ;;  %v9293_v1 = vld [vmem:[#allocation5 + $0x348] sm:$0xff]  ;;  %v9292_v6 = vld [vmem:[#allocation5 + $0x340] sm:$0xff] }
 0xc13   : > { %15118 = vmatprep.subr.bf16.mxu1 %v15117_v57  ;;  %15164 = vmatpush1.bf16.msra.mxu0 %v15163_v21  ;;  %v22297_v9 = vmov %v22296_v40  ;;  %v8889_v17 = vsel %vm5298_vm4, %v16414_v37, %v16408_v0  ;;  %v8887_v21 = vsel %vm5298_vm4, %v16413_v31, %v16403_v7  ;;  %v16428_v52 = vunpack.i.l.bf16 %v19925_v62  ;;  %v9301_v31 = vld [vmem:[#allocation5 + $0x388] sm:$0xff] }
 0xc14   : > { %15166 = vmatprep.subr.bf16.mxu0 %v15165_v30  ;;  %v8709_v40 = vsel %vm5415_vm6, %v16398_v58, %v22297_v9  ;;  %v8890_v30 = vsel %vm5298_vm4, %v16408_v0, %v16409_v19  ;;  %v15171_v4 = vpack.c.bf16 %v9276_v10, %v9268_v16  ;;  %v8892_v36 = vsel %vm5298_vm4, %v16423_v55, %v16424_v23  ;;  %v14452_v19 = vld [vmem:[%s21915_s7 + $0x60] sm:$0xff]  ;;  %v9309_v0 = vld [vmem:[#allocation5 + $0x3c8] sm:$0xff] }
 0xc15   : > { %14451 = vmatmul.mubr.msk.f32.gmra.mrb[28].mxu1 %vm7589_vm10, %v14449_v15  ;;  %v15123_v57 = vpack.c.bf16 %v8711_v44, %v8709_v40  ;;  %v15125_v48 = vpack.c.bf16 %v8890_v30, %v8888_v20  ;;  %v15173_v56 = vpack.c.bf16 %v9293_v1, %v9285_v28  ;;  %v16429_v15 = vunpack.i.h.bf16 %v19925_v62  ;;  %v9300_v10 = vld [vmem:[#allocation5 + $0x380] sm:$0xff] }
 0xc16   : > { %15120 = vmatpush1.bf16.msra.mxu1 %v15119_v22  ;;  %v19941_v39 = vpop.permute.xlu1 %16436  ;;  %v19943_v12 = vpop.permute.xlu0 %16441  ;;  %8795 = vmatprep.mubr.f32.mxu1 %v19773_v33  ;;  %v15127_v37 = vpack.c.bf16 %v8889_v17, %v8887_v21  ;;  %v16434_v44 = vunpack.i.h.bf16 %v19927_v29  ;;  %v16433_v22 = vunpack.i.l.bf16 %v19927_v29  ;;  %v8891_v23 = vsel %vm5298_vm4, %v16428_v52, %v16423_v55  ;;  %v9317_v21 = vld [vmem:[#allocation5 + $0x408] sm:$0xff] }
 0xc17   : > { %15122 = vmatprep.subr.bf16.mxu1 %v15121_v8  ;;  %15168 = vmatpush1.bf16.msra.mxu0 %v15167_v25  ;;  %v16439_v61 = vunpack.i.h.bf16 %v19941_v39  ;;  %v16438_v7 = vunpack.i.l.bf16 %v19941_v39  ;;  %v16444_v8 = vunpack.i.h.bf16 %v19943_v12  ;;  %v15175_v16 = vpack.c.bf16 %v9292_v6, %v9284_v54  ;;  %v9308_v39 = vld [vmem:[#allocation5 + $0x3c0] sm:$0xff]  ;;  %v9325_v52 = vld [vmem:[#allocation5 + $0x448] sm:$0xff] }
 0xc18   : > { %15170 = vmatprep.subr.bf16.mxu0 %v15169_v50  ;;  %v16443_v50 = vunpack.i.l.bf16 %v19943_v12  ;;  %v15177_v29 = vpack.c.bf16 %v9309_v0, %v9301_v31  ;;  %v14453_v12 = vld [vmem:[%s21915_s7 + $0x68] sm:$0xff]  ;;  %v9324_v31 = vld [vmem:[#allocation5 + $0x440] sm:$0xff] }
 0xc19   : > { %v8898_v17 = vsel %vm5298_vm4, %v16438_v7, %v16439_v61 }
 0xc1a   : > { %15124 = vmatpush1.bf16.msra.mxu1 %v15123_v57  ;;  %v19958_v3 = vpop.permute.xlu1 %16446  ;;  %v16452_v58 = vpop.permute.xlu0 %16451 }
 0xc1b   : > { %v16454_v62 = vunpack.i.h.bf16 %v16452_v58  ;;  %v16453_v25 = vunpack.i.l.bf16 %v16452_v58  ;;  %15126 = vmatprep.subr.bf16.mxu1 %v15125_v48  ;;  %15172 = vmatpush1.bf16.msra.mxu0 %v15171_v4  ;;  %v8896_v4 = vsel %vm5298_vm4, %v16433_v22, %v16434_v44  ;;  %v15179_v48 = vpack.c.bf16 %v9308_v39, %v9300_v10  ;;  %v9332_v39 = vld [vmem:[#allocation5 + $0x480] sm:$0xff] }
 0xc1c   : > { %15174 = vmatprep.subr.bf16.mxu0 %v15173_v56  ;;  %v8897_v56 = vsel %vm5298_vm4, %v16444_v8, %v16438_v7  ;;  %v16449_v54 = vunpack.i.h.bf16 %v19958_v3  ;;  %v16448_v6 = vunpack.i.l.bf16 %v19958_v3  ;;  %v15133_v58 = vpack.c.bf16 %v8898_v17, %v8896_v4  ;;  %v9341_v3 = vld [vmem:[#allocation5 + $0x4c8] sm:$0xff] }
 0xc1d   : > { %v8893_v20 = vsel %vm5298_vm4, %v16429_v15, %v16453_v25  ;;  %14454 = vmatmul.mubr.msk.f32.vlgmr.msra.gmra.mrb[26].mxu1 %vm7589_vm10, %v14452_v19  ;;  %v8894_v28 = vsel %vm5298_vm4, %v16453_v25, %v16454_v62  ;;  %v15181_v19 = vpack.c.bf16 %v9325_v52, %v9317_v21  ;;  %v14456_v21 = vld [vmem:[%s21915_s7 + $0x70] sm:$0xff] }
 0xc1e   : > { %15128 = vmatpush1.bf16.msra.mxu1 %v15127_v37  ;;  %v16462_v1 = vpop.permute.xlu1 %16461  ;;  %v16457_v9 = vpop.permute.xlu0 %16456  ;;  %v15129_v55 = vpack.c.bf16 %v8894_v28, %v8892_v36  ;;  %v15131_v40 = vpack.c.bf16 %v8893_v20, %v8891_v23  ;;  %8801 = vmatprep.mubr.f32.mxu1 %v19773_v33  ;;  %v8895_v36 = vsel %vm5298_vm4, %v16443_v50, %v16433_v22  ;;  %v9316_v37 = vld [vmem:[#allocation5 + $0x400] sm:$0xff]  ;;  %v9333_v22 = vld [vmem:[#allocation5 + $0x488] sm:$0xff] }
 0xc1f   : > { %v16459_v57 = vunpack.i.h.bf16 %v16457_v9  ;;  %v16458_v30 = vunpack.i.l.bf16 %v16457_v9  ;;  %15176 = vmatpush1.bf16.msra.mxu0 %v15175_v16  ;;  %v16464_v15 = vunpack.i.h.bf16 %v16462_v1  ;;  %v16463_v61 = vunpack.i.l.bf16 %v16462_v1  ;;  %v9340_v20 = vld [vmem:[#allocation5 + $0x4c0] sm:$0xff] }
 0xc20   : > { %15130 = vmatprep.subr.bf16.mxu1 %v15129_v55  ;;  %15178 = vmatprep.subr.bf16.mxu0 %v15177_v29  ;;  %v15135_v50 = vpack.c.bf16 %v8897_v56, %v8895_v36  ;;  %v9074_v16 = vsel %vm5181_vm3, %v16448_v6, %v16449_v54  ;;  %v15183_v10 = vpack.c.bf16 %v9324_v31, %v9316_v37  ;;  %v9349_v55 = vld [vmem:[#allocation5 + $0x508] sm:$0xff]  ;;  %v9356_v37 = vld [vmem:[#allocation5 + $0x540] sm:$0xff] }
 0xc21   : > { %14455 = vmatmul.mubr.msk.f32.gmra.mrb[28].mxu1 %vm7589_vm10, %v14453_v12  ;;  %v9076_v44 = vsel %vm5181_vm3, %v16458_v30, %v16459_v57  ;;  %v9073_v28 = vsel %vm5181_vm3, %v16463_v61, %v16448_v6  ;;  %v9075_v29 = vsel %vm5181_vm3, %v16464_v15, %v16458_v30  ;;  %v15185_v9 = vpack.c.bf16 %v9341_v3, %v9333_v22  ;;  %v9348_v15 = vld [vmem:[#allocation5 + $0x500] sm:$0xff]  ;;  %v9365_v31 = vld [vmem:[#allocation5 + $0x588] sm:$0xff]  ;;  %v14457_v3 = vld [vmem:[%s21915_s7 + $0x78] sm:$0xff] }
 0xc22   : > { %15132 = vmatpush1.bf16.msra.mxu1 %v15131_v40  ;;  %v16477_v0 = vpop.permute.xlu1 %16476  ;;  %v16467_v7 = vpop.permute.xlu0 %16466  ;;  %8981 = vmatprep.mubr.f32.mxu1 %v19773_v33  ;;  %v15137_v1 = vpack.c.bf16 %v9076_v44, %v9074_v16  ;;  %v9357_v40 = vld [vmem:[#allocation5 + $0x548] sm:$0xff]  ;;  %v15187_v30 = vpack.c.bf16 %v9340_v20, %v9332_v39  ;;  %v15139_v54 = vpack.c.bf16 %v9075_v29, %v9073_v28  ;;  %v9191_v16 = vld [vmem:[#allocation5 + $0x18] sm:$0xff] }
 0xc23   : > { %v16479_v62 = vunpack.i.h.bf16 %v16477_v0  ;;  %v16478_v25 = vunpack.i.l.bf16 %v16477_v0  ;;  %v16469_v23 = vunpack.i.h.bf16 %v16467_v7  ;;  %v16468_v8 = vunpack.i.l.bf16 %v16467_v7  ;;  %15134 = vmatprep.subr.bf16.mxu1 %v15133_v58  ;;  %15180 = vmatpush1.bf16.msra.mxu0 %v15179_v48  ;;  %v9373_v0 = vld [vmem:[#allocation5 + $0x5c8] sm:$0xff] }
 0xc24   : > { %15182 = vmatprep.subr.bf16.mxu0 %v15181_v19  ;;  %v15189_v6 = vpack.c.bf16 %v9357_v40, %v9349_v55  ;;  %v15191_v39 = vpack.c.bf16 %v9356_v37, %v9348_v15  ;;  %v15193_v20 = vpack.c.bf16 %v9373_v0, %v9365_v31  ;;  %v9372_v55 = vld [vmem:[#allocation5 + $0x5c0] sm:$0xff]  ;;  %v9206_v31 = vld [vmem:[#allocation5 + $0x90] sm:$0xff] }
 0xc25   : > { %v9078_v52 = vsel %vm5181_vm3, %v16468_v8, %v16469_v23  ;;  %v9080_v57 = vsel %vm5181_vm3, %v16478_v25, %v16479_v62  ;;  %v14460_v15 = vld [vmem:[%s21915_s7 + $0x80] sm:$0xff]  ;;  %v9214_v0 = vld [vmem:[#allocation5 + $0xd0] sm:$0xff] }
 0xc26   : > { %15136 = vmatpush1.bf16.msra.mxu1 %v15135_v50  ;;  %v16482_v17 = vpop.permute.xlu1 %16481  ;;  %v16472_v12 = vpop.permute.xlu0 %16471  ;;  %v15141_v19 = vpack.c.bf16 %v9080_v57, %v9078_v52  ;;  %v9190_v57 = vld [vmem:[#allocation5 + $0x10] sm:$0xff] }
 0xc27   : > { %v16474_v4 = vunpack.i.h.bf16 %v16472_v12  ;;  %v16473_v48 = vunpack.i.l.bf16 %v16472_v12  ;;  %15138 = vmatprep.subr.bf16.mxu1 %v15137_v1  ;;  %v16484_v56 = vunpack.i.h.bf16 %v16482_v17  ;;  %v16483_v36 = vunpack.i.l.bf16 %v16482_v17  ;;  %15184 = vmatpush1.bf16.msra.mxu0 %v15183_v10  ;;  %v9199_v10 = vld [vmem:[#allocation5 + $0x58] sm:$0xff]  ;;  %v9381_v12 = vld [vmem:[#allocation5 + $0x608] sm:$0xff] }
 0xc28   : > { %15186 = vmatprep.subr.bf16.mxu0 %v15185_v9  ;;  %v9364_v9 = vld [vmem:[#allocation5 + $0x580] sm:$0xff]  ;;  %v15213_v52 = vpack.c.bf16 %v9199_v10, %v9191_v16  ;;  %v9421_v16 = vld [vmem:[#allocation5 + $0x748] sm:$0xff] }
 0xc29   : > { %v9079_v61 = vsel %vm5181_vm3, %v16474_v4, %v16478_v25  ;;  %v9077_v58 = vsel %vm5181_vm3, %v16473_v48, %v16468_v8  ;;  %14458 = vmatmul.mubr.msk.f32.vlgmr.msra.gmra.mrb[26].mxu1 %vm7589_vm10, %v14456_v21  ;;  %v9082_v50 = vsel %vm5181_vm3, %v16483_v36, %v16484_v56  ;;  %v9389_v21 = vld [vmem:[#allocation5 + $0x648] sm:$0xff]  ;;  %v9198_v4 = vld [vmem:[#allocation5 + $0x50] sm:$0xff]  ;;  %v9207_v48 = vld [vmem:[#allocation5 + $0x98] sm:$0xff]  ;;  %v15195_v56 = vpack.c.bf16 %v9372_v55, %v9364_v9 }
 0xc2a   : > { %15140 = vmatpush1.bf16.msra.mxu1 %v15139_v54  ;;  %v16492_v7 = vpop.permute.xlu1 %16491  ;;  %v16487_v44 = vpop.permute.xlu0 %16486  ;;  %v15143_v22 = vpack.c.bf16 %v9079_v61, %v9077_v58  ;;  %8987 = vmatprep.mubr.f32.mxu1 %v19773_v33  ;;  %v9380_v54 = vld [vmem:[#allocation5 + $0x600] sm:$0xff]  ;;  %v15215_v61 = vpack.c.bf16 %v9198_v4, %v9190_v57  ;;  %v9397_v58 = vld [vmem:[#allocation5 + $0x688] sm:$0xff]  ;;  %v9263_v57 = vld [vmem:[#allocation5 + $0x258] sm:$0xff] }
 0xc2b   : > { %v16494_v62 = vunpack.i.h.bf16 %v16492_v7  ;;  %v16493_v25 = vunpack.i.l.bf16 %v16492_v7  ;;  %v16489_v23 = vunpack.i.h.bf16 %v16487_v44  ;;  %v16488_v8 = vunpack.i.l.bf16 %v16487_v44  ;;  %15142 = vmatprep.subr.bf16.mxu1 %v15141_v19  ;;  %15188 = vmatpush1.bf16.msra.mxu0 %v15187_v30  ;;  %v9215_v30 = vld [vmem:[#allocation5 + $0xd8] sm:$0xff]  ;;  %v9405_v19 = vld [vmem:[#allocation5 + $0x6c8] sm:$0xff]  ;;  %v9412_v9 = vld [vmem:[#allocation5 + $0x700] sm:$0xff] }
 0xc2c   : > { %15190 = vmatprep.subr.bf16.mxu0 %v15189_v6  ;;  %v9388_v6 = vld [vmem:[#allocation5 + $0x640] sm:$0xff]  ;;  %v15217_v37 = vpack.c.bf16 %v9215_v30, %v9207_v48  ;;  %v9223_v7 = vld [vmem:[#allocation5 + $0x118] sm:$0xff] }
 0xc2d   : > { %v9081_v28 = vsel %vm5181_vm3, %v16493_v25, %v16483_v36  ;;  %v9083_v29 = vsel %vm5181_vm3, %v16494_v62, %v16488_v8  ;;  %14459 = vmatmul.mubr.msk.f32.gmra.mrb[28].mxu1 %vm7589_vm10, %v14457_v3  ;;  %v9084_v1 = vsel %vm5181_vm3, %v16488_v8, %v16489_v23  ;;  %v15197_v36 = vpack.c.bf16 %v9389_v21, %v9381_v12  ;;  %v9231_v44 = vld [vmem:[#allocation5 + $0x158] sm:$0xff]  ;;  %v9396_v62 = vld [vmem:[#allocation5 + $0x680] sm:$0xff]  ;;  %v14461_v23 = vld [vmem:[%s21915_s7 + $0x88] sm:$0xff] }
 0xc2e   : > { %15144 = vmatpush1.bf16.msra.mxu1 %v15143_v22  ;;  %v15145_v40 = vpack.c.bf16 %v9084_v1, %v9082_v50  ;;  %v15147_v17 = vpack.c.bf16 %v9083_v29, %v9081_v28  ;;  %9167 = vmatprep.mubr.f32.mxu1 %v19773_v33  ;;  %v15199_v22 = vpack.c.bf16 %v9388_v6, %v9380_v54  ;;  %v9404_v25 = vld [vmem:[#allocation5 + $0x6c0] sm:$0xff]  ;;  %v9413_v50 = vld [vmem:[#allocation5 + $0x708] sm:$0xff]  ;;  %v9239_v28 = vld [vmem:[#allocation5 + $0x198] sm:$0xff]  ;;  %vm9808_vm3 = vcmask 195584  }
 0xc2f   : > { %15192 = vmatpush1.bf16.msra.mxu0 %v15191_v39  ;;  %v15201_v3 = vpack.c.bf16 %v9405_v19, %v9397_v58  ;;  %v15219_v8 = vpack.c.bf16 %v9214_v0, %v9206_v31  ;;  %v15221_v10 = vpack.c.bf16 %v9231_v44, %v9223_v7  ;;  %v9222_v39 = vld [vmem:[#allocation5 + $0x110] sm:$0xff]  ;;  %v9247_v29 = vld [vmem:[#allocation5 + $0x1d8] sm:$0xff]  ;;  %v15203_v1 = vpack.c.bf16 %v9404_v25, %v9396_v62  ;;  %v9420_v55 = vld [vmem:[#allocation5 + $0x740] sm:$0xff] }
 0xc30   : > { %15146 = vmatprep.subr.bf16.mxu1 %v15145_v40  ;;  %15194 = vmatprep.subr.bf16.mxu0 %v15193_v20  ;;  %v9230_v20 = vld [vmem:[#allocation5 + $0x150] sm:$0xff]  ;;  %v15207_v4 = vpack.c.bf16 %v9420_v55, %v9412_v9  ;;  %v9271_v54 = vld [vmem:[#allocation5 + $0x298] sm:$0xff] }
 0xc31   : > { %v15223_v40 = vpack.c.bf16 %v9230_v20, %v9222_v39  ;;  %v9238_v12 = vld [vmem:[#allocation5 + $0x190] sm:$0xff]  ;;  %v9279_v6 = vld [vmem:[#allocation5 + $0x2d8] sm:$0xff] }
 0xc32   : > { %15148 = vmatpush1.bf16.msra.mxu1 %v15147_v17  ;;  %v15225_v17 = vpack.c.bf16 %v9247_v29, %v9239_v28  ;;  %v9246_v21 = vld [vmem:[#allocation5 + $0x1d0] sm:$0xff]  ;;  %v9295_v31 = vld [vmem:[#allocation5 + $0x358] sm:$0xff] }
 0xc33   : > { %15214 = vmatprep.subr.bf16.mxu1 %v15213_v52  ;;  %15196 = vmatpush1.bf16.msra.mxu0 %v15195_v56  ;;  %v9255_v52 = vld [vmem:[#allocation5 + $0x218] sm:$0xff]  ;;  %v15227_v48 = vpack.c.bf16 %v9246_v21, %v9238_v12  ;;  %v9254_v56 = vld [vmem:[#allocation5 + $0x210] sm:$0xff] }
 0xc34   : > { %15198 = vmatprep.subr.bf16.mxu0 %v15197_v36  ;;  %v15229_v30 = vpack.c.bf16 %v9263_v57, %v9255_v52  ;;  %v9262_v36 = vld [vmem:[#allocation5 + $0x250] sm:$0xff]  ;;  %v9311_v62 = vld [vmem:[#allocation5 + $0x3d8] sm:$0xff] }
 0xc35   : > { %14462 = vmatmul.mubr.msk.f32.vlgmr.msra.gmra.mrb[26].mxu1 %vm7589_vm10, %v14460_v15  ;;  %v15231_v15 = vpack.c.bf16 %v9262_v36, %v9254_v56  ;;  %v9270_v58 = vld [vmem:[#allocation5 + $0x290] sm:$0xff]  ;;  %v9351_v12 = vld [vmem:[#allocation5 + $0x518] sm:$0xff] }
 0xc36   : > { %9173 = vmatprep.mubr.f32.mxu1 %v19773_v33  ;;  %15216 = vmatpush1.bf16.msra.mxu1 %v15215_v61  ;;  %v15205_v33 = vpack.c.bf16 %v9421_v16, %v9413_v50  ;;  %v15233_v61 = vpack.c.bf16 %v9279_v6, %v9271_v54  ;;  %v9278_v19 = vld [vmem:[#allocation5 + $0x2d0] sm:$0xff]  ;;  %v9319_v16 = vld [vmem:[#allocation5 + $0x418] sm:$0xff] }
 0xc37   : > { %15218 = vmatprep.subr.bf16.mxu1 %v15217_v37  ;;  %15200 = vmatpush1.bf16.msra.mxu0 %v15199_v22  ;;  %v9287_v37 = vld [vmem:[#allocation5 + $0x318] sm:$0xff]  ;;  %v15235_v0 = vpack.c.bf16 %v9278_v19, %v9270_v58  ;;  %v9286_v44 = vld [vmem:[#allocation5 + $0x310] sm:$0xff] }
 0xc38   : > { %15202 = vmatprep.subr.bf16.mxu0 %v15201_v3  ;;  %v15237_v7 = vpack.c.bf16 %v9295_v31, %v9287_v37  ;;  %v9294_v22 = vld [vmem:[#allocation5 + $0x350] sm:$0xff]  ;;  %v9303_v3 = vld [vmem:[#allocation5 + $0x398] sm:$0xff] }
 0xc39   : > { %14463 = vmatmul.mubr.msk.f32.gmra.mrb[28].mxu1 %vm7589_vm10, %v14461_v23  ;;  %v15239_v25 = vpack.c.bf16 %v9294_v22, %v9286_v44  ;;  %v15241_v23 = vpack.c.bf16 %v9311_v62, %v9303_v3  ;;  %v9310_v50 = vld [vmem:[#allocation5 + $0x3d0] sm:$0xff]  ;;  %v9359_v21 = vld [vmem:[#allocation5 + $0x558] sm:$0xff] }
 0xc3a   : > { %15220 = vmatpush1.bf16.msra.mxu1 %v15219_v8  ;;  %v9302_v8 = vld [vmem:[#allocation5 + $0x390] sm:$0xff]  ;;  %v15253_v57 = vpack.c.bf16 %v9359_v21, %v9351_v12  ;;  %v9375_v56 = vld [vmem:[#allocation5 + $0x5d8] sm:$0xff] }
 0xc3b   : > { %15222 = vmatprep.subr.bf16.mxu1 %v15221_v10  ;;  %15204 = vmatpush1.bf16.msra.mxu0 %v15203_v1  ;;  %v9327_v10 = vld [vmem:[#allocation5 + $0x458] sm:$0xff]  ;;  %v15243_v39 = vpack.c.bf16 %v9310_v50, %v9302_v8  ;;  %v9318_v28 = vld [vmem:[#allocation5 + $0x410] sm:$0xff] }
 0xc3c   : > { %15206 = vmatprep.subr.bf16.mxu0 %v15205_v33  ;;  %v15245_v20 = vpack.c.bf16 %v9327_v10, %v9319_v16  ;;  %v9326_v29 = vld [vmem:[#allocation5 + $0x450] sm:$0xff]  ;;  %v9335_v1 = vld [vmem:[#allocation5 + $0x498] sm:$0xff] }
 0xc3d   : > { %v9343_v33 = vld [vmem:[#allocation5 + $0x4d8] sm:$0xff]  ;;  %v15247_v9 = vpack.c.bf16 %v9326_v29, %v9318_v28  ;;  %v9366_v6 = vld [vmem:[#allocation5 + $0x590] sm:$0xff]  ;;  %v9429_v28 = vld [vmem:[#allocation5 + $0x788] sm:$0xff] }
 0xc3e   : > { %15224 = vmatpush1.bf16.msra.mxu1 %v15223_v40  ;;  %v15249_v55 = vpack.c.bf16 %v9343_v33, %v9335_v1  ;;  %v9334_v40 = vld [vmem:[#allocation5 + $0x490] sm:$0xff]  ;;  %v9391_v58 = vld [vmem:[#allocation5 + $0x658] sm:$0xff]  ;;  %v9437_v29 = vld [vmem:[#allocation5 + $0x7c8] sm:$0xff] }
 0xc3f   : > { %15226 = vmatprep.subr.bf16.mxu1 %v15225_v17  ;;  %15208 = vmatpush1.bf16.msra.mxu0 %v15207_v4  ;;  %v9342_v17 = vld [vmem:[#allocation5 + $0x4d0] sm:$0xff]  ;;  %v9407_v44 = vld [vmem:[#allocation5 + $0x6d8] sm:$0xff]  ;;  %v15209_v33 = vpack.c.bf16 %v9437_v29, %v9429_v28 }
 0xc40   : > { %v15251_v52 = vpack.c.bf16 %v9342_v17, %v9334_v40  ;;  %v9350_v4 = vld [vmem:[#allocation5 + $0x510] sm:$0xff]  ;;  %v9423_v8 = vld [vmem:[#allocation5 + $0x758] sm:$0xff]  ;;  %v9436_v40 = vld [vmem:[#allocation5 + $0x7c0] sm:$0xff] }
 0xc41   : > { %v9382_v31 = vld [vmem:[#allocation5 + $0x610] sm:$0xff]  ;;  %v9431_v1 = vld [vmem:[#allocation5 + $0x798] sm:$0xff]  ;;  %15210 = vmatprep.subr.bf16.mxu0 %v15209_v33  ;;  %v9216_v33 = vld [vmem:[#allocation5 + $0xe0] sm:$0xff] }
 0xc42   : > { %15228 = vmatpush1.bf16.msra.mxu1 %v15227_v48  ;;  %v9358_v48 = vld [vmem:[#allocation5 + $0x550] sm:$0xff] }
 0xc43   : > { %15230 = vmatprep.subr.bf16.mxu1 %v15229_v30  ;;  %v9367_v30 = vld [vmem:[#allocation5 + $0x598] sm:$0xff]  ;;  %v15255_v36 = vpack.c.bf16 %v9358_v48, %v9350_v4  ;;  %v9398_v62 = vld [vmem:[#allocation5 + $0x690] sm:$0xff]  ;;  %v9193_v4 = vld [vmem:[#allocation5 + $0x28] sm:$0xff] }
 0xc44   : > { %v15257_v54 = vpack.c.bf16 %v9375_v56, %v9367_v30  ;;  %v9414_v10 = vld [vmem:[#allocation5 + $0x710] sm:$0xff]  ;;  %v9201_v48 = vld [vmem:[#allocation5 + $0x68] sm:$0xff]  ;;  %v9195_v30 = vld [vmem:[#allocation5 + $0x38] sm:$0xff] }
 0xc45   : > { %v9430_v21 = vld [vmem:[#allocation5 + $0x790] sm:$0xff]  ;;  %v15277_v56 = vpack.c.bf16 %v9201_v48, %v9193_v4 }
 0xc46   : > { %15232 = vmatpush1.bf16.msra.mxu1 %v15231_v15  ;;  %v9374_v15 = vld [vmem:[#allocation5 + $0x5d0] sm:$0xff] }
 0xc47   : > { %15234 = vmatprep.subr.bf16.mxu1 %v15233_v61  ;;  %v9383_v61 = vld [vmem:[#allocation5 + $0x618] sm:$0xff]  ;;  %v15259_v19 = vpack.c.bf16 %v9374_v15, %v9366_v6  ;;  %v7582_v6 = vpop.permute.xlu0 %7581 }
 0xc48   : > { %v15261_v37 = vpack.c.bf16 %v9391_v58, %v9383_v61  ;;  %v9192_v61 = vld [vmem:[#allocation5 + $0x20] sm:$0xff] }
 0xc49   : > { %v9200_v58 = vld [vmem:[#allocation5 + $0x60] sm:$0xff] }
 0xc4a   : > { %15236 = vmatpush1.bf16.msra.mxu1 %v15235_v0  ;;  %v9390_v0 = vld [vmem:[#allocation5 + $0x650] sm:$0xff] }
 0xc4b   : > { %15238 = vmatprep.subr.bf16.mxu1 %v15237_v7  ;;  %v9399_v7 = vld [vmem:[#allocation5 + $0x698] sm:$0xff]  ;;  %v15263_v22 = vpack.c.bf16 %v9390_v0, %v9382_v31  ;;  %v9194_v31 = vld [vmem:[#allocation5 + $0x30] sm:$0xff] }
 0xc4c   : > { %v15265_v3 = vpack.c.bf16 %v9407_v44, %v9399_v7  ;;  %v9202_v0 = vld [vmem:[#allocation5 + $0x70] sm:$0xff]  ;;  %v9209_v7 = vld [vmem:[#allocation5 + $0xa8] sm:$0xff] }
 0xc4e   : > { %15240 = vmatpush1.bf16.msra.mxu1 %v15239_v25  ;;  %v9406_v25 = vld [vmem:[#allocation5 + $0x6d0] sm:$0xff] }
 0xc4f   : > { %15242 = vmatprep.subr.bf16.mxu1 %v15241_v23  ;;  %v9415_v23 = vld [vmem:[#allocation5 + $0x718] sm:$0xff]  ;;  %v15267_v50 = vpack.c.bf16 %v9406_v25, %v9398_v62  ;;  %v7587_v25 = vpop.permute.xlu1 %7586 }
 0xc50   : > { %v15269_v16 = vpack.c.bf16 %v9423_v8, %v9415_v23  ;;  %v9219_v62 = vld [vmem:[#allocation5 + $0xf8] sm:$0xff] }
 0xc52   : > { %15244 = vmatpush1.bf16.msra.mxu1 %v15243_v39  ;;  %v9422_v39 = vld [vmem:[#allocation5 + $0x750] sm:$0xff] }
 0xc53   : > { %15246 = vmatprep.subr.bf16.mxu1 %v15245_v20  ;;  %v15271_v20 = vpack.c.bf16 %v9422_v39, %v9414_v10  ;;  %v9208_v10 = vld [vmem:[#allocation5 + $0xa0] sm:$0xff] }
 0xc54   : > { %v15283_v4 = vpack.c.bf16 %v9216_v33, %v9208_v10  ;;  %v9259_v10 = vld [vmem:[#allocation5 + $0x238] sm:$0xff]  ;;  %v9264_v33 = vld [vmem:[#allocation5 + $0x260] sm:$0xff] }
 0xc56   : > { %15248 = vmatpush1.bf16.msra.mxu1 %v15247_v9  ;;  %v9439_v9 = vld [vmem:[#allocation5 + $0x7d8] sm:$0xff] }
 0xc57   : > { %15250 = vmatprep.subr.bf16.mxu1 %v15249_v55  ;;  %v9428_v55 = vld [vmem:[#allocation5 + $0x780] sm:$0xff]  ;;  %v15273_v17 = vpack.c.bf16 %v9439_v9, %v9431_v1  ;;  %v9210_v9 = vld [vmem:[#allocation5 + $0xb0] sm:$0xff] }
 0xc58   : > { %v15211_v12 = vpack.c.bf16 %v9436_v40, %v9428_v55  ;;  %v9218_v55 = vld [vmem:[#allocation5 + $0xf0] sm:$0xff] }
 0xc59   : > { %v15347_v48 = vpack.c.bf16 %v9218_v55, %v9210_v9  ;;  %v9258_v55 = vld [vmem:[#allocation5 + $0x230] sm:$0xff] }
 0xc5a   : > { %15252 = vmatpush1.bf16.msra.mxu1 %v15251_v52  ;;  %v9438_v52 = vld [vmem:[#allocation5 + $0x7d0] sm:$0xff]  ;;  %15212 = vmatpush1.bf16.msra.mxu0 %v15211_v12  ;;  %v9233_v12 = vld [vmem:[#allocation5 + $0x168] sm:$0xff] }
 0xc5b   : > { %15254 = vmatprep.subr.bf16.mxu1 %v15253_v57  ;;  %v15275_v57 = vpack.c.bf16 %v9438_v52, %v9430_v21  ;;  %15278 = vmatprep.subr.bf16.mxu0 %v15277_v56  ;;  %v9227_v21 = vld [vmem:[#allocation5 + $0x138] sm:$0xff]  ;;  %v9232_v56 = vld [vmem:[#allocation5 + $0x160] sm:$0xff] }
 0xc5c   : > { %v9235_v52 = vld [vmem:[#allocation5 + $0x178] sm:$0xff] }
 0xc5e   : > { %15256 = vmatpush1.bf16.msra.mxu1 %v15255_v36  ;;  %v9203_v36 = vld [vmem:[#allocation5 + $0x78] sm:$0xff] }
 0xc5f   : > { %15258 = vmatprep.subr.bf16.mxu1 %v15257_v54  ;;  %v15341_v54 = vpack.c.bf16 %v9203_v36, %v9195_v30  ;;  %v9224_v30 = vld [vmem:[#allocation5 + $0x120] sm:$0xff] }
 0xc62   : > { %15260 = vmatpush1.bf16.msra.mxu1 %v15259_v19 }
 0xc63   : > { %15262 = vmatprep.subr.bf16.mxu1 %v15261_v37 }
 0xc66   : > { %15264 = vmatpush1.bf16.msra.mxu1 %v15263_v22  ;;  %v9217_v22 = vld [vmem:[#allocation5 + $0xe8] sm:$0xff] }
 0xc67   : > { %15266 = vmatprep.subr.bf16.mxu1 %v15265_v3  ;;  %v9211_v3 = vld [vmem:[#allocation5 + $0xb8] sm:$0xff]  ;;  %v15281_v29 = vpack.c.bf16 %v9217_v22, %v9209_v7  ;;  %v9248_v22 = vld [vmem:[#allocation5 + $0x1e0] sm:$0xff] }
 0xc68   : > { %v15345_v1 = vpack.c.bf16 %v9219_v62, %v9211_v3 }
 0xc6a   : > { %15268 = vmatpush1.bf16.msra.mxu1 %v15267_v50  ;;  %v15279_v50 = vpack.c.bf16 %v9200_v58, %v9192_v61  ;;  %v15349_v58 = vpack.c.bf16 %v9235_v52, %v9227_v21  ;;  %v9275_v21 = vld [vmem:[#allocation5 + $0x2b8] sm:$0xff] }
 0xc6b   : > { %15270 = vmatprep.subr.bf16.mxu1 %v15269_v16  ;;  %v15343_v16 = vpack.c.bf16 %v9202_v0, %v9194_v31  ;;  %v9251_v31 = vld [vmem:[#allocation5 + $0x1f8] sm:$0xff]  ;;  %v15287_v0 = vpack.c.bf16 %v9232_v56, %v9224_v30  ;;  %v9272_v30 = vld [vmem:[#allocation5 + $0x2a0] sm:$0xff] }
 0xc6c   : > { %v9283_v52 = vld [vmem:[#allocation5 + $0x2f8] sm:$0xff]  ;;  %v9280_v56 = vld [vmem:[#allocation5 + $0x2e0] sm:$0xff] }
 0xc6e   : > { %15272 = vmatpush1.bf16.msra.mxu1 %v15271_v20 }
 0xc6f   : > { %15274 = vmatprep.subr.bf16.mxu1 %v15273_v17  ;;  %v9225_v17 = vld [vmem:[#allocation5 + $0x128] sm:$0xff] }
 0xc70   : > { %v15285_v61 = vpack.c.bf16 %v9233_v12, %v9225_v17  ;;  %v9273_v17 = vld [vmem:[#allocation5 + $0x2a8] sm:$0xff] }
 0xc71   : > { %v9281_v12 = vld [vmem:[#allocation5 + $0x2e8] sm:$0xff] }
 0xc72   : > { %15276 = vmatpush1.bf16.msra.mxu1 %v15275_v57 }
 0xc73   : > { %15342 = vmatprep.subr.bf16.mxu1 %v15341_v54  ;;  %v9226_v54 = vld [vmem:[#allocation5 + $0x130] sm:$0xff] }
 0xd08   : > { %v9169_v15 = vpop.f32.mrb[26].mxu1 }
 0xd09   : > { %v15567_v19 = vadd.f32 %v9169_v15, %v7582_v6  ;;  %v9171_v37 = vpop.f32.mrb[27].mxu1  ;;  %v9241_v15 = vld [vmem:[#allocation5 + $0x1a8] sm:$0xff] }
 0xd0a   : > { %v15568_v44 = vadd.f32 %v9171_v37, %v7582_v6  ;;  %v9234_v6 = vld [vmem:[#allocation5 + $0x170] sm:$0xff]  ;;  %v9243_v37 = vld [vmem:[#allocation5 + $0x1b8] sm:$0xff] }
 0xd0b   : > { %v20014_v39 = vmax.f32 %v15567_v19, 0.0  ;;  %v9249_v19 = vld [vmem:[#allocation5 + $0x1e8] sm:$0xff]  ;;  %v15351_v7 = vpack.c.bf16 %v9234_v6, %v9226_v54  ;;  %v15353_v62 = vpack.c.bf16 %v9251_v31, %v9243_v37  ;;  %v15297_v54 = vpack.c.bf16 %v9281_v12, %v9273_v17  ;;  %v9291_v37 = vld [vmem:[#allocation5 + $0x338] sm:$0xff] }
 0xd0c   : > { %v9185_v23 = vmax.f32 %v15568_v44, 0.0  ;;  %v9175_v8 = vpop.f32.mrb[28].mxu1  ;;  %v9240_v44 = vld [vmem:[#allocation5 + $0x1a0] sm:$0xff]  ;;  %v15289_v3 = vpack.c.bf16 %v9249_v19, %v9241_v15  ;;  %v15361_v6 = vpack.c.bf16 %v9283_v52, %v9275_v21  ;;  %v9274_v15 = vld [vmem:[#allocation5 + $0x2b0] sm:$0xff]  ;;  %v9297_v19 = vld [vmem:[#allocation5 + $0x368] sm:$0xff] }
 0xd0d   : > { %v15569_v20 = vadd.f32 %v9175_v8, %v7587_v25  ;;  %v9177_v28 = vpop.f32.mrb[29].mxu1  ;;  %v9250_v8 = vld [vmem:[#allocation5 + $0x1f0] sm:$0xff]  ;;  %v9299_v31 = vld [vmem:[#allocation5 + $0x378] sm:$0xff]  ;;  %v9321_v17 = vld [vmem:[#allocation5 + $0x428] sm:$0xff] }
 0xd0e   : > { %v15570_v40 = vadd.f32 %v9177_v28, %v7587_v25  ;;  %9508 = vmatprep.mubr.f32.mxu0 %v9185_v23  ;;  %9585 = vmatprep.mubr.f32.mxu1 %v9185_v23  ;;  %v9242_v25 = vld [vmem:[#allocation5 + $0x1b0] sm:$0xff]  ;;  %v15291_v28 = vpack.c.bf16 %v9248_v22, %v9240_v44  ;;  %v9288_v44 = vld [vmem:[#allocation5 + $0x320] sm:$0xff]  ;;  %v9329_v12 = vld [vmem:[#allocation5 + $0x468] sm:$0xff] }
 0xd0f   : > { %9509 = vmatmul.mubr.f32.vlgmr.msra.gmra.mrb[6].mxu0 %v20014_v39  ;;  %9586 = vmatmul.mubr.f32.vlgmr.msra.gmra.mrb[30].mxu1 %v20014_v39  ;;  %v20020_v36 = vmax.f32 %v15569_v20, 0.0  ;;  %v9267_v20 = vld [vmem:[#allocation5 + $0x278] sm:$0xff]  ;;  %v9296_v22 = vld [vmem:[#allocation5 + $0x360] sm:$0xff] }
 0xd10   : > { %v20018_v57 = vmax.f32 %v15570_v40, 0.0  ;;  %15280 = vmatpush1.bf16.msra.mxu0 %v15279_v50  ;;  %15344 = vmatpush1.bf16.msra.mxu1 %v15343_v16  ;;  %v9257_v50 = vld [vmem:[#allocation5 + $0x228] sm:$0xff]  ;;  %v9266_v40 = vld [vmem:[#allocation5 + $0x270] sm:$0xff]  ;;  %v9323_v21 = vld [vmem:[#allocation5 + $0x438] sm:$0xff] }
 0xd11   : > { %15282 = vmatprep.subr.bf16.mxu0 %v15281_v29  ;;  %15346 = vmatprep.subr.bf16.mxu1 %v15345_v1  ;;  %v9265_v16 = vld [vmem:[#allocation5 + $0x268] sm:$0xff]  ;;  %v15355_v29 = vpack.c.bf16 %v9250_v8, %v9242_v25  ;;  %v9256_v1 = vld [vmem:[#allocation5 + $0x220] sm:$0xff]  ;;  %v9290_v25 = vld [vmem:[#allocation5 + $0x330] sm:$0xff] }
 0xd12   : > { %9514 = vmatprep.mubr.f32.mxu0 %v20018_v57  ;;  %9591 = vmatprep.mubr.f32.mxu1 %v20018_v57  ;;  %v15293_v9 = vpack.c.bf16 %v9265_v16, %v9257_v50  ;;  %v9298_v8 = vld [vmem:[#allocation5 + $0x370] sm:$0xff]  ;;  %v9305_v50 = vld [vmem:[#allocation5 + $0x3a8] sm:$0xff]  ;;  %v9331_v52 = vld [vmem:[#allocation5 + $0x478] sm:$0xff] }
 0xd13   : > { %9515 = vmatmul.mubr.f32.gmra.mrb[8].mxu0 %v20020_v36  ;;  %9592 = vmatmul.mubr.f32.gmra.mrb[32].mxu1 %v20020_v36  ;;  %v9313_v16 = vld [vmem:[#allocation5 + $0x3e8] sm:$0xff] }
 0xd14   : > { %15284 = vmatpush1.bf16.msra.mxu0 %v15283_v4  ;;  %15348 = vmatpush1.bf16.msra.mxu1 %v15347_v48  ;;  %v15295_v4 = vpack.c.bf16 %v9264_v33, %v9256_v1  ;;  %v15359_v48 = vpack.c.bf16 %v9266_v40, %v9258_v55  ;;  %v9304_v1 = vld [vmem:[#allocation5 + $0x3a0] sm:$0xff]  ;;  %v9306_v55 = vld [vmem:[#allocation5 + $0x3b0] sm:$0xff] }
 0xd15   : > { %9662 = vmatprep.mubr.f32.mxu0 %v9185_v23  ;;  %9739 = vmatprep.mubr.f32.mxu1 %v9185_v23  ;;  %v15357_v23 = vpack.c.bf16 %v9267_v20, %v9259_v10  ;;  %v9307_v10 = vld [vmem:[#allocation5 + $0x3b8] sm:$0xff]  ;;  %v9312_v33 = vld [vmem:[#allocation5 + $0x3e0] sm:$0xff]  ;;  %v9314_v40 = vld [vmem:[#allocation5 + $0x3f0] sm:$0xff] }
 0xd16   : > { %15286 = vmatprep.subr.bf16.mxu0 %v15285_v61  ;;  %15350 = vmatprep.subr.bf16.mxu1 %v15349_v58  ;;  %v9282_v61 = vld [vmem:[#allocation5 + $0x2f0] sm:$0xff]  ;;  %v9289_v58 = vld [vmem:[#allocation5 + $0x328] sm:$0xff]  ;;  %v9315_v20 = vld [vmem:[#allocation5 + $0x3f8] sm:$0xff] }
 0xd18   : > { %15288 = vmatpush1.bf16.msra.mxu0 %v15287_v0  ;;  %15352 = vmatpush1.bf16.msra.mxu1 %v15351_v7  ;;  %v15299_v0 = vpack.c.bf16 %v9280_v56, %v9272_v30  ;;  %v15363_v7 = vpack.c.bf16 %v9282_v61, %v9274_v15  ;;  %v9320_v30 = vld [vmem:[#allocation5 + $0x420] sm:$0xff]  ;;  %v9322_v15 = vld [vmem:[#allocation5 + $0x430] sm:$0xff] }
 0xd19   : > { %15290 = vmatprep.subr.bf16.mxu0 %v15289_v3  ;;  %15354 = vmatprep.subr.bf16.mxu1 %v15353_v62  ;;  %v15301_v3 = vpack.c.bf16 %v9297_v19, %v9289_v58  ;;  %v15365_v62 = vpack.c.bf16 %v9299_v31, %v9291_v37  ;;  %v9328_v56 = vld [vmem:[#allocation5 + $0x460] sm:$0xff]  ;;  %v9330_v61 = vld [vmem:[#allocation5 + $0x470] sm:$0xff]  ;;  %v9337_v58 = vld [vmem:[#allocation5 + $0x4a8] sm:$0xff] }
 0xd1a   : > { %v9345_v19 = vld [vmem:[#allocation5 + $0x4e8] sm:$0xff]  ;;  %v9339_v37 = vld [vmem:[#allocation5 + $0x4b8] sm:$0xff] }
 0xd1b   : > { %v9347_v31 = vld [vmem:[#allocation5 + $0x4f8] sm:$0xff] }
 0xd1c   : > { %15292 = vmatpush1.bf16.msra.mxu0 %v15291_v28  ;;  %15356 = vmatpush1.bf16.msra.mxu1 %v15355_v29  ;;  %v15303_v28 = vpack.c.bf16 %v9296_v22, %v9288_v44  ;;  %v15367_v29 = vpack.c.bf16 %v9298_v8, %v9290_v25  ;;  %v9336_v44 = vld [vmem:[#allocation5 + $0x4a0] sm:$0xff]  ;;  %v9338_v25 = vld [vmem:[#allocation5 + $0x4b0] sm:$0xff] }
 0xd1d   : > { %15294 = vmatprep.subr.bf16.mxu0 %v15293_v9  ;;  %15358 = vmatprep.subr.bf16.mxu1 %v15357_v23  ;;  %v15305_v9 = vpack.c.bf16 %v9313_v16, %v9305_v50  ;;  %v15369_v23 = vpack.c.bf16 %v9315_v20, %v9307_v10  ;;  %v9344_v22 = vld [vmem:[#allocation5 + $0x4e0] sm:$0xff]  ;;  %v9346_v8 = vld [vmem:[#allocation5 + $0x4f0] sm:$0xff]  ;;  %v9353_v50 = vld [vmem:[#allocation5 + $0x528] sm:$0xff] }
 0xd1e   : > { %v9361_v16 = vld [vmem:[#allocation5 + $0x568] sm:$0xff]  ;;  %v9355_v10 = vld [vmem:[#allocation5 + $0x538] sm:$0xff] }
 0xd1f   : > { %v9363_v20 = vld [vmem:[#allocation5 + $0x578] sm:$0xff] }
 0xd20   : > { %15296 = vmatpush1.bf16.msra.mxu0 %v15295_v4  ;;  %15360 = vmatpush1.bf16.msra.mxu1 %v15359_v48  ;;  %v15307_v4 = vpack.c.bf16 %v9312_v33, %v9304_v1  ;;  %v15371_v48 = vpack.c.bf16 %v9314_v40, %v9306_v55  ;;  %v9352_v1 = vld [vmem:[#allocation5 + $0x520] sm:$0xff]  ;;  %v9354_v55 = vld [vmem:[#allocation5 + $0x530] sm:$0xff] }
 0xd21   : > { %15298 = vmatprep.subr.bf16.mxu0 %v15297_v54  ;;  %15362 = vmatprep.subr.bf16.mxu1 %v15361_v6  ;;  %v15309_v54 = vpack.c.bf16 %v9329_v12, %v9321_v17  ;;  %v15373_v6 = vpack.c.bf16 %v9331_v52, %v9323_v21  ;;  %v9360_v33 = vld [vmem:[#allocation5 + $0x560] sm:$0xff]  ;;  %v9362_v40 = vld [vmem:[#allocation5 + $0x570] sm:$0xff]  ;;  %v9369_v17 = vld [vmem:[#allocation5 + $0x5a8] sm:$0xff] }
 0xd22   : > { %v9377_v12 = vld [vmem:[#allocation5 + $0x5e8] sm:$0xff]  ;;  %v9371_v21 = vld [vmem:[#allocation5 + $0x5b8] sm:$0xff] }
 0xd23   : > { %v9379_v52 = vld [vmem:[#allocation5 + $0x5f8] sm:$0xff] }
 0xd24   : > { %15300 = vmatpush1.bf16.msra.mxu0 %v15299_v0  ;;  %15364 = vmatpush1.bf16.msra.mxu1 %v15363_v7  ;;  %v15311_v0 = vpack.c.bf16 %v9328_v56, %v9320_v30  ;;  %v15375_v7 = vpack.c.bf16 %v9330_v61, %v9322_v15  ;;  %v9368_v30 = vld [vmem:[#allocation5 + $0x5a0] sm:$0xff]  ;;  %v9370_v15 = vld [vmem:[#allocation5 + $0x5b0] sm:$0xff] }
 0xd25   : > { %15302 = vmatprep.subr.bf16.mxu0 %v15301_v3  ;;  %15366 = vmatprep.subr.bf16.mxu1 %v15365_v62  ;;  %v15313_v3 = vpack.c.bf16 %v9345_v19, %v9337_v58  ;;  %v15377_v62 = vpack.c.bf16 %v9347_v31, %v9339_v37  ;;  %v9376_v56 = vld [vmem:[#allocation5 + $0x5e0] sm:$0xff]  ;;  %v9378_v61 = vld [vmem:[#allocation5 + $0x5f0] sm:$0xff]  ;;  %v9385_v58 = vld [vmem:[#allocation5 + $0x628] sm:$0xff] }
 0xd26   : > { %v9393_v19 = vld [vmem:[#allocation5 + $0x668] sm:$0xff]  ;;  %v9387_v37 = vld [vmem:[#allocation5 + $0x638] sm:$0xff] }
 0xd27   : > { %v9395_v31 = vld [vmem:[#allocation5 + $0x678] sm:$0xff] }
 0xd28   : > { %15304 = vmatpush1.bf16.msra.mxu0 %v15303_v28  ;;  %15368 = vmatpush1.bf16.msra.mxu1 %v15367_v29  ;;  %v15315_v28 = vpack.c.bf16 %v9344_v22, %v9336_v44  ;;  %v15379_v29 = vpack.c.bf16 %v9346_v8, %v9338_v25  ;;  %v9384_v44 = vld [vmem:[#allocation5 + $0x620] sm:$0xff]  ;;  %v9386_v25 = vld [vmem:[#allocation5 + $0x630] sm:$0xff] }
 0xd29   : > { %15306 = vmatprep.subr.bf16.mxu0 %v15305_v9  ;;  %15370 = vmatprep.subr.bf16.mxu1 %v15369_v23  ;;  %v15317_v9 = vpack.c.bf16 %v9361_v16, %v9353_v50  ;;  %v15381_v23 = vpack.c.bf16 %v9363_v20, %v9355_v10  ;;  %v9392_v22 = vld [vmem:[#allocation5 + $0x660] sm:$0xff]  ;;  %v9394_v8 = vld [vmem:[#allocation5 + $0x670] sm:$0xff]  ;;  %v9401_v50 = vld [vmem:[#allocation5 + $0x6a8] sm:$0xff] }
 0xd2a   : > { %v9409_v16 = vld [vmem:[#allocation5 + $0x6e8] sm:$0xff]  ;;  %v9403_v10 = vld [vmem:[#allocation5 + $0x6b8] sm:$0xff] }
 0xd2b   : > { %v9411_v20 = vld [vmem:[#allocation5 + $0x6f8] sm:$0xff] }
 0xd2c   : > { %15308 = vmatpush1.bf16.msra.mxu0 %v15307_v4  ;;  %15372 = vmatpush1.bf16.msra.mxu1 %v15371_v48  ;;  %v15319_v4 = vpack.c.bf16 %v9360_v33, %v9352_v1  ;;  %v15383_v48 = vpack.c.bf16 %v9362_v40, %v9354_v55  ;;  %v9400_v1 = vld [vmem:[#allocation5 + $0x6a0] sm:$0xff]  ;;  %v9402_v55 = vld [vmem:[#allocation5 + $0x6b0] sm:$0xff] }
 0xd2d   : > { %15310 = vmatprep.subr.bf16.mxu0 %v15309_v54  ;;  %15374 = vmatprep.subr.bf16.mxu1 %v15373_v6  ;;  %v15321_v54 = vpack.c.bf16 %v9377_v12, %v9369_v17  ;;  %v15385_v6 = vpack.c.bf16 %v9379_v52, %v9371_v21  ;;  %v9408_v33 = vld [vmem:[#allocation5 + $0x6e0] sm:$0xff]  ;;  %v9410_v40 = vld [vmem:[#allocation5 + $0x6f0] sm:$0xff]  ;;  %v9417_v17 = vld [vmem:[#allocation5 + $0x728] sm:$0xff] }
 0xd2e   : > { %v9425_v12 = vld [vmem:[#allocation5 + $0x768] sm:$0xff]  ;;  %v9419_v21 = vld [vmem:[#allocation5 + $0x738] sm:$0xff] }
 0xd2f   : > { %v9427_v52 = vld [vmem:[#allocation5 + $0x778] sm:$0xff] }
 0xd30   : > { %15312 = vmatpush1.bf16.msra.mxu0 %v15311_v0  ;;  %15376 = vmatpush1.bf16.msra.mxu1 %v15375_v7  ;;  %v15323_v0 = vpack.c.bf16 %v9376_v56, %v9368_v30  ;;  %v15387_v7 = vpack.c.bf16 %v9378_v61, %v9370_v15  ;;  %v9416_v30 = vld [vmem:[#allocation5 + $0x720] sm:$0xff]  ;;  %v9418_v15 = vld [vmem:[#allocation5 + $0x730] sm:$0xff] }
 0xd31   : > { %15314 = vmatprep.subr.bf16.mxu0 %v15313_v3  ;;  %15378 = vmatprep.subr.bf16.mxu1 %v15377_v62  ;;  %v15325_v3 = vpack.c.bf16 %v9393_v19, %v9385_v58  ;;  %v15389_v62 = vpack.c.bf16 %v9395_v31, %v9387_v37  ;;  %v9424_v56 = vld [vmem:[#allocation5 + $0x760] sm:$0xff]  ;;  %v9426_v61 = vld [vmem:[#allocation5 + $0x770] sm:$0xff]  ;;  %v9433_v58 = vld [vmem:[#allocation5 + $0x7a8] sm:$0xff] }
 0xd32   : > { %v9441_v19 = vld [vmem:[#allocation5 + $0x7e8] sm:$0xff]  ;;  %v9435_v37 = vld [vmem:[#allocation5 + $0x7b8] sm:$0xff] }
 0xd33   : > { %v9443_v31 = vld [vmem:[#allocation5 + $0x7f8] sm:$0xff] }
 0xd34   : > { %15316 = vmatpush1.bf16.msra.mxu0 %v15315_v28  ;;  %15380 = vmatpush1.bf16.msra.mxu1 %v15379_v29  ;;  %v15327_v28 = vpack.c.bf16 %v9392_v22, %v9384_v44  ;;  %v15391_v29 = vpack.c.bf16 %v9394_v8, %v9386_v25  ;;  %v9432_v44 = vld [vmem:[#allocation5 + $0x7a0] sm:$0xff]  ;;  %v15337_v22 = vpack.c.bf16 %v9441_v19, %v9433_v58  ;;  %v9434_v25 = vld [vmem:[#allocation5 + $0x7b0] sm:$0xff] }
 0xd35   : > { %15318 = vmatprep.subr.bf16.mxu0 %v15317_v9  ;;  %15382 = vmatprep.subr.bf16.mxu1 %v15381_v23  ;;  %v15329_v9 = vpack.c.bf16 %v9409_v16, %v9401_v50  ;;  %v15393_v23 = vpack.c.bf16 %v9411_v20, %v9403_v10  ;;  %v9442_v8 = vld [vmem:[#allocation5 + $0x7f0] sm:$0xff] }
 0xd36   : > { %v15403_v16 = vpack.c.bf16 %v9442_v8, %v9434_v25  ;;  %v20032_v10 = vld [vmem:[#allocation2 + $0x110] sm:$0xff] }
 0xd38   : > { %15320 = vmatpush1.bf16.msra.mxu0 %v15319_v4  ;;  %15384 = vmatpush1.bf16.msra.mxu1 %v15383_v48  ;;  %v15331_v4 = vpack.c.bf16 %v9408_v33, %v9400_v1  ;;  %v15395_v48 = vpack.c.bf16 %v9410_v40, %v9402_v55 }
 0xd39   : > { %15322 = vmatprep.subr.bf16.mxu0 %v15321_v54  ;;  %15386 = vmatprep.subr.bf16.mxu1 %v15385_v6  ;;  %v15333_v54 = vpack.c.bf16 %v9425_v12, %v9417_v17  ;;  %v15397_v6 = vpack.c.bf16 %v9427_v52, %v9419_v21 }
 0xd3c   : > { %15324 = vmatpush1.bf16.msra.mxu0 %v15323_v0  ;;  %15388 = vmatpush1.bf16.msra.mxu1 %v15387_v7  ;;  %v15335_v0 = vpack.c.bf16 %v9424_v56, %v9416_v30  ;;  %v15399_v7 = vpack.c.bf16 %v9426_v61, %v9418_v15 }
 0xd3d   : > { %15326 = vmatprep.subr.bf16.mxu0 %v15325_v3  ;;  %15390 = vmatprep.subr.bf16.mxu1 %v15389_v62  ;;  %v15401_v3 = vpack.c.bf16 %v9443_v31, %v9435_v37  ;;  %v9440_v62 = vld [vmem:[#allocation5 + $0x7e0] sm:$0xff] }
 0xd3e   : > { %v15339_v50 = vpack.c.bf16 %v9440_v62, %v9432_v44 }
 0xd40   : > { %15328 = vmatpush1.bf16.msra.mxu0 %v15327_v28  ;;  %15392 = vmatpush1.bf16.msra.mxu1 %v15391_v29 }
 0xd41   : > { %15330 = vmatprep.subr.bf16.mxu0 %v15329_v9  ;;  %15394 = vmatprep.subr.bf16.mxu1 %v15393_v23 }
 0xd44   : > { %15332 = vmatpush1.bf16.msra.mxu0 %v15331_v4  ;;  %15396 = vmatpush1.bf16.msra.mxu1 %v15395_v48 }
 0xd45   : > { %15334 = vmatprep.subr.bf16.mxu0 %v15333_v54  ;;  %15398 = vmatprep.subr.bf16.mxu1 %v15397_v6 }
 0xd48   : > { %15336 = vmatpush1.bf16.msra.mxu0 %v15335_v0  ;;  %15400 = vmatpush1.bf16.msra.mxu1 %v15399_v7 }
 0xd49   : > { %15338 = vmatprep.subr.bf16.mxu0 %v15337_v22  ;;  %15402 = vmatprep.subr.bf16.mxu1 %v15401_v3 }
 0xd4c   : > { %15340 = vmatpush1.bf16.msra.mxu0 %v15339_v50  ;;  %15404 = vmatpush1.bf16.msra.mxu1 %v15403_v16 }
 0xd4f   : > { %9663 = vmatmul.mubr.f32.vlgmr.msra.gmra.mrb[10].mxu0 %v20014_v39  ;;  %9740 = vmatmul.mubr.f32.vlgmr.msra.gmra.mrb[34].mxu1 %v20014_v39 }
 0xd50   : > { %9668 = vmatprep.mubr.f32.mxu0 %v20018_v57  ;;  %9745 = vmatprep.mubr.f32.mxu1 %v20018_v57 }
 0xd53   : > { %9669 = vmatmul.mubr.f32.gmra.mrb[12].mxu0 %v20020_v36  ;;  %9746 = vmatmul.mubr.f32.gmra.mrb[36].mxu1 %v20020_v36 }
 0xd54   : > { %9876 = vmatprep.mubr.f32.mxu1 %v20032_v10  ;;  %10018 = vmatprep.mubr.f32.mxu0 %v20032_v10 }
 0xde2   : > { %v20036_v20 = vpop.f32.mrb[6].mxu0  ;;  %v20038_v28 = vpop.f32.mrb[30].mxu1 }
 0xde3   : > { %9752 = vst [vmem:[#allocation2 + $0x8] sm:$0xff] %v20036_v20  ;;  %9754 = vst [vmem:[#allocation2 + $0x18] sm:$0xff] %v20038_v28  ;;  %v20042_v39 = vpop.f32.mrb[7].mxu0  ;;  %v20044_v57 = vpop.f32.mrb[31].mxu1  ;;  %v10100_v36 = vmul.f32 %v20036_v20, %v22286_v38  ;;  %v10102_v29 = vmul.f32 %v20038_v28, %v17552_v35  ;;  %v10552_v1 = vmul.f32 %v20036_v20, %v22290_v27 }
 0xde4   : > { %v10554_v33 = vmul.f32 %v20038_v28, %v17545_v32  ;;  %9753 = vst [vmem:[#allocation2 + $0x10] sm:$0xff] %v20042_v39  ;;  %9755 = vst [vmem:[#allocation2 + $0x20] sm:$0xff] %v20044_v57  ;;  %v10101_v9 = vmul.f32 %v20042_v39, %v22289_v43  ;;  %v10103_v23 = vmul.f32 %v20044_v57, %v17602_v11 }
 0xde5   : > { %v10553_v55 = vmul.f32 %v20042_v39, %v22291_v24  ;;  %v10555_v40 = vmul.f32 %v20044_v57, %v17497_v26  ;;  %v11005_v17 = vmul.f32 %v20036_v20, %v22292_v18  ;;  %v11006_v12 = vmul.f32 %v20042_v39, %v22293_v14 }
 0xde6   : > { %v11007_v21 = vmul.f32 %v20038_v28, %v22278_v63  ;;  %v11008_v52 = vmul.f32 %v20044_v57, %v22280_v51  ;;  %v20072_v4 = vpop.f32.mrb[8].mxu0  ;;  %v20074_v48 = vpop.f32.mrb[32].mxu1  ;;  %v16515_v30 = vpack.i.bf16 %v10101_v9, %v10100_v36  ;;  %v16520_v56 = vpack.i.bf16 %v10103_v23, %v10102_v29 }
 0xde7   : > { %v16525_v54 = vpack.i.bf16 %v10553_v55, %v10552_v1  ;;  %v16530_v6 = vpack.i.bf16 %v10555_v40, %v10554_v33  ;;  %9760 = vst [vmem:[#allocation2 + $0x58] sm:$0xff] %v20072_v4  ;;  %v20077_v15 = vpop.f32.mrb[9].mxu0  ;;  %v20079_v61 = vpop.f32.mrb[33].mxu1  ;;  %v15407_v58 = vpack.c.bf16 %v20072_v4, %v20036_v20  ;;  %v16535_v19 = vpack.i.bf16 %v11006_v12, %v11005_v17  ;;  %v16871_v12 = vld [vmem:[#allocation2 + $0xa8] sm:$0xff] }
 0xde8   : > { %v16540_v37 = vpack.i.bf16 %v11008_v52, %v11007_v21  ;;  %v15411_v31 = vpack.c.bf16 %v20074_v48, %v20038_v28  ;;  %16516 = vrot.lane.b32.xlu0 %v16515_v30, %s22271_s28  ;;  %16521 = vrot.lane.b32.xlu1 %v16520_v56, %s22271_s28  ;;  %v15405_v0 = vpack.c.bf16 %v20077_v15, %v20042_v39  ;;  %v20170_v40 = vpop.permute.xlu1 %10190  ;;  %v20172_v17 = vpop.permute.xlu0 %16496  ;;  %v22300_v52 = vld [vmem:[#allocation36_spill] sm:$0xff] }
 0xde9   : > { %v15409_v7 = vpack.c.bf16 %v20079_v61, %v20044_v57  ;;  %v11458_v44 = vmul.f32 %v20036_v20, %v22294_v13  ;;  %v11459_v22 = vmul.f32 %v20042_v39, %v22295_v53  ;;  %v11460_v3 = vmul.f32 %v20038_v28, %v22288_v2  ;;  %22298 = vst [vmem:[#allocation14_spill] sm:$0xff] %v20170_v40  ;;  %v22324_v21 = vld [vmem:[#allocation52_spill] sm:$0xff]  ;;  %v22367_v40 = vld [vmem:[#allocation25_spill] sm:$0xff] }
 0xdea   : > { %v11461_v62 = vmul.f32 %v20044_v57, %v22287_v59  ;;  %v20101_v25 = vmul.f32 %v20074_v48, %v17552_v35  ;;  %15406 = vmatprep.subr.bf16.mxu1 %v15405_v0  ;;  %v20105_v8 = vmul.f32 %v20079_v61, %v17602_v11  ;;  %v20109_v50 = vmul.f32 %v20072_v4, %v22286_v38 }
 0xdeb   : > { %v20113_v16 = vmul.f32 %v20077_v15, %v22289_v43  ;;  %v20117_v36 = vmul.f32 %v20074_v48, %v17545_v32  ;;  %15408 = vmatpush1.bf16.msra.mxu1 %v15407_v58  ;;  %v16545_v35 = vpack.i.bf16 %v11459_v22, %v11458_v44  ;;  %v20121_v1 = vmul.f32 %v20079_v61, %v17497_v26  ;;  %v16870_v26 = vld [vmem:[#allocation2 + $0xb0] sm:$0xff]  ;;  %v16872_v44 = vld [vmem:[#allocation2 + $0xc0] sm:$0xff] }
 0xdec   : > { %v16550_v29 = vpack.i.bf16 %v11461_v62, %v11460_v3  ;;  %v20125_v11 = vmul.f32 %v20072_v4, %v22290_v27  ;;  %16526 = vrot.lane.b32.xlu0 %v16525_v54, %s22272_s0  ;;  %16531 = vrot.lane.b32.xlu1 %v16530_v6, %s22272_s0  ;;  %v16560_v32 = vpack.i.bf16 %v20105_v8, %v20101_v25  ;;  %v22307_v22 = vld [vmem:[#allocation45_spill] sm:$0xff]  ;;  %v22309_v3 = vld [vmem:[#allocation47_spill] sm:$0xff] }
 0xded   : > { %v16555_v38 = vpack.i.bf16 %v20113_v16, %v20109_v50  ;;  %v20135_v43 = vmul.f32 %v20077_v15, %v22291_v24  ;;  %9816 = vmatprep.subr.mxu1 %v16870_v26  ;;  %v20141_v33 = vmul.f32 %v20074_v48, %v22278_v63  ;;  %v20145_v9 = vmul.f32 %v20079_v61, %v22280_v51  ;;  %v20154_v24 = vld [vmem:[%s21917_s9 + $0x20] sm:$0xff]  ;;  %v20238_v16 = vpop.permute.xlu1 %10198  ;;  %v20240_v26 = vpop.permute.xlu0 %10196  ;;  %v22327_v27 = vld [vmem:[#allocation63_spill] sm:$0xff] }
 0xdee   : > { %v20149_v23 = vmul.f32 %v20072_v4, %v22292_v18  ;;  %v20160_v63 = vmul.f32 %v20077_v15, %v22293_v14  ;;  %v20164_v51 = vmul.f32 %v20074_v48, %v22288_v2  ;;  %v20168_v18 = vmul.f32 %v20079_v61, %v22287_v59  ;;  %22299 = vst [vmem:[#allocation17_spill] sm:$0xff] %v20172_v17 }
 0xdef   : > { %9817 = vmatpush1.msra.mxu1 %v16871_v12  ;;  %v20178_v14 = vmul.f32 %v20072_v4, %v22294_v13  ;;  %v20182_v2 = vmul.f32 %v20077_v15, %v22295_v53  ;;  %v20186_v59 = vmul.f32 %v20077_v15, %v22300_v52  ;;  %v22301_v13 = vld [vmem:[#allocation37_spill] sm:$0xff]  ;;  %v20204_v6 = vmul.f32 %v20042_v39, %v22300_v52  ;;  %v22318_v12 = vld [vmem:[#allocation54_spill] sm:$0xff] }
 0xdf0   : > { %16536 = vrot.lane.b32.xlu0 %v16535_v19, %s22279_s27  ;;  %16541 = vrot.lane.b32.xlu1 %v16540_v37, %s22279_s27  ;;  %v16575_v30 = vpack.i.bf16 %v20160_v63, %v20149_v23  ;;  %v16590_v56 = vpack.i.bf16 %v20168_v18, %v20164_v51  ;;  %v20196_v54 = vmul.f32 %v20074_v48, %v22301_v13  ;;  %v22304_v37 = vld [vmem:[#allocation33_spill] sm:$0xff]  ;;  %v16873_v18 = vld [vmem:[#allocation2 + $0xb8] sm:$0xff] }
 0xdf1   : > { %15410 = vmatprep.subr.bf16.mxu1 %v15409_v7  ;;  %14465 = vmatmul.mubr.msk.f32.vlgmr.msra.gmra.mrb[38].mxu1 %vm9808_vm3, %v20154_v24  ;;  %v16585_v53 = vpack.i.bf16 %v20182_v2, %v20178_v14  ;;  %22302 = vst [vmem:[#allocation10_spill] sm:$0xff] %v20204_v6  ;;  %v20210_v19 = vmul.f32 %v20038_v28, %v22301_v13  ;;  %22312 = vst [vmem:[#allocation13_spill] sm:$0xff] %v20238_v16  ;;  %v22320_v2 = vld [vmem:[#allocation55_spill] sm:$0xff] }
 0xdf2   : > { %15412 = vmatpush1.bf16.msra.mxu1 %v15411_v31  ;;  %v20214_v0 = vmul.f32 %v22304_v37, %v20036_v20  ;;  %v20218_v7 = vmul.f32 %v22304_v37, %v20072_v4  ;;  %v20222_v31 = vmul.f32 %v20077_v15, %v22307_v22  ;;  %v20226_v62 = vmul.f32 %v20074_v48, %v22309_v3 }
 0xdf3   : > { %22303 = vst [vmem:[#allocation9_spill] sm:$0xff] %v20210_v19  ;;  %9887 = vmatprep.subr.mxu1 %v16872_v44  ;;  %v20236_v50 = vmul.f32 %v20042_v39, %v22307_v22  ;;  %22313 = vst [vmem:[#allocation30_spill] sm:$0xff] %v20240_v26  ;;  %9947 = vmatprep.mubr.f32.mxu1 %v20032_v10  ;;  %v20259_v14 = vmul.f32 %v20077_v15, %v22318_v12  ;;  %v22370_v19 = vld [vmem:[#allocation40_spill] sm:$0xff] }
 0xdf4   : > { %22305 = vst [vmem:[#allocation18_spill] sm:$0xff] %v20214_v0  ;;  %22306 = vst [vmem:[#allocation21_spill] sm:$0xff] %v20218_v7  ;;  %16546 = vrot.lane.b32.xlu0 %v16545_v35, %s22259_s11  ;;  %16551 = vrot.lane.b32.xlu1 %v16550_v29, %s22259_s11  ;;  %v20246_v35 = vmul.f32 %v20038_v28, %v22309_v3  ;;  %v22315_v29 = vld [vmem:[#allocation42_spill] sm:$0xff]  ;;  %v20263_v44 = vmul.f32 %v20074_v48, %v22320_v2 }
 0xdf5   : > { %22308 = vst [vmem:[#allocation23_spill] sm:$0xff] %v20222_v31  ;;  %22310 = vst [vmem:[#allocation24_spill] sm:$0xff] %v20226_v62  ;;  %v20250_v63 = vmul.f32 %v22315_v29, %v20036_v20  ;;  %v20254_v51 = vmul.f32 %v22315_v29, %v20072_v4  ;;  %v20267_v23 = vmul.f32 %v20042_v39, %v22318_v12  ;;  %v20312_v12 = vpop.permute.xlu1 %10202 }
 0xdf6   : > { %22311 = vst [vmem:[#allocation22_spill] sm:$0xff] %v20236_v50  ;;  %22314 = vst [vmem:[#allocation29_spill] sm:$0xff] %v20246_v35  ;;  %9888 = vmatpush1.msra.mxu1 %v16873_v18  ;;  %v20277_v18 = vmul.f32 %v20038_v28, %v22320_v2  ;;  %v20285_v8 = vmul.f32 %v22324_v21, %v20036_v20  ;;  %v20289_v25 = vmul.f32 %v22324_v21, %v20072_v4  ;;  %v22369_v35 = vld [vmem:[#allocation12_spill] sm:$0xff] }
 0xdf7   : > { %22316 = vst [vmem:[#allocation16_spill] sm:$0xff] %v20250_v63  ;;  %22317 = vst [vmem:[#allocation11_spill] sm:$0xff] %v20254_v51  ;;  %14466 = vmatmul.mubr.msk.f32.vlgmr.msra.gmra.mrb[40].mxu1 %vm9808_vm3, %v20154_v24  ;;  %v20295_v2 = vmul.f32 %v20077_v15, %v22327_v27  ;;  %v20306_v21 = vmul.f32 %v20042_v39, %v22327_v27  ;;  %v20314_v15 = vpop.permute.xlu0 %10200  ;;  %v22339_v39 = vpack.i.bf16 %v20135_v43, %v20125_v11  ;;  %v22366_v51 = vld [vmem:[#allocation26_spill] sm:$0xff] }
 0xdf8   : > { %22319 = vst [vmem:[#allocation15_spill] sm:$0xff] %v20259_v14  ;;  %22321 = vst [vmem:[#allocation19_spill] sm:$0xff] %v20263_v44  ;;  %16561 = vrot.lane.b32.xlu0 %v16560_v32, %s22271_s28  ;;  %16556 = vrot.lane.b32.xlu1 %v16555_v38, %s22271_s28  ;;  %v22329_v32 = vld [vmem:[#allocation64_spill] sm:$0xff] }
 0xdf9   : > { %22322 = vst [vmem:[#allocation20_spill] sm:$0xff] %v20267_v23  ;;  %22323 = vst [vmem:[#allocation27_spill] sm:$0xff] %v20277_v18  ;;  %v20299_v38 = vmul.f32 %v20074_v48, %v22329_v32  ;;  %13831 = vmatprep.mubr.f32.mxu1 %v20032_v10  ;;  %v20310_v55 = vmul.f32 %v20038_v28, %v22329_v32  ;;  %v22335_v23 = vld [vmem:[#allocation62_spill] sm:$0xff]  ;;  %v22338_v28 = vpack.i.bf16 %v20121_v1, %v20117_v36  ;;  %v20343_v36 = vpop.permute.xlu1 %10206 }
 0xdfa   : > { %22325 = vst [vmem:[#allocation28_spill] sm:$0xff] %v20285_v8  ;;  %22326 = vst [vmem:[#allocation71_spill] sm:$0xff] %v20289_v25  ;;  %v20320_v18 = vmul.f32 %v22335_v23, %v20036_v20  ;;  %v20324_v58 = vmul.f32 %v22335_v23, %v20072_v4  ;;  %v22340_v4 = vpack.i.bf16 %v20145_v9, %v20141_v33  ;;  %v22354_v23 = vld [vmem:[#allocation58_spill] sm:$0xff] }
 0xdfb   : > { %22328 = vst [vmem:[#allocation72_spill] sm:$0xff] %v20295_v2  ;;  %22330 = vst [vmem:[#allocation73_spill] sm:$0xff] %v20299_v38  ;;  %v20345_v1 = vpop.permute.xlu0 %10204  ;;  %v20375_v27 = vmul.f32 %v20032_v10, %v22354_v23  ;;  %v20377_v32 = vld [vmem:[#allocation2 + $0xc8] sm:$0xff] }
 0xdfc   : > { %22331 = vst [vmem:[#allocation74_spill] sm:$0xff] %v20306_v21  ;;  %22332 = vst [vmem:[#allocation75_spill] sm:$0xff] %v20310_v55  ;;  %16571 = vrot.lane.b32.xlu0 %v22338_v28, %s22272_s0  ;;  %16566 = vrot.lane.b32.xlu1 %v22339_v39, %s22272_s0  ;;  %v22358_v23 = vld [vmem:[#allocation38_spill] sm:$0xff] }
 0xdfd   : > { %22333 = vst [vmem:[#allocation76_spill] sm:$0xff] %v20312_v12  ;;  %22334 = vst [vmem:[#allocation77_spill] sm:$0xff] %v20314_v15  ;;  %v20349_v11 = vpop.permute.xlu1 %10643 }
 0xdfe   : > { %22336 = vst [vmem:[#allocation78_spill] sm:$0xff] %v20320_v18  ;;  %22337 = vst [vmem:[#allocation79_spill] sm:$0xff] %v20324_v58  ;;  %v22355_v18 = vld [vmem:[#allocation32_spill] sm:$0xff] }
 0xdff   : > { %22341 = vst [vmem:[#allocation80_spill] sm:$0xff] %v20343_v36  ;;  %22342 = vst [vmem:[#allocation81_spill] sm:$0xff] %v20345_v1  ;;  %v20351_v43 = vpop.permute.xlu0 %16501  ;;  %v20381_v58 = vmul.f32 %v20377_v32, %v22355_v18 }
 0xe00   : > { %16581 = vrot.lane.b32.xlu0 %v22340_v4, %s22279_s27  ;;  %16576 = vrot.lane.b32.xlu1 %v16575_v30, %s22279_s27  ;;  %22343 = vst [vmem:[#allocation82_spill] sm:$0xff] %v20349_v11  ;;  %22344 = vst [vmem:[#allocation83_spill] sm:$0xff] %v20351_v43  ;;  %v22363_v11 = vld [vmem:[#allocation56_spill] sm:$0xff] }
 0xe01   : > { %v20353_v28 = vpop.permute.xlu1 %10651  ;;  %v20417_v1 = vmul.f32 %v20044_v57, %v22363_v11 }
 0xe02   : > { %22345 = vst [vmem:[#allocation84_spill] sm:$0xff] %v20353_v28  ;;  %v22360_v28 = vld [vmem:[#allocation48_spill] sm:$0xff] }
 0xe03   : > { %v20355_v39 = vpop.permute.xlu0 %10649  ;;  %v20409_v2 = vmul.f32 %v20044_v57, %v22360_v28  ;;  %v20413_v38 = vmul.f32 %v20079_v61, %v22360_v28 }
 0xe04   : > { %16591 = vrot.lane.b32.xlu0 %v16590_v56, %s22259_s11  ;;  %16586 = vrot.lane.b32.xlu1 %v16585_v53, %s22259_s11  ;;  %22346 = vst [vmem:[#allocation85_spill] sm:$0xff] %v20355_v39  ;;  %v22353_v53 = vld [vmem:[#allocation39_spill] sm:$0xff]  ;;  %v20405_v39 = vmul.f32 %v20079_v61, %v22358_v23 }
 0xe05   : > { %v20357_v33 = vpop.permute.xlu1 %10655  ;;  %v20371_v48 = vmul.f32 %v20032_v10, %v22353_v53  ;;  %v22357_v53 = vld [vmem:[#allocation31_spill] sm:$0xff]  ;;  %22361 = vst [vmem:[#allocation58_spill] sm:$0xff] %v20409_v2  ;;  %22362 = vst [vmem:[#allocation32_spill] sm:$0xff] %v20413_v38  ;;  %v20663_v2 = vmul.f32 %v20079_v61, %v22363_v11 }
 0xe06   : > { %22347 = vst [vmem:[#allocation86_spill] sm:$0xff] %v20357_v33  ;;  %v20397_v33 = vmul.f32 %v20044_v57, %v22358_v23  ;;  %22359 = vst [vmem:[#allocation39_spill] sm:$0xff] %v20405_v39 }
 0xe07   : > { %v20359_v9 = vpop.permute.xlu0 %10653 }
 0xe08   : > { %22348 = vst [vmem:[#allocation87_spill] sm:$0xff] %v20359_v9 }
 0xe09   : > { %v20361_v30 = vpop.permute.xlu1 %10659 }
 0xe0a   : > { %22349 = vst [vmem:[#allocation88_spill] sm:$0xff] %v20361_v30  ;;  %v20383_v30 = vld [vmem:[#allocation2 + $0xd0] sm:$0xff] }
 0xe0b   : > { %v20363_v4 = vpop.permute.xlu0 %10657 }
 0xe0c   : > { %22350 = vst [vmem:[#allocation89_spill] sm:$0xff] %v20363_v4  ;;  %v22356_v4 = vld [vmem:[#allocation34_spill] sm:$0xff] }
 0xe0d   : > { %v20365_v20 = vpop.permute.xlu1 %11096 }
 0xe0e   : > { %22351 = vst [vmem:[#allocation90_spill] sm:$0xff] %v20365_v20  ;;  %v20387_v20 = vmul.f32 %v20383_v30, %v22356_v4 }
 0xe0f   : > { %v20367_v56 = vpop.permute.xlu0 %16506 }
 0xe10   : > { %22352 = vst [vmem:[#allocation91_spill] sm:$0xff] %v20367_v56  ;;  %v20389_v56 = vld [vmem:[#allocation2 + $0xe0] sm:$0xff] }
 0xe11   : > { %v20393_v9 = vmul.f32 %v20389_v56, %v22357_v53  ;;  %v20453_v26 = vpop.permute.xlu1 %11104 }
 0xe12   : > { %22364 = vst [vmem:[#allocation34_spill] sm:$0xff] %v20453_v26 }
 0xe13   : > { %v20455_v16 = vpop.permute.xlu0 %11102 }
 0xe14   : > { %22365 = vst [vmem:[#allocation31_spill] sm:$0xff] %v20455_v16 }
 0xe22   : > { %v20399_v21 = vpop.f32.mrb[10].mxu0  ;;  %v20401_v55 = vpop.f32.mrb[34].mxu1 }
 0xe23   : > { %9756 = vst [vmem:[#allocation2 + $0x28] sm:$0xff] %v20399_v21  ;;  %9758 = vst [vmem:[#allocation2 + $0x38] sm:$0xff] %v20401_v55  ;;  %v20421_v36 = vpop.f32.mrb[11].mxu0  ;;  %v20423_v43 = vpop.f32.mrb[35].mxu1  ;;  %v10104_v15 = vmul.f32 %v20399_v21, %v17566_v41  ;;  %v20429_v12 = vmul.f32 %v20401_v55, %v17581_v49  ;;  %v20433_v8 = vmul.f32 %v20399_v21, %v22274_v34 }
 0xe24   : > { %v20437_v25 = vmul.f32 %v20401_v55, %v22277_v5  ;;  %9757 = vst [vmem:[#allocation2 + $0x30] sm:$0xff] %v20421_v36  ;;  %9759 = vst [vmem:[#allocation2 + $0x40] sm:$0xff] %v20423_v43  ;;  %v10105_v14 = vmul.f32 %v20421_v36, %v17617_v47  ;;  %v10107_v44 = vmul.f32 %v17422_v46, %v20423_v43 }
 0xe25   : > { %v20447_v28 = vmul.f32 %v20421_v36, %v22273_v45  ;;  %v20451_v3 = vmul.f32 %v22276_v42, %v20423_v43  ;;  %v20459_v63 = vmul.f32 %v20399_v21, %v22283_v60  ;;  %v20463_v29 = vmul.f32 %v20421_v36, %v22366_v51 }
 0xe26   : > { %v20467_v50 = vmul.f32 %v20401_v55, %v22367_v40  ;;  %v20471_v22 = vmul.f32 %v22369_v35, %v20423_v43  ;;  %v20473_v17 = vpop.f32.mrb[12].mxu0  ;;  %v20475_v26 = vpop.f32.mrb[36].mxu1  ;;  %v16595_v16 = vpack.i.bf16 %v10105_v14, %v10104_v15  ;;  %v16600_v31 = vpack.i.bf16 %v10107_v44, %v20429_v12 }
 0xe27   : > { %v20482_v13 = vpop.f32.mrb[13].mxu0  ;;  %v20484_v0 = vpop.f32.mrb[37].mxu1  ;;  %v15415_v7 = vpack.c.bf16 %v20473_v17, %v20399_v21  ;;  %v10113_v6 = vmul.f32 %v20473_v17, %v17566_v41  ;;  %v15419_v14 = vpack.c.bf16 %v20475_v26, %v20401_v55  ;;  %v20494_v12 = vmul.f32 %v20475_v26, %v17581_v49 }
 0xe28   : > { %22368 = vst [vmem:[#allocation26_spill] sm:$0xff] %v20467_v50  ;;  %16596 = vrot.lane.b32.xlu0 %v16595_v16, %s22271_s28  ;;  %v15413_v44 = vpack.c.bf16 %v20482_v13, %v20421_v36  ;;  %v10114_v15 = vmul.f32 %v20482_v13, %v17617_v47  ;;  %v15417_v23 = vpack.c.bf16 %v20484_v0, %v20423_v43 }
 0xe29   : > { %v10116_v41 = vmul.f32 %v17422_v46, %v20484_v0  ;;  %v20511_v16 = vmul.f32 %v20399_v21, %v22370_v19  ;;  %v20515_v37 = vmul.f32 %v20399_v21, %v22355_v18  ;;  %v20520_v46 = vmul.f32 %v20421_v36, %v22356_v4 }
 0xe2a   : > { %15414 = vmatprep.subr.bf16.mxu0 %v15413_v44  ;;  %v16635_v47 = vpack.i.bf16 %v10114_v15, %v10113_v6  ;;  %v20524_v62 = vmul.f32 %v20473_v17, %v22274_v34  ;;  %v20530_v50 = vmul.f32 %v20482_v13, %v22273_v45  ;;  %v22371_v44 = vld [vmem:[#allocation35_spill] sm:$0xff]  ;;  %v20540_v15 = vpop.permute.xlu1 %11108  ;;  %v20542_v34 = vpop.permute.xlu0 %11106  ;;  %v22374_v45 = vld [vmem:[#allocation41_spill] sm:$0xff] }
 0xe2b   : > { %v16640_v52 = vpack.i.bf16 %v10116_v41, %v20494_v12  ;;  %15416 = vmatpush1.bf16.msra.mxu0 %v15415_v7  ;;  %v20534_v6 = vmul.f32 %v20401_v55, %v22371_v44  ;;  %v20538_v12 = vmul.f32 %v22357_v53, %v20423_v43  ;;  %22372 = vst [vmem:[#allocation25_spill] sm:$0xff] %v20540_v15  ;;  %22373 = vst [vmem:[#allocation12_spill] sm:$0xff] %v20542_v34  ;;  %v22376_v15 = vld [vmem:[#allocation44_spill] sm:$0xff] }
 0xe2c   : > { %11559 = vrot.lane.b32.xlu0 %v20381_v58, %s22259_s11  ;;  %16636 = vrot.lane.b32.xlu1 %v16635_v47, %s22271_s28  ;;  %v20551_v7 = vmul.f32 %v20475_v26, %v22277_v5  ;;  %v20555_v41 = vmul.f32 %v22276_v42, %v20484_v0  ;;  %v20564_v47 = vmul.f32 %v20473_v17, %v22370_v19  ;;  %v22375_v58 = vld [vmem:[#allocation43_spill] sm:$0xff] }
 0xe2d   : > { %9958 = vmatprep.subr.mxu0 %v20383_v30  ;;  %v20568_v5 = vmul.f32 %v20473_v17, %v22283_v60  ;;  %v20574_v30 = vmul.f32 %v20482_v13, %v22366_v51  ;;  %v20578_v49 = vmul.f32 %v20421_v36, %v22374_v45  ;;  %v20582_v34 = vmul.f32 %v20401_v55, %v22375_v58  ;;  %v22378_v60 = vld [vmem:[#allocation49_spill] sm:$0xff] }
 0xe2e   : > { %v20589_v42 = vmul.f32 %v20475_v26, %v22367_v40  ;;  %v20593_v51 = vmul.f32 %v22369_v35, %v20484_v0  ;;  %v20597_v19 = vmul.f32 %v20423_v43, %v22376_v15  ;;  %v20608_v39 = vmul.f32 %v20399_v21, %v22378_v60  ;;  %v20622_v40 = vpop.permute.xlu0 %11110 }
 0xe2f   : > { %9959 = vmatpush1.msra.mxu0 %v20377_v32  ;;  %v20620_v32 = vpop.permute.xlu1 %11112  ;;  %22381 = vst [vmem:[#allocation44_spill] sm:$0xff] %v20622_v40  ;;  %v20633_v35 = vmul.f32 %v20473_v17, %v22378_v60  ;;  %v22391_v60 = vld [vmem:[#allocation65_spill] sm:$0xff] }
 0xe30   : > { %22377 = vst [vmem:[#allocation35_spill] sm:$0xff] %v20597_v19  ;;  %16601 = vrot.lane.b32.xlu0 %v16600_v31, %s22271_s28  ;;  %11561 = vrot.lane.b32.xlu1 %v20387_v20, %s22259_s11  ;;  %22379 = vst [vmem:[#allocation41_spill] sm:$0xff] %v20608_v39  ;;  %v20618_v20 = vmul.f32 %v20473_v17, %v22355_v18  ;;  %v20629_v31 = vmul.f32 %v20482_v13, %v22356_v4  ;;  %v22386_v4 = vld [vmem:[#allocation51_spill] sm:$0xff] }
 0xe31   : > { %15418 = vmatprep.subr.bf16.mxu0 %v15417_v23  ;;  %14467 = vmatmul.mubr.msk.f32.vlgmr.msra.gmra.mrb[14].mxu0 %vm9808_vm3, %v20154_v24  ;;  %22380 = vst [vmem:[#allocation43_spill] sm:$0xff] %v20620_v32  ;;  %v20638_v18 = vmul.f32 %v20475_v26, %v22371_v44  ;;  %v22384_v23 = vld [vmem:[#allocation50_spill] sm:$0xff]  ;;  %v20650_v32 = vmul.f32 %v20401_v55, %v22386_v4 }
 0xe32   : > { %15420 = vmatpush1.bf16.msra.mxu0 %v15419_v14  ;;  %10089 = vmatprep.mubr.f32.mxu0 %v20032_v10  ;;  %v20642_v14 = vmul.f32 %v22357_v53, %v20484_v0  ;;  %v20646_v40 = vmul.f32 %v20421_v36, %v22384_v23  ;;  %v22390_v53 = vld [vmem:[#allocation57_spill] sm:$0xff]  ;;  %v20691_v11 = vmul.f32 %v20044_v57, %v22391_v60  ;;  %v20711_v38 = vpop.permute.xlu0 %16511 }
 0xe33   : > { %10029 = vmatprep.subr.mxu0 %v20389_v56  ;;  %22382 = vst [vmem:[#allocation92_spill] sm:$0xff] %v20638_v18  ;;  %22387 = vst [vmem:[#allocation51_spill] sm:$0xff] %v20650_v32  ;;  %v22388_v56 = vpack.i.bf16 %v20447_v28, %v20433_v8  ;;  %v20671_v8 = vmul.f32 %v20482_v13, %v22374_v45  ;;  %v16877_v28 = vld [vmem:[#allocation2 + $0xd8] sm:$0xff]  ;;  %v20683_v39 = vmul.f32 %v20399_v21, %v22390_v53  ;;  %v20709_v57 = vpop.permute.xlu1 %11549 }
 0xe34   : > { %22383 = vst [vmem:[#allocation93_spill] sm:$0xff] %v20642_v14  ;;  %22385 = vst [vmem:[#allocation94_spill] sm:$0xff] %v20646_v40  ;;  %16641 = vrot.lane.b32.xlu1 %v16640_v52, %s22271_s28  ;;  %v20675_v52 = vmul.f32 %v20475_v26, %v22375_v58  ;;  %v20687_v19 = vmul.f32 %v20473_v17, %v22390_v53  ;;  %v20699_v32 = vmul.f32 %v20482_v13, %v22384_v23  ;;  %v22393_v53 = vld [vmem:[#allocation59_spill] sm:$0xff]  ;;  %s22440_s28 = smov 113  }
 0xe35   : > { %16606 = vrot.lane.b32.xlu0 %v22388_v56, %s22272_s0  ;;  %22389 = vst [vmem:[#allocation95_spill] sm:$0xff] %v20671_v8  ;;  %v20679_v56 = vmul.f32 %v20484_v0, %v22376_v15  ;;  %v20703_v18 = vmul.f32 %v20475_v26, %v22386_v4  ;;  %v20707_v14 = vmul.f32 %v20421_v36, %v22393_v53  ;;  %22394 = vst [vmem:[#allocation97_spill] sm:$0xff] %v20709_v57  ;;  %v22399_v57 = vld [vmem:[#allocation66_spill] sm:$0xff] }
 0xe36   : > { %10030 = vmatpush1.msra.mxu0 %v16877_v28  ;;  %22392 = vst [vmem:[#allocation96_spill] sm:$0xff] %v20699_v32  ;;  %22395 = vst [vmem:[#allocation98_spill] sm:$0xff] %v20711_v38  ;;  %v22397_v38 = vld [vmem:[#allocation60_spill] sm:$0xff]  ;;  %v20742_v8 = vmul.f32 %v20482_v13, %v22393_v53  ;;  %v20750_v40 = vmul.f32 %v20399_v21, %v22399_v57  ;;  %v20754_v32 = vmul.f32 %v20473_v17, %v22399_v57  ;;  %v22409_v57 = vld [vmem:[#allocation26_spill] sm:$0xff] }
 0xe37   : > { %14468 = vmatmul.mubr.msk.f32.vlgmr.msra.gmra.mrb[16].mxu0 %vm9808_vm3, %v20154_v24  ;;  %v22396_v24 = vpack.i.bf16 %v20451_v3, %v20437_v25  ;;  %v20730_v3 = vmul.f32 %v20401_v55, %v22397_v38  ;;  %v22398_v25 = vld [vmem:[#allocation61_spill] sm:$0xff]  ;;  %v20746_v23 = vmul.f32 %v20475_v26, %v22397_v38  ;;  %v22400_v38 = vpack.i.bf16 %v20463_v29, %v20459_v63  ;;  %v22404_v63 = vld [vmem:[#allocation68_spill] sm:$0xff]  ;;  %v20812_v21 = vld [vmem:[#allocation2 + $0xb0] sm:$0xff] }
 0xe38   : > { %11565 = vrot.lane.b32.xlu1 %v20393_v9, %s22259_s11  ;;  %10323 = vmatprep.mubr.f32.mxu0 %v20032_v10  ;;  %v20734_v9 = vmul.f32 %v20423_v43, %v22398_v25  ;;  %v20762_v53 = vmul.f32 %v20484_v0, %v22398_v25  ;;  %v22401_v17 = vpack.i.bf16 %v20196_v54, %v20186_v59  ;;  %v22402_v25 = vld [vmem:[#allocation67_spill] sm:$0xff]  ;;  %v20788_v54 = vpop.permute.xlu1 %11557 }
 0xe39   : > { %16611 = vrot.lane.b32.xlu0 %v22396_v24, %s22272_s0  ;;  %v20738_v24 = vmul.f32 %v20079_v61, %v22391_v60  ;;  %v20782_v29 = vmul.f32 %v20421_v36, %v22402_v25  ;;  %v20786_v59 = vmul.f32 %v20401_v55, %v22404_v63  ;;  %22405 = vst [vmem:[#allocation100_spill] sm:$0xff] %v20788_v54 }
 0xe3a   : > { %v20798_v61 = vmul.f32 %v20475_v26, %v22404_v63  ;;  %v22410_v55 = vpack.i.bf16 %v20471_v22, %v22409_v57  ;;  %v22411_v60 = vpack.i.bf16 %v20511_v16, %v20397_v33  ;;  %v22412_v36 = vpack.i.bf16 %v20520_v46, %v20515_v37  ;;  %v22414_v33 = vld [vmem:[#allocation36_spill] sm:$0xff]  ;;  %v20838_v46 = vld [vmem:[#allocation2 + $0xa8] sm:$0xff]  ;;  %v22444_v63 = vld [vmem:[#allocation17_spill] sm:$0xff] }
 0xe3b   : > { %22403 = vst [vmem:[#allocation99_spill] sm:$0xff] %v20782_v29  ;;  %v22413_v22 = vpack.i.bf16 %v20530_v50, %v20524_v62  ;;  %v11956_v16 = vmul.f32 %v20812_v21, %v22414_v33  ;;  %v11482_v37 = vmul.f32 %v16877_v28, %v22371_v44  ;;  %v22416_v62 = vpack.i.bf16 %v20555_v41, %v20551_v7  ;;  %v22417_v50 = vld [vmem:[#allocation33_spill] sm:$0xff]  ;;  %v22421_v28 = vld [vmem:[#allocation10_spill] sm:$0xff]  ;;  %v20860_v41 = vld [vmem:[#allocation2 + $0xd8] sm:$0xff] }
 0xe3c   : > { %16651 = vrot.lane.b32.xlu1 %v22401_v17, %s22260_s22  ;;  %v20794_v17 = vmul.f32 %v20482_v13, %v22402_v25  ;;  %22408 = vst [vmem:[#allocation103_spill] sm:$0xff] %v20798_v61  ;;  %v20814_v26 = vpop.permute.xlu1 %10192  ;;  %v22420_v44 = vld [vmem:[#allocation9_spill] sm:$0xff] }
 0xe3d   : > { %16616 = vrot.lane.b32.xlu0 %v22400_v38, %s22279_s27  ;;  %v20790_v38 = vpop.permute.xlu0 %11555  ;;  %v22422_v33 = vpack.i.bf16 %v22420_v44, %v22421_v28  ;;  %v11961_v44 = vmul.f32 %v20860_v41, %v22375_v58  ;;  %v22429_v28 = vld [vmem:[#allocation39_spill] sm:$0xff]  ;;  %v22432_v58 = vpack.i.bf16 %v20574_v30, %v20568_v5  ;;  %v22434_v5 = vld [vmem:[#allocation38_spill] sm:$0xff]  ;;  %v22448_v61 = vld [vmem:[#allocation45_spill] sm:$0xff] }
 0xe3e   : > { %22406 = vst [vmem:[#allocation101_spill] sm:$0xff] %v20790_v38  ;;  %22407 = vst [vmem:[#allocation102_spill] sm:$0xff] %v20794_v17 }
 0xe40   : > { %16661 = vrot.lane.b32.xlu1 %v22411_v60, %s22260_s22  ;;  %v22415_v60 = vpack.i.bf16 %v20538_v12, %v20534_v6  ;;  %v20833_v57 = vpop.permute.xlu1 %10645  ;;  %v11955_v6 = vmul.f32 %v22417_v50, %v20838_v46  ;;  %v20847_v12 = vld [vmem:[#allocation2 + $0xc8] sm:$0xff] }
 0xe41   : > { %16621 = vrot.lane.b32.xlu0 %v22410_v55, %s22279_s27  ;;  %v20816_v38 = vpop.permute.xlu0 %10194 }
 0xe44   : > { %16671 = vrot.lane.b32.xlu1 %v22413_v22, %s22272_s0 }
 0xe45   : > { %16626 = vrot.lane.b32.xlu0 %v22412_v36, %s22259_s11  ;;  %v20835_v55 = vpop.permute.xlu0 %10647  ;;  %v20849_v36 = vpop.permute.xlu1 %11098 }
 0xe46   : > { %22418 = vst [vmem:[#allocation26_spill] sm:$0xff] %v20849_v36  ;;  %v12409_v36 = vmul.f32 %v20812_v21, %v22448_v61 }
 0xe48   : > { %12031 = vrot.lane.b32.xlu1 %v11956_v16, %s22260_s22  ;;  %v22423_v16 = vld [vmem:[#allocation40_spill] sm:$0xff] }
 0xe49   : > { %16631 = vrot.lane.b32.xlu0 %v22415_v60, %s22259_s11  ;;  %v20851_v22 = vpop.permute.xlu0 %11100  ;;  %v11959_v7 = vmul.f32 %v20847_v12, %v22423_v16  ;;  %v22424_v60 = vld [vmem:[#allocation21_spill] sm:$0xff]  ;;  %v20867_v50 = vpop.permute.xlu1 %11551 }
 0xe4a   : > { %22419 = vst [vmem:[#allocation36_spill] sm:$0xff] %v20851_v22  ;;  %22427 = vst [vmem:[#allocation33_spill] sm:$0xff] %v20867_v50  ;;  %v22442_v50 = vld [vmem:[#allocation23_spill] sm:$0xff] }
 0xe4c   : > { %16676 = vrot.lane.b32.xlu1 %v22416_v62, %s22272_s0  ;;  %s22634_s0 = sld [smem:[#allocation107_spill]] }
 0xe4d   : > { %11563 = vrot.lane.b32.xlu0 %v11482_v37, %s22259_s11  ;;  %v22425_v37 = vld [vmem:[#allocation18_spill] sm:$0xff]  ;;  %v20869_v13 = vpop.permute.xlu0 %11553 }
 0xe4e   : > { %v22426_v62 = vpack.i.bf16 %v22424_v60, %v22425_v37  ;;  %22428 = vst [vmem:[#allocation9_spill] sm:$0xff] %v20869_v13 }
 0xe50   : > { %12029 = vrot.lane.b32.xlu1 %v11955_v6, %s22260_s22  ;;  %v20873_v6 = vld [vmem:[#allocation2 + $0xb8] sm:$0xff] }
 0xe51   : > { %16646 = vrot.lane.b32.xlu0 %v22422_v33, %s22260_s22  ;;  %v22430_v33 = vpack.i.bf16 %v20564_v47, %v22429_v28  ;;  %v20895_v28 = vld [vmem:[#allocation2 + $0xc0] sm:$0xff] }
 0xe52   : > { %v11958_v30 = vmul.f32 %v20895_v28, %v22434_v5  ;;  %v22441_v5 = vld [vmem:[#allocation24_spill] sm:$0xff] }
 0xe54   : > { %12037 = vrot.lane.b32.xlu1 %v11959_v7, %s22260_s22  ;;  %v22431_v7 = vld [vmem:[#allocation37_spill] sm:$0xff] }
 0xe55   : > { %16656 = vrot.lane.b32.xlu0 %v22426_v62, %s22260_s22  ;;  %v11957_v37 = vmul.f32 %v20873_v6, %v22431_v7 }
 0xe58   : > { %12041 = vrot.lane.b32.xlu1 %v11961_v44, %s22260_s22  ;;  %v22433_v44 = vpack.i.bf16 %v20582_v34, %v20578_v49  ;;  %v20918_v34 = vld [vmem:[#allocation2 + $0xd0] sm:$0xff] }
 0xe59   : > { %16666 = vrot.lane.b32.xlu0 %v22430_v33, %s22260_s22 }
 0xe5a   : > { %v20880_v16 = vpop.permute.xlu0 %16516  ;;  %v20882_v60 = vpop.permute.xlu1 %16521 }
 0xe5b   : > { %v16519_v13 = vunpack.i.h.bf16 %v20880_v16  ;;  %v16524_v61 = vunpack.i.h.bf16 %v20882_v60 }
 0xe5c   : > { %16691 = vrot.lane.b32.xlu1 %v22432_v58, %s22279_s27 }
 0xe5d   : > { %12033 = vrot.lane.b32.xlu0 %v11957_v37, %s22260_s22  ;;  %v22435_v37 = vpack.i.bf16 %v20593_v51, %v20589_v42  ;;  %v16518_v42 = vunpack.i.l.bf16 %v20880_v16  ;;  %v20930_v51 = vld [vmem:[#allocation2 + $0xe0] sm:$0xff] }
 0xe5e   : > { %v20891_v62 = vpop.permute.xlu0 %16526  ;;  %v20893_v47 = vpop.permute.xlu1 %16531 }
 0xe60   : > { %12045 = vrot.lane.b32.xlu1 %v20371_v48, %s22260_s22 }
 0xe61   : > { %16681 = vrot.lane.b32.xlu0 %v22433_v44, %s22260_s22  ;;  %v22438_v44 = vld [vmem:[#allocation35_spill] sm:$0xff] }
 0xe62   : > { %v20903_v33 = vpop.permute.xlu0 %16536  ;;  %v20905_v7 = vpop.permute.xlu1 %16541  ;;  %v22439_v54 = vpack.i.bf16 %v20371_v48, %v22438_v44  ;;  %v16499_v44 = vunpack.i.h.bf16 %v22444_v63 }
 0xe64   : > { %16701 = vrot.lane.b32.xlu1 %v22435_v37, %s22279_s27  ;;  %s585_s27 = scalar_lea.vmem %s22634_s0, %s22633_s19 }
 0xe65   : > { %12035 = vrot.lane.b32.xlu0 %v11958_v30, %s22260_s22  ;;  %v22443_v30 = vpack.i.bf16 %v22441_v5, %v22442_v50  ;;  %v22445_v50 = vld [vmem:[#allocation41_spill] sm:$0xff]  ;;  %v22446_v5 = vld [vmem:[#allocation58_spill] sm:$0xff] }
 0xe66   : > { %v20914_v58 = vpop.permute.xlu0 %16546  ;;  %v20916_v49 = vpop.permute.xlu1 %16551  ;;  %v22447_v16 = vpack.i.bf16 %v22445_v50, %v22446_v5 }
 0xe67   : > { %22436 = vst [vmem:[#allocation10_spill] sm:$0xff] %v20914_v58  ;;  %22437 = vst [vmem:[#allocation40_spill] sm:$0xff] %v20916_v49  ;;  %v11960_v58 = vmul.f32 %v20918_v34, %v22374_v45 }
 0xe68   : > { %16706 = vrot.lane.b32.xlu1 %v22443_v30, %s22440_s28  ;;  %v11962_v30 = vmul.f32 %v20930_v51, %v22376_v15 }
 0xe69   : > { %16686 = vrot.lane.b32.xlu0 %v22439_v54, %s22260_s22  ;;  %v16498_v54 = vunpack.i.l.bf16 %v22444_v63  ;;  %v10209_v63 = vsel %vm1288_vm1, %v16518_v42, %v16519_v13 }
 0xe6a   : > { %v20932_v37 = vpop.permute.xlu0 %16561  ;;  %v16557_v49 = vpop.permute.xlu1 %16556 }
 0xe6b   : > { %v16559_v25 = vunpack.i.h.bf16 %v16557_v49  ;;  %v16558_v17 = vunpack.i.l.bf16 %v16557_v49  ;;  %v10208_v45 = vsel %vm1288_vm1, %v16498_v54, %v16518_v42  ;;  %v16563_v29 = vunpack.i.l.bf16 %v20932_v37 }
 0xe6c   : > { %16716 = vrot.lane.b32.xlu1 %v22447_v16, %s22440_s28  ;;  %v16523_v54 = vunpack.i.l.bf16 %v20882_v60 }
 0xe6d   : > { %12039 = vrot.lane.b32.xlu0 %v11960_v58, %s22260_s22  ;;  %v10216_v22 = vsel %vm1288_vm1, %v16499_v44, %v16558_v17  ;;  %v10217_v49 = vsel %vm1288_vm1, %v16558_v17, %v16559_v25  ;;  %v22175_v58 = vunpack.i.h.bf16 %v20932_v37  ;;  %v10225_v44 = vsel %vm1288_vm1, %v20814_v26, %v20816_v38 }
 0xe6e   : > { %v20953_v50 = vpop.permute.xlu0 %16571  ;;  %v20955_v5 = vpop.permute.xlu1 %16566  ;;  %v15421_v15 = vpack.c.bf16 %v10217_v49, %v10209_v63  ;;  %v15423_v16 = vpack.c.bf16 %v10216_v22, %v10208_v45  ;;  %v10218_v45 = vsel %vm1288_vm1, %v16559_v25, %v16563_v29  ;;  %v22452_v49 = vpack.i.bf16 %v20629_v31, %v20618_v20  ;;  %v22453_v25 = vld [vmem:[#allocation14_spill] sm:$0xff] }
 0xe6f   : > { %v10219_v22 = vsel %vm1288_vm1, %v16563_v29, %v22175_v58  ;;  %v10224_v29 = vsel %vm1288_vm1, %v22453_v25, %v20814_v26  ;;  %v22454_v20 = vld [vmem:[#allocation42_spill] sm:$0xff]  ;;  %v22458_v25 = vld [vmem:[#allocation13_spill] sm:$0xff] }
 0xe70   : > { %12484 = vrot.lane.b32.xlu1 %v12409_v36, %s22440_s28  ;;  %15422 = vmatprep.subr.bf16.mxu0 %v15421_v15  ;;  %v22450_v36 = vld [vmem:[#allocation22_spill] sm:$0xff]  ;;  %v10211_v15 = vsel %vm1288_vm1, %v16523_v54, %v16524_v61 }
 0xe71   : > { %12043 = vrot.lane.b32.xlu0 %v11962_v30, %s22260_s22  ;;  %15424 = vmatpush1.bf16.msra.mxu0 %v15423_v16  ;;  %v22449_v30 = vld [vmem:[#allocation29_spill] sm:$0xff] }
 0xe72   : > { %v20961_v17 = vpop.permute.xlu0 %16581  ;;  %v20963_v42 = vpop.permute.xlu1 %16576  ;;  %10263 = vmatprep.subr.mxu0 %v10225_v44  ;;  %v22451_v63 = vpack.i.bf16 %v22449_v30, %v22450_v36  ;;  %v20986_v16 = vld [vmem:[%s21917_s9] sm:$0xff]  ;;  %v15425_v44 = vpack.c.bf16 %v10219_v22, %v10211_v15  ;;  %v10210_v30 = vsel %vm1288_vm1, %v16519_v13, %v16523_v54  ;;  %v22455_v22 = vld [vmem:[#allocation11_spill] sm:$0xff]  ;;  %v22456_v13 = vld [vmem:[#allocation16_spill] sm:$0xff] }
 0xe73   : > { %v15427_v26 = vpack.c.bf16 %v10218_v45, %v10210_v30  ;;  %v22457_v54 = vpack.i.bf16 %v22455_v22, %v22456_v13  ;;  %v22460_v45 = vld [vmem:[#allocation32_spill] sm:$0xff]  ;;  %v22465_v13 = vld [vmem:[#allocation47_spill] sm:$0xff] }
 0xe74   : > { %16726 = vrot.lane.b32.xlu1 %v22452_v49, %s22259_s11  ;;  %v22461_v30 = vpack.i.bf16 %v20633_v35, %v22460_v45  ;;  %v12414_v35 = vmul.f32 %v20860_v41, %v22386_v4 }
 0xe75   : > { %16696 = vrot.lane.b32.xlu0 %v22451_v63, %s22440_s28  ;;  %10264 = vmatpush1.msra.mxu0 %v10224_v29  ;;  %v12408_v63 = vmul.f32 %v22454_v20, %v20838_v46  ;;  %v22459_v29 = vld [vmem:[#allocation30_spill] sm:$0xff]  ;;  %v22462_v20 = vld [vmem:[#allocation93_spill] sm:$0xff] }
 0xe76   : > { %v20992_v36 = vpop.permute.xlu0 %16591  ;;  %v20994_v31 = vpop.permute.xlu1 %16586  ;;  %15426 = vmatprep.subr.bf16.mxu0 %v15425_v44  ;;  %14469 = vmatmul.mubr.msk.f32.vlgmr.msra.gmra.mrb[18].mxu0 %vm9808_vm3, %v20986_v16  ;;  %v10227_v44 = vsel %vm1288_vm1, %v22459_v29, %v22458_v25 }
 0xe77   : > { %v22176_v49 = vunpack.i.l.bf16 %v20992_v36  ;;  %v16589_v58 = vunpack.i.h.bf16 %v20994_v31  ;;  %15428 = vmatpush1.bf16.msra.mxu0 %v15427_v26  ;;  %10394 = vmatprep.mubr.f32.mxu0 %v20032_v10  ;;  %v10226_v26 = vsel %vm1288_vm1, %v20816_v38, %v22459_v29  ;;  %v22467_v38 = vld [vmem:[#allocation51_spill] sm:$0xff]  ;;  %v22468_v29 = vld [vmem:[#allocation94_spill] sm:$0xff] }
 0xe78   : > { %12482 = vrot.lane.b32.xlu1 %v12408_v63, %s22440_s28  ;;  %10334 = vmatprep.subr.mxu0 %v10227_v44  ;;  %v22463_v63 = vld [vmem:[#allocation92_spill] sm:$0xff]  ;;  %v22469_v45 = vpack.i.bf16 %v22467_v38, %v22468_v29  ;;  %v22478_v38 = vld [vmem:[#allocation15_spill] sm:$0xff] }
 0xe79   : > { %16711 = vrot.lane.b32.xlu0 %v22457_v54, %s22440_s28  ;;  %v21012_v15 = vsel %vm2485_vm14, %v16589_v58, %v22176_v49  ;;  %v22464_v22 = vpack.i.bf16 %v22462_v20, %v22463_v63  ;;  %v12410_v54 = vmul.f32 %v20873_v6, %v22465_v13  ;;  %v22466_v49 = vld [vmem:[#allocation49_spill] sm:$0xff]  ;;  %v22471_v20 = vld [vmem:[#allocation46_spill] sm:$0xff]  ;;  %v22473_v13 = vld [vmem:[#allocation95_spill] sm:$0xff] }
 0xe7a   : > { %v12412_v44 = vmul.f32 %v20847_v12, %v22466_v49  ;;  %v22470_v49 = vld [vmem:[#allocation48_spill] sm:$0xff]  ;;  %v21049_v63 = vmul.f32 %v20032_v10, %v22471_v20 }
 0xe7b   : > { %10335 = vmatpush1.msra.mxu0 %v10226_v26 }
 0xe7c   : > { %16736 = vrot.lane.b32.xlu1 %v22464_v22, %s22259_s11  ;;  %14470 = vmatmul.mubr.msk.f32.vlgmr.msra.gmra.mrb[20].mxu0 %vm9808_vm3, %v20986_v16  ;;  %v22472_v22 = vld [vmem:[#allocation53_spill] sm:$0xff]  ;;  %s22476_s11 = smov 112  }
 0xe7d   : > { %16721 = vrot.lane.b32.xlu0 %v22461_v30, %s22440_s28  ;;  %10465 = vmatprep.mubr.f32.mxu0 %v20032_v10  ;;  %v12411_v30 = vmul.f32 %v20895_v28, %v22470_v49  ;;  %v12397_v26 = vmul.f32 %v20423_v43, %v22472_v22  ;;  %v22481_v49 = vld [vmem:[#allocation27_spill] sm:$0xff] }
 0xe7f   : > { %v16740_v4 = vpack.i.bf16 %v21049_v63, %v12397_v26  ;;  %v22484_v26 = vpack.i.bf16 %v20683_v39, %v20417_v1 }
 0xe80   : > { %12490 = vrot.lane.b32.xlu1 %v12412_v44, %s22440_s28  ;;  %v22475_v44 = vld [vmem:[#allocation50_spill] sm:$0xff] }
 0xe81   : > { %12486 = vrot.lane.b32.xlu0 %v12410_v54, %s22440_s28  ;;  %v22474_v54 = vpack.i.bf16 %v20675_v52, %v22473_v13  ;;  %v12413_v10 = vmul.f32 %v20918_v34, %v22475_v44  ;;  %v22480_v52 = vpack.i.bf16 %v20371_v48, %v20679_v56  ;;  %v22485_v13 = vld [vmem:[#allocation54_spill] sm:$0xff]  ;;  %v22486_v44 = vld [vmem:[#allocation71_spill] sm:$0xff] }
 0xe84   : > { %12494 = vrot.lane.b32.xlu1 %v12414_v35, %s22440_s28  ;;  %v22477_v35 = vld [vmem:[#allocation19_spill] sm:$0xff] }
 0xe85   : > { %16731 = vrot.lane.b32.xlu0 %v22469_v45, %s22440_s28  ;;  %v22479_v29 = vpack.i.bf16 %v22477_v35, %v22478_v38  ;;  %v12415_v45 = vmul.f32 %v20930_v51, %v22472_v22 }
 0xe88   : > { %12498 = vrot.lane.b32.xlu1 %v21049_v63, %s22440_s28 }
 0xe89   : > { %12488 = vrot.lane.b32.xlu0 %v12411_v30, %s22440_s28  ;;  %v22482_v30 = vld [vmem:[#allocation20_spill] sm:$0xff] }
 0xe8a   : > { %v22483_v20 = vpack.i.bf16 %v22481_v49, %v22482_v30  ;;  %v22490_v49 = vpack.i.bf16 %v20687_v19, %v20663_v2  ;;  %v22492_v19 = vld [vmem:[#allocation55_spill] sm:$0xff] }
 0xe8b   : > { %v12863_v2 = vmul.f32 %v20873_v6, %v22492_v19 }
 0xe8c   : > { %16751 = vrot.lane.b32.xlu1 %v22474_v54, %s22260_s22  ;;  %v12862_v54 = vmul.f32 %v20812_v21, %v22485_v13 }
 0xe8d   : > { %16741 = vrot.lane.b32.xlu0 %v16740_v4, %s22440_s28 }
 0xe90   : > { %16756 = vrot.lane.b32.xlu1 %v22479_v29, %s22476_s11 }
 0xe91   : > { %12492 = vrot.lane.b32.xlu0 %v12413_v10, %s22440_s28  ;;  %v22487_v10 = vld [vmem:[#allocation28_spill] sm:$0xff] }
 0xe92   : > { %v22488_v35 = vpack.i.bf16 %v22486_v44, %v22487_v10 }
 0xe94   : > { %16766 = vrot.lane.b32.xlu1 %v22480_v52, %s22260_s22 }
 0xe95   : > { %12496 = vrot.lane.b32.xlu0 %v12415_v45, %s22440_s28  ;;  %v22489_v45 = vld [vmem:[#allocation52_spill] sm:$0xff] }
 0xe96   : > { %v12861_v1 = vmul.f32 %v22489_v45, %v20838_v46 }
 0xe98   : > { %16771 = vrot.lane.b32.xlu1 %v22484_v26, %s22476_s11 }
 0xe99   : > { %16746 = vrot.lane.b32.xlu0 %v22483_v20, %s22476_s11  ;;  %v22491_v20 = vunpack.i.h.bf16 %v20932_v37  ;;  %v22493_v37 = vld [vmem:[#allocation96_spill] sm:$0xff] }
 0xe9a   : > { %v16597_v4 = vpop.permute.xlu0 %16596 }
 0xe9b   : > { %v16599_v48 = vunpack.i.h.bf16 %v16597_v4  ;;  %v16598_v56 = vunpack.i.l.bf16 %v16597_v4 }
 0xe9c   : > { %12937 = vrot.lane.b32.xlu1 %v12862_v54, %s22476_s11 }
 0xe9d   : > { %16761 = vrot.lane.b32.xlu0 %v22488_v35, %s22476_s11  ;;  %v10212_v30 = vsel %vm1288_vm1, %v16524_v61, %v16598_v56  ;;  %v10213_v4 = vsel %vm1288_vm1, %v16598_v56, %v16599_v48  ;;  %v22494_v61 = vpack.i.bf16 %v20703_v18, %v22493_v37  ;;  %v12406_v56 = vmul.f32 %v20484_v0, %v22472_v22 }
 0xe9e   : > { %v21091_v38 = vpop.permute.xlu0 %11559  ;;  %v16637_v29 = vpop.permute.xlu1 %16636  ;;  %v22498_v22 = vpack.i.bf16 %v20730_v3, %v20707_v14  ;;  %v16569_v3 = vunpack.i.h.bf16 %v20955_v5 }
 0xe9f   : > { %v16639_v39 = vunpack.i.h.bf16 %v16637_v29  ;;  %v16638_v52 = vunpack.i.l.bf16 %v16637_v29 }
 0xea0   : > { %12935 = vrot.lane.b32.xlu1 %v12861_v1, %s22476_s11 }
 0xea1   : > { %16776 = vrot.lane.b32.xlu0 %v22490_v49, %s22476_s11  ;;  %v10220_v26 = vsel %vm1288_vm1, %v22491_v20, %v16638_v52  ;;  %v10221_v13 = vsel %vm1288_vm1, %v16638_v52, %v16639_v39  ;;  %v22495_v49 = vld [vmem:[#allocation76_spill] sm:$0xff] }
 0xea2   : > { %v15431_v54 = vpack.c.bf16 %v10220_v26, %v10212_v30  ;;  %v16602_v44 = vpop.permute.xlu0 %16601  ;;  %v21108_v10 = vpop.permute.xlu1 %11561  ;;  %v15429_v35 = vpack.c.bf16 %v10221_v13, %v10213_v4  ;;  %v22496_v30 = vld [vmem:[#allocation77_spill] sm:$0xff] }
 0xea3   : > { %v21115_v60 = vsel %vm2485_vm14, %v21091_v38, %v21108_v10  ;;  %v16604_v29 = vunpack.i.h.bf16 %v16602_v44  ;;  %v16603_v45 = vunpack.i.l.bf16 %v16602_v44  ;;  %v10229_v20 = vsel %vm1288_vm1, %v22496_v30, %v22495_v49  ;;  %v22497_v26 = vld [vmem:[#allocation57_spill] sm:$0xff]  ;;  %v22499_v44 = vld [vmem:[#allocation56_spill] sm:$0xff] }
 0xea4   : > { %16786 = vrot.lane.b32.xlu1 %v22494_v61, %s22440_s28  ;;  %15430 = vmatprep.subr.bf16.mxu0 %v15429_v35  ;;  %v12865_v4 = vmul.f32 %v20847_v12, %v22497_v26  ;;  %v12864_v19 = vmul.f32 %v20895_v28, %v22499_v44 }
 0xea5   : > { %12939 = vrot.lane.b32.xlu0 %v12863_v2, %s22476_s11  ;;  %15432 = vmatpush1.bf16.msra.mxu0 %v15431_v54  ;;  %v10228_v54 = vsel %vm1288_vm1, %v22458_v25, %v22496_v30  ;;  %v16795_v2 = vpack.i.bf16 %v21049_v63, %v12406_v56  ;;  %v10214_v35 = vsel %vm1288_vm1, %v16599_v48, %v16603_v45  ;;  %v16529_v63 = vunpack.i.h.bf16 %v20891_v62  ;;  %v21159_v56 = vld [vmem:[#allocation2 + $0x110] sm:$0xff] }
 0xea6   : > { %v16642_v52 = vpop.permute.xlu1 %16641  ;;  %10405 = vmatprep.subr.mxu0 %v10229_v20  ;;  %v10215_v61 = vsel %vm1288_vm1, %v16603_v45, %v16604_v29  ;;  %v16528_v48 = vunpack.i.l.bf16 %v20891_v62 }
 0xea7   : > { %v21124_v1 = vpop.permute.xlu0 %16606  ;;  %v16644_v13 = vunpack.i.h.bf16 %v16642_v52  ;;  %v16643_v18 = vunpack.i.l.bf16 %v16642_v52  ;;  %v16568_v52 = vunpack.i.l.bf16 %v20955_v5 }
 0xea8   : > { %12943 = vrot.lane.b32.xlu1 %v12865_v4, %s22476_s11  ;;  %v22501_v4 = vld [vmem:[#allocation80_spill] sm:$0xff] }
 0xea9   : > { %16781 = vrot.lane.b32.xlu0 %v22498_v22, %s22476_s11  ;;  %v10222_v37 = vsel %vm1288_vm1, %v16639_v39, %v16643_v18  ;;  %v10223_v14 = vsel %vm1288_vm1, %v16643_v18, %v16644_v13  ;;  %10406 = vmatpush1.msra.mxu0 %v10228_v54  ;;  %v22500_v39 = vld [vmem:[#allocation83_spill] sm:$0xff]  ;;  %v22502_v13 = vld [vmem:[#allocation81_spill] sm:$0xff]  ;;  %v22503_v18 = vld [vmem:[#allocation60_spill] sm:$0xff]  ;;  %v10670_v54 = vsel %vm1687_vm0, %v16568_v52, %v16569_v3 }
 0xeaa   : > { %v15435_v20 = vpack.c.bf16 %v10222_v37, %v10214_v35  ;;  %v21150_v30 = vpop.permute.xlu1 %11565  ;;  %v15433_v26 = vpack.c.bf16 %v10223_v14, %v10215_v61  ;;  %14471 = vmatmul.mubr.msk.f32.vlgmr.msra.gmra.mrb[14].mxu0 %vm9808_vm3, %v20986_v16  ;;  %v16504_v5 = vunpack.i.h.bf16 %v22500_v39  ;;  %v10231_v62 = vsel %vm1288_vm1, %v22502_v13, %v22501_v4  ;;  %v22505_v4 = vld [vmem:[#allocation59_spill] sm:$0xff] }
 0xeab   : > { %v21148_v25 = vpop.permute.xlu0 %16611  ;;  %10536 = vmatprep.mubr.f32.mxu0 %v21159_v56  ;;  %v12867_v22 = vmul.f32 %v20860_v41, %v22503_v18  ;;  %v16503_v44 = vunpack.i.l.bf16 %v22500_v39  ;;  %v16573_v35 = vunpack.i.l.bf16 %v20953_v50  ;;  %v22504_v37 = vpack.i.bf16 %v20375_v27, %v20734_v9 }
 0xeac   : > { %16796 = vrot.lane.b32.xlu1 %v16795_v2, %s22440_s28  ;;  %15434 = vmatprep.subr.bf16.mxu0 %v15433_v26  ;;  %v16574_v2 = vunpack.i.h.bf16 %v20953_v50  ;;  %v10662_v61 = vsel %vm1687_vm0, %v16528_v48, %v16529_v63  ;;  %v16534_v26 = vunpack.i.h.bf16 %v20893_v47  ;;  %v16533_v50 = vunpack.i.l.bf16 %v20893_v47 }
 0xead   : > { %12941 = vrot.lane.b32.xlu0 %v12864_v19, %s22476_s11  ;;  %15436 = vmatpush1.bf16.msra.mxu0 %v15435_v20  ;;  %v10669_v19 = vsel %vm1687_vm0, %v16504_v5, %v16568_v52  ;;  %v10661_v14 = vsel %vm1687_vm0, %v16503_v44, %v16528_v48  ;;  %v10230_v52 = vsel %vm1288_vm1, %v22495_v49, %v22502_v13 }
 0xeae   : > { %v21164_v45 = vpop.permute.xlu1 %16651  ;;  %10476 = vmatprep.subr.mxu0 %v10231_v62  ;;  %v15437_v20 = vpack.c.bf16 %v10670_v54, %v10662_v61  ;;  %v15439_v5 = vpack.c.bf16 %v10669_v19, %v10661_v14  ;;  %v12866_v62 = vmul.f32 %v20918_v34, %v22505_v4  ;;  %v10678_v47 = vsel %vm1687_vm0, %v20833_v57, %v20835_v55  ;;  %v22510_v4 = vld [vmem:[#allocation72_spill] sm:$0xff] }
 0xeaf   : > { %v21162_v29 = vpop.permute.xlu0 %16616  ;;  %v10672_v49 = vsel %vm1687_vm0, %v16573_v35, %v16574_v2  ;;  %v10671_v48 = vsel %vm1687_vm0, %v16569_v3, %v16573_v35  ;;  %v10664_v54 = vsel %vm1687_vm0, %v16533_v50, %v16534_v26  ;;  %v21216_v3 = vld [vmem:[%s21917_s9 + $0x8] sm:$0xff]  ;;  %v10663_v35 = vsel %vm1687_vm0, %v16529_v63, %v16533_v50  ;;  %v22512_v50 = vld [vmem:[#allocation84_spill] sm:$0xff] }
 0xeb0   : > { %12947 = vrot.lane.b32.xlu1 %v12867_v22, %s22476_s11  ;;  %v22506_v22 = vld [vmem:[#allocation61_spill] sm:$0xff]  ;;  %v15441_v14 = vpack.c.bf16 %v10672_v49, %v10664_v54 }
 0xeb1   : > { %16791 = vrot.lane.b32.xlu0 %v22504_v37, %s22476_s11  ;;  %10477 = vmatpush1.msra.mxu0 %v10230_v52  ;;  %v22507_v37 = vld [vmem:[#allocation82_spill] sm:$0xff]  ;;  %v16609_v52 = vunpack.i.h.bf16 %v21124_v1  ;;  %v22513_v49 = vld [vmem:[#allocation85_spill] sm:$0xff] }
 0xeb2   : > { %v21190_v9 = vpop.permute.xlu1 %16661  ;;  %15438 = vmatprep.subr.bf16.mxu0 %v15437_v20  ;;  %14472 = vmatmul.mubr.msk.f32.vlgmr.msra.gmra.mrb[16].mxu0 %vm9808_vm3, %v20986_v16  ;;  %v12868_v16 = vmul.f32 %v20930_v51, %v22506_v22  ;;  %v10677_v61 = vsel %vm1687_vm0, %v22507_v37, %v20833_v57  ;;  %v16608_v20 = vunpack.i.l.bf16 %v21124_v1  ;;  %v15443_v57 = vpack.c.bf16 %v10671_v48, %v10663_v35  ;;  %v22514_v48 = vld [vmem:[#allocation75_spill] sm:$0xff] }
 0xeb3   : > { %v21188_v39 = vpop.permute.xlu0 %16621  ;;  %15440 = vmatpush1.bf16.msra.mxu0 %v15439_v5  ;;  %10776 = vmatprep.mubr.f32.mxu0 %v21159_v56  ;;  %v22509_v5 = vld [vmem:[#allocation73_spill] sm:$0xff]  ;;  %v16614_v37 = vunpack.i.h.bf16 %v21148_v25 }
 0xeb4   : > { %12951 = vrot.lane.b32.xlu1 %v20375_v27, %s22476_s11  ;;  %10716 = vmatprep.subr.mxu0 %v10678_v47  ;;  %v10666_v35 = vsel %vm1687_vm0, %v16608_v20, %v16609_v52 }
 0xeb5   : > { %12945 = vrot.lane.b32.xlu0 %v12866_v62, %s22476_s11  ;;  %v22511_v62 = vpack.i.bf16 %v22509_v5, %v22510_v4  ;;  %v10665_v5 = vsel %vm1687_vm0, %v16534_v26, %v16608_v20 }
 0xeb6   : > { %v16672_v18 = vpop.permute.xlu1 %16671 }
 0xeb7   : > { %v21204_v13 = vpop.permute.xlu0 %16626  ;;  %v16674_v44 = vunpack.i.h.bf16 %v16672_v18  ;;  %v16673_v19 = vunpack.i.l.bf16 %v16672_v18  ;;  %10717 = vmatpush1.msra.mxu0 %v10677_v61  ;;  %v10680_v18 = vsel %vm1687_vm0, %v22513_v49, %v22512_v50  ;;  %v16613_v61 = vunpack.i.l.bf16 %v21148_v25 }
 0xeb8   : > { %16806 = vrot.lane.b32.xlu1 %v22511_v62, %s22508_s23  ;;  %15442 = vmatprep.subr.bf16.mxu0 %v15441_v14  ;;  %v22517_v14 = vpack.i.bf16 %v20746_v23, %v20742_v8  ;;  %v22518_v23 = vld [vmem:[#allocation86_spill] sm:$0xff]  ;;  %v22519_v8 = vld [vmem:[#allocation87_spill] sm:$0xff] }
 0xeb9   : > { %12949 = vrot.lane.b32.xlu0 %v12868_v16, %s22476_s11  ;;  %14474 = vmatmul.mubr.msk.f32.vlgmr.msra.gmra.mrb[18].mxu0 %vm9808_vm3, %v21216_v3  ;;  %v10674_v1 = vsel %vm1687_vm0, %v16673_v19, %v16674_v44  ;;  %v10673_v22 = vsel %vm1687_vm0, %v16574_v2, %v16673_v19  ;;  %v22515_v16 = vld [vmem:[#allocation74_spill] sm:$0xff]  ;;  %v10679_v2 = vsel %vm1687_vm0, %v20835_v55, %v22513_v49  ;;  %v22520_v55 = vld [vmem:[#allocation79_spill] sm:$0xff] }
 0xeba   : > { %v21230_v63 = vpop.permute.xlu1 %12031  ;;  %15444 = vmatpush1.bf16.msra.mxu0 %v15443_v57  ;;  %10847 = vmatprep.mubr.f32.mxu0 %v21159_v56  ;;  %v22516_v54 = vpack.i.bf16 %v22514_v48, %v22515_v16  ;;  %v15445_v62 = vpack.c.bf16 %v10674_v1, %v10666_v35  ;;  %v15447_v57 = vpack.c.bf16 %v10673_v22, %v10665_v5  ;;  %v22521_v49 = vld [vmem:[#allocation78_spill] sm:$0xff]  ;;  %v16579_v5 = vunpack.i.h.bf16 %v20963_v42 }
 0xebb   : > { %v21228_v47 = vpop.permute.xlu0 %16631  ;;  %10787 = vmatprep.subr.mxu0 %v10680_v18  ;;  %v10682_v26 = vsel %vm1687_vm0, %v22519_v8, %v22518_v23  ;;  %v22522_v48 = vpack.i.bf16 %v22520_v55, %v22521_v49  ;;  %v10668_v1 = vsel %vm1687_vm0, %v16613_v61, %v16614_v37  ;;  %v22523_v16 = vpack.i.bf16 %v20750_v40, %v20691_v11 }
 0xebc   : > { %16816 = vrot.lane.b32.xlu1 %v22517_v14, %s22476_s11  ;;  %v10667_v35 = vsel %vm1687_vm0, %v16609_v52, %v16613_v61  ;;  %v16578_v37 = vunpack.i.l.bf16 %v20963_v42  ;;  %v10681_v11 = vsel %vm1687_vm0, %v22512_v50, %v22519_v8  ;;  %v22524_v40 = vpack.i.bf16 %v20754_v32, %v20738_v24  ;;  %v22526_v50 = vld [vmem:[#allocation91_spill] sm:$0xff]  ;;  %v22527_v32 = vld [vmem:[#allocation64_spill] sm:$0xff] }
 0xebd   : > { %16801 = vrot.lane.b32.xlu0 %v22516_v54, %s22508_s23  ;;  %v16538_v52 = vunpack.i.l.bf16 %v20903_v33  ;;  %v22525_v61 = vpack.i.bf16 %v20375_v27, %v20762_v53  ;;  %v13316_v24 = vmul.f32 %v20873_v6, %v22527_v32  ;;  %v22530_v53 = vld [vmem:[#allocation63_spill] sm:$0xff] }
 0xebe   : > { %v16677_v4 = vpop.permute.xlu1 %16676  ;;  %10788 = vmatpush1.msra.mxu0 %v10679_v2  ;;  %v13315_v8 = vmul.f32 %v20812_v21, %v22530_v53  ;;  %v16583_v21 = vunpack.i.l.bf16 %v20961_v17 }
 0xebf   : > { %v21253_v19 = vpop.permute.xlu0 %11563  ;;  %v16679_v25 = vunpack.i.h.bf16 %v16677_v4  ;;  %v16678_v18 = vunpack.i.l.bf16 %v16677_v4  ;;  %15446 = vmatprep.subr.bf16.mxu0 %v15445_v62  ;;  %14475 = vmatmul.mubr.msk.f32.vlgmr.msra.gmra.mrb[20].mxu0 %vm9808_vm3, %v21216_v3  ;;  %v16539_v4 = vunpack.i.h.bf16 %v20903_v33  ;;  %v16508_v33 = vunpack.i.l.bf16 %v22526_v50 }
 0xec0   : > { %15448 = vmatpush1.bf16.msra.mxu0 %v15447_v57  ;;  %16821 = vrot.lane.b32.xlu1 %v22523_v16, %s22508_s23  ;;  %v16509_v57 = vunpack.i.h.bf16 %v22526_v50 }
 0xec1   : > { %v10675_v20 = vsel %vm1687_vm0, %v16674_v44, %v16678_v18  ;;  %16811 = vrot.lane.b32.xlu0 %v22522_v48, %s22508_s23  ;;  %v10676_v22 = vsel %vm1687_vm0, %v16678_v18, %v16679_v25  ;;  %10858 = vmatprep.subr.mxu0 %v10682_v26  ;;  %v22528_v25 = vld [vmem:[#allocation88_spill] sm:$0xff]  ;;  %v22529_v18 = vld [vmem:[#allocation89_spill] sm:$0xff]  ;;  %v11123_v26 = vsel %vm2086_vm15, %v16578_v37, %v16579_v5  ;;  %v16584_v48 = vunpack.i.h.bf16 %v20961_v17 }
 0xec2   : > { %v21273_v14 = vpop.permute.xlu1 %12029  ;;  %v15449_v44 = vpack.c.bf16 %v10676_v22, %v10668_v1  ;;  %10918 = vmatprep.mubr.f32.mxu0 %v21159_v56  ;;  %v15451_v2 = vpack.c.bf16 %v10675_v20, %v10667_v35  ;;  %v10684_v27 = vsel %vm1687_vm0, %v22529_v18, %v22528_v25  ;;  %v11122_v20 = vsel %vm2086_vm15, %v16509_v57, %v16578_v37  ;;  %v22532_v57 = vld [vmem:[#allocation99_spill] sm:$0xff] }
 0xec3   : > { %v21271_v54 = vpop.permute.xlu0 %16646  ;;  %v10683_v6 = vsel %vm1687_vm0, %v22518_v23, %v22529_v18  ;;  %v11114_v49 = vsel %vm2086_vm15, %v16508_v33, %v16538_v52  ;;  %v11115_v16 = vsel %vm2086_vm15, %v16538_v52, %v16539_v4  ;;  %v16663_v35 = vunpack.i.l.bf16 %v21190_v9  ;;  %v22535_v33 = vld [vmem:[#allocation26_spill] sm:$0xff] }
 0xec4   : > { %10859 = vmatpush1.msra.mxu0 %v10681_v11  ;;  %16831 = vrot.lane.b32.xlu1 %v22525_v61, %s22476_s11  ;;  %v16649_v55 = vunpack.i.h.bf16 %v21271_v54  ;;  %v15453_v37 = vpack.c.bf16 %v11123_v26, %v11115_v16  ;;  %v16543_v11 = vunpack.i.l.bf16 %v20905_v7  ;;  %v15455_v17 = vpack.c.bf16 %v11122_v20, %v11114_v49  ;;  %v22537_v26 = vld [vmem:[#allocation66_spill] sm:$0xff] }
 0xec5   : > { %16826 = vrot.lane.b32.xlu0 %v22524_v40, %s22508_s23  ;;  %15450 = vmatprep.subr.bf16.mxu0 %v15449_v44  ;;  %v16654_v44 = vunpack.i.h.bf16 %v21164_v45  ;;  %v22533_v32 = vpack.i.bf16 %v20786_v59, %v22532_v57  ;;  %v13318_v59 = vmul.f32 %v20847_v12, %v22537_v26 }
 0xec6   : > { %v21294_v62 = vpop.permute.xlu1 %12037  ;;  %14476 = vmatmul.mubr.msk.f32.vlgmr.msra.gmra.mrb[14].mxu0 %vm9808_vm3, %v21216_v3  ;;  %v21334_v40 = vsel %vm2430_vm13, %v16649_v55, %v16663_v35  ;;  %v11116_v12 = vsel %vm2086_vm15, %v16539_v4, %v16543_v11  ;;  %v22541_v4 = vld [vmem:[#allocation34_spill] sm:$0xff] }
 0xec7   : > { %v21292_v42 = vpop.permute.xlu0 %16656  ;;  %15452 = vmatpush1.bf16.msra.mxu0 %v15451_v2  ;;  %10989 = vmatprep.mubr.f32.mxu0 %v21159_v56  ;;  %v16544_v2 = vunpack.i.h.bf16 %v20905_v7  ;;  %v22531_v7 = vld [vmem:[#allocation62_spill] sm:$0xff] }
 0xec8   : > { %10929 = vmatprep.subr.mxu0 %v10684_v27  ;;  %13390 = vrot.lane.b32.xlu1 %v13315_v8, %s22508_s23  ;;  %v13314_v61 = vmul.f32 %v22531_v7, %v20838_v46  ;;  %v22536_v46 = vld [vmem:[#allocation65_spill] sm:$0xff]  ;;  %v11124_v8 = vsel %vm2086_vm15, %v16579_v5, %v16583_v21  ;;  %v16619_v5 = vunpack.i.h.bf16 %v21162_v29 }
 0xec9   : > { %13392 = vrot.lane.b32.xlu0 %v13316_v24, %s22508_s23  ;;  %v22534_v24 = vld [vmem:[#allocation36_spill] sm:$0xff]  ;;  %v13317_v53 = vmul.f32 %v20895_v28, %v22536_v46  ;;  %v11117_v20 = vsel %vm2086_vm15, %v16543_v11, %v16544_v2  ;;  %v21375_v28 = vld [vmem:[%s21917_s9 + $0x10] sm:$0xff] }
 0xeca   : > { %v21321_v22 = vpop.permute.xlu1 %12041  ;;  %v11131_v25 = vsel %vm2086_vm15, %v22535_v33, %v22534_v24  ;;  %v22542_v11 = vld [vmem:[#allocation31_spill] sm:$0xff] }
 0xecb   : > { %v21319_v1 = vpop.permute.xlu0 %16666  ;;  %10930 = vmatpush1.msra.mxu0 %v10683_v6  ;;  %v22538_v6 = vld [vmem:[#allocation70_spill] sm:$0xff] }
 0xecc   : > { %v16668_v23 = vunpack.i.l.bf16 %v21319_v1  ;;  %15454 = vmatprep.subr.bf16.mxu0 %v15453_v37  ;;  %14477 = vmatmul.mubr.msk.f32.vlgmr.msra.gmra.mrb[16].mxu0 %vm9808_vm3, %v21216_v3  ;;  %v11125_v3 = vsel %vm2086_vm15, %v16583_v21, %v16584_v48  ;;  %v13303_v49 = vmul.f32 %v20423_v43, %v22538_v6  ;;  %v16618_v21 = vunpack.i.l.bf16 %v21162_v29 }
 0xecd   : > { %15456 = vmatpush1.bf16.msra.mxu0 %v15455_v17  ;;  %16836 = vrot.lane.b32.xlu0 %v22533_v32, %s22508_s23  ;;  %v22539_v17 = vld [vmem:[#allocation90_spill] sm:$0xff]  ;;  %v22540_v32 = vld [vmem:[#allocation69_spill] sm:$0xff] }
 0xece   : > { %v21341_v52 = vsel %vm2430_vm13, %v16654_v44, %v16668_v23  ;;  %v16692_v27 = vpop.permute.xlu1 %16691  ;;  %13388 = vrot.lane.b32.xlu1 %v13314_v61, %s22508_s23  ;;  %11169 = vmatprep.subr.mxu0 %v11131_v25  ;;  %v11130_v7 = vsel %vm2086_vm15, %v22539_v17, %v22535_v33  ;;  %v15457_v61 = vpack.c.bf16 %v11125_v3, %v11117_v20  ;;  %v16624_v20 = vunpack.i.h.bf16 %v21188_v39  ;;  %v22543_v17 = vld [vmem:[#allocation103_spill] sm:$0xff] }
 0xecf   : > { %v21356_v18 = vpop.permute.xlu0 %12033  ;;  %11229 = vmatprep.mubr.f32.mxu0 %v21159_v56  ;;  %v16694_v16 = vunpack.i.h.bf16 %v16692_v27  ;;  %v16693_v37 = vunpack.i.l.bf16 %v16692_v27  ;;  %v21387_v33 = vmul.f32 %v21159_v56, %v22540_v32  ;;  %v15459_v25 = vpack.c.bf16 %v11124_v8, %v11116_v12 }
 0xed0   : > { %v11133_v27 = vsel %vm2086_vm15, %v22542_v11, %v22541_v4  ;;  %v11119_v26 = vsel %vm2086_vm15, %v16618_v21, %v16619_v5  ;;  %v11118_v12 = vsel %vm2086_vm15, %v16544_v2, %v16618_v21  ;;  %v11132_v32 = vsel %vm2086_vm15, %v22534_v24, %v22542_v11  ;;  %v22547_v21 = vld [vmem:[#allocation25_spill] sm:$0xff]  ;;  %v22548_v11 = vld [vmem:[#allocation12_spill] sm:$0xff] }
 0xed1   : > { %11170 = vmatpush1.msra.mxu0 %v11130_v7  ;;  %13394 = vrot.lane.b32.xlu0 %v13317_v53, %s22508_s23  ;;  %v16840_v29 = vpack.i.bf16 %v21387_v33, %v13303_v49  ;;  %v11127_v3 = vsel %vm2086_vm15, %v16693_v37, %v16694_v16  ;;  %v11126_v46 = vsel %vm2086_vm15, %v16584_v48, %v16693_v37  ;;  %v16623_v49 = vunpack.i.l.bf16 %v21188_v39  ;;  %v22544_v7 = vld [vmem:[#allocation102_spill] sm:$0xff] }
 0xed2   : > { %v21383_v57 = vpop.permute.xlu1 %12045  ;;  %13396 = vrot.lane.b32.xlu1 %v13318_v59, %s22508_s23  ;;  %15458 = vmatprep.subr.bf16.mxu0 %v15457_v61  ;;  %v13312_v59 = vmul.f32 %v20484_v0, %v22538_v6  ;;  %v22545_v61 = vpack.i.bf16 %v22543_v17, %v22544_v7  ;;  %v22546_v0 = vld [vmem:[#allocation67_spill] sm:$0xff] }
 0xed3   : > { %v21381_v43 = vpop.permute.xlu0 %16681  ;;  %14479 = vmatmul.mubr.msk.f32.vlgmr.msra.gmra.mrb[18].mxu0 %vm9808_vm3, %v21375_v28 }
 0xed4   : > { %15460 = vmatpush1.bf16.msra.mxu0 %v15459_v25  ;;  %11300 = vmatprep.mubr.f32.mxu0 %v21159_v56  ;;  %v15461_v25 = vpack.c.bf16 %v11127_v3, %v11119_v26  ;;  %v11121_v3 = vsel %vm2086_vm15, %v16623_v49, %v16624_v20  ;;  %v11120_v26 = vsel %vm2086_vm15, %v16619_v5, %v16623_v49 }
 0xed5   : > { %11240 = vmatprep.subr.mxu0 %v11133_v27  ;;  %16841 = vrot.lane.b32.xlu0 %v16840_v29, %s22508_s23  ;;  %v15463_v29 = vpack.c.bf16 %v11126_v46, %v11118_v12  ;;  %v13319_v27 = vmul.f32 %v20918_v34, %v22546_v0  ;;  %v11135_v34 = vsel %vm2086_vm15, %v22548_v11, %v22547_v21  ;;  %v22552_v0 = vld [vmem:[#allocation43_spill] sm:$0xff] }
 0xed6   : > { %v16702_v8 = vpop.permute.xlu1 %16701  ;;  %16846 = vrot.lane.b32.xlu1 %v22545_v61, %s22508_s23  ;;  %v11134_v61 = vsel %vm2086_vm15, %v22541_v4, %v22548_v11 }
 0xed7   : > { %v21400_v53 = vpop.permute.xlu0 %12035  ;;  %v16704_v48 = vunpack.i.h.bf16 %v16702_v8  ;;  %v16703_v37 = vunpack.i.l.bf16 %v16702_v8  ;;  %v16850_v8 = vpack.i.bf16 %v21387_v33, %v13312_v59  ;;  %v13321_v59 = vmul.f32 %v20930_v51, %v22538_v6  ;;  %v21447_v51 = vpop.f32.mrb[38].mxu1  ;;  %v22550_v6 = vld [vmem:[#allocation10_spill] sm:$0xff] }
 0xed8   : > { %11241 = vmatpush1.msra.mxu0 %v11132_v32  ;;  %v16549_v5 = vunpack.i.h.bf16 %v22550_v6  ;;  %v16548_v49 = vunpack.i.l.bf16 %v22550_v6  ;;  %v21455_v4 = vpop.f32.mrb[39].mxu1  ;;  %v22551_v32 = vld [vmem:[#allocation98_spill] sm:$0xff] }
 0xed9   : > { %v11129_v39 = vsel %vm2086_vm15, %v16703_v37, %v16704_v48  ;;  %15462 = vmatprep.subr.bf16.mxu0 %v15461_v25  ;;  %14480 = vmatmul.mubr.msk.f32.vlgmr.msra.gmra.mrb[20].mxu0 %vm9808_vm3, %v21375_v28  ;;  %v11128_v24 = vsel %vm2086_vm15, %v16694_v16, %v16703_v37  ;;  %v16588_v16 = vunpack.i.l.bf16 %v20994_v31  ;;  %v22549_v48 = vld [vmem:[#allocation68_spill] sm:$0xff]  ;;  %v16514_v25 = vunpack.i.h.bf16 %v22551_v32 }
 0xeda   : > { %v21423_v2 = vpop.permute.xlu1 %16706  ;;  %15464 = vmatpush1.bf16.msra.mxu0 %v15463_v29  ;;  %13398 = vrot.lane.b32.xlu0 %v13319_v27, %s22508_s23  ;;  %v15465_v46 = vpack.c.bf16 %v11129_v39, %v11121_v3  ;;  %v15467_v7 = vpack.c.bf16 %v11128_v24, %v11120_v26  ;;  %v13320_v20 = vmul.f32 %v20860_v41, %v22549_v48  ;;  %v9802_v41 = vld [vmem:[%s21918_s10] sm:$0xff]  ;;  %v21460_v29 = vpop.f32.mrb[40].mxu1  ;;  %v22553_v27 = vld [vmem:[#allocation44_spill] sm:$0xff]  ;;  %v16594_v26 = vunpack.i.h.bf16 %v20992_v36 }
 0xedb   : > { %v21421_v17 = vpop.permute.xlu0 %16686  ;;  %16851 = vrot.lane.b32.xlu1 %v16850_v8, %s22508_s23  ;;  %11311 = vmatprep.subr.mxu0 %v11135_v34  ;;  %v11137_v39 = vsel %vm2086_vm15, %v22553_v27, %v22552_v0  ;;  %v11576_v11 = vsel %vm2485_vm14, %v16588_v16, %v16589_v58  ;;  %v16513_v34 = vunpack.i.l.bf16 %v22551_v32  ;;  %v11575_v3 = vsel %vm2485_vm14, %v16514_v25, %v16588_v16  ;;  %v13758_v16 = vld [vmem:[%s21920_s12] sm:$0x7] }
 0xedc   : > { %11371 = vmatprep.mubr.f32.mxu0 %v21159_v56  ;;  %v11136_v58 = vsel %vm2086_vm15, %v22547_v21, %v22553_v27  ;;  %v22555_v21 = vld [vmem:[#allocation9_spill] sm:$0xff]  ;;  %v22557_v25 = vunpack.i.l.bf16 %v20992_v36 }
 0xede   : > { %v21444_v12 = vpop.permute.xlu1 %16716  ;;  %11312 = vmatpush1.msra.mxu0 %v11134_v61  ;;  %13402 = vrot.lane.b32.xlu0 %v13321_v59, %s22508_s23  ;;  %v11568_v59 = vsel %vm2485_vm14, %v16548_v49, %v16549_v5  ;;  %v22554_v61 = vld [vmem:[#allocation40_spill] sm:$0xff]  ;;  %v11578_v0 = vsel %vm2485_vm14, %v22557_v25, %v16594_v26 }
 0xedf   : > { %v21442_v37 = vpop.permute.xlu0 %12039  ;;  %13400 = vrot.lane.b32.xlu1 %v13320_v20, %s22508_s23  ;;  %15466 = vmatprep.subr.bf16.mxu0 %v15465_v46  ;;  %v21475_v46 = vpop.f32.mrb[41].mxu1  ;;  %v15469_v31 = vpack.c.bf16 %v11576_v11, %v11568_v59  ;;  %v16554_v48 = vunpack.i.h.bf16 %v22554_v61  ;;  %v16553_v20 = vunpack.i.l.bf16 %v22554_v61  ;;  %v22558_v59 = vld [vmem:[#allocation97_spill] sm:$0xff]  ;;  %v16628_v61 = vunpack.i.l.bf16 %v21204_v13 }
 0xee0   : > { %14481 = vmatmul.mubr.msk.f32.vlgmr.msra.gmra.mrb[14].mxu0 %vm9808_vm3, %v21375_v28 }
 0xee1   : > { %15468 = vmatpush1.bf16.msra.mxu0 %v15467_v7  ;;  %11442 = vmatprep.mubr.f32.mxu0 %v21159_v56  ;;  %v11567_v7 = vsel %vm2485_vm14, %v16513_v34, %v16548_v49  ;;  %v22556_v49 = vld [vmem:[#allocation33_spill] sm:$0xff]  ;;  %v11570_v11 = vsel %vm2485_vm14, %v16553_v20, %v16554_v48  ;;  %v11569_v36 = vsel %vm2485_vm14, %v16549_v5, %v16553_v20 }
 0xee2   : > { %v21467_v24 = vpop.permute.xlu1 %12484  ;;  %11382 = vmatprep.subr.mxu0 %v11137_v39  ;;  %9805 = vperm.xlu0 %15983, %v9802_v41   ;;  %v15471_v6 = vpack.c.bf16 %v11575_v3, %v11567_v7  ;;  %v11584_v32 = vsel %vm2485_vm14, %v22556_v49, %v22555_v21  ;;  %v11583_v7 = vsel %vm2485_vm14, %v22558_v59, %v22556_v49 }
 0xee3   : > { %v21465_v8 = vpop.permute.xlu0 %12043  ;;  %13404 = vrot.lane.b32.xlu1 %v21387_v33, %s22508_s23  ;;  %v11571_v59 = vsel %vm2485_vm14, %v16554_v48, %v16628_v61 }
 0xee5   : > { %11383 = vmatpush1.msra.mxu0 %v11136_v58  ;;  %v15473_v58 = vpack.c.bf16 %v11578_v0, %v11570_v11  ;;  %v16634_v0 = vunpack.i.h.bf16 %v21228_v47  ;;  %v16633_v11 = vunpack.i.l.bf16 %v21228_v47 }
 0xee6   : > { %v16727_v41 = vpop.permute.xlu1 %16726  ;;  %15470 = vmatprep.subr.bf16.mxu0 %v15469_v31  ;;  %14482 = vmatmul.mubr.msk.f32.vlgmr.msra.gmra.mrb[16].mxu0 %vm9808_vm3, %v21375_v28  ;;  %v21505_v28 = vld [vmem:[%s21917_s9 + $0x18] sm:$0xff]  ;;  %v15475_v31 = vpack.c.bf16 %v21012_v15, %v11569_v36 }
 0xee7   : > { %v21490_v33 = vpop.permute.xlu0 %16696  ;;  %15472 = vmatpush1.bf16.msra.mxu0 %v15471_v6  ;;  %13761 = vperm.xlu1 %16044, %v13758_v16   ;;  %v16729_v27 = vunpack.i.h.bf16 %v16727_v41  ;;  %v16728_v39 = vunpack.i.l.bf16 %v16727_v41  ;;  %v16629_v16 = vunpack.i.h.bf16 %v21204_v13  ;;  %v22559_v6 = vld [vmem:[#allocation100_spill] sm:$0xff]  ;;  %v22560_v41 = vld [vmem:[#allocation101_spill] sm:$0xff]  ;;  %v11574_v47 = vsel %vm2485_vm14, %v16633_v11, %v16634_v0 }
 0xee8   : > { %11622 = vmatprep.subr.mxu0 %v11584_v32  ;;  %11682 = vmatprep.mubr.f32.mxu0 %v21159_v56  ;;  %v11586_v5 = vsel %vm2485_vm14, %v22560_v41, %v22559_v6 }
 0xee9   : > { %v11580_v15 = vsel %vm2485_vm14, %v16728_v39, %v16729_v27  ;;  %v11579_v32 = vsel %vm2485_vm14, %v16594_v26, %v16728_v39  ;;  %v11572_v36 = vsel %vm2485_vm14, %v16628_v61, %v16629_v16  ;;  %v11573_v48 = vsel %vm2485_vm14, %v16629_v16, %v16633_v11 }
 0xeea   : > { %v21509_v3 = vpop.permute.xlu1 %12482  ;;  %v16648_v61 = vunpack.i.l.bf16 %v21271_v54  ;;  %v16653_v16 = vunpack.i.l.bf16 %v21164_v45  ;;  %v16669_v11 = vunpack.i.h.bf16 %v21319_v1  ;;  %v16664_v54 = vunpack.i.h.bf16 %v21190_v9 }
 0xeeb   : > { %v21507_v34 = vpop.permute.xlu0 %16711  ;;  %11623 = vmatpush1.msra.mxu0 %v11583_v7  ;;  %v11585_v7 = vsel %vm2485_vm14, %v22555_v21, %v22560_v41  ;;  %v12064_v45 = vsel %vm2430_vm13, %v21230_v63, %v21356_v18  ;;  %v12063_v1 = vsel %vm2430_vm13, %v21273_v14, %v21230_v63  ;;  %v16683_v9 = vunpack.i.l.bf16 %v21381_v43 }
 0xeec   : > { %15474 = vmatprep.subr.bf16.mxu0 %v15473_v58  ;;  %14484 = vmatmul.mubr.msk.f32.vlgmr.msra.gmra.mrb[18].mxu0 %vm9808_vm3, %v21505_v28  ;;  %v15477_v58 = vpack.c.bf16 %v11580_v15, %v11572_v36  ;;  %v11587_v15 = vsel %vm2485_vm14, %v22559_v6, %v21091_v38  ;;  %v12048_v38 = vsel %vm2430_vm13, %v16648_v61, %v16649_v55 }
 0xeed   : > { %15476 = vmatpush1.bf16.msra.mxu0 %v15475_v31  ;;  %11753 = vmatprep.mubr.f32.mxu0 %v21159_v56  ;;  %v15479_v31 = vpack.c.bf16 %v11579_v32, %v11571_v59  ;;  %v16659_v32 = vunpack.i.h.bf16 %v21292_v42  ;;  %v11589_v36 = vsel %vm2485_vm14, %v21108_v10, %v21253_v19  ;;  %v12058_v10 = vsel %vm2430_vm13, %v16668_v23, %v16669_v11 }
 0xeee   : > { %v16737_v49 = vpop.permute.xlu1 %16736  ;;  %11693 = vmatprep.subr.mxu0 %v11586_v5 }
 0xeef   : > { %v21523_v20 = vpop.permute.xlu0 %16721  ;;  %v16739_v13 = vunpack.i.h.bf16 %v16737_v49  ;;  %v16738_v25 = vunpack.i.l.bf16 %v16737_v49  ;;  %v12055_v6 = vsel %vm2430_vm13, %v16659_v32, %v16653_v16  ;;  %v12051_v32 = vsel %vm2430_vm13, %v16664_v54, %v16683_v9 }
 0xef1   : > { %11694 = vmatpush1.msra.mxu0 %v11585_v7  ;;  %v11582_v39 = vsel %vm2485_vm14, %v16738_v25, %v16739_v13  ;;  %v11581_v5 = vsel %vm2485_vm14, %v16729_v27, %v16738_v25  ;;  %v16658_v13 = vunpack.i.l.bf16 %v21292_v42 }
 0xef2   : > { %v21537_v26 = vpop.permute.xlu1 %12490  ;;  %15478 = vmatprep.subr.bf16.mxu0 %v15477_v58  ;;  %14485 = vmatmul.mubr.msk.f32.vlgmr.msra.gmra.mrb[20].mxu0 %vm9808_vm3, %v21505_v28  ;;  %v15481_v21 = vpack.c.bf16 %v11582_v39, %v11574_v47  ;;  %v15483_v41 = vpack.c.bf16 %v11581_v5, %v11573_v48  ;;  %v16684_v47 = vunpack.i.h.bf16 %v21381_v43  ;;  %v12066_v48 = vsel %vm2430_vm13, %v21400_v53, %v21294_v62 }
 0xef3   : > { %v21535_v50 = vpop.permute.xlu0 %12486  ;;  %15480 = vmatpush1.bf16.msra.mxu0 %v15479_v31  ;;  %11824 = vmatprep.mubr.f32.mxu0 %v21159_v56  ;;  %v12047_v42 = vsel %vm2430_vm13, %v16658_v13, %v16648_v61  ;;  %v12050_v31 = vsel %vm2430_vm13, %v16663_v35, %v16664_v54  ;;  %v22561_v35 = vpack.c.bf16 %v21341_v52, %v21334_v40  ;;  %v16688_v40 = vunpack.i.l.bf16 %v21421_v17 }
 0xef4   : > { %11764 = vmatprep.subr.mxu0 %v21115_v60  ;;  %v11590_v60 = vsel %vm2485_vm14, %v21253_v19, %v21150_v30  ;;  %v12056_v30 = vsel %vm2430_vm13, %v16653_v16, %v16654_v44  ;;  %v15487_v7 = vpack.c.bf16 %v12055_v6, %v12047_v42  ;;  %v15489_v23 = vpack.c.bf16 %v12058_v10, %v12050_v31 }
 0xef5   : > { %v15485_v59 = vpack.c.bf16 %v12056_v30, %v12048_v38  ;;  %v12052_v52 = vsel %vm2430_vm13, %v16683_v9, %v16684_v47  ;;  %v12065_v13 = vsel %vm2430_vm13, %v21356_v18, %v21400_v53  ;;  %v12068_v18 = vsel %vm2430_vm13, %v21442_v37, %v21321_v22 }
 0xef6   : > { %v21550_v27 = vpop.permute.xlu1 %12494  ;;  %v16714_v10 = vunpack.i.h.bf16 %v21507_v34  ;;  %v16708_v31 = vunpack.i.l.bf16 %v21423_v2  ;;  %vm22562_vm14 = vcmask 924672  }
 0xef7   : > { %v21548_v49 = vpop.permute.xlu0 %16731  ;;  %11765 = vmatpush1.msra.mxu0 %v11587_v15  ;;  %v16689_v15 = vunpack.i.h.bf16 %v21421_v17  ;;  %v12053_v17 = vsel %vm2430_vm13, %v16684_v47, %v16688_v40  ;;  %vm22563_vm15 = vmmov %vm22562_vm14  ;;  %v16723_v47 = vunpack.i.l.bf16 %v21523_v20 }
 0xef8   : > { %15482 = vmatprep.subr.bf16.mxu0 %v15481_v21  ;;  %14486 = vmatmul.mubr.msk.f32.vlgmr.msra.gmra.mrb[14].mxu0 %vm9808_vm3, %v21505_v28  ;;  %vm22564_vm0 = vmmov %vm22562_vm14 }
 0xef9   : > { %15484 = vmatpush1.bf16.msra.mxu0 %v15483_v41  ;;  %11895 = vmatprep.mubr.f32.mxu0 %v21159_v56  ;;  %v12054_v53 = vsel %vm2430_vm13, %v16688_v40, %v16689_v15  ;;  %vm22565_vm1 = vmmov %vm22564_vm0 }
 0xefa   : > { %v21565_v0 = vpop.permute.xlu1 %12498  ;;  %11835 = vmatprep.subr.mxu0 %v11590_v60  ;;  %vm22566_vm4 = vmmov %vm22564_vm0 }
 0xefb   : > { %v21563_v25 = vpop.permute.xlu0 %12488  ;;  %vm22568_vm6 = vmmov %vm22564_vm0 }
 0xefc   : > { %vm22569_vm7 = vmmov %vm22564_vm0 }
 0xefd   : > { %11836 = vmatpush1.msra.mxu0 %v11589_v36  ;;  %v16699_v36 = vunpack.i.h.bf16 %v21490_v33  ;;  %vm22570_vm9 = vmmov %vm22564_vm0 }
 0xefe   : > { %v16752_v58 = vpop.permute.xlu1 %16751  ;;  %15486 = vmatprep.subr.bf16.mxu0 %v15485_v59  ;;  %14487 = vmatmul.mubr.msk.f32.vlgmr.msra.gmra.mrb[16].mxu0 %vm9808_vm3, %v21505_v28  ;;  %v21598_v28 = vld [vmem:[%s21917_s9 + $0x28] sm:$0xff]  ;;  %v16698_v59 = vunpack.i.l.bf16 %v21490_v33  ;;  %v12070_v33 = vsel %vm2430_vm13, %v21465_v8, %v21383_v57  ;;  %v12069_v57 = vsel %vm2430_vm13, %v21321_v22, %v21465_v8  ;;  %vm22571_vm2 = vmmov %vm22564_vm0 }
 0xeff   : > { %v21581_v55 = vpop.permute.xlu0 %16741  ;;  %15488 = vmatpush1.bf16.msra.mxu0 %v15487_v7  ;;  %12162 = vmatprep.mubr.f32.mxu0 %v21159_v56  ;;  %v16754_v19 = vunpack.i.h.bf16 %v16752_v58  ;;  %v16753_v44 = vunpack.i.l.bf16 %v16752_v58  ;;  %vm22572_vm8 = vmmov %vm22564_vm0 }
 0xf00   : > { %12102 = vmatprep.subr.mxu0 %v12064_v45  ;;  %v12067_v45 = vsel %vm2430_vm13, %v21294_v62, %v21442_v37  ;;  %v12501_v37 = vsel %vm22562_vm14, %v16698_v59, %v16699_v36  ;;  %vm22573_vm11 = vmmov %vm22564_vm0 }
 0xf01   : > { %v12060_v14 = vsel %vm2430_vm13, %v16753_v44, %v16754_v19  ;;  %v12059_v43 = vsel %vm2430_vm13, %v16669_v11, %v16753_v44  ;;  %v16709_v44 = vunpack.i.h.bf16 %v21423_v2  ;;  %vm22574_vm12 = vmmov %vm22564_vm0 }
 0xf02   : > { %v21602_v5 = vpop.permute.xlu1 %16756  ;;  %v15493_v16 = vpack.c.bf16 %v12060_v14, %v12052_v52  ;;  %v15495_v60 = vpack.c.bf16 %v12059_v43, %v12051_v32  ;;  %vm22575_vm10 = vmmov %vm22564_vm0 }
 0xf03   : > { %v21600_v39 = vpop.permute.xlu0 %12492  ;;  %12103 = vmatpush1.msra.mxu0 %v12063_v1  ;;  %v12509_v9 = vsel %vm22565_vm1, %v16708_v31, %v16709_v44  ;;  %vm22576_vm14 = vmmov %vm22564_vm0 }
 0xf04   : > { %15490 = vmatprep.subr.bf16.mxu0 %v15489_v23  ;;  %14489 = vmatmul.mubr.msk.f32.vlgmr.msra.gmra.mrb[18].mxu0 %vm9808_vm3, %v21598_v28  ;;  %v16724_v23 = vunpack.i.h.bf16 %v21523_v20  ;;  %v12517_v20 = vsel %vm22566_vm4, %v21467_v24, %v21535_v50  ;;  %vm22578_vm1 = vmmov %vm22564_vm0 }
 0xf05   : > { %15492 = vmatpush1.bf16.msra.mxu0 %v22561_v35  ;;  %12233 = vmatprep.mubr.f32.mxu0 %v21159_v56  ;;  %v15501_v35 = vpack.c.bf16 %v12509_v9, %v12501_v37  ;;  %vm22579_vm4 = vmmov %vm22564_vm0 }
 0xf06   : > { %v16767_v63 = vpop.permute.xlu1 %16766  ;;  %12173 = vmatprep.subr.mxu0 %v12066_v48  ;;  %v16719_v48 = vunpack.i.h.bf16 %v21444_v12 }
 0xf07   : > { %v21617_v21 = vpop.permute.xlu0 %12496  ;;  %v16769_v61 = vunpack.i.h.bf16 %v16767_v63  ;;  %v16768_v41 = vunpack.i.l.bf16 %v16767_v63  ;;  %v16718_v63 = vunpack.i.l.bf16 %v21444_v12  ;;  %v12510_v12 = vsel %vm22568_vm6, %v16709_v44, %v16723_v47  ;;  %vm22581_vm6 = vmmov %vm22564_vm0 }
 0xf09   : > { %12174 = vmatpush1.msra.mxu0 %v12065_v13  ;;  %v12062_v6 = vsel %vm2430_vm13, %v16768_v41, %v16769_v61  ;;  %v12061_v11 = vsel %vm2430_vm13, %v16754_v19, %v16768_v41  ;;  %v16713_v19 = vunpack.i.l.bf16 %v21507_v34  ;;  %v12508_v34 = vsel %vm22564_vm0, %v16714_v10, %v16708_v31  ;;  %vm22567_vm13 = vmmov %vm22564_vm0 }
 0xf0a   : > { %v21631_v42 = vpop.permute.xlu1 %16771  ;;  %15494 = vmatprep.subr.bf16.mxu0 %v15493_v16  ;;  %14490 = vmatmul.mubr.msk.f32.vlgmr.msra.gmra.mrb[20].mxu0 %vm9808_vm3, %v21598_v28  ;;  %v15497_v30 = vpack.c.bf16 %v12062_v6, %v12054_v53  ;;  %v15499_v54 = vpack.c.bf16 %v12061_v11, %v12053_v17  ;;  %v12511_v22 = vsel %vm22567_vm13, %v16723_v47, %v16724_v23  ;;  %v16734_v6 = vunpack.i.h.bf16 %v21548_v49  ;;  %vm22580_vm13 = vmmov %vm22564_vm0 }
 0xf0b   : > { %v21629_v38 = vpop.permute.xlu0 %16746  ;;  %15496 = vmatpush1.bf16.msra.mxu0 %v15495_v60  ;;  %12304 = vmatprep.mubr.f32.mxu0 %v21159_v56  ;;  %v12500_v2 = vsel %vm22563_vm15, %v16713_v19, %v16698_v59  ;;  %v12503_v15 = vsel %vm22569_vm7, %v16718_v63, %v16719_v48  ;;  %v12502_v32 = vsel %vm22570_vm9, %v16699_v36, %v16718_v63  ;;  %v16733_v11 = vunpack.i.l.bf16 %v21548_v49  ;;  %vm22577_vm15 = vmmov %vm22564_vm0 }
 0xf0c   : > { %12244 = vmatprep.subr.mxu0 %v12068_v18  ;;  %v15503_v14 = vpack.c.bf16 %v12508_v34, %v12500_v2  ;;  %v12516_v13 = vsel %vm22571_vm2, %v21509_v3, %v21467_v24  ;;  %v15505_v16 = vpack.c.bf16 %v12511_v22, %v12503_v15  ;;  %v15507_v60 = vpack.c.bf16 %v12510_v12, %v12502_v32  ;;  %vm22582_vm7 = vmmov %vm22564_vm0 }
 0xf0d   : > { %v12519_v18 = vsel %vm22572_vm8, %v21563_v25, %v21537_v26  ;;  %v16744_v36 = vunpack.i.h.bf16 %v21581_v55  ;;  %v16743_v59 = vunpack.i.l.bf16 %v21581_v55  ;;  %v12518_v10 = vsel %vm22577_vm15, %v21535_v50, %v21563_v25  ;;  %vm22583_vm9 = vmmov %vm22564_vm0 }
 0xf0e   : > { %v21647_v58 = vpop.permute.xlu1 %12937  ;;  %v12521_v50 = vsel %vm22579_vm4, %v21600_v39, %v21550_v27  ;;  %v16748_v47 = vunpack.i.l.bf16 %v21629_v38  ;;  %vm22584_vm2 = vcmask 916480   ;;  %v16774_v32 = vunpack.i.h.bf16 %v21631_v42 }
 0xf0f   : > { %v21645_v7 = vpop.permute.xlu0 %16761  ;;  %12245 = vmatpush1.msra.mxu0 %v12067_v45  ;;  %v12504_v45 = vsel %vm22576_vm14, %v16719_v48, %v16733_v11  ;;  %v12507_v25 = vsel %vm22580_vm13, %v16743_v59, %v16744_v36  ;;  %v12506_v55 = vsel %vm22581_vm6, %v16734_v6, %v16743_v59  ;;  %vm22585_vm8 = vmmov %vm22584_vm2 }
 0xf10   : > { %15498 = vmatprep.subr.bf16.mxu0 %v15497_v30  ;;  %14491 = vmatmul.mubr.msk.f32.vlgmr.msra.gmra.mrb[14].mxu0 %vm9808_vm3, %v21598_v28  ;;  %v16764_v48 = vunpack.i.h.bf16 %v21645_v7  ;;  %v16763_v63 = vunpack.i.l.bf16 %v21645_v7  ;;  %vm22589_vm14 = vmmov %vm22584_vm2 }
 0xf11   : > { %15500 = vmatpush1.bf16.msra.mxu0 %v15499_v54  ;;  %12375 = vmatprep.mubr.f32.mxu0 %v21159_v56  ;;  %v12505_v54 = vsel %vm22575_vm10, %v16733_v11, %v16734_v6  ;;  %vm22588_vm10 = vmmov %vm22564_vm0 }
 0xf12   : > { %v21663_v62 = vpop.permute.xlu1 %12935  ;;  %12315 = vmatprep.subr.mxu0 %v12070_v33  ;;  %v12953_v7 = vsel %vm22585_vm8, %v16763_v63, %v16748_v47  ;;  %vm22590_vm15 = vmmov %vm22584_vm2 }
 0xf13   : > { %v21661_v1 = vpop.permute.xlu0 %16776 }
 0xf14   : > { %v16779_v12 = vunpack.i.h.bf16 %v21661_v1 }
 0xf15   : > { %12316 = vmatpush1.msra.mxu0 %v12069_v57 }
 0xf16   : > { %v16787_v61 = vpop.permute.xlu1 %16786  ;;  %15502 = vmatprep.subr.bf16.mxu0 %v15501_v35  ;;  %14492 = vmatmul.mubr.msk.f32.vlgmr.msra.gmra.mrb[16].mxu0 %vm9808_vm3, %v21598_v28  ;;  %v21691_v28 = vld [vmem:[%s21917_s9 + $0x30] sm:$0xff]  ;;  %v12520_v35 = vsel %vm22582_vm7, %v21537_v26, %v21600_v39  ;;  %v12523_v26 = vsel %vm22583_vm9, %v21617_v21, %v21565_v0  ;;  %v12522_v0 = vsel %vm22588_vm10, %v21550_v27, %v21617_v21 }
 0xf17   : > { %v21677_v43 = vpop.permute.xlu0 %12939  ;;  %15504 = vmatpush1.bf16.msra.mxu0 %v15503_v14  ;;  %12615 = vmatprep.mubr.f32.mxu0 %v21159_v56  ;;  %v16789_v8 = vunpack.i.h.bf16 %v16787_v61  ;;  %v16788_v41 = vunpack.i.l.bf16 %v16787_v61  ;;  %v16759_v61 = vunpack.i.h.bf16 %v21602_v5 }
 0xf18   : > { %12555 = vmatprep.subr.mxu0 %v12517_v20  ;;  %v16758_v20 = vunpack.i.l.bf16 %v21602_v5  ;;  %v12970_v6 = vsel %vm22589_vm14, %v21647_v58, %v21677_v43 }
 0xf19   : > { %v12513_v24 = vsel %vm22573_vm11, %v16788_v41, %v16789_v8  ;;  %v12512_v3 = vsel %vm22574_vm12, %v16724_v23, %v16788_v41  ;;  %v16749_v23 = vunpack.i.h.bf16 %v21629_v38  ;;  %vm22586_vm11 = vmmov %vm22584_vm2 }
 0xf1a   : > { %v21695_v52 = vpop.permute.xlu1 %12943  ;;  %v15509_v19 = vpack.c.bf16 %v12513_v24, %v12505_v54  ;;  %v15511_v44 = vpack.c.bf16 %v12512_v3, %v12504_v45  ;;  %v12961_v5 = vsel %vm22586_vm11, %v16764_v48, %v16758_v20  ;;  %vm22587_vm12 = vmmov %vm22584_vm2 }
 0xf1b   : > { %v21693_v40 = vpop.permute.xlu0 %16781  ;;  %12556 = vmatpush1.msra.mxu0 %v12516_v13  ;;  %v12954_v38 = vsel %vm22584_vm2, %v16748_v47, %v16749_v23  ;;  %v12962_v41 = vsel %vm22587_vm12, %v16758_v20, %v16759_v61  ;;  %v16773_v13 = vunpack.i.l.bf16 %v21631_v42 }
 0xf1c   : > { %15506 = vmatprep.subr.bf16.mxu0 %v15505_v16  ;;  %14494 = vmatmul.mubr.msk.f32.vlgmr.msra.gmra.mrb[18].mxu0 %vm9808_vm3, %v21691_v28  ;;  %v15517_v15 = vpack.c.bf16 %v12962_v41, %v12954_v38  ;;  %v15519_v16 = vpack.c.bf16 %v12961_v5, %v12953_v7  ;;  %v16783_v36 = vunpack.i.l.bf16 %v21693_v40 }
 0xf1d   : > { %15508 = vmatpush1.bf16.msra.mxu0 %v15507_v60  ;;  %12686 = vmatprep.mubr.f32.mxu0 %v21159_v56 }
 0xf1e   : > { %v16797_v17 = vpop.permute.xlu1 %16796  ;;  %12626 = vmatprep.subr.mxu0 %v12519_v18 }
 0xf1f   : > { %v21708_v53 = vpop.permute.xlu0 %12941  ;;  %v16799_v49 = vunpack.i.h.bf16 %v16797_v17  ;;  %v16798_v30 = vunpack.i.l.bf16 %v16797_v17 }
 0xf21   : > { %12627 = vmatpush1.msra.mxu0 %v12518_v10  ;;  %v12515_v37 = vsel %vm22564_vm0, %v16798_v30, %v16799_v49  ;;  %v12514_v2 = vsel %vm22578_vm1, %v16789_v8, %v16798_v30  ;;  %v16778_v8 = vunpack.i.l.bf16 %v21661_v1  ;;  %vm22591_vm0 = vmmov %vm22584_vm2  ;;  %v16784_v30 = vunpack.i.h.bf16 %v21693_v40 }
 0xf22   : > { %v21722_v33 = vpop.permute.xlu1 %12947  ;;  %15510 = vmatprep.subr.bf16.mxu0 %v15509_v19  ;;  %14495 = vmatmul.mubr.msk.f32.vlgmr.msra.gmra.mrb[20].mxu0 %vm9808_vm3, %v21691_v28  ;;  %v15513_v34 = vpack.c.bf16 %v12515_v37, %v12507_v25  ;;  %v15515_v9 = vpack.c.bf16 %v12514_v2, %v12506_v55  ;;  %vm22592_vm1 = vmmov %vm22591_vm0 }
 0xf23   : > { %v21720_v31 = vpop.permute.xlu0 %16791  ;;  %15512 = vmatpush1.bf16.msra.mxu0 %v15511_v44  ;;  %12757 = vmatprep.mubr.f32.mxu0 %v21159_v56  ;;  %v12964_v27 = vsel %vm22590_vm15, %v16778_v8, %v16779_v12  ;;  %v12963_v21 = vsel %vm22591_vm0, %v16759_v61, %v16778_v8  ;;  %v12956_v18 = vsel %vm22592_vm1, %v16773_v13, %v16774_v32  ;;  %vm22593_vm4 = vmmov %vm22591_vm0 }
 0xf24   : > { %12697 = vmatprep.subr.mxu0 %v12521_v50  ;;  %v12955_v17 = vsel %vm22593_vm4, %v16749_v23, %v16773_v13  ;;  %vm22594_vm13 = vmmov %vm22591_vm0  ;;  %v15521_v24 = vpack.c.bf16 %v12964_v27, %v12956_v18  ;;  %v16794_v19 = vunpack.i.h.bf16 %v21720_v31  ;;  %v16793_v44 = vunpack.i.l.bf16 %v21720_v31 }
 0xf25   : > { %v15523_v49 = vpack.c.bf16 %v12963_v21, %v12955_v17  ;;  %vm22595_vm6 = vmmov %vm22591_vm0 }
 0xf26   : > { %v21743_v14 = vpop.permute.xlu1 %12951  ;;  %v12972_v54 = vsel %vm22595_vm6, %v21708_v53, %v21695_v52  ;;  %vm22596_vm7 = vmmov %vm22591_vm0  ;;  %v12959_v48 = vsel %vm22591_vm0, %v16784_v30, %v16793_v44 }
 0xf27   : > { %v21736_v57 = vpop.permute.xlu0 %12945  ;;  %12698 = vmatpush1.msra.mxu0 %v12520_v35  ;;  %vm22597_vm9 = vmmov %vm22591_vm0 }
 0xf28   : > { %15514 = vmatprep.subr.bf16.mxu0 %v15513_v34  ;;  %14496 = vmatmul.mubr.msk.f32.vlgmr.msra.gmra.mrb[14].mxu0 %vm9808_vm3, %v21691_v28  ;;  %vm22598_vm2 = vmmov %vm22591_vm0 }
 0xf29   : > { %15516 = vmatpush1.bf16.msra.mxu0 %v15515_v9  ;;  %12828 = vmatprep.mubr.f32.mxu0 %v21159_v56  ;;  %v12957_v10 = vsel %vm22598_vm2, %v16774_v32, %v16783_v36  ;;  %vm22599_vm8 = vmmov %vm22591_vm0 }
 0xf2a   : > { %12768 = vmatprep.subr.mxu0 %v12523_v26  ;;  %v21758_v22 = vpop.permute.xlu1 %16806  ;;  %v12958_v2 = vsel %vm22599_vm8, %v16783_v36, %v16784_v30  ;;  %vm22600_vm11 = vmmov %vm22591_vm0 }
 0xf2b   : > { %v21752_v39 = vpop.permute.xlu0 %12949  ;;  %v12971_v50 = vsel %vm22600_vm11, %v21677_v43, %v21708_v53  ;;  %vm22601_vm12 = vmmov %vm22591_vm0  ;;  %v16808_v8 = vunpack.i.l.bf16 %v21758_v22 }
 0xf2c   : > { %vm22602_vm10 = vmmov %vm22591_vm0 }
 0xf2d   : > { %12769 = vmatpush1.msra.mxu0 %v12522_v0  ;;  %vm22603_vm14 = vmmov %vm22591_vm0 }
 0xf2e   : > { %15518 = vmatprep.subr.bf16.mxu0 %v15517_v15  ;;  %14497 = vmatmul.mubr.msk.f32.vlgmr.msra.gmra.mrb[16].mxu0 %vm9808_vm3, %v21691_v28  ;;  %v16817_v1 = vpop.permute.xlu1 %16816  ;;  %v21782_v28 = vld [vmem:[%s21917_s9 + $0x38] sm:$0xff]  ;;  %v12974_v43 = vsel %vm22603_vm14, %v21736_v57, %v21722_v33  ;;  %vm22604_vm15 = vmmov %vm22591_vm0 }
 0xf2f   : > { %v21768_v60 = vpop.permute.xlu0 %16801  ;;  %15520 = vmatpush1.bf16.msra.mxu0 %v15519_v16  ;;  %13068 = vmatprep.mubr.f32.mxu0 %v21159_v56  ;;  %v16819_v42 = vunpack.i.h.bf16 %v16817_v1  ;;  %v16818_v11 = vunpack.i.l.bf16 %v16817_v1  ;;  %v12969_v56 = vsel %vm22594_vm13, %v21663_v62, %v21647_v58  ;;  %v21797_v58 = vld [vmem:[#allocation2 + $0x110] sm:$0xff]  ;;  %v12960_v35 = vsel %vm22604_vm15, %v16793_v44, %v16794_v19  ;;  %vm22605_vm1 = vmmov %vm22591_vm0 }
 0xf30   : > { %13008 = vmatprep.subr.mxu0 %v12970_v6  ;;  %v16804_v61 = vunpack.i.h.bf16 %v21768_v60  ;;  %v16803_v20 = vunpack.i.l.bf16 %v21768_v60  ;;  %v12973_v38 = vsel %vm22605_vm1, %v21695_v52, %v21736_v57  ;;  %vm22606_vm4 = vmmov %vm22591_vm0  ;;  %vm22607_vm13 = vcmask 908288  }
 0xf31   : > { %v12966_v62 = vsel %vm22596_vm7, %v16818_v11, %v16819_v42  ;;  %v12965_v40 = vsel %vm22597_vm9, %v16779_v12, %v16818_v11  ;;  %v16809_v12 = vunpack.i.h.bf16 %v21758_v22  ;;  %v12976_v15 = vsel %vm22606_vm4, %v21752_v39, %v21743_v14  ;;  %vm22608_vm6 = vmmov %vm22607_vm13 }
 0xf32   : > { %v21790_v59 = vpop.permute.xlu1 %16821  ;;  %v15525_v34 = vpack.c.bf16 %v12966_v62, %v12958_v2  ;;  %v15527_v23 = vpack.c.bf16 %v12965_v40, %v12957_v10  ;;  %v13407_v52 = vsel %vm22607_vm13, %v16803_v20, %v16804_v61  ;;  %vm22609_vm7 = vmmov %vm22608_vm6 }
 0xf33   : > { %v16812_v3 = vpop.permute.xlu0 %16811  ;;  %13009 = vmatpush1.msra.mxu0 %v12969_v56  ;;  %vm22610_vm9 = vmmov %vm22608_vm6  ;;  %v16824_v27 = vunpack.i.h.bf16 %v21790_v59  ;;  %v16823_v21 = vunpack.i.l.bf16 %v21790_v59 }
 0xf34   : > { %15522 = vmatprep.subr.bf16.mxu0 %v15521_v24  ;;  %14499 = vmatmul.mubr.msk.f32.vlgmr.msra.gmra.mrb[18].mxu0 %vm9808_vm3, %v21782_v28  ;;  %v16814_v7 = vunpack.i.h.bf16 %v16812_v3  ;;  %v16813_v5 = vunpack.i.l.bf16 %v16812_v3  ;;  %v13415_v16 = vsel %vm22610_vm9, %v16808_v8, %v16809_v12  ;;  %vm22611_vm2 = vmmov %vm22591_vm0  ;;  %v14503_v24 = vld [vmem:[%s21917_s9 + $0x40] sm:$0xff] }
 0xf35   : > { %15524 = vmatpush1.bf16.msra.mxu0 %v15523_v49  ;;  %13139 = vmatprep.mubr.f32.mxu0 %v21797_v58  ;;  %v12975_v60 = vsel %vm22611_vm2, %v21722_v33, %v21752_v39  ;;  %v15533_v1 = vpack.c.bf16 %v13415_v16, %v13407_v52  ;;  %vm22612_vm8 = vmmov %vm22608_vm6 }
 0xf36   : > { %13079 = vmatprep.subr.mxu0 %v12972_v54  ;;  %v16832_v37 = vpop.permute.xlu1 %16831  ;;  %v13406_v57 = vsel %vm22608_vm6, %v16813_v5, %v16803_v20  ;;  %v13414_v22 = vsel %vm22609_vm7, %v16814_v7, %v16808_v8  ;;  %vm22613_vm11 = vmmov %vm22608_vm6 }
 0xf37   : > { %v21802_v45 = vpop.permute.xlu0 %16826  ;;  %v16834_v25 = vunpack.i.h.bf16 %v16832_v37  ;;  %v16833_v55 = vunpack.i.l.bf16 %v16832_v37  ;;  %v15535_v6 = vpack.c.bf16 %v13414_v22, %v13406_v57  ;;  %vm22616_vm14 = vmmov %vm22608_vm6 }
 0xf38   : > { %v16829_v32 = vunpack.i.h.bf16 %v21802_v45  ;;  %v16828_v13 = vunpack.i.l.bf16 %v21802_v45  ;;  %v13408_v3 = vsel %vm22616_vm14, %v16804_v61, %v16823_v21  ;;  %vm22617_vm15 = vmmov %vm22608_vm6 }
 0xf39   : > { %13080 = vmatpush1.msra.mxu0 %v12971_v50  ;;  %v12967_v47 = vsel %vm22601_vm12, %v16819_v42, %v16833_v55  ;;  %v12968_v31 = vsel %vm22602_vm10, %v16833_v55, %v16834_v25  ;;  %vm22614_vm12 = vmmov %vm22608_vm6 }
 0xf3a   : > { %15526 = vmatprep.subr.bf16.mxu0 %v15525_v34  ;;  %14500 = vmatmul.mubr.msk.f32.vlgmr.msra.gmra.mrb[20].mxu0 %vm9808_vm3, %v21782_v28  ;;  %v13391_v53 = vpop.permute.xlu1 %13390  ;;  %v15529_v63 = vpack.c.bf16 %v12968_v31, %v12960_v35  ;;  %v15531_v26 = vpack.c.bf16 %v12967_v47, %v12959_v48  ;;  %v13417_v33 = vsel %vm22613_vm11, %v16828_v13, %v16829_v32  ;;  %vm22615_vm10 = vmmov %vm22608_vm6 }
 0xf3b   : > { %v21814_v9 = vpop.permute.xlu0 %13392  ;;  %15528 = vmatpush1.bf16.msra.mxu0 %v15527_v23  ;;  %13210 = vmatprep.mubr.f32.mxu0 %v21797_v58  ;;  %v13416_v39 = vsel %vm22614_vm12, %v16809_v12, %v16828_v13  ;;  %vm22618_vm0 = vmmov %vm22608_vm6 }
 0xf3c   : > { %13150 = vmatprep.subr.mxu0 %v12974_v43  ;;  %v13423_v11 = vsel %vm22612_vm8, %v13391_v53, %v21814_v9  ;;  %v15539_v36 = vpack.c.bf16 %v13416_v39, %v13408_v3  ;;  %vm22619_vm1 = vmmov %vm22618_vm0 }
 0xf3d   : > { %vm22620_vm4 = vmmov %vm22618_vm0 }
 0xf3e   : > { %vm22621_vm13 = vmmov %vm22618_vm0 }
 0xf3f   : > { %13151 = vmatpush1.msra.mxu0 %v12973_v38  ;;  %v21830_v41 = vpop.permute.xlu0 %16836  ;;  %vm22622_vm6 = vmmov %vm22618_vm0 }
 0xf40   : > { %15530 = vmatprep.subr.bf16.mxu0 %v15529_v63  ;;  %14501 = vmatmul.mubr.msk.f32.vlgmr.msra.gmra.mrb[14].mxu0 %vm9808_vm3, %v21782_v28  ;;  %v13389_v0 = vpop.permute.xlu1 %13388  ;;  %v16839_v59 = vunpack.i.h.bf16 %v21830_v41  ;;  %v16838_v54 = vunpack.i.l.bf16 %v21830_v41  ;;  %vm22623_vm7 = vmmov %vm22618_vm0 }
 0xf41   : > { %15532 = vmatpush1.bf16.msra.mxu0 %v15531_v26  ;;  %13281 = vmatprep.mubr.f32.mxu0 %v21797_v58  ;;  %v13422_v49 = vsel %vm22617_vm15, %v13389_v0, %v13391_v53  ;;  %vm22624_vm9 = vmmov %vm22618_vm0 }
 0xf42   : > { %13221 = vmatprep.subr.mxu0 %v12976_v15  ;;  %v13411_v2 = vsel %vm22621_vm13, %v16838_v54, %v16839_v59  ;;  %v13410_v50 = vsel %vm22622_vm6, %v16824_v27, %v16838_v54  ;;  %vm22625_vm2 = vmmov %vm22618_vm0 }
 0xf43   : > { %v13395_v42 = vpop.permute.xlu0 %13394  ;;  %vm22626_vm8 = vmmov %vm22618_vm0 }
 0xf44   : > { %v13397_v14 = vpop.permute.xlu1 %13396  ;;  %v13424_v25 = vsel %vm22623_vm7, %v21814_v9, %v13395_v42  ;;  %vm22627_vm11 = vmmov %vm22618_vm0 }
 0xf45   : > { %13222 = vmatpush1.msra.mxu0 %v12975_v60  ;;  %v13425_v45 = vsel %vm22618_vm0, %v13395_v42, %v13397_v14  ;;  %vm22628_vm12 = vmmov %vm22618_vm0  ;;  %v13757_v60 = vld [vmem:[%s22632_s18] sm:$0x7] }
 0xf46   : > { %15534 = vmatprep.subr.bf16.mxu0 %v15533_v1  ;;  %14502 = vmatmul.mubr.msk.f32.vlgmr.msra.gmra.mrb[16].mxu0 %vm9808_vm3, %v21782_v28  ;;  %v13409_v28 = vsel %vm22615_vm10, %v16823_v21, %v16824_v27  ;;  %vm22629_vm10 = vmmov %vm22618_vm0 }
 0xf47   : > { %15536 = vmatpush1.bf16.msra.mxu0 %v15535_v6  ;;  %13521 = vmatprep.mubr.f32.mxu0 %v21797_v58  ;;  %v15537_v30 = vpack.c.bf16 %v13417_v33, %v13409_v28  ;;  %v16842_v62 = vpop.permute.xlu0 %16841  ;;  %vm22630_vm14 = vmmov %vm22618_vm0 }
 0xf48   : > { %13461 = vmatprep.subr.mxu0 %v13423_v11  ;;  %v16847_v18 = vpop.permute.xlu1 %16846  ;;  %v16844_v34 = vunpack.i.h.bf16 %v16842_v62  ;;  %v16843_v23 = vunpack.i.l.bf16 %v16842_v62  ;;  %vm22631_vm15 = vmmov %vm22618_vm0 }
 0xf49   : > { %v16849_v17 = vunpack.i.h.bf16 %v16847_v18  ;;  %v16848_v56 = vunpack.i.l.bf16 %v16847_v18 }
 0xf4a   : > { %v13413_v9 = vsel %vm22627_vm11, %v16843_v23, %v16844_v34  ;;  %v13412_v63 = vsel %vm22628_vm12, %v16839_v59, %v16843_v23 }
 0xf4b   : > { %13462 = vmatpush1.msra.mxu0 %v13422_v49  ;;  %v13419_v10 = vsel %vm22619_vm1, %v16848_v56, %v16849_v17  ;;  %v13418_v19 = vsel %vm22620_vm4, %v16829_v32, %v16848_v56 }
 0xf4c   : > { %14504 = vmatmul.mubr.msk.f32.vlgmr.msra.gmra.mrb[18].mxu0 %vm9808_vm3, %v14503_v24  ;;  %15538 = vmatprep.subr.bf16.mxu0 %v15537_v30  ;;  %v15541_v55 = vpack.c.bf16 %v13419_v10, %v13411_v2  ;;  %v15543_v47 = vpack.c.bf16 %v13418_v19, %v13410_v50  ;;  %v13399_v31 = vpop.permute.xlu0 %13398 }
 0xf4d   : > { %15540 = vmatpush1.bf16.msra.mxu0 %v15539_v36  ;;  %v16852_v40 = vpop.permute.xlu1 %16851  ;;  %13592 = vmatprep.mubr.f32.mxu0 %v21797_v58  ;;  %v13426_v61 = vsel %vm22629_vm10, %v13397_v14, %v13399_v31 }
 0xf4e   : > { %13532 = vmatprep.subr.mxu0 %v13425_v45  ;;  %v16854_v44 = vunpack.i.h.bf16 %v16852_v40  ;;  %v16853_v37 = vunpack.i.l.bf16 %v16852_v40 }
 0xf50   : > { %v13421_v35 = vsel %vm22625_vm2, %v16853_v37, %v16854_v44  ;;  %v13420_v48 = vsel %vm22626_vm8, %v16849_v17, %v16853_v37  ;;  %v13403_v7 = vpop.permute.xlu0 %13402 }
 0xf51   : > { %13533 = vmatpush1.msra.mxu0 %v13424_v25  ;;  %v13401_v43 = vpop.permute.xlu1 %13400  ;;  %v15545_v26 = vpack.c.bf16 %v13421_v35, %v13413_v9  ;;  %v15547_v38 = vpack.c.bf16 %v13420_v48, %v13412_v63 }
 0xf52   : > { %14505 = vmatmul.mubr.msk.f32.vlgmr.msra.gmra.mrb[20].mxu0 %vm9808_vm3, %v14503_v24  ;;  %15542 = vmatprep.subr.bf16.mxu0 %v15541_v55  ;;  %v13427_v53 = vsel %vm22624_vm9, %v13399_v31, %v13401_v43  ;;  %v13428_v12 = vsel %vm22631_vm15, %v13401_v43, %v13403_v7 }
 0xf53   : > { %15544 = vmatpush1.bf16.msra.mxu0 %v15543_v47  ;;  %13663 = vmatprep.mubr.f32.mxu0 %v21797_v58 }
 0xf54   : > { %13603 = vmatprep.subr.mxu0 %v13427_v53 }
 0xf55   : > { %v13405_v20 = vpop.permute.xlu1 %13404 }
 0xf56   : > { %v13429_v5 = vsel %vm22630_vm14, %v13403_v7, %v13405_v20 }
 0xf57   : > { %13604 = vmatpush1.msra.mxu0 %v13426_v61 }
 0xf58   : > { %14506 = vmatmul.mubr.msk.f32.vlgmr.msra.gmra.mrb[14].mxu0 %vm9808_vm3, %v14503_v24  ;;  %15546 = vmatprep.subr.bf16.mxu0 %v15545_v26 }
 0xf59   : > { %15548 = vmatpush1.bf16.msra.mxu0 %v15547_v38  ;;  %13734 = vmatprep.mubr.f32.mxu0 %v21797_v58 }
 0xf5a   : > { %13674 = vmatprep.subr.mxu0 %v13429_v5 }
 0xf5d   : > { %13675 = vmatpush1.msra.mxu0 %v13428_v12 }
 0xf5e   : > { %14507 = vmatmul.mubr.msk.f32.vlgmr.msra.gmra.mrb[16].mxu0 %vm9808_vm3, %v14503_v24 }
 0xf61   : > { %v9806_v8 = vpop.permute.xlu0 %9805 }
 0xf62   : > { %v9879_v41 = vadd.f32 %v21447_v51, %v9806_v8  ;;  %v9881_v15 = vadd.f32 %v21455_v4, %v9806_v8  ;;  %v9950_v16 = vadd.f32 %v21460_v29, %v9806_v8  ;;  %v9952_v1 = vadd.f32 %v21475_v46, %v9806_v8 }
 0xf66   : > { %v13762_v49 = vpop.permute.xlu1 %13761 }
0x101f   : > { %v13523_v0 = vpop.f32.mrb[18].mxu0 }
0x1020   : > { %v15572_v52 = vadd.f32 %v13523_v0, %v9879_v41  ;;  %v13525_v57 = vpop.f32.mrb[19].mxu0 }
0x1021   : > { %v15574_v22 = vadd.f32 %v13525_v57, %v9881_v15 }
0x1022   : > { %v13749_v13 = vmax.f32 %v15572_v52, 0.0 }
0x1023   : > { %v13750_v32 = vmax.f32 %v15574_v22, 0.0 }
0x1025   : > { %v13594_v14 = vpop.f32.mrb[20].mxu0  ;;  %13767 = vmatprep.subr.mxu1 %v13750_v32 }
0x1026   : > { %v15576_v6 = vadd.f32 %v13594_v14, %v9950_v16  ;;  %v13596_v51 = vpop.f32.mrb[21].mxu0  ;;  %13768 = vmatpush1.msra.mxu1 %v13749_v13 }
0x1027   : > { %v15578_v27 = vadd.f32 %v13596_v51, %v9952_v1  ;;  %14508 = vmatmul.mubr.msk.f32.vlgmr.msra.gmra.mrb[42].mxu1 %vm5090_vm5, %v13757_v60 }
0x1028   : > { %13902 = vmatprep.mubr.f32.mxu1 %v21797_v58  ;;  %v13751_v21 = vmax.f32 %v15576_v6, 0.0 }
0x1029   : > { %v13752_v4 = vmax.f32 %v15578_v27, 0.0 }
0x102b   : > { %v13665_v42 = vpop.f32.mrb[14].mxu0  ;;  %13838 = vmatprep.subr.mxu1 %v13752_v4 }
0x102c   : > { %v15579_v29 = vadd.f32 %v13665_v42, %v9806_v8  ;;  %v13667_v11 = vpop.f32.mrb[15].mxu0  ;;  %13839 = vmatpush1.msra.mxu1 %v13751_v21 }
0x102d   : > { %v15580_v33 = vadd.f32 %v13667_v11, %v9806_v8  ;;  %14509 = vmatmul.mubr.msk.f32.vlgmr.msra.gmra.mrb[44].mxu1 %vm5090_vm5, %v13757_v60 }
0x102e   : > { %13973 = vmatprep.mubr.f32.mxu1 %v21797_v58  ;;  %v13753_v39 = vmax.f32 %v15579_v29, 0.0 }
0x102f   : > { %v13754_v46 = vmax.f32 %v15580_v33, 0.0 }
0x1031   : > { %v13736_v18 = vpop.f32.mrb[16].mxu0  ;;  %13909 = vmatprep.subr.mxu1 %v13754_v46 }
0x1032   : > { %v15581_v17 = vadd.f32 %v13736_v18, %v9806_v8  ;;  %v13738_v56 = vpop.f32.mrb[17].mxu0  ;;  %13910 = vmatpush1.msra.mxu1 %v13753_v39 }
0x1033   : > { %v15582_v24 = vadd.f32 %v13738_v56, %v9806_v8  ;;  %14510 = vmatmul.mubr.msk.f32.vlgmr.msra.gmra.mrb[46].mxu1 %vm5090_vm5, %v13757_v60 }
0x1034   : > { %14044 = vmatprep.mubr.f32.mxu1 %v21797_v58  ;;  %v13755_v3 = vmax.f32 %v15581_v17, 0.0 }
0x1035   : > { %v13756_v28 = vmax.f32 %v15582_v24, 0.0 }
0x1037   : > { %13980 = vmatprep.subr.mxu1 %v13756_v28 }
0x1038   : > { %13981 = vmatpush1.msra.mxu1 %v13755_v3 }
0x1039   : > { %14511 = vmatmul.mubr.msk.f32.vlgmr.msra.gmra.mrb[48].mxu1 %vm5090_vm5, %v13757_v60 }
0x10fa   : > { %v13833_v30 = vpop.f32.mrb[42].mxu1 }
0x10fb   : > { %v13834_v36 = vadd.f32 %v13833_v30, %v13762_v49  ;;  %v13835_v59 = vpop.f32.mrb[43].mxu1 }
0x10fc   : > { %v13836_v54 = vadd.f32 %v13835_v59, %v13762_v49 }
0x10fe   : > { %v14053_v62 = vcombine.low %v13834_v36, %v13836_v54 }
0x1100   : > { %14055 = vst [vmem:[%s585_s27] sm:$0x77] %v14053_v62  ;;  %v13904_v40 = vpop.f32.mrb[44].mxu1 }
0x1101   : > { %v13905_v58 = vadd.f32 %v13904_v40, %v13762_v49  ;;  %v13906_v45 = vpop.f32.mrb[45].mxu1 }
0x1102   : > { %v13907_v10 = vadd.f32 %v13906_v45, %v13762_v49 }
0x1104   : > { %v14058_v19 = vcombine.low %v13905_v58, %v13907_v10 }
0x1106   : > { %14512 = vst [vmem:[%s585_s27 + $0x8] sm:$0x77] %v14058_v19  ;;  %v13975_v44 = vpop.f32.mrb[46].mxu1 }
0x1107   : > { %v13976_v37 = vadd.f32 %v13975_v44, %v13762_v49  ;;  %v13977_v2 = vpop.f32.mrb[47].mxu1 }
0x1108   : > { %v13978_v50 = vadd.f32 %v13977_v2, %v13762_v49 }
0x110a   : > { %v14064_v25 = vcombine.low %v13976_v37, %v13978_v50 }
0x110c   : > { %14513 = vst [vmem:[%s585_s27 + $0x10] sm:$0x77] %v14064_v25  ;;  %v14046_v55 = vpop.f32.mrb[48].mxu1 }
0x110d   : > { %v14047_v34 = vadd.f32 %v14046_v55, %v13762_v49  ;;  %v14048_v23 = vpop.f32.mrb[49].mxu1 }
0x110e   : > { %v14049_v47 = vadd.f32 %v14048_v23, %v13762_v49 }
0x1110   : > { %v14070_v31 = vcombine.low %v14047_v34, %v14049_v47 }
0x1112   : > { %14514 = vst [vmem:[%s585_s27 + $0x18] sm:$0x77] %v14070_v31 }
0x1113 PF: > { %s29_s24 = sadd.s32 1, %s16950_s24  }
0x1114   : > { %p26_p2 = scmp.ge.s32.totalorder %s29_s24, 4  }
0x1116   :  { %28 = sbr.rel (!%p26_p2) target bundleno = 7 (0x7), region = 173 }
0x111d   :  { %14098 = vsyncpa [#allocation4], 1 }
0x111e   :  { %14100 = vsyncpa [#allocation4 + $0x1], 1 }
0x111f   :  { %14101 = vsyncpa [#allocation6], 1 }

</bundles_post_ra>
